<compile_context>
chip_gen: v7x
topology: tpu7x:2x2x1
jax: 0.10.0
libtpu: 0.0.40
codegen_flags: <defaults>
</compile_context>

<pallas_src>
import jax
import jax.numpy as jnp
from jax import lax
from jax.experimental import pallas as pl
from jax.experimental.pallas import tpu as pltpu

INPUT_VOCAB = 20
OUTPUT_VOCAB = 18
EMB = 8
ENC_HID = 16
DEC_HID = 16
VPAD = 128  # output vocab padded to one full lane width


# ------------------------------ fused kernel --------------------------------


def _seq2seq_kernel(
    tf_ref, trg_ref, embflat_ref,                                   # SMEM, SMEM, VMEM
    fwih_ref, fwhh_ref, fbih_ref, fbhh_ref,                         # enc fwd GRU
    bwih_ref, bwhh_ref, bbih_ref, bbhh_ref,                         # enc bwd GRU
    fcwf_ref, fcwb_ref, fcb_ref,                                    # enc fc
    attn_wh_ref, attn_we_f_ref, attn_we_b_ref, attn_b_ref, attn_v_ref,
    w_ie_ref, w_icf_ref, w_icb_ref, dwhh_ref, dbih_ref, dbhh_ref,   # dec GRU
    ow_h_ref, ow_cf_ref, ow_cb_ref, ow_e_ref, ob_ref,               # output proj
    out_ref,                                                        # [T, B, VPAD]
):
    f32 = jnp.float32
    T, B = trg_ref.shape
    SB = embflat_ref.shape[0]
    S = SB // B

    # ------------------------------ encoder ------------------------------
    emb = embflat_ref[...]                                           # [S*B, EMB]

    # Hoisted input-to-hidden projections: one M=S*B matmul per gate/direction.
    xpf = [jnp.dot(emb, fwih_ref[g], preferred_element_type=f32) + fbih_ref[g]
           for g in range(3)]                                        # each [S*B, He]
    xpb = [jnp.dot(emb, bwih_ref[g], preferred_element_type=f32) + bbih_ref[g]
           for g in range(3)]

    fwhh = [fwhh_ref[g] for g in range(3)]
    fbhh = [fbhh_ref[g] for g in range(3)]
    bwhh = [bwhh_ref[g] for g in range(3)]
    bbhh = [bbhh_ref[g] for g in range(3)]

    def gru_step(xp, h, whh, bhh):
        gh = [jnp.dot(h, whh[g], preferred_element_type=f32) + bhh[g] for g in range(3)]
        r = jax.nn.sigmoid(xp[0] + gh[0])
        z = jax.nn.sigmoid(xp[1] + gh[1])
        n = jnp.tanh(xp[2] + r * gh[2])
        return (1.0 - z) * n + z * h

    h_f = jnp.zeros((B, ENC_HID), f32)
    h_b = jnp.zeros((B, ENC_HID), f32)
    hf_list = [None] * S
    hb_list = [None] * S
    # Forward and backward recurrences interleaved (independent chains overlap).
    for i in range(S):
        sf = i
        sb = S - 1 - i
        xf = [xpf[g][sf * B:(sf + 1) * B] for g in range(3)]
        xb = [xpb[g][sb * B:(sb + 1) * B] for g in range(3)]
        h_f = gru_step(xf, h_f, fwhh, fbhh)
        h_b = gru_step(xb, h_b, bwhh, bbhh)
        hf_list[sf] = h_f
        hb_list[sb] = h_b

    # Initial decoder hidden = tanh(fc([h_fwd_final ; h_bwd_final])) (split matmuls).
    hidden = jnp.tanh(
        jnp.dot(h_f, fcwf_ref[...], preferred_element_type=f32)
        + jnp.dot(h_b, fcwb_ref[...], preferred_element_type=f32)
        + fcb_ref[...])                                              # [B, Hd]

    # Hoisted attention encoder projection: two batched M=S*B matmuls.
    encf = jnp.concatenate(hf_list, axis=0)                          # [S*B, He]
    encb = jnp.concatenate(hb_list, axis=0)
    eproj_flat = (jnp.dot(encf, attn_we_f_ref[...], preferred_element_type=f32)
                  + jnp.dot(encb, attn_we_b_ref[...], preferred_element_type=f32)
                  + attn_b_ref[...])                                 # [S*B, Hd]
    eproj = [eproj_flat[s * B:(s + 1) * B] for s in range(S)]        # each [B, Hd]

    # ------------------------------ decoder ------------------------------
    attn_wh = attn_wh_ref[...]
    v_row = attn_v_ref[...]                                          # [1, Hd]
    w_ie = [w_ie_ref[g] for g in range(3)]                           # [VPAD, Hd] (emb folded)
    w_icf = [w_icf_ref[g] for g in range(3)]
    w_icb = [w_icb_ref[g] for g in range(3)]
    dwhh = [dwhh_ref[g] for g in range(3)]
    dbih = [dbih_ref[g] for g in range(3)]
    dbhh = [dbhh_ref[g] for g in range(3)]
    ow_h = ow_h_ref[...]
    ow_cf = ow_cf_ref[...]
    ow_cb = ow_cb_ref[...]
    ow_e = ow_e_ref[...]
    ob = ob_ref[...]

    lane = lax.broadcasted_iota(jnp.int32, (B, VPAD), 1)
    row = lax.broadcasted_iota(jnp.int32, (B, VPAD), 0)

    def trg_onehot(t):
        # Build one-hot of trg[t] from SMEM int32 scalars (no gather, no XLA one_hot).
        oh = jnp.zeros((B, VPAD), f32)
        for b in range(B):
            oh = jnp.where((row == b) & (lane == trg_ref[t, b]), 1.0, oh)
        return oh

    # outputs[0] stays zero, as in the reference (zero only that row).
    out_ref[0] = jnp.zeros((B, VPAD), f32)

    inp_oh = trg_onehot(0)                                           # input = trg[0]

    for t in range(1, T):
        # ---- Bahdanau attention over the S encoder positions (exact softmax) ----
        hproj = jnp.dot(hidden, attn_wh, preferred_element_type=f32)  # [B, Hd]
        scores = []
        for s in range(S):
            e_s = jnp.tanh(eproj[s] + hproj)                          # [B, Hd]
            scores.append(jnp.sum(e_s * v_row, axis=-1, keepdims=True))  # [B, 1]
        m = scores[0]
        for s in range(1, S):
            m = jnp.maximum(m, scores[s])
        exps = [jnp.exp(sc - m) for sc in scores]
        denom = exps[0]
        for s in range(1, S):
            denom = denom + exps[s]
        inv = 1.0 / denom                                             # exact division
        ctx_f = (exps[0] * inv) * hf_list[0]                          # [B, He]
        ctx_b = (exps[0] * inv) * hb_list[0]
        for s in range(1, S):
            a_s = exps[s] * inv
            ctx_f = ctx_f + a_s * hf_list[s]
            ctx_b = ctx_b + a_s * hb_list[s]

        # ---- GRU step: embedding folded into w_ie, [emb;ctx] concat split ----
        def gi(g):
            return (jnp.dot(inp_oh, w_ie[g], preferred_element_type=f32)
                    + jnp.dot(ctx_f, w_icf[g], preferred_element_type=f32)
                    + jnp.dot(ctx_b, w_icb[g], preferred_element_type=f32)
                    + dbih[g])

        def gh(g):
            return jnp.dot(hidden, dwhh[g], preferred_element_type=f32) + dbhh[g]

        r = jax.nn.sigmoid(gi(0) + gh(0))
        z = jax.nn.sigmoid(gi(1) + gh(1))
        n = jnp.tanh(gi(2) + r * gh(2))
        h_new = (1.0 - z) * n + z * hidden

        # ---- output projection (lane-dense VPAD columns, concat split) ----
        logits = (jnp.dot(h_new, ow_h, preferred_element_type=f32)
                  + jnp.dot(ctx_f, ow_cf, preferred_element_type=f32)
                  + jnp.dot(ctx_b, ow_cb, preferred_element_type=f32)
                  + jnp.dot(inp_oh, ow_e, preferred_element_type=f32)
                  + ob)                                               # [B, VPAD]
        out_ref[t] = logits

        # ---- greedy argmax (first occurrence) -> one-hot ----
        valid = lane < OUTPUT_VOCAB
        masked = jnp.where(valid, logits, jnp.full_like(logits, -1e30))
        mx = jnp.max(masked, axis=-1, keepdims=True)
        idx_cand = jnp.where((masked == mx) & valid, lane, VPAD)
        amax = jnp.min(idx_cand, axis=-1, keepdims=True)              # [B, 1]
        top1_oh = (lane == amax).astype(f32)

        # ---- teacher forcing (precomputed 0/1 mask in SMEM) vs greedy feedback ----
        tf_f = tf_ref[t].astype(f32)
        inp_oh = tf_f * trg_onehot(t) + (1.0 - tf_f) * top1_oh
        hidden = h_new


def _seq2seq_pallas(p, tf_mask, trg, emb_flat):
    T, B = trg.shape
    smem = pl.BlockSpec(memory_space=pltpu.MemorySpace.SMEM)
    vmem = pl.BlockSpec(memory_space=pltpu.MemorySpace.VMEM)
    weights = (p["enc_f_wih"], p["enc_f_whh"], p["enc_f_bih"], p["enc_f_bhh"],
               p["enc_b_wih"], p["enc_b_whh"], p["enc_b_bih"], p["enc_b_bhh"],
               p["enc_fc_wf"], p["enc_fc_wb"], p["enc_fc_b"],
               p["attn_wh"], p["attn_we_f"], p["attn_we_b"], p["attn_b"], p["attn_v"],
               p["dec_w_ie"], p["dec_w_icf"], p["dec_w_icb"],
               p["dec_whh"], p["dec_bih"], p["dec_bhh"],
               p["out_w_h"], p["out_w_cf"], p["out_w_cb"], p["out_w_e"], p["out_b"])
    args = (tf_mask, trg, emb_flat) + weights
    return pl.pallas_call(
        _seq2seq_kernel,
        out_shape=jax.ShapeDtypeStruct((T, B, VPAD), jnp.float32),
        in_specs=[smem, smem] + [vmem] * (len(args) - 2),
        out_specs=vmem,
    )(*args)


# ------------------------------ parameters ----------------------------------


def init_params(key):
    def nrm(k, shape, scale=0.1):
        return (scale * jax.random.normal(k, shape)).astype(jnp.float32)

    ks = iter(jax.random.split(key, 40))
    p = {}
    p["enc_emb"] = nrm(next(ks), (INPUT_VOCAB, EMB))
    # Encoder GRUs (fwd/bwd), gate-stacked (r, z, n) on the leading axis.
    for d in ("f", "b"):
        p[f"enc_{d}_wih"] = nrm(next(ks), (3, EMB, ENC_HID))
        p[f"enc_{d}_whh"] = nrm(next(ks), (3, ENC_HID, ENC_HID))
        p[f"enc_{d}_bih"] = nrm(next(ks), (3, 1, ENC_HID))
        p[f"enc_{d}_bhh"] = nrm(next(ks), (3, 1, ENC_HID))
    # enc fc split into fwd/bwd halves (concat folded into two matmuls).
    p["enc_fc_wf"] = nrm(next(ks), (ENC_HID, DEC_HID))
    p["enc_fc_wb"] = nrm(next(ks), (ENC_HID, DEC_HID))
    p["enc_fc_b"] = nrm(next(ks), (1, DEC_HID))
    # Attention (We split into fwd/bwd halves).
    p["attn_wh"] = nrm(next(ks), (DEC_HID, DEC_HID))
    p["attn_we_f"] = nrm(next(ks), (ENC_HID, DEC_HID))
    p["attn_we_b"] = nrm(next(ks), (ENC_HID, DEC_HID))
    p["attn_b"] = nrm(next(ks), (1, DEC_HID))
    p["attn_v"] = nrm(next(ks), (1, DEC_HID))

    # Decoder embedding, rows lane-padded to VPAD; pre-folded into its consumers
    # (numerically exact because the decoder input is always a true one-hot).
    dec_emb = jnp.pad(nrm(next(ks), (OUTPUT_VOCAB, EMB)),
                      ((0, VPAD - OUTPUT_VOCAB), (0, 0)))             # [VPAD, EMB]
    dec_w_ie = nrm(next(ks), (3, EMB, DEC_HID))
    p["dec_w_ie"] = jnp.einsum("ve,geh->gvh", dec_emb, dec_w_ie)      # [3, VPAD, Hd]
    p["dec_w_icf"] = nrm(next(ks), (3, ENC_HID, DEC_HID))             # ctx fwd part of W_ih
    p["dec_w_icb"] = nrm(next(ks), (3, ENC_HID, DEC_HID))             # ctx bwd part of W_ih
    p["dec_whh"] = nrm(next(ks), (3, DEC_HID, DEC_HID))
    p["dec_bih"] = nrm(next(ks), (3, 1, DEC_HID))
    p["dec_bhh"] = nrm(next(ks), (3, 1, DEC_HID))

    def padcols(w):
        return jnp.pad(w, ((0, 0), (0, VPAD - OUTPUT_VOCAB)))

    p["out_w_h"] = padcols(nrm(next(ks), (DEC_HID, OUTPUT_VOCAB)))
    p["out_w_cf"] = padcols(nrm(next(ks), (ENC_HID, OUTPUT_VOCAB)))
    p["out_w_cb"] = padcols(nrm(next(ks), (ENC_HID, OUTPUT_VOCAB)))
    out_w_e = nrm(next(ks), (EMB, OUTPUT_VOCAB))
    p["out_w_e"] = padcols(dec_emb @ out_w_e)                         # [VPAD, VPAD]
    p["out_b"] = padcols(nrm(next(ks), (1, OUTPUT_VOCAB)))
    return p


# ------------------------------ full forward --------------------------------


@jax.jit
def seq2seq_forward(p, src, trg, key, teacher_forcing_ratio=0.5):
    # Mirrors PyTorch Seq2Seq.forward: outputs [T, B, OUTPUT_VOCAB], outputs[0]=0.
    T = trg.shape[0]
    emb_flat = p["enc_emb"][src.reshape(-1)]                          # [S*B, EMB] (XLA gather)
    # TODO(synk): reference uses host-side random.random() per step; here the
    # teacher-forcing decisions are a precomputed on-device Bernoulli mask.
    tf_mask = (jax.random.uniform(key, (T,)) < teacher_forcing_ratio).astype(jnp.int32)
    out_pad = _seq2seq_pallas(p, tf_mask, trg.astype(jnp.int32), emb_flat)
    return out_pad[:, :, :OUTPUT_VOCAB]


# ---------------------------------- main -------------------------------------

if __name__ == "__main__":
    key = jax.random.PRNGKey(0)
    k_param, k_src, k_trg, k_tf = jax.random.split(key, 4)

    S, T, B = 6, 5, 2
    params = init_params(k_param)
    src = jax.random.randint(k_src, (S, B), 0, INPUT_VOCAB, dtype=jnp.int32)
    trg = jax.random.randint(k_trg, (T, B), 0, OUTPUT_VOCAB, dtype=jnp.int32)

    outputs = seq2seq_forward(params, src, trg, k_tf, 0.5)
    outputs = jax.block_until_ready(outputs)

    assert outputs.shape == (T, B, OUTPUT_VOCAB)
    assert bool(jnp.all(outputs[0] == 0.0))
    assert bool(jnp.all(jnp.isfinite(outputs)))
    print("KERNEL_OK")
</pallas_src>

<mosaic_0001>
module attributes {stable_mosaic.version = 11 : i64} {
  func.func @_seq2seq_kernel(%arg0: memref<5xi32, #tpu.memory_space<smem>>, %arg1: memref<5x2xi32, #tpu.memory_space<smem>>, %arg2: memref<12x8xf32, #tpu.memory_space<vmem>>, %arg3: memref<3x8x16xf32, #tpu.memory_space<vmem>>, %arg4: memref<3x16x16xf32, #tpu.memory_space<vmem>>, %arg5: memref<3x1x16xf32, #tpu.memory_space<vmem>>, %arg6: memref<3x1x16xf32, #tpu.memory_space<vmem>>, %arg7: memref<3x8x16xf32, #tpu.memory_space<vmem>>, %arg8: memref<3x16x16xf32, #tpu.memory_space<vmem>>, %arg9: memref<3x1x16xf32, #tpu.memory_space<vmem>>, %arg10: memref<3x1x16xf32, #tpu.memory_space<vmem>>, %arg11: memref<16x16xf32, #tpu.memory_space<vmem>>, %arg12: memref<16x16xf32, #tpu.memory_space<vmem>>, %arg13: memref<1x16xf32, #tpu.memory_space<vmem>>, %arg14: memref<16x16xf32, #tpu.memory_space<vmem>>, %arg15: memref<16x16xf32, #tpu.memory_space<vmem>>, %arg16: memref<16x16xf32, #tpu.memory_space<vmem>>, %arg17: memref<1x16xf32, #tpu.memory_space<vmem>>, %arg18: memref<1x16xf32, #tpu.memory_space<vmem>>, %arg19: memref<3x128x16xf32, #tpu.memory_space<vmem>>, %arg20: memref<3x16x16xf32, #tpu.memory_space<vmem>>, %arg21: memref<3x16x16xf32, #tpu.memory_space<vmem>>, %arg22: memref<3x16x16xf32, #tpu.memory_space<vmem>>, %arg23: memref<3x1x16xf32, #tpu.memory_space<vmem>>, %arg24: memref<3x1x16xf32, #tpu.memory_space<vmem>>, %arg25: memref<16x128xf32, #tpu.memory_space<vmem>>, %arg26: memref<16x128xf32, #tpu.memory_space<vmem>>, %arg27: memref<16x128xf32, #tpu.memory_space<vmem>>, %arg28: memref<128x128xf32, #tpu.memory_space<vmem>>, %arg29: memref<1x128xf32, #tpu.memory_space<vmem>>, %arg30: memref<5x2x128xf32, #tpu.memory_space<vmem>>) attributes {dimension_semantics = [], scalar_prefetch = 0 : i64, scratch_operands = 0 : i64, tpu.core_type = #tpu.core_type<tc>} {
    %c0 = arith.constant 0 : index
    %c0_0 = arith.constant 0 : index
    %0 = vector.load %arg2[%c0, %c0_0] : memref<12x8xf32, #tpu.memory_space<vmem>>, vector<12x8xf32>
    %c0_1 = arith.constant 0 : index
    %c0_2 = arith.constant 0 : index
    %c0_3 = arith.constant 0 : index
    %1 = vector.load %arg3[%c0_1, %c0_2, %c0_3] : memref<3x8x16xf32, #tpu.memory_space<vmem>>, vector<1x8x16xf32>
    %2 = vector.shape_cast %1 : vector<1x8x16xf32> to vector<8x16xf32>
    %cst = arith.constant dense<0.000000e+00> : vector<12x16xf32>
    %3 = tpu.matmul %0, %2, %cst {dimension_numbers = #tpu.dot_dimension_numbers<[1], [0], [0], [1], [0, 0, 1, 1], [], []>} : vector<12x8xf32>, vector<8x16xf32>, vector<12x16xf32> -> vector<12x16xf32>
    %c0_4 = arith.constant 0 : index
    %c0_5 = arith.constant 0 : index
    %c0_6 = arith.constant 0 : index
    %4 = vector.load %arg5[%c0_4, %c0_5, %c0_6] : memref<3x1x16xf32, #tpu.memory_space<vmem>>, vector<1x1x16xf32>
    %5 = vector.shape_cast %4 : vector<1x1x16xf32> to vector<1x16xf32>
    %6 = vector.broadcast %5 : vector<1x16xf32> to vector<12x16xf32>
    %7 = arith.addf %3, %6 : vector<12x16xf32>
    %c1 = arith.constant 1 : index
    %c0_7 = arith.constant 0 : index
    %c0_8 = arith.constant 0 : index
    %8 = vector.load %arg3[%c1, %c0_7, %c0_8] : memref<3x8x16xf32, #tpu.memory_space<vmem>>, vector<1x8x16xf32>
    %9 = vector.shape_cast %8 : vector<1x8x16xf32> to vector<8x16xf32>
    %cst_9 = arith.constant dense<0.000000e+00> : vector<12x16xf32>
    %10 = tpu.matmul %0, %9, %cst_9 {dimension_numbers = #tpu.dot_dimension_numbers<[1], [0], [0], [1], [0, 0, 1, 1], [], []>} : vector<12x8xf32>, vector<8x16xf32>, vector<12x16xf32> -> vector<12x16xf32>
    %c1_10 = arith.constant 1 : index
    %c0_11 = arith.constant 0 : index
    %c0_12 = arith.constant 0 : index
    %11 = vector.load %arg5[%c1_10, %c0_11, %c0_12] : memref<3x1x16xf32, #tpu.memory_space<vmem>>, vector<1x1x16xf32>
    %12 = vector.shape_cast %11 : vector<1x1x16xf32> to vector<1x16xf32>
    %13 = vector.broadcast %12 : vector<1x16xf32> to vector<12x16xf32>
    %14 = arith.addf %10, %13 : vector<12x16xf32>
    %c2 = arith.constant 2 : index
    %c0_13 = arith.constant 0 : index
    %c0_14 = arith.constant 0 : index
    %15 = vector.load %arg3[%c2, %c0_13, %c0_14] : memref<3x8x16xf32, #tpu.memory_space<vmem>>, vector<1x8x16xf32>
    %16 = vector.shape_cast %15 : vector<1x8x16xf32> to vector<8x16xf32>
    %cst_15 = arith.constant dense<0.000000e+00> : vector<12x16xf32>
    %17 = tpu.matmul %0, %16, %cst_15 {dimension_numbers = #tpu.dot_dimension_numbers<[1], [0], [0], [1], [0, 0, 1, 1], [], []>} : vector<12x8xf32>, vector<8x16xf32>, vector<12x16xf32> -> vector<12x16xf32>
    %c2_16 = arith.constant 2 : index
    %c0_17 = arith.constant 0 : index
    %c0_18 = arith.constant 0 : index
    %18 = vector.load %arg5[%c2_16, %c0_17, %c0_18] : memref<3x1x16xf32, #tpu.memory_space<vmem>>, vector<1x1x16xf32>
    %19 = vector.shape_cast %18 : vector<1x1x16xf32> to vector<1x16xf32>
    %20 = vector.broadcast %19 : vector<1x16xf32> to vector<12x16xf32>
    %21 = arith.addf %17, %20 : vector<12x16xf32>
    %c0_19 = arith.constant 0 : index
    %c0_20 = arith.constant 0 : index
    %c0_21 = arith.constant 0 : index
    %22 = vector.load %arg7[%c0_19, %c0_20, %c0_21] : memref<3x8x16xf32, #tpu.memory_space<vmem>>, vector<1x8x16xf32>
    %23 = vector.shape_cast %22 : vector<1x8x16xf32> to vector<8x16xf32>
    %cst_22 = arith.constant dense<0.000000e+00> : vector<12x16xf32>
    %24 = tpu.matmul %0, %23, %cst_22 {dimension_numbers = #tpu.dot_dimension_numbers<[1], [0], [0], [1], [0, 0, 1, 1], [], []>} : vector<12x8xf32>, vector<8x16xf32>, vector<12x16xf32> -> vector<12x16xf32>
    %c0_23 = arith.constant 0 : index
    %c0_24 = arith.constant 0 : index
    %c0_25 = arith.constant 0 : index
    %25 = vector.load %arg9[%c0_23, %c0_24, %c0_25] : memref<3x1x16xf32, #tpu.memory_space<vmem>>, vector<1x1x16xf32>
    %26 = vector.shape_cast %25 : vector<1x1x16xf32> to vector<1x16xf32>
    %27 = vector.broadcast %26 : vector<1x16xf32> to vector<12x16xf32>
    %28 = arith.addf %24, %27 : vector<12x16xf32>
    %c1_26 = arith.constant 1 : index
    %c0_27 = arith.constant 0 : index
    %c0_28 = arith.constant 0 : index
    %29 = vector.load %arg7[%c1_26, %c0_27, %c0_28] : memref<3x8x16xf32, #tpu.memory_space<vmem>>, vector<1x8x16xf32>
    %30 = vector.shape_cast %29 : vector<1x8x16xf32> to vector<8x16xf32>
    %cst_29 = arith.constant dense<0.000000e+00> : vector<12x16xf32>
    %31 = tpu.matmul %0, %30, %cst_29 {dimension_numbers = #tpu.dot_dimension_numbers<[1], [0], [0], [1], [0, 0, 1, 1], [], []>} : vector<12x8xf32>, vector<8x16xf32>, vector<12x16xf32> -> vector<12x16xf32>
    %c1_30 = arith.constant 1 : index
    %c0_31 = arith.constant 0 : index
    %c0_32 = arith.constant 0 : index
    %32 = vector.load %arg9[%c1_30, %c0_31, %c0_32] : memref<3x1x16xf32, #tpu.memory_space<vmem>>, vector<1x1x16xf32>
    %33 = vector.shape_cast %32 : vector<1x1x16xf32> to vector<1x16xf32>
    %34 = vector.broadcast %33 : vector<1x16xf32> to vector<12x16xf32>
    %35 = arith.addf %31, %34 : vector<12x16xf32>
    %c2_33 = arith.constant 2 : index
    %c0_34 = arith.constant 0 : index
    %c0_35 = arith.constant 0 : index
    %36 = vector.load %arg7[%c2_33, %c0_34, %c0_35] : memref<3x8x16xf32, #tpu.memory_space<vmem>>, vector<1x8x16xf32>
    %37 = vector.shape_cast %36 : vector<1x8x16xf32> to vector<8x16xf32>
    %cst_36 = arith.constant dense<0.000000e+00> : vector<12x16xf32>
    %38 = tpu.matmul %0, %37, %cst_36 {dimension_numbers = #tpu.dot_dimension_numbers<[1], [0], [0], [1], [0, 0, 1, 1], [], []>} : vector<12x8xf32>, vector<8x16xf32>, vector<12x16xf32> -> vector<12x16xf32>
    %c2_37 = arith.constant 2 : index
    %c0_38 = arith.constant 0 : index
    %c0_39 = arith.constant 0 : index
    %39 = vector.load %arg9[%c2_37, %c0_38, %c0_39] : memref<3x1x16xf32, #tpu.memory_space<vmem>>, vector<1x1x16xf32>
    %40 = vector.shape_cast %39 : vector<1x1x16xf32> to vector<1x16xf32>
    %41 = vector.broadcast %40 : vector<1x16xf32> to vector<12x16xf32>
    %42 = arith.addf %38, %41 : vector<12x16xf32>
    %c0_40 = arith.constant 0 : index
    %c0_41 = arith.constant 0 : index
    %c0_42 = arith.constant 0 : index
    %43 = vector.load %arg4[%c0_40, %c0_41, %c0_42] : memref<3x16x16xf32, #tpu.memory_space<vmem>>, vector<1x16x16xf32>
    %44 = vector.shape_cast %43 : vector<1x16x16xf32> to vector<16x16xf32>
    %c1_43 = arith.constant 1 : index
    %c0_44 = arith.constant 0 : index
    %c0_45 = arith.constant 0 : index
    %45 = vector.load %arg4[%c1_43, %c0_44, %c0_45] : memref<3x16x16xf32, #tpu.memory_space<vmem>>, vector<1x16x16xf32>
    %46 = vector.shape_cast %45 : vector<1x16x16xf32> to vector<16x16xf32>
    %c2_46 = arith.constant 2 : index
    %c0_47 = arith.constant 0 : index
    %c0_48 = arith.constant 0 : index
    %47 = vector.load %arg4[%c2_46, %c0_47, %c0_48] : memref<3x16x16xf32, #tpu.memory_space<vmem>>, vector<1x16x16xf32>
    %48 = vector.shape_cast %47 : vector<1x16x16xf32> to vector<16x16xf32>
    %c0_49 = arith.constant 0 : index
    %c0_50 = arith.constant 0 : index
    %c0_51 = arith.constant 0 : index
    %49 = vector.load %arg6[%c0_49, %c0_50, %c0_51] : memref<3x1x16xf32, #tpu.memory_space<vmem>>, vector<1x1x16xf32>
    %50 = vector.shape_cast %49 : vector<1x1x16xf32> to vector<1x16xf32>
    %c1_52 = arith.constant 1 : index
    %c0_53 = arith.constant 0 : index
    %c0_54 = arith.constant 0 : index
    %51 = vector.load %arg6[%c1_52, %c0_53, %c0_54] : memref<3x1x16xf32, #tpu.memory_space<vmem>>, vector<1x1x16xf32>
    %52 = vector.shape_cast %51 : vector<1x1x16xf32> to vector<1x16xf32>
    %c2_55 = arith.constant 2 : index
    %c0_56 = arith.constant 0 : index
    %c0_57 = arith.constant 0 : index
    %53 = vector.load %arg6[%c2_55, %c0_56, %c0_57] : memref<3x1x16xf32, #tpu.memory_space<vmem>>, vector<1x1x16xf32>
    %54 = vector.shape_cast %53 : vector<1x1x16xf32> to vector<1x16xf32>
    %c0_58 = arith.constant 0 : index
    %c0_59 = arith.constant 0 : index
    %c0_60 = arith.constant 0 : index
    %55 = vector.load %arg8[%c0_58, %c0_59, %c0_60] : memref<3x16x16xf32, #tpu.memory_space<vmem>>, vector<1x16x16xf32>
    %56 = vector.shape_cast %55 : vector<1x16x16xf32> to vector<16x16xf32>
    %c1_61 = arith.constant 1 : index
    %c0_62 = arith.constant 0 : index
    %c0_63 = arith.constant 0 : index
    %57 = vector.load %arg8[%c1_61, %c0_62, %c0_63] : memref<3x16x16xf32, #tpu.memory_space<vmem>>, vector<1x16x16xf32>
    %58 = vector.shape_cast %57 : vector<1x16x16xf32> to vector<16x16xf32>
    %c2_64 = arith.constant 2 : index
    %c0_65 = arith.constant 0 : index
    %c0_66 = arith.constant 0 : index
    %59 = vector.load %arg8[%c2_64, %c0_65, %c0_66] : memref<3x16x16xf32, #tpu.memory_space<vmem>>, vector<1x16x16xf32>
    %60 = vector.shape_cast %59 : vector<1x16x16xf32> to vector<16x16xf32>
    %c0_67 = arith.constant 0 : index
    %c0_68 = arith.constant 0 : index
    %c0_69 = arith.constant 0 : index
    %61 = vector.load %arg10[%c0_67, %c0_68, %c0_69] : memref<3x1x16xf32, #tpu.memory_space<vmem>>, vector<1x1x16xf32>
    %62 = vector.shape_cast %61 : vector<1x1x16xf32> to vector<1x16xf32>
    %c1_70 = arith.constant 1 : index
    %c0_71 = arith.constant 0 : index
    %c0_72 = arith.constant 0 : index
    %63 = vector.load %arg10[%c1_70, %c0_71, %c0_72] : memref<3x1x16xf32, #tpu.memory_space<vmem>>, vector<1x1x16xf32>
    %64 = vector.shape_cast %63 : vector<1x1x16xf32> to vector<1x16xf32>
    %c2_73 = arith.constant 2 : index
    %c0_74 = arith.constant 0 : index
    %c0_75 = arith.constant 0 : index
    %65 = vector.load %arg10[%c2_73, %c0_74, %c0_75] : memref<3x1x16xf32, #tpu.memory_space<vmem>>, vector<1x1x16xf32>
    %66 = vector.shape_cast %65 : vector<1x1x16xf32> to vector<1x16xf32>
    %cst_76 = arith.constant 0.000000e+00 : f32
    %67 = vector.broadcast %cst_76 : f32 to vector<2x16xf32>
    %cst_77 = arith.constant 0.000000e+00 : f32
    %68 = vector.broadcast %cst_77 : f32 to vector<2x16xf32>
    %69 = vector.extract_strided_slice %7 {offsets = [0, 0], sizes = [2, 16], strides = [1, 1]} : vector<12x16xf32> to vector<2x16xf32>
    %70 = vector.extract_strided_slice %14 {offsets = [0, 0], sizes = [2, 16], strides = [1, 1]} : vector<12x16xf32> to vector<2x16xf32>
    %71 = vector.extract_strided_slice %21 {offsets = [0, 0], sizes = [2, 16], strides = [1, 1]} : vector<12x16xf32> to vector<2x16xf32>
    %72 = vector.extract_strided_slice %28 {offsets = [10, 0], sizes = [2, 16], strides = [1, 1]} : vector<12x16xf32> to vector<2x16xf32>
    %73 = vector.extract_strided_slice %35 {offsets = [10, 0], sizes = [2, 16], strides = [1, 1]} : vector<12x16xf32> to vector<2x16xf32>
    %74 = vector.extract_strided_slice %42 {offsets = [10, 0], sizes = [2, 16], strides = [1, 1]} : vector<12x16xf32> to vector<2x16xf32>
    %cst_78 = arith.constant dense<0.000000e+00> : vector<2x16xf32>
    %75 = tpu.matmul %67, %44, %cst_78 {dimension_numbers = #tpu.dot_dimension_numbers<[1], [0], [0], [1], [0, 0, 1, 1], [], []>} : vector<2x16xf32>, vector<16x16xf32>, vector<2x16xf32> -> vector<2x16xf32>
    %76 = vector.broadcast %50 : vector<1x16xf32> to vector<2x16xf32>
    %77 = arith.addf %75, %76 : vector<2x16xf32>
    %cst_79 = arith.constant dense<0.000000e+00> : vector<2x16xf32>
    %78 = tpu.matmul %67, %46, %cst_79 {dimension_numbers = #tpu.dot_dimension_numbers<[1], [0], [0], [1], [0, 0, 1, 1], [], []>} : vector<2x16xf32>, vector<16x16xf32>, vector<2x16xf32> -> vector<2x16xf32>
    %79 = vector.broadcast %52 : vector<1x16xf32> to vector<2x16xf32>
    %80 = arith.addf %78, %79 : vector<2x16xf32>
    %cst_80 = arith.constant dense<0.000000e+00> : vector<2x16xf32>
    %81 = tpu.matmul %67, %48, %cst_80 {dimension_numbers = #tpu.dot_dimension_numbers<[1], [0], [0], [1], [0, 0, 1, 1], [], []>} : vector<2x16xf32>, vector<16x16xf32>, vector<2x16xf32> -> vector<2x16xf32>
    %82 = vector.broadcast %54 : vector<1x16xf32> to vector<2x16xf32>
    %83 = arith.addf %81, %82 : vector<2x16xf32>
    %84 = arith.addf %69, %77 : vector<2x16xf32>
    %85 = arith.negf %84 : vector<2x16xf32>
    %86 = math.exp %85 : vector<2x16xf32>
    %cst_81 = arith.constant 1.000000e+00 : f32
    %87 = vector.broadcast %cst_81 : f32 to vector<2x16xf32>
    %88 = arith.addf %87, %86 : vector<2x16xf32>
    %89 = arith.divf %87, %88 : vector<2x16xf32>
    %90 = arith.addf %70, %80 : vector<2x16xf32>
    %91 = arith.negf %90 : vector<2x16xf32>
    %92 = math.exp %91 : vector<2x16xf32>
    %cst_82 = arith.constant 1.000000e+00 : f32
    %93 = vector.broadcast %cst_82 : f32 to vector<2x16xf32>
    %94 = arith.addf %93, %92 : vector<2x16xf32>
    %95 = arith.divf %93, %94 : vector<2x16xf32>
    %96 = arith.mulf %89, %83 : vector<2x16xf32>
    %97 = arith.addf %71, %96 : vector<2x16xf32>
    %98 = math.tanh %97 : vector<2x16xf32>
    %cst_83 = arith.constant 1.000000e+00 : f32
    %99 = vector.broadcast %cst_83 : f32 to vector<2x16xf32>
    %100 = arith.subf %99, %95 : vector<2x16xf32>
    %101 = arith.mulf %100, %98 : vector<2x16xf32>
    %102 = arith.mulf %95, %67 : vector<2x16xf32>
    %103 = arith.addf %101, %102 : vector<2x16xf32>
    %cst_84 = arith.constant dense<0.000000e+00> : vector<2x16xf32>
    %104 = tpu.matmul %68, %56, %cst_84 {dimension_numbers = #tpu.dot_dimension_numbers<[1], [0], [0], [1], [0, 0, 1, 1], [], []>} : vector<2x16xf32>, vector<16x16xf32>, vector<2x16xf32> -> vector<2x16xf32>
    %105 = vector.broadcast %62 : vector<1x16xf32> to vector<2x16xf32>
    %106 = arith.addf %104, %105 : vector<2x16xf32>
    %cst_85 = arith.constant dense<0.000000e+00> : vector<2x16xf32>
    %107 = tpu.matmul %68, %58, %cst_85 {dimension_numbers = #tpu.dot_dimension_numbers<[1], [0], [0], [1], [0, 0, 1, 1], [], []>} : vector<2x16xf32>, vector<16x16xf32>, vector<2x16xf32> -> vector<2x16xf32>
    %108 = vector.broadcast %64 : vector<1x16xf32> to vector<2x16xf32>
    %109 = arith.addf %107, %108 : vector<2x16xf32>
    %cst_86 = arith.constant dense<0.000000e+00> : vector<2x16xf32>
    %110 = tpu.matmul %68, %60, %cst_86 {dimension_numbers = #tpu.dot_dimension_numbers<[1], [0], [0], [1], [0, 0, 1, 1], [], []>} : vector<2x16xf32>, vector<16x16xf32>, vector<2x16xf32> -> vector<2x16xf32>
    %111 = vector.broadcast %66 : vector<1x16xf32> to vector<2x16xf32>
    %112 = arith.addf %110, %111 : vector<2x16xf32>
    %113 = arith.addf %72, %106 : vector<2x16xf32>
    %114 = arith.negf %113 : vector<2x16xf32>
    %115 = math.exp %114 : vector<2x16xf32>
    %cst_87 = arith.constant 1.000000e+00 : f32
    %116 = vector.broadcast %cst_87 : f32 to vector<2x16xf32>
    %117 = arith.addf %116, %115 : vector<2x16xf32>
    %118 = arith.divf %116, %117 : vector<2x16xf32>
    %119 = arith.addf %73, %109 : vector<2x16xf32>
    %120 = arith.negf %119 : vector<2x16xf32>
    %121 = math.exp %120 : vector<2x16xf32>
    %cst_88 = arith.constant 1.000000e+00 : f32
    %122 = vector.broadcast %cst_88 : f32 to vector<2x16xf32>
    %123 = arith.addf %122, %121 : vector<2x16xf32>
    %124 = arith.divf %122, %123 : vector<2x16xf32>
    %125 = arith.mulf %118, %112 : vector<2x16xf32>
    %126 = arith.addf %74, %125 : vector<2x16xf32>
    %127 = math.tanh %126 : vector<2x16xf32>
    %cst_89 = arith.constant 1.000000e+00 : f32
    %128 = vector.broadcast %cst_89 : f32 to vector<2x16xf32>
    %129 = arith.subf %128, %124 : vector<2x16xf32>
    %130 = arith.mulf %129, %127 : vector<2x16xf32>
    %131 = arith.mulf %124, %68 : vector<2x16xf32>
    %132 = arith.addf %130, %131 : vector<2x16xf32>
    %133 = vector.extract_strided_slice %7 {offsets = [2, 0], sizes = [2, 16], strides = [1, 1]} : vector<12x16xf32> to vector<2x16xf32>
    %134 = vector.extract_strided_slice %14 {offsets = [2, 0], sizes = [2, 16], strides = [1, 1]} : vector<12x16xf32> to vector<2x16xf32>
    %135 = vector.extract_strided_slice %21 {offsets = [2, 0], sizes = [2, 16], strides = [1, 1]} : vector<12x16xf32> to vector<2x16xf32>
    %136 = vector.extract_strided_slice %28 {offsets = [8, 0], sizes = [2, 16], strides = [1, 1]} : vector<12x16xf32> to vector<2x16xf32>
    %137 = vector.extract_strided_slice %35 {offsets = [8, 0], sizes = [2, 16], strides = [1, 1]} : vector<12x16xf32> to vector<2x16xf32>
    %138 = vector.extract_strided_slice %42 {offsets = [8, 0], sizes = [2, 16], strides = [1, 1]} : vector<12x16xf32> to vector<2x16xf32>
    %cst_90 = arith.constant dense<0.000000e+00> : vector<2x16xf32>
    %139 = tpu.matmul %103, %44, %cst_90 {dimension_numbers = #tpu.dot_dimension_numbers<[1], [0], [0], [1], [0, 0, 1, 1], [], []>} : vector<2x16xf32>, vector<16x16xf32>, vector<2x16xf32> -> vector<2x16xf32>
    %140 = vector.broadcast %50 : vector<1x16xf32> to vector<2x16xf32>
    %141 = arith.addf %139, %140 : vector<2x16xf32>
    %cst_91 = arith.constant dense<0.000000e+00> : vector<2x16xf32>
    %142 = tpu.matmul %103, %46, %cst_91 {dimension_numbers = #tpu.dot_dimension_numbers<[1], [0], [0], [1], [0, 0, 1, 1], [], []>} : vector<2x16xf32>, vector<16x16xf32>, vector<2x16xf32> -> vector<2x16xf32>
    %143 = vector.broadcast %52 : vector<1x16xf32> to vector<2x16xf32>
    %144 = arith.addf %142, %143 : vector<2x16xf32>
    %cst_92 = arith.constant dense<0.000000e+00> : vector<2x16xf32>
    %145 = tpu.matmul %103, %48, %cst_92 {dimension_numbers = #tpu.dot_dimension_numbers<[1], [0], [0], [1], [0, 0, 1, 1], [], []>} : vector<2x16xf32>, vector<16x16xf32>, vector<2x16xf32> -> vector<2x16xf32>
    %146 = vector.broadcast %54 : vector<1x16xf32> to vector<2x16xf32>
    %147 = arith.addf %145, %146 : vector<2x16xf32>
    %148 = arith.addf %133, %141 : vector<2x16xf32>
    %149 = arith.negf %148 : vector<2x16xf32>
    %150 = math.exp %149 : vector<2x16xf32>
    %cst_93 = arith.constant 1.000000e+00 : f32
    %151 = vector.broadcast %cst_93 : f32 to vector<2x16xf32>
    %152 = arith.addf %151, %150 : vector<2x16xf32>
    %153 = arith.divf %151, %152 : vector<2x16xf32>
    %154 = arith.addf %134, %144 : vector<2x16xf32>
    %155 = arith.negf %154 : vector<2x16xf32>
    %156 = math.exp %155 : vector<2x16xf32>
    %cst_94 = arith.constant 1.000000e+00 : f32
    %157 = vector.broadcast %cst_94 : f32 to vector<2x16xf32>
    %158 = arith.addf %157, %156 : vector<2x16xf32>
    %159 = arith.divf %157, %158 : vector<2x16xf32>
    %160 = arith.mulf %153, %147 : vector<2x16xf32>
    %161 = arith.addf %135, %160 : vector<2x16xf32>
    %162 = math.tanh %161 : vector<2x16xf32>
    %cst_95 = arith.constant 1.000000e+00 : f32
    %163 = vector.broadcast %cst_95 : f32 to vector<2x16xf32>
    %164 = arith.subf %163, %159 : vector<2x16xf32>
    %165 = arith.mulf %164, %162 : vector<2x16xf32>
    %166 = arith.mulf %159, %103 : vector<2x16xf32>
    %167 = arith.addf %165, %166 : vector<2x16xf32>
    %cst_96 = arith.constant dense<0.000000e+00> : vector<2x16xf32>
    %168 = tpu.matmul %132, %56, %cst_96 {dimension_numbers = #tpu.dot_dimension_numbers<[1], [0], [0], [1], [0, 0, 1, 1], [], []>} : vector<2x16xf32>, vector<16x16xf32>, vector<2x16xf32> -> vector<2x16xf32>
    %169 = vector.broadcast %62 : vector<1x16xf32> to vector<2x16xf32>
    %170 = arith.addf %168, %169 : vector<2x16xf32>
    %cst_97 = arith.constant dense<0.000000e+00> : vector<2x16xf32>
    %171 = tpu.matmul %132, %58, %cst_97 {dimension_numbers = #tpu.dot_dimension_numbers<[1], [0], [0], [1], [0, 0, 1, 1], [], []>} : vector<2x16xf32>, vector<16x16xf32>, vector<2x16xf32> -> vector<2x16xf32>
    %172 = vector.broadcast %64 : vector<1x16xf32> to vector<2x16xf32>
    %173 = arith.addf %171, %172 : vector<2x16xf32>
    %cst_98 = arith.constant dense<0.000000e+00> : vector<2x16xf32>
    %174 = tpu.matmul %132, %60, %cst_98 {dimension_numbers = #tpu.dot_dimension_numbers<[1], [0], [0], [1], [0, 0, 1, 1], [], []>} : vector<2x16xf32>, vector<16x16xf32>, vector<2x16xf32> -> vector<2x16xf32>
    %175 = vector.broadcast %66 : vector<1x16xf32> to vector<2x16xf32>
    %176 = arith.addf %174, %175 : vector<2x16xf32>
    %177 = arith.addf %136, %170 : vector<2x16xf32>
    %178 = arith.negf %177 : vector<2x16xf32>
    %179 = math.exp %178 : vector<2x16xf32>
    %cst_99 = arith.constant 1.000000e+00 : f32
    %180 = vector.broadcast %cst_99 : f32 to vector<2x16xf32>
    %181 = arith.addf %180, %179 : vector<2x16xf32>
    %182 = arith.divf %180, %181 : vector<2x16xf32>
    %183 = arith.addf %137, %173 : vector<2x16xf32>
    %184 = arith.negf %183 : vector<2x16xf32>
    %185 = math.exp %184 : vector<2x16xf32>
    %cst_100 = arith.constant 1.000000e+00 : f32
    %186 = vector.broadcast %cst_100 : f32 to vector<2x16xf32>
    %187 = arith.addf %186, %185 : vector<2x16xf32>
    %188 = arith.divf %186, %187 : vector<2x16xf32>
    %189 = arith.mulf %182, %176 : vector<2x16xf32>
    %190 = arith.addf %138, %189 : vector<2x16xf32>
    %191 = math.tanh %190 : vector<2x16xf32>
    %cst_101 = arith.constant 1.000000e+00 : f32
    %192 = vector.broadcast %cst_101 : f32 to vector<2x16xf32>
    %193 = arith.subf %192, %188 : vector<2x16xf32>
    %194 = arith.mulf %193, %191 : vector<2x16xf32>
    %195 = arith.mulf %188, %132 : vector<2x16xf32>
    %196 = arith.addf %194, %195 : vector<2x16xf32>
    %197 = vector.extract_strided_slice %7 {offsets = [4, 0], sizes = [2, 16], strides = [1, 1]} : vector<12x16xf32> to vector<2x16xf32>
    %198 = vector.extract_strided_slice %14 {offsets = [4, 0], sizes = [2, 16], strides = [1, 1]} : vector<12x16xf32> to vector<2x16xf32>
    %199 = vector.extract_strided_slice %21 {offsets = [4, 0], sizes = [2, 16], strides = [1, 1]} : vector<12x16xf32> to vector<2x16xf32>
    %200 = vector.extract_strided_slice %28 {offsets = [6, 0], sizes = [2, 16], strides = [1, 1]} : vector<12x16xf32> to vector<2x16xf32>
    %201 = vector.extract_strided_slice %35 {offsets = [6, 0], sizes = [2, 16], strides = [1, 1]} : vector<12x16xf32> to vector<2x16xf32>
    %202 = vector.extract_strided_slice %42 {offsets = [6, 0], sizes = [2, 16], strides = [1, 1]} : vector<12x16xf32> to vector<2x16xf32>
    %cst_102 = arith.constant dense<0.000000e+00> : vector<2x16xf32>
    %203 = tpu.matmul %167, %44, %cst_102 {dimension_numbers = #tpu.dot_dimension_numbers<[1], [0], [0], [1], [0, 0, 1, 1], [], []>} : vector<2x16xf32>, vector<16x16xf32>, vector<2x16xf32> -> vector<2x16xf32>
    %204 = vector.broadcast %50 : vector<1x16xf32> to vector<2x16xf32>
    %205 = arith.addf %203, %204 : vector<2x16xf32>
    %cst_103 = arith.constant dense<0.000000e+00> : vector<2x16xf32>
    %206 = tpu.matmul %167, %46, %cst_103 {dimension_numbers = #tpu.dot_dimension_numbers<[1], [0], [0], [1], [0, 0, 1, 1], [], []>} : vector<2x16xf32>, vector<16x16xf32>, vector<2x16xf32> -> vector<2x16xf32>
    %207 = vector.broadcast %52 : vector<1x16xf32> to vector<2x16xf32>
    %208 = arith.addf %206, %207 : vector<2x16xf32>
    %cst_104 = arith.constant dense<0.000000e+00> : vector<2x16xf32>
    %209 = tpu.matmul %167, %48, %cst_104 {dimension_numbers = #tpu.dot_dimension_numbers<[1], [0], [0], [1], [0, 0, 1, 1], [], []>} : vector<2x16xf32>, vector<16x16xf32>, vector<2x16xf32> -> vector<2x16xf32>
    %210 = vector.broadcast %54 : vector<1x16xf32> to vector<2x16xf32>
    %211 = arith.addf %209, %210 : vector<2x16xf32>
    %212 = arith.addf %197, %205 : vector<2x16xf32>
    %213 = arith.negf %212 : vector<2x16xf32>
    %214 = math.exp %213 : vector<2x16xf32>
    %cst_105 = arith.constant 1.000000e+00 : f32
    %215 = vector.broadcast %cst_105 : f32 to vector<2x16xf32>
    %216 = arith.addf %215, %214 : vector<2x16xf32>
    %217 = arith.divf %215, %216 : vector<2x16xf32>
    %218 = arith.addf %198, %208 : vector<2x16xf32>
    %219 = arith.negf %218 : vector<2x16xf32>
    %220 = math.exp %219 : vector<2x16xf32>
    %cst_106 = arith.constant 1.000000e+00 : f32
    %221 = vector.broadcast %cst_106 : f32 to vector<2x16xf32>
    %222 = arith.addf %221, %220 : vector<2x16xf32>
    %223 = arith.divf %221, %222 : vector<2x16xf32>
    %224 = arith.mulf %217, %211 : vector<2x16xf32>
    %225 = arith.addf %199, %224 : vector<2x16xf32>
    %226 = math.tanh %225 : vector<2x16xf32>
    %cst_107 = arith.constant 1.000000e+00 : f32
    %227 = vector.broadcast %cst_107 : f32 to vector<2x16xf32>
    %228 = arith.subf %227, %223 : vector<2x16xf32>
    %229 = arith.mulf %228, %226 : vector<2x16xf32>
    %230 = arith.mulf %223, %167 : vector<2x16xf32>
    %231 = arith.addf %229, %230 : vector<2x16xf32>
    %cst_108 = arith.constant dense<0.000000e+00> : vector<2x16xf32>
    %232 = tpu.matmul %196, %56, %cst_108 {dimension_numbers = #tpu.dot_dimension_numbers<[1], [0], [0], [1], [0, 0, 1, 1], [], []>} : vector<2x16xf32>, vector<16x16xf32>, vector<2x16xf32> -> vector<2x16xf32>
    %233 = vector.broadcast %62 : vector<1x16xf32> to vector<2x16xf32>
    %234 = arith.addf %232, %233 : vector<2x16xf32>
    %cst_109 = arith.constant dense<0.000000e+00> : vector<2x16xf32>
    %235 = tpu.matmul %196, %58, %cst_109 {dimension_numbers = #tpu.dot_dimension_numbers<[1], [0], [0], [1], [0, 0, 1, 1], [], []>} : vector<2x16xf32>, vector<16x16xf32>, vector<2x16xf32> -> vector<2x16xf32>
    %236 = vector.broadcast %64 : vector<1x16xf32> to vector<2x16xf32>
    %237 = arith.addf %235, %236 : vector<2x16xf32>
    %cst_110 = arith.constant dense<0.000000e+00> : vector<2x16xf32>
    %238 = tpu.matmul %196, %60, %cst_110 {dimension_numbers = #tpu.dot_dimension_numbers<[1], [0], [0], [1], [0, 0, 1, 1], [], []>} : vector<2x16xf32>, vector<16x16xf32>, vector<2x16xf32> -> vector<2x16xf32>
    %239 = vector.broadcast %66 : vector<1x16xf32> to vector<2x16xf32>
    %240 = arith.addf %238, %239 : vector<2x16xf32>
    %241 = arith.addf %200, %234 : vector<2x16xf32>
    %242 = arith.negf %241 : vector<2x16xf32>
    %243 = math.exp %242 : vector<2x16xf32>
    %cst_111 = arith.constant 1.000000e+00 : f32
    %244 = vector.broadcast %cst_111 : f32 to vector<2x16xf32>
    %245 = arith.addf %244, %243 : vector<2x16xf32>
    %246 = arith.divf %244, %245 : vector<2x16xf32>
    %247 = arith.addf %201, %237 : vector<2x16xf32>
    %248 = arith.negf %247 : vector<2x16xf32>
    %249 = math.exp %248 : vector<2x16xf32>
    %cst_112 = arith.constant 1.000000e+00 : f32
    %250 = vector.broadcast %cst_112 : f32 to vector<2x16xf32>
    %251 = arith.addf %250, %249 : vector<2x16xf32>
    %252 = arith.divf %250, %251 : vector<2x16xf32>
    %253 = arith.mulf %246, %240 : vector<2x16xf32>
    %254 = arith.addf %202, %253 : vector<2x16xf32>
    %255 = math.tanh %254 : vector<2x16xf32>
    %cst_113 = arith.constant 1.000000e+00 : f32
    %256 = vector.broadcast %cst_113 : f32 to vector<2x16xf32>
    %257 = arith.subf %256, %252 : vector<2x16xf32>
    %258 = arith.mulf %257, %255 : vector<2x16xf32>
    %259 = arith.mulf %252, %196 : vector<2x16xf32>
    %260 = arith.addf %258, %259 : vector<2x16xf32>
    %261 = vector.extract_strided_slice %7 {offsets = [6, 0], sizes = [2, 16], strides = [1, 1]} : vector<12x16xf32> to vector<2x16xf32>
    %262 = vector.extract_strided_slice %14 {offsets = [6, 0], sizes = [2, 16], strides = [1, 1]} : vector<12x16xf32> to vector<2x16xf32>
    %263 = vector.extract_strided_slice %21 {offsets = [6, 0], sizes = [2, 16], strides = [1, 1]} : vector<12x16xf32> to vector<2x16xf32>
    %264 = vector.extract_strided_slice %28 {offsets = [4, 0], sizes = [2, 16], strides = [1, 1]} : vector<12x16xf32> to vector<2x16xf32>
    %265 = vector.extract_strided_slice %35 {offsets = [4, 0], sizes = [2, 16], strides = [1, 1]} : vector<12x16xf32> to vector<2x16xf32>
    %266 = vector.extract_strided_slice %42 {offsets = [4, 0], sizes = [2, 16], strides = [1, 1]} : vector<12x16xf32> to vector<2x16xf32>
    %cst_114 = arith.constant dense<0.000000e+00> : vector<2x16xf32>
    %267 = tpu.matmul %231, %44, %cst_114 {dimension_numbers = #tpu.dot_dimension_numbers<[1], [0], [0], [1], [0, 0, 1, 1], [], []>} : vector<2x16xf32>, vector<16x16xf32>, vector<2x16xf32> -> vector<2x16xf32>
    %268 = vector.broadcast %50 : vector<1x16xf32> to vector<2x16xf32>
    %269 = arith.addf %267, %268 : vector<2x16xf32>
    %cst_115 = arith.constant dense<0.000000e+00> : vector<2x16xf32>
    %270 = tpu.matmul %231, %46, %cst_115 {dimension_numbers = #tpu.dot_dimension_numbers<[1], [0], [0], [1], [0, 0, 1, 1], [], []>} : vector<2x16xf32>, vector<16x16xf32>, vector<2x16xf32> -> vector<2x16xf32>
    %271 = vector.broadcast %52 : vector<1x16xf32> to vector<2x16xf32>
    %272 = arith.addf %270, %271 : vector<2x16xf32>
    %cst_116 = arith.constant dense<0.000000e+00> : vector<2x16xf32>
    %273 = tpu.matmul %231, %48, %cst_116 {dimension_numbers = #tpu.dot_dimension_numbers<[1], [0], [0], [1], [0, 0, 1, 1], [], []>} : vector<2x16xf32>, vector<16x16xf32>, vector<2x16xf32> -> vector<2x16xf32>
    %274 = vector.broadcast %54 : vector<1x16xf32> to vector<2x16xf32>
    %275 = arith.addf %273, %274 : vector<2x16xf32>
    %276 = arith.addf %261, %269 : vector<2x16xf32>
    %277 = arith.negf %276 : vector<2x16xf32>
    %278 = math.exp %277 : vector<2x16xf32>
    %cst_117 = arith.constant 1.000000e+00 : f32
    %279 = vector.broadcast %cst_117 : f32 to vector<2x16xf32>
    %280 = arith.addf %279, %278 : vector<2x16xf32>
    %281 = arith.divf %279, %280 : vector<2x16xf32>
    %282 = arith.addf %262, %272 : vector<2x16xf32>
    %283 = arith.negf %282 : vector<2x16xf32>
    %284 = math.exp %283 : vector<2x16xf32>
    %cst_118 = arith.constant 1.000000e+00 : f32
    %285 = vector.broadcast %cst_118 : f32 to vector<2x16xf32>
    %286 = arith.addf %285, %284 : vector<2x16xf32>
    %287 = arith.divf %285, %286 : vector<2x16xf32>
    %288 = arith.mulf %281, %275 : vector<2x16xf32>
    %289 = arith.addf %263, %288 : vector<2x16xf32>
    %290 = math.tanh %289 : vector<2x16xf32>
    %cst_119 = arith.constant 1.000000e+00 : f32
    %291 = vector.broadcast %cst_119 : f32 to vector<2x16xf32>
    %292 = arith.subf %291, %287 : vector<2x16xf32>
    %293 = arith.mulf %292, %290 : vector<2x16xf32>
    %294 = arith.mulf %287, %231 : vector<2x16xf32>
    %295 = arith.addf %293, %294 : vector<2x16xf32>
    %cst_120 = arith.constant dense<0.000000e+00> : vector<2x16xf32>
    %296 = tpu.matmul %260, %56, %cst_120 {dimension_numbers = #tpu.dot_dimension_numbers<[1], [0], [0], [1], [0, 0, 1, 1], [], []>} : vector<2x16xf32>, vector<16x16xf32>, vector<2x16xf32> -> vector<2x16xf32>
    %297 = vector.broadcast %62 : vector<1x16xf32> to vector<2x16xf32>
    %298 = arith.addf %296, %297 : vector<2x16xf32>
    %cst_121 = arith.constant dense<0.000000e+00> : vector<2x16xf32>
    %299 = tpu.matmul %260, %58, %cst_121 {dimension_numbers = #tpu.dot_dimension_numbers<[1], [0], [0], [1], [0, 0, 1, 1], [], []>} : vector<2x16xf32>, vector<16x16xf32>, vector<2x16xf32> -> vector<2x16xf32>
    %300 = vector.broadcast %64 : vector<1x16xf32> to vector<2x16xf32>
    %301 = arith.addf %299, %300 : vector<2x16xf32>
    %cst_122 = arith.constant dense<0.000000e+00> : vector<2x16xf32>
    %302 = tpu.matmul %260, %60, %cst_122 {dimension_numbers = #tpu.dot_dimension_numbers<[1], [0], [0], [1], [0, 0, 1, 1], [], []>} : vector<2x16xf32>, vector<16x16xf32>, vector<2x16xf32> -> vector<2x16xf32>
    %303 = vector.broadcast %66 : vector<1x16xf32> to vector<2x16xf32>
    %304 = arith.addf %302, %303 : vector<2x16xf32>
    %305 = arith.addf %264, %298 : vector<2x16xf32>
    %306 = arith.negf %305 : vector<2x16xf32>
    %307 = math.exp %306 : vector<2x16xf32>
    %cst_123 = arith.constant 1.000000e+00 : f32
    %308 = vector.broadcast %cst_123 : f32 to vector<2x16xf32>
    %309 = arith.addf %308, %307 : vector<2x16xf32>
    %310 = arith.divf %308, %309 : vector<2x16xf32>
    %311 = arith.addf %265, %301 : vector<2x16xf32>
    %312 = arith.negf %311 : vector<2x16xf32>
    %313 = math.exp %312 : vector<2x16xf32>
    %cst_124 = arith.constant 1.000000e+00 : f32
    %314 = vector.broadcast %cst_124 : f32 to vector<2x16xf32>
    %315 = arith.addf %314, %313 : vector<2x16xf32>
    %316 = arith.divf %314, %315 : vector<2x16xf32>
    %317 = arith.mulf %310, %304 : vector<2x16xf32>
    %318 = arith.addf %266, %317 : vector<2x16xf32>
    %319 = math.tanh %318 : vector<2x16xf32>
    %cst_125 = arith.constant 1.000000e+00 : f32
    %320 = vector.broadcast %cst_125 : f32 to vector<2x16xf32>
    %321 = arith.subf %320, %316 : vector<2x16xf32>
    %322 = arith.mulf %321, %319 : vector<2x16xf32>
    %323 = arith.mulf %316, %260 : vector<2x16xf32>
    %324 = arith.addf %322, %323 : vector<2x16xf32>
    %325 = vector.extract_strided_slice %7 {offsets = [8, 0], sizes = [2, 16], strides = [1, 1]} : vector<12x16xf32> to vector<2x16xf32>
    %326 = vector.extract_strided_slice %14 {offsets = [8, 0], sizes = [2, 16], strides = [1, 1]} : vector<12x16xf32> to vector<2x16xf32>
    %327 = vector.extract_strided_slice %21 {offsets = [8, 0], sizes = [2, 16], strides = [1, 1]} : vector<12x16xf32> to vector<2x16xf32>
    %328 = vector.extract_strided_slice %28 {offsets = [2, 0], sizes = [2, 16], strides = [1, 1]} : vector<12x16xf32> to vector<2x16xf32>
    %329 = vector.extract_strided_slice %35 {offsets = [2, 0], sizes = [2, 16], strides = [1, 1]} : vector<12x16xf32> to vector<2x16xf32>
    %330 = vector.extract_strided_slice %42 {offsets = [2, 0], sizes = [2, 16], strides = [1, 1]} : vector<12x16xf32> to vector<2x16xf32>
    %cst_126 = arith.constant dense<0.000000e+00> : vector<2x16xf32>
    %331 = tpu.matmul %295, %44, %cst_126 {dimension_numbers = #tpu.dot_dimension_numbers<[1], [0], [0], [1], [0, 0, 1, 1], [], []>} : vector<2x16xf32>, vector<16x16xf32>, vector<2x16xf32> -> vector<2x16xf32>
    %332 = vector.broadcast %50 : vector<1x16xf32> to vector<2x16xf32>
    %333 = arith.addf %331, %332 : vector<2x16xf32>
    %cst_127 = arith.constant dense<0.000000e+00> : vector<2x16xf32>
    %334 = tpu.matmul %295, %46, %cst_127 {dimension_numbers = #tpu.dot_dimension_numbers<[1], [0], [0], [1], [0, 0, 1, 1], [], []>} : vector<2x16xf32>, vector<16x16xf32>, vector<2x16xf32> -> vector<2x16xf32>
    %335 = vector.broadcast %52 : vector<1x16xf32> to vector<2x16xf32>
    %336 = arith.addf %334, %335 : vector<2x16xf32>
    %cst_128 = arith.constant dense<0.000000e+00> : vector<2x16xf32>
    %337 = tpu.matmul %295, %48, %cst_128 {dimension_numbers = #tpu.dot_dimension_numbers<[1], [0], [0], [1], [0, 0, 1, 1], [], []>} : vector<2x16xf32>, vector<16x16xf32>, vector<2x16xf32> -> vector<2x16xf32>
    %338 = vector.broadcast %54 : vector<1x16xf32> to vector<2x16xf32>
    %339 = arith.addf %337, %338 : vector<2x16xf32>
    %340 = arith.addf %325, %333 : vector<2x16xf32>
    %341 = arith.negf %340 : vector<2x16xf32>
    %342 = math.exp %341 : vector<2x16xf32>
    %cst_129 = arith.constant 1.000000e+00 : f32
    %343 = vector.broadcast %cst_129 : f32 to vector<2x16xf32>
    %344 = arith.addf %343, %342 : vector<2x16xf32>
    %345 = arith.divf %343, %344 : vector<2x16xf32>
    %346 = arith.addf %326, %336 : vector<2x16xf32>
    %347 = arith.negf %346 : vector<2x16xf32>
    %348 = math.exp %347 : vector<2x16xf32>
    %cst_130 = arith.constant 1.000000e+00 : f32
    %349 = vector.broadcast %cst_130 : f32 to vector<2x16xf32>
    %350 = arith.addf %349, %348 : vector<2x16xf32>
    %351 = arith.divf %349, %350 : vector<2x16xf32>
    %352 = arith.mulf %345, %339 : vector<2x16xf32>
    %353 = arith.addf %327, %352 : vector<2x16xf32>
    %354 = math.tanh %353 : vector<2x16xf32>
    %cst_131 = arith.constant 1.000000e+00 : f32
    %355 = vector.broadcast %cst_131 : f32 to vector<2x16xf32>
    %356 = arith.subf %355, %351 : vector<2x16xf32>
    %357 = arith.mulf %356, %354 : vector<2x16xf32>
    %358 = arith.mulf %351, %295 : vector<2x16xf32>
    %359 = arith.addf %357, %358 : vector<2x16xf32>
    %cst_132 = arith.constant dense<0.000000e+00> : vector<2x16xf32>
    %360 = tpu.matmul %324, %56, %cst_132 {dimension_numbers = #tpu.dot_dimension_numbers<[1], [0], [0], [1], [0, 0, 1, 1], [], []>} : vector<2x16xf32>, vector<16x16xf32>, vector<2x16xf32> -> vector<2x16xf32>
    %361 = vector.broadcast %62 : vector<1x16xf32> to vector<2x16xf32>
    %362 = arith.addf %360, %361 : vector<2x16xf32>
    %cst_133 = arith.constant dense<0.000000e+00> : vector<2x16xf32>
    %363 = tpu.matmul %324, %58, %cst_133 {dimension_numbers = #tpu.dot_dimension_numbers<[1], [0], [0], [1], [0, 0, 1, 1], [], []>} : vector<2x16xf32>, vector<16x16xf32>, vector<2x16xf32> -> vector<2x16xf32>
    %364 = vector.broadcast %64 : vector<1x16xf32> to vector<2x16xf32>
    %365 = arith.addf %363, %364 : vector<2x16xf32>
    %cst_134 = arith.constant dense<0.000000e+00> : vector<2x16xf32>
    %366 = tpu.matmul %324, %60, %cst_134 {dimension_numbers = #tpu.dot_dimension_numbers<[1], [0], [0], [1], [0, 0, 1, 1], [], []>} : vector<2x16xf32>, vector<16x16xf32>, vector<2x16xf32> -> vector<2x16xf32>
    %367 = vector.broadcast %66 : vector<1x16xf32> to vector<2x16xf32>
    %368 = arith.addf %366, %367 : vector<2x16xf32>
    %369 = arith.addf %328, %362 : vector<2x16xf32>
    %370 = arith.negf %369 : vector<2x16xf32>
    %371 = math.exp %370 : vector<2x16xf32>
    %cst_135 = arith.constant 1.000000e+00 : f32
    %372 = vector.broadcast %cst_135 : f32 to vector<2x16xf32>
    %373 = arith.addf %372, %371 : vector<2x16xf32>
    %374 = arith.divf %372, %373 : vector<2x16xf32>
    %375 = arith.addf %329, %365 : vector<2x16xf32>
    %376 = arith.negf %375 : vector<2x16xf32>
    %377 = math.exp %376 : vector<2x16xf32>
    %cst_136 = arith.constant 1.000000e+00 : f32
    %378 = vector.broadcast %cst_136 : f32 to vector<2x16xf32>
    %379 = arith.addf %378, %377 : vector<2x16xf32>
    %380 = arith.divf %378, %379 : vector<2x16xf32>
    %381 = arith.mulf %374, %368 : vector<2x16xf32>
    %382 = arith.addf %330, %381 : vector<2x16xf32>
    %383 = math.tanh %382 : vector<2x16xf32>
    %cst_137 = arith.constant 1.000000e+00 : f32
    %384 = vector.broadcast %cst_137 : f32 to vector<2x16xf32>
    %385 = arith.subf %384, %380 : vector<2x16xf32>
    %386 = arith.mulf %385, %383 : vector<2x16xf32>
    %387 = arith.mulf %380, %324 : vector<2x16xf32>
    %388 = arith.addf %386, %387 : vector<2x16xf32>
    %389 = vector.extract_strided_slice %7 {offsets = [10, 0], sizes = [2, 16], strides = [1, 1]} : vector<12x16xf32> to vector<2x16xf32>
    %390 = vector.extract_strided_slice %14 {offsets = [10, 0], sizes = [2, 16], strides = [1, 1]} : vector<12x16xf32> to vector<2x16xf32>
    %391 = vector.extract_strided_slice %21 {offsets = [10, 0], sizes = [2, 16], strides = [1, 1]} : vector<12x16xf32> to vector<2x16xf32>
    %392 = vector.extract_strided_slice %28 {offsets = [0, 0], sizes = [2, 16], strides = [1, 1]} : vector<12x16xf32> to vector<2x16xf32>
    %393 = vector.extract_strided_slice %35 {offsets = [0, 0], sizes = [2, 16], strides = [1, 1]} : vector<12x16xf32> to vector<2x16xf32>
    %394 = vector.extract_strided_slice %42 {offsets = [0, 0], sizes = [2, 16], strides = [1, 1]} : vector<12x16xf32> to vector<2x16xf32>
    %cst_138 = arith.constant dense<0.000000e+00> : vector<2x16xf32>
    %395 = tpu.matmul %359, %44, %cst_138 {dimension_numbers = #tpu.dot_dimension_numbers<[1], [0], [0], [1], [0, 0, 1, 1], [], []>} : vector<2x16xf32>, vector<16x16xf32>, vector<2x16xf32> -> vector<2x16xf32>
    %396 = vector.broadcast %50 : vector<1x16xf32> to vector<2x16xf32>
    %397 = arith.addf %395, %396 : vector<2x16xf32>
    %cst_139 = arith.constant dense<0.000000e+00> : vector<2x16xf32>
    %398 = tpu.matmul %359, %46, %cst_139 {dimension_numbers = #tpu.dot_dimension_numbers<[1], [0], [0], [1], [0, 0, 1, 1], [], []>} : vector<2x16xf32>, vector<16x16xf32>, vector<2x16xf32> -> vector<2x16xf32>
    %399 = vector.broadcast %52 : vector<1x16xf32> to vector<2x16xf32>
    %400 = arith.addf %398, %399 : vector<2x16xf32>
    %cst_140 = arith.constant dense<0.000000e+00> : vector<2x16xf32>
    %401 = tpu.matmul %359, %48, %cst_140 {dimension_numbers = #tpu.dot_dimension_numbers<[1], [0], [0], [1], [0, 0, 1, 1], [], []>} : vector<2x16xf32>, vector<16x16xf32>, vector<2x16xf32> -> vector<2x16xf32>
    %402 = vector.broadcast %54 : vector<1x16xf32> to vector<2x16xf32>
    %403 = arith.addf %401, %402 : vector<2x16xf32>
    %404 = arith.addf %389, %397 : vector<2x16xf32>
    %405 = arith.negf %404 : vector<2x16xf32>
    %406 = math.exp %405 : vector<2x16xf32>
    %cst_141 = arith.constant 1.000000e+00 : f32
    %407 = vector.broadcast %cst_141 : f32 to vector<2x16xf32>
    %408 = arith.addf %407, %406 : vector<2x16xf32>
    %409 = arith.divf %407, %408 : vector<2x16xf32>
    %410 = arith.addf %390, %400 : vector<2x16xf32>
    %411 = arith.negf %410 : vector<2x16xf32>
    %412 = math.exp %411 : vector<2x16xf32>
    %cst_142 = arith.constant 1.000000e+00 : f32
    %413 = vector.broadcast %cst_142 : f32 to vector<2x16xf32>
    %414 = arith.addf %413, %412 : vector<2x16xf32>
    %415 = arith.divf %413, %414 : vector<2x16xf32>
    %416 = arith.mulf %409, %403 : vector<2x16xf32>
    %417 = arith.addf %391, %416 : vector<2x16xf32>
    %418 = math.tanh %417 : vector<2x16xf32>
    %cst_143 = arith.constant 1.000000e+00 : f32
    %419 = vector.broadcast %cst_143 : f32 to vector<2x16xf32>
    %420 = arith.subf %419, %415 : vector<2x16xf32>
    %421 = arith.mulf %420, %418 : vector<2x16xf32>
    %422 = arith.mulf %415, %359 : vector<2x16xf32>
    %423 = arith.addf %421, %422 : vector<2x16xf32>
    %cst_144 = arith.constant dense<0.000000e+00> : vector<2x16xf32>
    %424 = tpu.matmul %388, %56, %cst_144 {dimension_numbers = #tpu.dot_dimension_numbers<[1], [0], [0], [1], [0, 0, 1, 1], [], []>} : vector<2x16xf32>, vector<16x16xf32>, vector<2x16xf32> -> vector<2x16xf32>
    %425 = vector.broadcast %62 : vector<1x16xf32> to vector<2x16xf32>
    %426 = arith.addf %424, %425 : vector<2x16xf32>
    %cst_145 = arith.constant dense<0.000000e+00> : vector<2x16xf32>
    %427 = tpu.matmul %388, %58, %cst_145 {dimension_numbers = #tpu.dot_dimension_numbers<[1], [0], [0], [1], [0, 0, 1, 1], [], []>} : vector<2x16xf32>, vector<16x16xf32>, vector<2x16xf32> -> vector<2x16xf32>
    %428 = vector.broadcast %64 : vector<1x16xf32> to vector<2x16xf32>
    %429 = arith.addf %427, %428 : vector<2x16xf32>
    %cst_146 = arith.constant dense<0.000000e+00> : vector<2x16xf32>
    %430 = tpu.matmul %388, %60, %cst_146 {dimension_numbers = #tpu.dot_dimension_numbers<[1], [0], [0], [1], [0, 0, 1, 1], [], []>} : vector<2x16xf32>, vector<16x16xf32>, vector<2x16xf32> -> vector<2x16xf32>
    %431 = vector.broadcast %66 : vector<1x16xf32> to vector<2x16xf32>
    %432 = arith.addf %430, %431 : vector<2x16xf32>
    %433 = arith.addf %392, %426 : vector<2x16xf32>
    %434 = arith.negf %433 : vector<2x16xf32>
    %435 = math.exp %434 : vector<2x16xf32>
    %cst_147 = arith.constant 1.000000e+00 : f32
    %436 = vector.broadcast %cst_147 : f32 to vector<2x16xf32>
    %437 = arith.addf %436, %435 : vector<2x16xf32>
    %438 = arith.divf %436, %437 : vector<2x16xf32>
    %439 = arith.addf %393, %429 : vector<2x16xf32>
    %440 = arith.negf %439 : vector<2x16xf32>
    %441 = math.exp %440 : vector<2x16xf32>
    %cst_148 = arith.constant 1.000000e+00 : f32
    %442 = vector.broadcast %cst_148 : f32 to vector<2x16xf32>
    %443 = arith.addf %442, %441 : vector<2x16xf32>
    %444 = arith.divf %442, %443 : vector<2x16xf32>
    %445 = arith.mulf %438, %432 : vector<2x16xf32>
    %446 = arith.addf %394, %445 : vector<2x16xf32>
    %447 = math.tanh %446 : vector<2x16xf32>
    %cst_149 = arith.constant 1.000000e+00 : f32
    %448 = vector.broadcast %cst_149 : f32 to vector<2x16xf32>
    %449 = arith.subf %448, %444 : vector<2x16xf32>
    %450 = arith.mulf %449, %447 : vector<2x16xf32>
    %451 = arith.mulf %444, %388 : vector<2x16xf32>
    %452 = arith.addf %450, %451 : vector<2x16xf32>
    %c0_150 = arith.constant 0 : index
    %c0_151 = arith.constant 0 : index
    %453 = vector.load %arg11[%c0_150, %c0_151] : memref<16x16xf32, #tpu.memory_space<vmem>>, vector<16x16xf32>
    %cst_152 = arith.constant dense<0.000000e+00> : vector<2x16xf32>
    %454 = tpu.matmul %423, %453, %cst_152 {dimension_numbers = #tpu.dot_dimension_numbers<[1], [0], [0], [1], [0, 0, 1, 1], [], []>} : vector<2x16xf32>, vector<16x16xf32>, vector<2x16xf32> -> vector<2x16xf32>
    %c0_153 = arith.constant 0 : index
    %c0_154 = arith.constant 0 : index
    %455 = vector.load %arg12[%c0_153, %c0_154] : memref<16x16xf32, #tpu.memory_space<vmem>>, vector<16x16xf32>
    %cst_155 = arith.constant dense<0.000000e+00> : vector<2x16xf32>
    %456 = tpu.matmul %452, %455, %cst_155 {dimension_numbers = #tpu.dot_dimension_numbers<[1], [0], [0], [1], [0, 0, 1, 1], [], []>} : vector<2x16xf32>, vector<16x16xf32>, vector<2x16xf32> -> vector<2x16xf32>
    %457 = arith.addf %454, %456 : vector<2x16xf32>
    %c0_156 = arith.constant 0 : index
    %c0_157 = arith.constant 0 : index
    %458 = vector.load %arg13[%c0_156, %c0_157] : memref<1x16xf32, #tpu.memory_space<vmem>>, vector<1x16xf32>
    %459 = vector.broadcast %458 : vector<1x16xf32> to vector<2x16xf32>
    %460 = arith.addf %457, %459 : vector<2x16xf32>
    %461 = math.tanh %460 : vector<2x16xf32>
    %462 = tpu.concatenate %103, %167, %231, %295, %359, %423 in 0 : vector<2x16xf32>, vector<2x16xf32>, vector<2x16xf32>, vector<2x16xf32>, vector<2x16xf32>, vector<2x16xf32> -> vector<12x16xf32>
    %463 = tpu.concatenate %452, %388, %324, %260, %196, %132 in 0 : vector<2x16xf32>, vector<2x16xf32>, vector<2x16xf32>, vector<2x16xf32>, vector<2x16xf32>, vector<2x16xf32> -> vector<12x16xf32>
    %c0_158 = arith.constant 0 : index
    %c0_159 = arith.constant 0 : index
    %464 = vector.load %arg15[%c0_158, %c0_159] : memref<16x16xf32, #tpu.memory_space<vmem>>, vector<16x16xf32>
    %cst_160 = arith.constant dense<0.000000e+00> : vector<12x16xf32>
    %465 = tpu.matmul %462, %464, %cst_160 {dimension_numbers = #tpu.dot_dimension_numbers<[1], [0], [0], [1], [0, 0, 1, 1], [], []>} : vector<12x16xf32>, vector<16x16xf32>, vector<12x16xf32> -> vector<12x16xf32>
    %c0_161 = arith.constant 0 : index
    %c0_162 = arith.constant 0 : index
    %466 = vector.load %arg16[%c0_161, %c0_162] : memref<16x16xf32, #tpu.memory_space<vmem>>, vector<16x16xf32>
    %cst_163 = arith.constant dense<0.000000e+00> : vector<12x16xf32>
    %467 = tpu.matmul %463, %466, %cst_163 {dimension_numbers = #tpu.dot_dimension_numbers<[1], [0], [0], [1], [0, 0, 1, 1], [], []>} : vector<12x16xf32>, vector<16x16xf32>, vector<12x16xf32> -> vector<12x16xf32>
    %468 = arith.addf %465, %467 : vector<12x16xf32>
    %c0_164 = arith.constant 0 : index
    %c0_165 = arith.constant 0 : index
    %469 = vector.load %arg17[%c0_164, %c0_165] : memref<1x16xf32, #tpu.memory_space<vmem>>, vector<1x16xf32>
    %470 = vector.broadcast %469 : vector<1x16xf32> to vector<12x16xf32>
    %471 = arith.addf %468, %470 : vector<12x16xf32>
    %472 = vector.extract_strided_slice %471 {offsets = [0, 0], sizes = [2, 16], strides = [1, 1]} : vector<12x16xf32> to vector<2x16xf32>
    %473 = vector.extract_strided_slice %471 {offsets = [2, 0], sizes = [2, 16], strides = [1, 1]} : vector<12x16xf32> to vector<2x16xf32>
    %474 = vector.extract_strided_slice %471 {offsets = [4, 0], sizes = [2, 16], strides = [1, 1]} : vector<12x16xf32> to vector<2x16xf32>
    %475 = vector.extract_strided_slice %471 {offsets = [6, 0], sizes = [2, 16], strides = [1, 1]} : vector<12x16xf32> to vector<2x16xf32>
    %476 = vector.extract_strided_slice %471 {offsets = [8, 0], sizes = [2, 16], strides = [1, 1]} : vector<12x16xf32> to vector<2x16xf32>
    %477 = vector.extract_strided_slice %471 {offsets = [10, 0], sizes = [2, 16], strides = [1, 1]} : vector<12x16xf32> to vector<2x16xf32>
    %c0_166 = arith.constant 0 : index
    %c0_167 = arith.constant 0 : index
    %478 = vector.load %arg14[%c0_166, %c0_167] : memref<16x16xf32, #tpu.memory_space<vmem>>, vector<16x16xf32>
    %c0_168 = arith.constant 0 : index
    %c0_169 = arith.constant 0 : index
    %479 = vector.load %arg18[%c0_168, %c0_169] : memref<1x16xf32, #tpu.memory_space<vmem>>, vector<1x16xf32>
    %c0_170 = arith.constant 0 : index
    %c0_171 = arith.constant 0 : index
    %c0_172 = arith.constant 0 : index
    %480 = vector.load %arg19[%c0_170, %c0_171, %c0_172] : memref<3x128x16xf32, #tpu.memory_space<vmem>>, vector<1x128x16xf32>
    %481 = vector.shape_cast %480 : vector<1x128x16xf32> to vector<128x16xf32>
    %c1_173 = arith.constant 1 : index
    %c0_174 = arith.constant 0 : index
    %c0_175 = arith.constant 0 : index
    %482 = vector.load %arg19[%c1_173, %c0_174, %c0_175] : memref<3x128x16xf32, #tpu.memory_space<vmem>>, vector<1x128x16xf32>
    %483 = vector.shape_cast %482 : vector<1x128x16xf32> to vector<128x16xf32>
    %c2_176 = arith.constant 2 : index
    %c0_177 = arith.constant 0 : index
    %c0_178 = arith.constant 0 : index
    %484 = vector.load %arg19[%c2_176, %c0_177, %c0_178] : memref<3x128x16xf32, #tpu.memory_space<vmem>>, vector<1x128x16xf32>
    %485 = vector.shape_cast %484 : vector<1x128x16xf32> to vector<128x16xf32>
    %c0_179 = arith.constant 0 : index
    %c0_180 = arith.constant 0 : index
    %c0_181 = arith.constant 0 : index
    %486 = vector.load %arg20[%c0_179, %c0_180, %c0_181] : memref<3x16x16xf32, #tpu.memory_space<vmem>>, vector<1x16x16xf32>
    %487 = vector.shape_cast %486 : vector<1x16x16xf32> to vector<16x16xf32>
    %c1_182 = arith.constant 1 : index
    %c0_183 = arith.constant 0 : index
    %c0_184 = arith.constant 0 : index
    %488 = vector.load %arg20[%c1_182, %c0_183, %c0_184] : memref<3x16x16xf32, #tpu.memory_space<vmem>>, vector<1x16x16xf32>
    %489 = vector.shape_cast %488 : vector<1x16x16xf32> to vector<16x16xf32>
    %c2_185 = arith.constant 2 : index
    %c0_186 = arith.constant 0 : index
    %c0_187 = arith.constant 0 : index
    %490 = vector.load %arg20[%c2_185, %c0_186, %c0_187] : memref<3x16x16xf32, #tpu.memory_space<vmem>>, vector<1x16x16xf32>
    %491 = vector.shape_cast %490 : vector<1x16x16xf32> to vector<16x16xf32>
    %c0_188 = arith.constant 0 : index
    %c0_189 = arith.constant 0 : index
    %c0_190 = arith.constant 0 : index
    %492 = vector.load %arg21[%c0_188, %c0_189, %c0_190] : memref<3x16x16xf32, #tpu.memory_space<vmem>>, vector<1x16x16xf32>
    %493 = vector.shape_cast %492 : vector<1x16x16xf32> to vector<16x16xf32>
    %c1_191 = arith.constant 1 : index
    %c0_192 = arith.constant 0 : index
    %c0_193 = arith.constant 0 : index
    %494 = vector.load %arg21[%c1_191, %c0_192, %c0_193] : memref<3x16x16xf32, #tpu.memory_space<vmem>>, vector<1x16x16xf32>
    %495 = vector.shape_cast %494 : vector<1x16x16xf32> to vector<16x16xf32>
    %c2_194 = arith.constant 2 : index
    %c0_195 = arith.constant 0 : index
    %c0_196 = arith.constant 0 : index
    %496 = vector.load %arg21[%c2_194, %c0_195, %c0_196] : memref<3x16x16xf32, #tpu.memory_space<vmem>>, vector<1x16x16xf32>
    %497 = vector.shape_cast %496 : vector<1x16x16xf32> to vector<16x16xf32>
    %c0_197 = arith.constant 0 : index
    %c0_198 = arith.constant 0 : index
    %c0_199 = arith.constant 0 : index
    %498 = vector.load %arg22[%c0_197, %c0_198, %c0_199] : memref<3x16x16xf32, #tpu.memory_space<vmem>>, vector<1x16x16xf32>
    %499 = vector.shape_cast %498 : vector<1x16x16xf32> to vector<16x16xf32>
    %c1_200 = arith.constant 1 : index
    %c0_201 = arith.constant 0 : index
    %c0_202 = arith.constant 0 : index
    %500 = vector.load %arg22[%c1_200, %c0_201, %c0_202] : memref<3x16x16xf32, #tpu.memory_space<vmem>>, vector<1x16x16xf32>
    %501 = vector.shape_cast %500 : vector<1x16x16xf32> to vector<16x16xf32>
    %c2_203 = arith.constant 2 : index
    %c0_204 = arith.constant 0 : index
    %c0_205 = arith.constant 0 : index
    %502 = vector.load %arg22[%c2_203, %c0_204, %c0_205] : memref<3x16x16xf32, #tpu.memory_space<vmem>>, vector<1x16x16xf32>
    %503 = vector.shape_cast %502 : vector<1x16x16xf32> to vector<16x16xf32>
    %c0_206 = arith.constant 0 : index
    %c0_207 = arith.constant 0 : index
    %c0_208 = arith.constant 0 : index
    %504 = vector.load %arg23[%c0_206, %c0_207, %c0_208] : memref<3x1x16xf32, #tpu.memory_space<vmem>>, vector<1x1x16xf32>
    %505 = vector.shape_cast %504 : vector<1x1x16xf32> to vector<1x16xf32>
    %c1_209 = arith.constant 1 : index
    %c0_210 = arith.constant 0 : index
    %c0_211 = arith.constant 0 : index
    %506 = vector.load %arg23[%c1_209, %c0_210, %c0_211] : memref<3x1x16xf32, #tpu.memory_space<vmem>>, vector<1x1x16xf32>
    %507 = vector.shape_cast %506 : vector<1x1x16xf32> to vector<1x16xf32>
    %c2_212 = arith.constant 2 : index
    %c0_213 = arith.constant 0 : index
    %c0_214 = arith.constant 0 : index
    %508 = vector.load %arg23[%c2_212, %c0_213, %c0_214] : memref<3x1x16xf32, #tpu.memory_space<vmem>>, vector<1x1x16xf32>
    %509 = vector.shape_cast %508 : vector<1x1x16xf32> to vector<1x16xf32>
    %c0_215 = arith.constant 0 : index
    %c0_216 = arith.constant 0 : index
    %c0_217 = arith.constant 0 : index
    %510 = vector.load %arg24[%c0_215, %c0_216, %c0_217] : memref<3x1x16xf32, #tpu.memory_space<vmem>>, vector<1x1x16xf32>
    %511 = vector.shape_cast %510 : vector<1x1x16xf32> to vector<1x16xf32>
    %c1_218 = arith.constant 1 : index
    %c0_219 = arith.constant 0 : index
    %c0_220 = arith.constant 0 : index
    %512 = vector.load %arg24[%c1_218, %c0_219, %c0_220] : memref<3x1x16xf32, #tpu.memory_space<vmem>>, vector<1x1x16xf32>
    %513 = vector.shape_cast %512 : vector<1x1x16xf32> to vector<1x16xf32>
    %c2_221 = arith.constant 2 : index
    %c0_222 = arith.constant 0 : index
    %c0_223 = arith.constant 0 : index
    %514 = vector.load %arg24[%c2_221, %c0_222, %c0_223] : memref<3x1x16xf32, #tpu.memory_space<vmem>>, vector<1x1x16xf32>
    %515 = vector.shape_cast %514 : vector<1x1x16xf32> to vector<1x16xf32>
    %c0_224 = arith.constant 0 : index
    %c0_225 = arith.constant 0 : index
    %516 = vector.load %arg25[%c0_224, %c0_225] : memref<16x128xf32, #tpu.memory_space<vmem>>, vector<16x128xf32>
    %c0_226 = arith.constant 0 : index
    %c0_227 = arith.constant 0 : index
    %517 = vector.load %arg26[%c0_226, %c0_227] : memref<16x128xf32, #tpu.memory_space<vmem>>, vector<16x128xf32>
    %c0_228 = arith.constant 0 : index
    %c0_229 = arith.constant 0 : index
    %518 = vector.load %arg27[%c0_228, %c0_229] : memref<16x128xf32, #tpu.memory_space<vmem>>, vector<16x128xf32>
    %c0_230 = arith.constant 0 : index
    %c0_231 = arith.constant 0 : index
    %519 = vector.load %arg28[%c0_230, %c0_231] : memref<128x128xf32, #tpu.memory_space<vmem>>, vector<128x128xf32>
    %c0_232 = arith.constant 0 : index
    %c0_233 = arith.constant 0 : index
    %520 = vector.load %arg29[%c0_232, %c0_233] : memref<1x128xf32, #tpu.memory_space<vmem>>, vector<1x128xf32>
    %521 = tpu.iota {dimensions = array<i32: 1>} : vector<2x128xi32>
    %522 = tpu.iota {dimensions = array<i32: 0>} : vector<2x128xi32>
    %cst_234 = arith.constant 0.000000e+00 : f32
    %523 = vector.broadcast %cst_234 : f32 to vector<2x128xf32>
    %c0_235 = arith.constant 0 : index
    %c0_236 = arith.constant 0 : index
    %c0_237 = arith.constant 0 : index
    %524 = vector.load %arg30[%c0_235, %c0_236, %c0_237] : memref<5x2x128xf32, #tpu.memory_space<vmem>>, vector<1x2x128xf32>
    %525 = vector.shape_cast %524 : vector<1x2x128xf32> to vector<2x128xf32>
    %526 = vector.shape_cast %523 : vector<2x128xf32> to vector<1x2x128xf32>
    tpu.vector_store %arg30[%c0_235, %c0_236, %c0_237], %526 {strides = array<i32>} : memref<5x2x128xf32, #tpu.memory_space<vmem>>, vector<1x2x128xf32>,
    %cst_238 = arith.constant 0.000000e+00 : f32
    %527 = vector.broadcast %cst_238 : f32 to vector<2x128xf32>
    %c0_i32 = arith.constant 0 : i32
    %528 = vector.broadcast %c0_i32 : i32 to vector<2x128xi32>
    %529 = arith.cmpi eq, %522, %528 : vector<2x128xi32>
    %c0_239 = arith.constant 0 : index
    %c0_240 = arith.constant 0 : index
    %530 = memref.load %arg1[%c0_239, %c0_240] : memref<5x2xi32, #tpu.memory_space<smem>>
    %531 = vector.broadcast %530 : i32 to vector<2x128xi32>
    %532 = arith.cmpi eq, %521, %531 : vector<2x128xi32>
    %533 = arith.andi %529, %532 : vector<2x128xi1>
    %cst_241 = arith.constant 1.000000e+00 : f32
    %534 = vector.broadcast %cst_241 : f32 to vector<2x128xf32>
    %535 = arith.select %533, %534, %527 : vector<2x128xi1>, vector<2x128xf32>
    %c1_i32 = arith.constant 1 : i32
    %536 = vector.broadcast %c1_i32 : i32 to vector<2x128xi32>
    %537 = arith.cmpi eq, %522, %536 : vector<2x128xi32>
    %c0_242 = arith.constant 0 : index
    %c1_243 = arith.constant 1 : index
    %538 = memref.load %arg1[%c0_242, %c1_243] : memref<5x2xi32, #tpu.memory_space<smem>>
    %539 = vector.broadcast %538 : i32 to vector<2x128xi32>
    %540 = arith.cmpi eq, %521, %539 : vector<2x128xi32>
    %541 = arith.andi %537, %540 : vector<2x128xi1>
    %cst_244 = arith.constant 1.000000e+00 : f32
    %542 = vector.broadcast %cst_244 : f32 to vector<2x128xf32>
    %543 = arith.select %541, %542, %535 : vector<2x128xi1>, vector<2x128xf32>
    %cst_245 = arith.constant dense<0.000000e+00> : vector<2x16xf32>
    %544 = tpu.matmul %461, %478, %cst_245 {dimension_numbers = #tpu.dot_dimension_numbers<[1], [0], [0], [1], [0, 0, 1, 1], [], []>} : vector<2x16xf32>, vector<16x16xf32>, vector<2x16xf32> -> vector<2x16xf32>
    %545 = arith.addf %472, %544 : vector<2x16xf32>
    %546 = math.tanh %545 : vector<2x16xf32>
    %547 = vector.broadcast %479 : vector<1x16xf32> to vector<2x16xf32>
    %548 = arith.mulf %546, %547 : vector<2x16xf32>
    %cst_246 = arith.constant dense<0.000000e+00> : vector<2xf32>
    %549 = vector.multi_reduction <add>, %548, %cst_246 [1] : vector<2x16xf32> to vector<2xf32>
    %550 = vector.shape_cast %549 : vector<2xf32> to vector<2x1xf32>
    %551 = arith.addf %473, %544 : vector<2x16xf32>
    %552 = math.tanh %551 : vector<2x16xf32>
    %553 = vector.broadcast %479 : vector<1x16xf32> to vector<2x16xf32>
    %554 = arith.mulf %552, %553 : vector<2x16xf32>
    %cst_247 = arith.constant dense<0.000000e+00> : vector<2xf32>
    %555 = vector.multi_reduction <add>, %554, %cst_247 [1] : vector<2x16xf32> to vector<2xf32>
    %556 = vector.shape_cast %555 : vector<2xf32> to vector<2x1xf32>
    %557 = arith.addf %474, %544 : vector<2x16xf32>
    %558 = math.tanh %557 : vector<2x16xf32>
    %559 = vector.broadcast %479 : vector<1x16xf32> to vector<2x16xf32>
    %560 = arith.mulf %558, %559 : vector<2x16xf32>
    %cst_248 = arith.constant dense<0.000000e+00> : vector<2xf32>
    %561 = vector.multi_reduction <add>, %560, %cst_248 [1] : vector<2x16xf32> to vector<2xf32>
    %562 = vector.shape_cast %561 : vector<2xf32> to vector<2x1xf32>
    %563 = arith.addf %475, %544 : vector<2x16xf32>
    %564 = math.tanh %563 : vector<2x16xf32>
    %565 = vector.broadcast %479 : vector<1x16xf32> to vector<2x16xf32>
    %566 = arith.mulf %564, %565 : vector<2x16xf32>
    %cst_249 = arith.constant dense<0.000000e+00> : vector<2xf32>
    %567 = vector.multi_reduction <add>, %566, %cst_249 [1] : vector<2x16xf32> to vector<2xf32>
    %568 = vector.shape_cast %567 : vector<2xf32> to vector<2x1xf32>
    %569 = arith.addf %476, %544 : vector<2x16xf32>
    %570 = math.tanh %569 : vector<2x16xf32>
    %571 = vector.broadcast %479 : vector<1x16xf32> to vector<2x16xf32>
    %572 = arith.mulf %570, %571 : vector<2x16xf32>
    %cst_250 = arith.constant dense<0.000000e+00> : vector<2xf32>
    %573 = vector.multi_reduction <add>, %572, %cst_250 [1] : vector<2x16xf32> to vector<2xf32>
    %574 = vector.shape_cast %573 : vector<2xf32> to vector<2x1xf32>
    %575 = arith.addf %477, %544 : vector<2x16xf32>
    %576 = math.tanh %575 : vector<2x16xf32>
    %577 = vector.broadcast %479 : vector<1x16xf32> to vector<2x16xf32>
    %578 = arith.mulf %576, %577 : vector<2x16xf32>
    %cst_251 = arith.constant dense<0.000000e+00> : vector<2xf32>
    %579 = vector.multi_reduction <add>, %578, %cst_251 [1] : vector<2x16xf32> to vector<2xf32>
    %580 = vector.shape_cast %579 : vector<2xf32> to vector<2x1xf32>
    %581 = arith.maximumf %550, %556 : vector<2x1xf32>
    %582 = arith.maximumf %581, %562 : vector<2x1xf32>
    %583 = arith.maximumf %582, %568 : vector<2x1xf32>
    %584 = arith.maximumf %583, %574 : vector<2x1xf32>
    %585 = arith.maximumf %584, %580 : vector<2x1xf32>
    %586 = arith.subf %550, %585 : vector<2x1xf32>
    %587 = math.exp %586 : vector<2x1xf32>
    %588 = arith.subf %556, %585 : vector<2x1xf32>
    %589 = math.exp %588 : vector<2x1xf32>
    %590 = arith.subf %562, %585 : vector<2x1xf32>
    %591 = math.exp %590 : vector<2x1xf32>
    %592 = arith.subf %568, %585 : vector<2x1xf32>
    %593 = math.exp %592 : vector<2x1xf32>
    %594 = arith.subf %574, %585 : vector<2x1xf32>
    %595 = math.exp %594 : vector<2x1xf32>
    %596 = arith.subf %580, %585 : vector<2x1xf32>
    %597 = math.exp %596 : vector<2x1xf32>
    %598 = arith.addf %587, %589 : vector<2x1xf32>
    %599 = arith.addf %598, %591 : vector<2x1xf32>
    %600 = arith.addf %599, %593 : vector<2x1xf32>
    %601 = arith.addf %600, %595 : vector<2x1xf32>
    %602 = arith.addf %601, %597 : vector<2x1xf32>
    %cst_252 = arith.constant 1.000000e+00 : f32
    %603 = vector.broadcast %cst_252 : f32 to vector<2x1xf32>
    %604 = arith.divf %603, %602 : vector<2x1xf32>
    %605 = arith.mulf %587, %604 : vector<2x1xf32>
    %606 = vector.broadcast %605 : vector<2x1xf32> to vector<2x16xf32>
    %607 = arith.mulf %606, %103 : vector<2x16xf32>
    %608 = arith.mulf %587, %604 : vector<2x1xf32>
    %609 = vector.broadcast %608 : vector<2x1xf32> to vector<2x16xf32>
    %610 = arith.mulf %609, %452 : vector<2x16xf32>
    %611 = arith.mulf %589, %604 : vector<2x1xf32>
    %612 = vector.broadcast %611 : vector<2x1xf32> to vector<2x16xf32>
    %613 = arith.mulf %612, %167 : vector<2x16xf32>
    %614 = arith.addf %607, %613 : vector<2x16xf32>
    %615 = vector.broadcast %611 : vector<2x1xf32> to vector<2x16xf32>
    %616 = arith.mulf %615, %388 : vector<2x16xf32>
    %617 = arith.addf %610, %616 : vector<2x16xf32>
    %618 = arith.mulf %591, %604 : vector<2x1xf32>
    %619 = vector.broadcast %618 : vector<2x1xf32> to vector<2x16xf32>
    %620 = arith.mulf %619, %231 : vector<2x16xf32>
    %621 = arith.addf %614, %620 : vector<2x16xf32>
    %622 = vector.broadcast %618 : vector<2x1xf32> to vector<2x16xf32>
    %623 = arith.mulf %622, %324 : vector<2x16xf32>
    %624 = arith.addf %617, %623 : vector<2x16xf32>
    %625 = arith.mulf %593, %604 : vector<2x1xf32>
    %626 = vector.broadcast %625 : vector<2x1xf32> to vector<2x16xf32>
    %627 = arith.mulf %626, %295 : vector<2x16xf32>
    %628 = arith.addf %621, %627 : vector<2x16xf32>
    %629 = vector.broadcast %625 : vector<2x1xf32> to vector<2x16xf32>
    %630 = arith.mulf %629, %260 : vector<2x16xf32>
    %631 = arith.addf %624, %630 : vector<2x16xf32>
    %632 = arith.mulf %595, %604 : vector<2x1xf32>
    %633 = vector.broadcast %632 : vector<2x1xf32> to vector<2x16xf32>
    %634 = arith.mulf %633, %359 : vector<2x16xf32>
    %635 = arith.addf %628, %634 : vector<2x16xf32>
    %636 = vector.broadcast %632 : vector<2x1xf32> to vector<2x16xf32>
    %637 = arith.mulf %636, %196 : vector<2x16xf32>
    %638 = arith.addf %631, %637 : vector<2x16xf32>
    %639 = arith.mulf %597, %604 : vector<2x1xf32>
    %640 = vector.broadcast %639 : vector<2x1xf32> to vector<2x16xf32>
    %641 = arith.mulf %640, %423 : vector<2x16xf32>
    %642 = arith.addf %635, %641 : vector<2x16xf32>
    %643 = vector.broadcast %639 : vector<2x1xf32> to vector<2x16xf32>
    %644 = arith.mulf %643, %132 : vector<2x16xf32>
    %645 = arith.addf %638, %644 : vector<2x16xf32>
    %cst_253 = arith.constant dense<0.000000e+00> : vector<2x16xf32>
    %646 = tpu.matmul %543, %481, %cst_253 {dimension_numbers = #tpu.dot_dimension_numbers<[1], [0], [0], [1], [0, 0, 1, 1], [], []>} : vector<2x128xf32>, vector<128x16xf32>, vector<2x16xf32> -> vector<2x16xf32>
    %cst_254 = arith.constant dense<0.000000e+00> : vector<2x16xf32>
    %647 = tpu.matmul %642, %487, %cst_254 {dimension_numbers = #tpu.dot_dimension_numbers<[1], [0], [0], [1], [0, 0, 1, 1], [], []>} : vector<2x16xf32>, vector<16x16xf32>, vector<2x16xf32> -> vector<2x16xf32>
    %648 = arith.addf %646, %647 : vector<2x16xf32>
    %cst_255 = arith.constant dense<0.000000e+00> : vector<2x16xf32>
    %649 = tpu.matmul %645, %493, %cst_255 {dimension_numbers = #tpu.dot_dimension_numbers<[1], [0], [0], [1], [0, 0, 1, 1], [], []>} : vector<2x16xf32>, vector<16x16xf32>, vector<2x16xf32> -> vector<2x16xf32>
    %650 = arith.addf %648, %649 : vector<2x16xf32>
    %651 = vector.broadcast %505 : vector<1x16xf32> to vector<2x16xf32>
    %652 = arith.addf %650, %651 : vector<2x16xf32>
    %cst_256 = arith.constant dense<0.000000e+00> : vector<2x16xf32>
    %653 = tpu.matmul %461, %499, %cst_256 {dimension_numbers = #tpu.dot_dimension_numbers<[1], [0], [0], [1], [0, 0, 1, 1], [], []>} : vector<2x16xf32>, vector<16x16xf32>, vector<2x16xf32> -> vector<2x16xf32>
    %654 = vector.broadcast %511 : vector<1x16xf32> to vector<2x16xf32>
    %655 = arith.addf %653, %654 : vector<2x16xf32>
    %656 = arith.addf %652, %655 : vector<2x16xf32>
    %657 = arith.negf %656 : vector<2x16xf32>
    %658 = math.exp %657 : vector<2x16xf32>
    %cst_257 = arith.constant 1.000000e+00 : f32
    %659 = vector.broadcast %cst_257 : f32 to vector<2x16xf32>
    %660 = arith.addf %659, %658 : vector<2x16xf32>
    %661 = arith.divf %659, %660 : vector<2x16xf32>
    %cst_258 = arith.constant dense<0.000000e+00> : vector<2x16xf32>
    %662 = tpu.matmul %543, %483, %cst_258 {dimension_numbers = #tpu.dot_dimension_numbers<[1], [0], [0], [1], [0, 0, 1, 1], [], []>} : vector<2x128xf32>, vector<128x16xf32>, vector<2x16xf32> -> vector<2x16xf32>
    %cst_259 = arith.constant dense<0.000000e+00> : vector<2x16xf32>
    %663 = tpu.matmul %642, %489, %cst_259 {dimension_numbers = #tpu.dot_dimension_numbers<[1], [0], [0], [1], [0, 0, 1, 1], [], []>} : vector<2x16xf32>, vector<16x16xf32>, vector<2x16xf32> -> vector<2x16xf32>
    %664 = arith.addf %662, %663 : vector<2x16xf32>
    %cst_260 = arith.constant dense<0.000000e+00> : vector<2x16xf32>
    %665 = tpu.matmul %645, %495, %cst_260 {dimension_numbers = #tpu.dot_dimension_numbers<[1], [0], [0], [1], [0, 0, 1, 1], [], []>} : vector<2x16xf32>, vector<16x16xf32>, vector<2x16xf32> -> vector<2x16xf32>
    %666 = arith.addf %664, %665 : vector<2x16xf32>
    %667 = vector.broadcast %507 : vector<1x16xf32> to vector<2x16xf32>
    %668 = arith.addf %666, %667 : vector<2x16xf32>
    %cst_261 = arith.constant dense<0.000000e+00> : vector<2x16xf32>
    %669 = tpu.matmul %461, %501, %cst_261 {dimension_numbers = #tpu.dot_dimension_numbers<[1], [0], [0], [1], [0, 0, 1, 1], [], []>} : vector<2x16xf32>, vector<16x16xf32>, vector<2x16xf32> -> vector<2x16xf32>
    %670 = vector.broadcast %513 : vector<1x16xf32> to vector<2x16xf32>
    %671 = arith.addf %669, %670 : vector<2x16xf32>
    %672 = arith.addf %668, %671 : vector<2x16xf32>
    %673 = arith.negf %672 : vector<2x16xf32>
    %674 = math.exp %673 : vector<2x16xf32>
    %cst_262 = arith.constant 1.000000e+00 : f32
    %675 = vector.broadcast %cst_262 : f32 to vector<2x16xf32>
    %676 = arith.addf %675, %674 : vector<2x16xf32>
    %677 = arith.divf %675, %676 : vector<2x16xf32>
    %cst_263 = arith.constant dense<0.000000e+00> : vector<2x16xf32>
    %678 = tpu.matmul %543, %485, %cst_263 {dimension_numbers = #tpu.dot_dimension_numbers<[1], [0], [0], [1], [0, 0, 1, 1], [], []>} : vector<2x128xf32>, vector<128x16xf32>, vector<2x16xf32> -> vector<2x16xf32>
    %cst_264 = arith.constant dense<0.000000e+00> : vector<2x16xf32>
    %679 = tpu.matmul %642, %491, %cst_264 {dimension_numbers = #tpu.dot_dimension_numbers<[1], [0], [0], [1], [0, 0, 1, 1], [], []>} : vector<2x16xf32>, vector<16x16xf32>, vector<2x16xf32> -> vector<2x16xf32>
    %680 = arith.addf %678, %679 : vector<2x16xf32>
    %cst_265 = arith.constant dense<0.000000e+00> : vector<2x16xf32>
    %681 = tpu.matmul %645, %497, %cst_265 {dimension_numbers = #tpu.dot_dimension_numbers<[1], [0], [0], [1], [0, 0, 1, 1], [], []>} : vector<2x16xf32>, vector<16x16xf32>, vector<2x16xf32> -> vector<2x16xf32>
    %682 = arith.addf %680, %681 : vector<2x16xf32>
    %683 = vector.broadcast %509 : vector<1x16xf32> to vector<2x16xf32>
    %684 = arith.addf %682, %683 : vector<2x16xf32>
    %cst_266 = arith.constant dense<0.000000e+00> : vector<2x16xf32>
    %685 = tpu.matmul %461, %503, %cst_266 {dimension_numbers = #tpu.dot_dimension_numbers<[1], [0], [0], [1], [0, 0, 1, 1], [], []>} : vector<2x16xf32>, vector<16x16xf32>, vector<2x16xf32> -> vector<2x16xf32>
    %686 = vector.broadcast %515 : vector<1x16xf32> to vector<2x16xf32>
    %687 = arith.addf %685, %686 : vector<2x16xf32>
    %688 = arith.mulf %661, %687 : vector<2x16xf32>
    %689 = arith.addf %684, %688 : vector<2x16xf32>
    %690 = math.tanh %689 : vector<2x16xf32>
    %cst_267 = arith.constant 1.000000e+00 : f32
    %691 = vector.broadcast %cst_267 : f32 to vector<2x16xf32>
    %692 = arith.subf %691, %677 : vector<2x16xf32>
    %693 = arith.mulf %692, %690 : vector<2x16xf32>
    %694 = arith.mulf %677, %461 : vector<2x16xf32>
    %695 = arith.addf %693, %694 : vector<2x16xf32>
    %cst_268 = arith.constant dense<0.000000e+00> : vector<2x128xf32>
    %696 = tpu.matmul %695, %516, %cst_268 {dimension_numbers = #tpu.dot_dimension_numbers<[1], [0], [0], [1], [0, 0, 1, 1], [], []>} : vector<2x16xf32>, vector<16x128xf32>, vector<2x128xf32> -> vector<2x128xf32>
    %cst_269 = arith.constant dense<0.000000e+00> : vector<2x128xf32>
    %697 = tpu.matmul %642, %517, %cst_269 {dimension_numbers = #tpu.dot_dimension_numbers<[1], [0], [0], [1], [0, 0, 1, 1], [], []>} : vector<2x16xf32>, vector<16x128xf32>, vector<2x128xf32> -> vector<2x128xf32>
    %698 = arith.addf %696, %697 : vector<2x128xf32>
    %cst_270 = arith.constant dense<0.000000e+00> : vector<2x128xf32>
    %699 = tpu.matmul %645, %518, %cst_270 {dimension_numbers = #tpu.dot_dimension_numbers<[1], [0], [0], [1], [0, 0, 1, 1], [], []>} : vector<2x16xf32>, vector<16x128xf32>, vector<2x128xf32> -> vector<2x128xf32>
    %700 = arith.addf %698, %699 : vector<2x128xf32>
    %cst_271 = arith.constant dense<0.000000e+00> : vector<2x128xf32>
    %701 = tpu.matmul %543, %519, %cst_271 {dimension_numbers = #tpu.dot_dimension_numbers<[1], [0], [0], [1], [0, 0, 1, 1], [], []>} : vector<2x128xf32>, vector<128x128xf32>, vector<2x128xf32> -> vector<2x128xf32>
    %702 = arith.addf %700, %701 : vector<2x128xf32>
    %703 = vector.broadcast %520 : vector<1x128xf32> to vector<2x128xf32>
    %704 = arith.addf %702, %703 : vector<2x128xf32>
    %c1_272 = arith.constant 1 : index
    %c0_273 = arith.constant 0 : index
    %c0_274 = arith.constant 0 : index
    %705 = vector.load %arg30[%c1_272, %c0_273, %c0_274] : memref<5x2x128xf32, #tpu.memory_space<vmem>>, vector<1x2x128xf32>
    %706 = vector.shape_cast %705 : vector<1x2x128xf32> to vector<2x128xf32>
    %707 = vector.shape_cast %704 : vector<2x128xf32> to vector<1x2x128xf32>
    tpu.vector_store %arg30[%c1_272, %c0_273, %c0_274], %707 {strides = array<i32>} : memref<5x2x128xf32, #tpu.memory_space<vmem>>, vector<1x2x128xf32>,
    %c18_i32 = arith.constant 18 : i32
    %708 = vector.broadcast %c18_i32 : i32 to vector<2x128xi32>
    %709 = arith.cmpi slt, %521, %708 : vector<2x128xi32>
    %cst_275 = arith.constant -1.000000e+30 : f32
    %710 = vector.broadcast %cst_275 : f32 to vector<2x128xf32>
    %711 = arith.select %709, %704, %710 : vector<2x128xi1>, vector<2x128xf32>
    %cst_276 = arith.constant dense<0xFF800000> : vector<2xf32>
    %712 = vector.multi_reduction <maximumf>, %711, %cst_276 [1] : vector<2x128xf32> to vector<2xf32>
    %713 = vector.shape_cast %712 : vector<2xf32> to vector<2x1xf32>
    %714 = vector.broadcast %713 : vector<2x1xf32> to vector<2x128xf32>
    %715 = arith.cmpf oeq, %711, %714 : vector<2x128xf32>
    %716 = arith.andi %715, %709 : vector<2x128xi1>
    %c128_i32 = arith.constant 128 : i32
    %717 = vector.broadcast %c128_i32 : i32 to vector<2x128xi32>
    %718 = arith.select %716, %521, %717 : vector<2x128xi1>, vector<2x128xi32>
    %cst_277 = arith.constant dense<2147483647> : vector<2xi32>
    %719 = vector.multi_reduction <minsi>, %718, %cst_277 [1] : vector<2x128xi32> to vector<2xi32>
    %720 = vector.shape_cast %719 : vector<2xi32> to vector<2x1xi32>
    %721 = vector.broadcast %720 : vector<2x1xi32> to vector<2x128xi32>
    %722 = arith.cmpi eq, %521, %721 : vector<2x128xi32>
    %723 = arith.extui %722 : vector<2x128xi1> to vector<2x128xi32>
    %724 = arith.sitofp %723 : vector<2x128xi32> to vector<2x128xf32>
    %c1_278 = arith.constant 1 : index
    %725 = memref.load %arg0[%c1_278] : memref<5xi32, #tpu.memory_space<smem>>
    %726 = arith.sitofp %725 : i32 to f32
    %cst_279 = arith.constant 0.000000e+00 : f32
    %727 = vector.broadcast %cst_279 : f32 to vector<2x128xf32>
    %c0_i32_280 = arith.constant 0 : i32
    %728 = vector.broadcast %c0_i32_280 : i32 to vector<2x128xi32>
    %729 = arith.cmpi eq, %522, %728 : vector<2x128xi32>
    %c1_281 = arith.constant 1 : index
    %c0_282 = arith.constant 0 : index
    %730 = memref.load %arg1[%c1_281, %c0_282] : memref<5x2xi32, #tpu.memory_space<smem>>
    %731 = vector.broadcast %730 : i32 to vector<2x128xi32>
    %732 = arith.cmpi eq, %521, %731 : vector<2x128xi32>
    %733 = arith.andi %729, %732 : vector<2x128xi1>
    %cst_283 = arith.constant 1.000000e+00 : f32
    %734 = vector.broadcast %cst_283 : f32 to vector<2x128xf32>
    %735 = arith.select %733, %734, %727 : vector<2x128xi1>, vector<2x128xf32>
    %c1_i32_284 = arith.constant 1 : i32
    %736 = vector.broadcast %c1_i32_284 : i32 to vector<2x128xi32>
    %737 = arith.cmpi eq, %522, %736 : vector<2x128xi32>
    %c1_285 = arith.constant 1 : index
    %c1_286 = arith.constant 1 : index
    %738 = memref.load %arg1[%c1_285, %c1_286] : memref<5x2xi32, #tpu.memory_space<smem>>
    %739 = vector.broadcast %738 : i32 to vector<2x128xi32>
    %740 = arith.cmpi eq, %521, %739 : vector<2x128xi32>
    %741 = arith.andi %737, %740 : vector<2x128xi1>
    %cst_287 = arith.constant 1.000000e+00 : f32
    %742 = vector.broadcast %cst_287 : f32 to vector<2x128xf32>
    %743 = arith.select %741, %742, %735 : vector<2x128xi1>, vector<2x128xf32>
    %744 = vector.broadcast %726 : f32 to vector<2x128xf32>
    %745 = arith.mulf %744, %743 : vector<2x128xf32>
    %cst_288 = arith.constant 1.000000e+00 : f32
    %746 = arith.subf %cst_288, %726 : f32
    %747 = vector.broadcast %746 : f32 to vector<2x128xf32>
    %748 = arith.mulf %747, %724 : vector<2x128xf32>
    %749 = arith.addf %745, %748 : vector<2x128xf32>
    %cst_289 = arith.constant dense<0.000000e+00> : vector<2x16xf32>
    %750 = tpu.matmul %695, %478, %cst_289 {dimension_numbers = #tpu.dot_dimension_numbers<[1], [0], [0], [1], [0, 0, 1, 1], [], []>} : vector<2x16xf32>, vector<16x16xf32>, vector<2x16xf32> -> vector<2x16xf32>
    %751 = arith.addf %472, %750 : vector<2x16xf32>
    %752 = math.tanh %751 : vector<2x16xf32>
    %753 = vector.broadcast %479 : vector<1x16xf32> to vector<2x16xf32>
    %754 = arith.mulf %752, %753 : vector<2x16xf32>
    %cst_290 = arith.constant dense<0.000000e+00> : vector<2xf32>
    %755 = vector.multi_reduction <add>, %754, %cst_290 [1] : vector<2x16xf32> to vector<2xf32>
    %756 = vector.shape_cast %755 : vector<2xf32> to vector<2x1xf32>
    %757 = arith.addf %473, %750 : vector<2x16xf32>
    %758 = math.tanh %757 : vector<2x16xf32>
    %759 = vector.broadcast %479 : vector<1x16xf32> to vector<2x16xf32>
    %760 = arith.mulf %758, %759 : vector<2x16xf32>
    %cst_291 = arith.constant dense<0.000000e+00> : vector<2xf32>
    %761 = vector.multi_reduction <add>, %760, %cst_291 [1] : vector<2x16xf32> to vector<2xf32>
    %762 = vector.shape_cast %761 : vector<2xf32> to vector<2x1xf32>
    %763 = arith.addf %474, %750 : vector<2x16xf32>
    %764 = math.tanh %763 : vector<2x16xf32>
    %765 = vector.broadcast %479 : vector<1x16xf32> to vector<2x16xf32>
    %766 = arith.mulf %764, %765 : vector<2x16xf32>
    %cst_292 = arith.constant dense<0.000000e+00> : vector<2xf32>
    %767 = vector.multi_reduction <add>, %766, %cst_292 [1] : vector<2x16xf32> to vector<2xf32>
    %768 = vector.shape_cast %767 : vector<2xf32> to vector<2x1xf32>
    %769 = arith.addf %475, %750 : vector<2x16xf32>
    %770 = math.tanh %769 : vector<2x16xf32>
    %771 = vector.broadcast %479 : vector<1x16xf32> to vector<2x16xf32>
    %772 = arith.mulf %770, %771 : vector<2x16xf32>
    %cst_293 = arith.constant dense<0.000000e+00> : vector<2xf32>
    %773 = vector.multi_reduction <add>, %772, %cst_293 [1] : vector<2x16xf32> to vector<2xf32>
    %774 = vector.shape_cast %773 : vector<2xf32> to vector<2x1xf32>
    %775 = arith.addf %476, %750 : vector<2x16xf32>
    %776 = math.tanh %775 : vector<2x16xf32>
    %777 = vector.broadcast %479 : vector<1x16xf32> to vector<2x16xf32>
    %778 = arith.mulf %776, %777 : vector<2x16xf32>
    %cst_294 = arith.constant dense<0.000000e+00> : vector<2xf32>
    %779 = vector.multi_reduction <add>, %778, %cst_294 [1] : vector<2x16xf32> to vector<2xf32>
    %780 = vector.shape_cast %779 : vector<2xf32> to vector<2x1xf32>
    %781 = arith.addf %477, %750 : vector<2x16xf32>
    %782 = math.tanh %781 : vector<2x16xf32>
    %783 = vector.broadcast %479 : vector<1x16xf32> to vector<2x16xf32>
    %784 = arith.mulf %782, %783 : vector<2x16xf32>
    %cst_295 = arith.constant dense<0.000000e+00> : vector<2xf32>
    %785 = vector.multi_reduction <add>, %784, %cst_295 [1] : vector<2x16xf32> to vector<2xf32>
    %786 = vector.shape_cast %785 : vector<2xf32> to vector<2x1xf32>
    %787 = arith.maximumf %756, %762 : vector<2x1xf32>
    %788 = arith.maximumf %787, %768 : vector<2x1xf32>
    %789 = arith.maximumf %788, %774 : vector<2x1xf32>
    %790 = arith.maximumf %789, %780 : vector<2x1xf32>
    %791 = arith.maximumf %790, %786 : vector<2x1xf32>
    %792 = arith.subf %756, %791 : vector<2x1xf32>
    %793 = math.exp %792 : vector<2x1xf32>
    %794 = arith.subf %762, %791 : vector<2x1xf32>
    %795 = math.exp %794 : vector<2x1xf32>
    %796 = arith.subf %768, %791 : vector<2x1xf32>
    %797 = math.exp %796 : vector<2x1xf32>
    %798 = arith.subf %774, %791 : vector<2x1xf32>
    %799 = math.exp %798 : vector<2x1xf32>
    %800 = arith.subf %780, %791 : vector<2x1xf32>
    %801 = math.exp %800 : vector<2x1xf32>
    %802 = arith.subf %786, %791 : vector<2x1xf32>
    %803 = math.exp %802 : vector<2x1xf32>
    %804 = arith.addf %793, %795 : vector<2x1xf32>
    %805 = arith.addf %804, %797 : vector<2x1xf32>
    %806 = arith.addf %805, %799 : vector<2x1xf32>
    %807 = arith.addf %806, %801 : vector<2x1xf32>
    %808 = arith.addf %807, %803 : vector<2x1xf32>
    %cst_296 = arith.constant 1.000000e+00 : f32
    %809 = vector.broadcast %cst_296 : f32 to vector<2x1xf32>
    %810 = arith.divf %809, %808 : vector<2x1xf32>
    %811 = arith.mulf %793, %810 : vector<2x1xf32>
    %812 = vector.broadcast %811 : vector<2x1xf32> to vector<2x16xf32>
    %813 = arith.mulf %812, %103 : vector<2x16xf32>
    %814 = arith.mulf %793, %810 : vector<2x1xf32>
    %815 = vector.broadcast %814 : vector<2x1xf32> to vector<2x16xf32>
    %816 = arith.mulf %815, %452 : vector<2x16xf32>
    %817 = arith.mulf %795, %810 : vector<2x1xf32>
    %818 = vector.broadcast %817 : vector<2x1xf32> to vector<2x16xf32>
    %819 = arith.mulf %818, %167 : vector<2x16xf32>
    %820 = arith.addf %813, %819 : vector<2x16xf32>
    %821 = vector.broadcast %817 : vector<2x1xf32> to vector<2x16xf32>
    %822 = arith.mulf %821, %388 : vector<2x16xf32>
    %823 = arith.addf %816, %822 : vector<2x16xf32>
    %824 = arith.mulf %797, %810 : vector<2x1xf32>
    %825 = vector.broadcast %824 : vector<2x1xf32> to vector<2x16xf32>
    %826 = arith.mulf %825, %231 : vector<2x16xf32>
    %827 = arith.addf %820, %826 : vector<2x16xf32>
    %828 = vector.broadcast %824 : vector<2x1xf32> to vector<2x16xf32>
    %829 = arith.mulf %828, %324 : vector<2x16xf32>
    %830 = arith.addf %823, %829 : vector<2x16xf32>
    %831 = arith.mulf %799, %810 : vector<2x1xf32>
    %832 = vector.broadcast %831 : vector<2x1xf32> to vector<2x16xf32>
    %833 = arith.mulf %832, %295 : vector<2x16xf32>
    %834 = arith.addf %827, %833 : vector<2x16xf32>
    %835 = vector.broadcast %831 : vector<2x1xf32> to vector<2x16xf32>
    %836 = arith.mulf %835, %260 : vector<2x16xf32>
    %837 = arith.addf %830, %836 : vector<2x16xf32>
    %838 = arith.mulf %801, %810 : vector<2x1xf32>
    %839 = vector.broadcast %838 : vector<2x1xf32> to vector<2x16xf32>
    %840 = arith.mulf %839, %359 : vector<2x16xf32>
    %841 = arith.addf %834, %840 : vector<2x16xf32>
    %842 = vector.broadcast %838 : vector<2x1xf32> to vector<2x16xf32>
    %843 = arith.mulf %842, %196 : vector<2x16xf32>
    %844 = arith.addf %837, %843 : vector<2x16xf32>
    %845 = arith.mulf %803, %810 : vector<2x1xf32>
    %846 = vector.broadcast %845 : vector<2x1xf32> to vector<2x16xf32>
    %847 = arith.mulf %846, %423 : vector<2x16xf32>
    %848 = arith.addf %841, %847 : vector<2x16xf32>
    %849 = vector.broadcast %845 : vector<2x1xf32> to vector<2x16xf32>
    %850 = arith.mulf %849, %132 : vector<2x16xf32>
    %851 = arith.addf %844, %850 : vector<2x16xf32>
    %cst_297 = arith.constant dense<0.000000e+00> : vector<2x16xf32>
    %852 = tpu.matmul %749, %481, %cst_297 {dimension_numbers = #tpu.dot_dimension_numbers<[1], [0], [0], [1], [0, 0, 1, 1], [], []>} : vector<2x128xf32>, vector<128x16xf32>, vector<2x16xf32> -> vector<2x16xf32>
    %cst_298 = arith.constant dense<0.000000e+00> : vector<2x16xf32>
    %853 = tpu.matmul %848, %487, %cst_298 {dimension_numbers = #tpu.dot_dimension_numbers<[1], [0], [0], [1], [0, 0, 1, 1], [], []>} : vector<2x16xf32>, vector<16x16xf32>, vector<2x16xf32> -> vector<2x16xf32>
    %854 = arith.addf %852, %853 : vector<2x16xf32>
    %cst_299 = arith.constant dense<0.000000e+00> : vector<2x16xf32>
    %855 = tpu.matmul %851, %493, %cst_299 {dimension_numbers = #tpu.dot_dimension_numbers<[1], [0], [0], [1], [0, 0, 1, 1], [], []>} : vector<2x16xf32>, vector<16x16xf32>, vector<2x16xf32> -> vector<2x16xf32>
    %856 = arith.addf %854, %855 : vector<2x16xf32>
    %857 = vector.broadcast %505 : vector<1x16xf32> to vector<2x16xf32>
    %858 = arith.addf %856, %857 : vector<2x16xf32>
    %cst_300 = arith.constant dense<0.000000e+00> : vector<2x16xf32>
    %859 = tpu.matmul %695, %499, %cst_300 {dimension_numbers = #tpu.dot_dimension_numbers<[1], [0], [0], [1], [0, 0, 1, 1], [], []>} : vector<2x16xf32>, vector<16x16xf32>, vector<2x16xf32> -> vector<2x16xf32>
    %860 = vector.broadcast %511 : vector<1x16xf32> to vector<2x16xf32>
    %861 = arith.addf %859, %860 : vector<2x16xf32>
    %862 = arith.addf %858, %861 : vector<2x16xf32>
    %863 = arith.negf %862 : vector<2x16xf32>
    %864 = math.exp %863 : vector<2x16xf32>
    %cst_301 = arith.constant 1.000000e+00 : f32
    %865 = vector.broadcast %cst_301 : f32 to vector<2x16xf32>
    %866 = arith.addf %865, %864 : vector<2x16xf32>
    %867 = arith.divf %865, %866 : vector<2x16xf32>
    %cst_302 = arith.constant dense<0.000000e+00> : vector<2x16xf32>
    %868 = tpu.matmul %749, %483, %cst_302 {dimension_numbers = #tpu.dot_dimension_numbers<[1], [0], [0], [1], [0, 0, 1, 1], [], []>} : vector<2x128xf32>, vector<128x16xf32>, vector<2x16xf32> -> vector<2x16xf32>
    %cst_303 = arith.constant dense<0.000000e+00> : vector<2x16xf32>
    %869 = tpu.matmul %848, %489, %cst_303 {dimension_numbers = #tpu.dot_dimension_numbers<[1], [0], [0], [1], [0, 0, 1, 1], [], []>} : vector<2x16xf32>, vector<16x16xf32>, vector<2x16xf32> -> vector<2x16xf32>
    %870 = arith.addf %868, %869 : vector<2x16xf32>
    %cst_304 = arith.constant dense<0.000000e+00> : vector<2x16xf32>
    %871 = tpu.matmul %851, %495, %cst_304 {dimension_numbers = #tpu.dot_dimension_numbers<[1], [0], [0], [1], [0, 0, 1, 1], [], []>} : vector<2x16xf32>, vector<16x16xf32>, vector<2x16xf32> -> vector<2x16xf32>
    %872 = arith.addf %870, %871 : vector<2x16xf32>
    %873 = vector.broadcast %507 : vector<1x16xf32> to vector<2x16xf32>
    %874 = arith.addf %872, %873 : vector<2x16xf32>
    %cst_305 = arith.constant dense<0.000000e+00> : vector<2x16xf32>
    %875 = tpu.matmul %695, %501, %cst_305 {dimension_numbers = #tpu.dot_dimension_numbers<[1], [0], [0], [1], [0, 0, 1, 1], [], []>} : vector<2x16xf32>, vector<16x16xf32>, vector<2x16xf32> -> vector<2x16xf32>
    %876 = vector.broadcast %513 : vector<1x16xf32> to vector<2x16xf32>
    %877 = arith.addf %875, %876 : vector<2x16xf32>
    %878 = arith.addf %874, %877 : vector<2x16xf32>
    %879 = arith.negf %878 : vector<2x16xf32>
    %880 = math.exp %879 : vector<2x16xf32>
    %cst_306 = arith.constant 1.000000e+00 : f32
    %881 = vector.broadcast %cst_306 : f32 to vector<2x16xf32>
    %882 = arith.addf %881, %880 : vector<2x16xf32>
    %883 = arith.divf %881, %882 : vector<2x16xf32>
    %cst_307 = arith.constant dense<0.000000e+00> : vector<2x16xf32>
    %884 = tpu.matmul %749, %485, %cst_307 {dimension_numbers = #tpu.dot_dimension_numbers<[1], [0], [0], [1], [0, 0, 1, 1], [], []>} : vector<2x128xf32>, vector<128x16xf32>, vector<2x16xf32> -> vector<2x16xf32>
    %cst_308 = arith.constant dense<0.000000e+00> : vector<2x16xf32>
    %885 = tpu.matmul %848, %491, %cst_308 {dimension_numbers = #tpu.dot_dimension_numbers<[1], [0], [0], [1], [0, 0, 1, 1], [], []>} : vector<2x16xf32>, vector<16x16xf32>, vector<2x16xf32> -> vector<2x16xf32>
    %886 = arith.addf %884, %885 : vector<2x16xf32>
    %cst_309 = arith.constant dense<0.000000e+00> : vector<2x16xf32>
    %887 = tpu.matmul %851, %497, %cst_309 {dimension_numbers = #tpu.dot_dimension_numbers<[1], [0], [0], [1], [0, 0, 1, 1], [], []>} : vector<2x16xf32>, vector<16x16xf32>, vector<2x16xf32> -> vector<2x16xf32>
    %888 = arith.addf %886, %887 : vector<2x16xf32>
    %889 = vector.broadcast %509 : vector<1x16xf32> to vector<2x16xf32>
    %890 = arith.addf %888, %889 : vector<2x16xf32>
    %cst_310 = arith.constant dense<0.000000e+00> : vector<2x16xf32>
    %891 = tpu.matmul %695, %503, %cst_310 {dimension_numbers = #tpu.dot_dimension_numbers<[1], [0], [0], [1], [0, 0, 1, 1], [], []>} : vector<2x16xf32>, vector<16x16xf32>, vector<2x16xf32> -> vector<2x16xf32>
    %892 = vector.broadcast %515 : vector<1x16xf32> to vector<2x16xf32>
    %893 = arith.addf %891, %892 : vector<2x16xf32>
    %894 = arith.mulf %867, %893 : vector<2x16xf32>
    %895 = arith.addf %890, %894 : vector<2x16xf32>
    %896 = math.tanh %895 : vector<2x16xf32>
    %cst_311 = arith.constant 1.000000e+00 : f32
    %897 = vector.broadcast %cst_311 : f32 to vector<2x16xf32>
    %898 = arith.subf %897, %883 : vector<2x16xf32>
    %899 = arith.mulf %898, %896 : vector<2x16xf32>
    %900 = arith.mulf %883, %695 : vector<2x16xf32>
    %901 = arith.addf %899, %900 : vector<2x16xf32>
    %cst_312 = arith.constant dense<0.000000e+00> : vector<2x128xf32>
    %902 = tpu.matmul %901, %516, %cst_312 {dimension_numbers = #tpu.dot_dimension_numbers<[1], [0], [0], [1], [0, 0, 1, 1], [], []>} : vector<2x16xf32>, vector<16x128xf32>, vector<2x128xf32> -> vector<2x128xf32>
    %cst_313 = arith.constant dense<0.000000e+00> : vector<2x128xf32>
    %903 = tpu.matmul %848, %517, %cst_313 {dimension_numbers = #tpu.dot_dimension_numbers<[1], [0], [0], [1], [0, 0, 1, 1], [], []>} : vector<2x16xf32>, vector<16x128xf32>, vector<2x128xf32> -> vector<2x128xf32>
    %904 = arith.addf %902, %903 : vector<2x128xf32>
    %cst_314 = arith.constant dense<0.000000e+00> : vector<2x128xf32>
    %905 = tpu.matmul %851, %518, %cst_314 {dimension_numbers = #tpu.dot_dimension_numbers<[1], [0], [0], [1], [0, 0, 1, 1], [], []>} : vector<2x16xf32>, vector<16x128xf32>, vector<2x128xf32> -> vector<2x128xf32>
    %906 = arith.addf %904, %905 : vector<2x128xf32>
    %cst_315 = arith.constant dense<0.000000e+00> : vector<2x128xf32>
    %907 = tpu.matmul %749, %519, %cst_315 {dimension_numbers = #tpu.dot_dimension_numbers<[1], [0], [0], [1], [0, 0, 1, 1], [], []>} : vector<2x128xf32>, vector<128x128xf32>, vector<2x128xf32> -> vector<2x128xf32>
    %908 = arith.addf %906, %907 : vector<2x128xf32>
    %909 = vector.broadcast %520 : vector<1x128xf32> to vector<2x128xf32>
    %910 = arith.addf %908, %909 : vector<2x128xf32>
    %c2_316 = arith.constant 2 : index
    %c0_317 = arith.constant 0 : index
    %c0_318 = arith.constant 0 : index
    %911 = vector.load %arg30[%c2_316, %c0_317, %c0_318] : memref<5x2x128xf32, #tpu.memory_space<vmem>>, vector<1x2x128xf32>
    %912 = vector.shape_cast %911 : vector<1x2x128xf32> to vector<2x128xf32>
    %913 = vector.shape_cast %910 : vector<2x128xf32> to vector<1x2x128xf32>
    tpu.vector_store %arg30[%c2_316, %c0_317, %c0_318], %913 {strides = array<i32>} : memref<5x2x128xf32, #tpu.memory_space<vmem>>, vector<1x2x128xf32>,
    %c18_i32_319 = arith.constant 18 : i32
    %914 = vector.broadcast %c18_i32_319 : i32 to vector<2x128xi32>
    %915 = arith.cmpi slt, %521, %914 : vector<2x128xi32>
    %cst_320 = arith.constant -1.000000e+30 : f32
    %916 = vector.broadcast %cst_320 : f32 to vector<2x128xf32>
    %917 = arith.select %915, %910, %916 : vector<2x128xi1>, vector<2x128xf32>
    %cst_321 = arith.constant dense<0xFF800000> : vector<2xf32>
    %918 = vector.multi_reduction <maximumf>, %917, %cst_321 [1] : vector<2x128xf32> to vector<2xf32>
    %919 = vector.shape_cast %918 : vector<2xf32> to vector<2x1xf32>
    %920 = vector.broadcast %919 : vector<2x1xf32> to vector<2x128xf32>
    %921 = arith.cmpf oeq, %917, %920 : vector<2x128xf32>
    %922 = arith.andi %921, %915 : vector<2x128xi1>
    %c128_i32_322 = arith.constant 128 : i32
    %923 = vector.broadcast %c128_i32_322 : i32 to vector<2x128xi32>
    %924 = arith.select %922, %521, %923 : vector<2x128xi1>, vector<2x128xi32>
    %cst_323 = arith.constant dense<2147483647> : vector<2xi32>
    %925 = vector.multi_reduction <minsi>, %924, %cst_323 [1] : vector<2x128xi32> to vector<2xi32>
    %926 = vector.shape_cast %925 : vector<2xi32> to vector<2x1xi32>
    %927 = vector.broadcast %926 : vector<2x1xi32> to vector<2x128xi32>
    %928 = arith.cmpi eq, %521, %927 : vector<2x128xi32>
    %929 = arith.extui %928 : vector<2x128xi1> to vector<2x128xi32>
    %930 = arith.sitofp %929 : vector<2x128xi32> to vector<2x128xf32>
    %c2_324 = arith.constant 2 : index
    %931 = memref.load %arg0[%c2_324] : memref<5xi32, #tpu.memory_space<smem>>
    %932 = arith.sitofp %931 : i32 to f32
    %cst_325 = arith.constant 0.000000e+00 : f32
    %933 = vector.broadcast %cst_325 : f32 to vector<2x128xf32>
    %c0_i32_326 = arith.constant 0 : i32
    %934 = vector.broadcast %c0_i32_326 : i32 to vector<2x128xi32>
    %935 = arith.cmpi eq, %522, %934 : vector<2x128xi32>
    %c2_327 = arith.constant 2 : index
    %c0_328 = arith.constant 0 : index
    %936 = memref.load %arg1[%c2_327, %c0_328] : memref<5x2xi32, #tpu.memory_space<smem>>
    %937 = vector.broadcast %936 : i32 to vector<2x128xi32>
    %938 = arith.cmpi eq, %521, %937 : vector<2x128xi32>
    %939 = arith.andi %935, %938 : vector<2x128xi1>
    %cst_329 = arith.constant 1.000000e+00 : f32
    %940 = vector.broadcast %cst_329 : f32 to vector<2x128xf32>
    %941 = arith.select %939, %940, %933 : vector<2x128xi1>, vector<2x128xf32>
    %c1_i32_330 = arith.constant 1 : i32
    %942 = vector.broadcast %c1_i32_330 : i32 to vector<2x128xi32>
    %943 = arith.cmpi eq, %522, %942 : vector<2x128xi32>
    %c2_331 = arith.constant 2 : index
    %c1_332 = arith.constant 1 : index
    %944 = memref.load %arg1[%c2_331, %c1_332] : memref<5x2xi32, #tpu.memory_space<smem>>
    %945 = vector.broadcast %944 : i32 to vector<2x128xi32>
    %946 = arith.cmpi eq, %521, %945 : vector<2x128xi32>
    %947 = arith.andi %943, %946 : vector<2x128xi1>
    %cst_333 = arith.constant 1.000000e+00 : f32
    %948 = vector.broadcast %cst_333 : f32 to vector<2x128xf32>
    %949 = arith.select %947, %948, %941 : vector<2x128xi1>, vector<2x128xf32>
    %950 = vector.broadcast %932 : f32 to vector<2x128xf32>
    %951 = arith.mulf %950, %949 : vector<2x128xf32>
    %cst_334 = arith.constant 1.000000e+00 : f32
    %952 = arith.subf %cst_334, %932 : f32
    %953 = vector.broadcast %952 : f32 to vector<2x128xf32>
    %954 = arith.mulf %953, %930 : vector<2x128xf32>
    %955 = arith.addf %951, %954 : vector<2x128xf32>
    %cst_335 = arith.constant dense<0.000000e+00> : vector<2x16xf32>
    %956 = tpu.matmul %901, %478, %cst_335 {dimension_numbers = #tpu.dot_dimension_numbers<[1], [0], [0], [1], [0, 0, 1, 1], [], []>} : vector<2x16xf32>, vector<16x16xf32>, vector<2x16xf32> -> vector<2x16xf32>
    %957 = arith.addf %472, %956 : vector<2x16xf32>
    %958 = math.tanh %957 : vector<2x16xf32>
    %959 = vector.broadcast %479 : vector<1x16xf32> to vector<2x16xf32>
    %960 = arith.mulf %958, %959 : vector<2x16xf32>
    %cst_336 = arith.constant dense<0.000000e+00> : vector<2xf32>
    %961 = vector.multi_reduction <add>, %960, %cst_336 [1] : vector<2x16xf32> to vector<2xf32>
    %962 = vector.shape_cast %961 : vector<2xf32> to vector<2x1xf32>
    %963 = arith.addf %473, %956 : vector<2x16xf32>
    %964 = math.tanh %963 : vector<2x16xf32>
    %965 = vector.broadcast %479 : vector<1x16xf32> to vector<2x16xf32>
    %966 = arith.mulf %964, %965 : vector<2x16xf32>
    %cst_337 = arith.constant dense<0.000000e+00> : vector<2xf32>
    %967 = vector.multi_reduction <add>, %966, %cst_337 [1] : vector<2x16xf32> to vector<2xf32>
    %968 = vector.shape_cast %967 : vector<2xf32> to vector<2x1xf32>
    %969 = arith.addf %474, %956 : vector<2x16xf32>
    %970 = math.tanh %969 : vector<2x16xf32>
    %971 = vector.broadcast %479 : vector<1x16xf32> to vector<2x16xf32>
    %972 = arith.mulf %970, %971 : vector<2x16xf32>
    %cst_338 = arith.constant dense<0.000000e+00> : vector<2xf32>
    %973 = vector.multi_reduction <add>, %972, %cst_338 [1] : vector<2x16xf32> to vector<2xf32>
    %974 = vector.shape_cast %973 : vector<2xf32> to vector<2x1xf32>
    %975 = arith.addf %475, %956 : vector<2x16xf32>
    %976 = math.tanh %975 : vector<2x16xf32>
    %977 = vector.broadcast %479 : vector<1x16xf32> to vector<2x16xf32>
    %978 = arith.mulf %976, %977 : vector<2x16xf32>
    %cst_339 = arith.constant dense<0.000000e+00> : vector<2xf32>
    %979 = vector.multi_reduction <add>, %978, %cst_339 [1] : vector<2x16xf32> to vector<2xf32>
    %980 = vector.shape_cast %979 : vector<2xf32> to vector<2x1xf32>
    %981 = arith.addf %476, %956 : vector<2x16xf32>
    %982 = math.tanh %981 : vector<2x16xf32>
    %983 = vector.broadcast %479 : vector<1x16xf32> to vector<2x16xf32>
    %984 = arith.mulf %982, %983 : vector<2x16xf32>
    %cst_340 = arith.constant dense<0.000000e+00> : vector<2xf32>
    %985 = vector.multi_reduction <add>, %984, %cst_340 [1] : vector<2x16xf32> to vector<2xf32>
    %986 = vector.shape_cast %985 : vector<2xf32> to vector<2x1xf32>
    %987 = arith.addf %477, %956 : vector<2x16xf32>
    %988 = math.tanh %987 : vector<2x16xf32>
    %989 = vector.broadcast %479 : vector<1x16xf32> to vector<2x16xf32>
    %990 = arith.mulf %988, %989 : vector<2x16xf32>
    %cst_341 = arith.constant dense<0.000000e+00> : vector<2xf32>
    %991 = vector.multi_reduction <add>, %990, %cst_341 [1] : vector<2x16xf32> to vector<2xf32>
    %992 = vector.shape_cast %991 : vector<2xf32> to vector<2x1xf32>
    %993 = arith.maximumf %962, %968 : vector<2x1xf32>
    %994 = arith.maximumf %993, %974 : vector<2x1xf32>
    %995 = arith.maximumf %994, %980 : vector<2x1xf32>
    %996 = arith.maximumf %995, %986 : vector<2x1xf32>
    %997 = arith.maximumf %996, %992 : vector<2x1xf32>
    %998 = arith.subf %962, %997 : vector<2x1xf32>
    %999 = math.exp %998 : vector<2x1xf32>
    %1000 = arith.subf %968, %997 : vector<2x1xf32>
    %1001 = math.exp %1000 : vector<2x1xf32>
    %1002 = arith.subf %974, %997 : vector<2x1xf32>
    %1003 = math.exp %1002 : vector<2x1xf32>
    %1004 = arith.subf %980, %997 : vector<2x1xf32>
    %1005 = math.exp %1004 : vector<2x1xf32>
    %1006 = arith.subf %986, %997 : vector<2x1xf32>
    %1007 = math.exp %1006 : vector<2x1xf32>
    %1008 = arith.subf %992, %997 : vector<2x1xf32>
    %1009 = math.exp %1008 : vector<2x1xf32>
    %1010 = arith.addf %999, %1001 : vector<2x1xf32>
    %1011 = arith.addf %1010, %1003 : vector<2x1xf32>
    %1012 = arith.addf %1011, %1005 : vector<2x1xf32>
    %1013 = arith.addf %1012, %1007 : vector<2x1xf32>
    %1014 = arith.addf %1013, %1009 : vector<2x1xf32>
    %cst_342 = arith.constant 1.000000e+00 : f32
    %1015 = vector.broadcast %cst_342 : f32 to vector<2x1xf32>
    %1016 = arith.divf %1015, %1014 : vector<2x1xf32>
    %1017 = arith.mulf %999, %1016 : vector<2x1xf32>
    %1018 = vector.broadcast %1017 : vector<2x1xf32> to vector<2x16xf32>
    %1019 = arith.mulf %1018, %103 : vector<2x16xf32>
    %1020 = arith.mulf %999, %1016 : vector<2x1xf32>
    %1021 = vector.broadcast %1020 : vector<2x1xf32> to vector<2x16xf32>
    %1022 = arith.mulf %1021, %452 : vector<2x16xf32>
    %1023 = arith.mulf %1001, %1016 : vector<2x1xf32>
    %1024 = vector.broadcast %1023 : vector<2x1xf32> to vector<2x16xf32>
    %1025 = arith.mulf %1024, %167 : vector<2x16xf32>
    %1026 = arith.addf %1019, %1025 : vector<2x16xf32>
    %1027 = vector.broadcast %1023 : vector<2x1xf32> to vector<2x16xf32>
    %1028 = arith.mulf %1027, %388 : vector<2x16xf32>
    %1029 = arith.addf %1022, %1028 : vector<2x16xf32>
    %1030 = arith.mulf %1003, %1016 : vector<2x1xf32>
    %1031 = vector.broadcast %1030 : vector<2x1xf32> to vector<2x16xf32>
    %1032 = arith.mulf %1031, %231 : vector<2x16xf32>
    %1033 = arith.addf %1026, %1032 : vector<2x16xf32>
    %1034 = vector.broadcast %1030 : vector<2x1xf32> to vector<2x16xf32>
    %1035 = arith.mulf %1034, %324 : vector<2x16xf32>
    %1036 = arith.addf %1029, %1035 : vector<2x16xf32>
    %1037 = arith.mulf %1005, %1016 : vector<2x1xf32>
    %1038 = vector.broadcast %1037 : vector<2x1xf32> to vector<2x16xf32>
    %1039 = arith.mulf %1038, %295 : vector<2x16xf32>
    %1040 = arith.addf %1033, %1039 : vector<2x16xf32>
    %1041 = vector.broadcast %1037 : vector<2x1xf32> to vector<2x16xf32>
    %1042 = arith.mulf %1041, %260 : vector<2x16xf32>
    %1043 = arith.addf %1036, %1042 : vector<2x16xf32>
    %1044 = arith.mulf %1007, %1016 : vector<2x1xf32>
    %1045 = vector.broadcast %1044 : vector<2x1xf32> to vector<2x16xf32>
    %1046 = arith.mulf %1045, %359 : vector<2x16xf32>
    %1047 = arith.addf %1040, %1046 : vector<2x16xf32>
    %1048 = vector.broadcast %1044 : vector<2x1xf32> to vector<2x16xf32>
    %1049 = arith.mulf %1048, %196 : vector<2x16xf32>
    %1050 = arith.addf %1043, %1049 : vector<2x16xf32>
    %1051 = arith.mulf %1009, %1016 : vector<2x1xf32>
    %1052 = vector.broadcast %1051 : vector<2x1xf32> to vector<2x16xf32>
    %1053 = arith.mulf %1052, %423 : vector<2x16xf32>
    %1054 = arith.addf %1047, %1053 : vector<2x16xf32>
    %1055 = vector.broadcast %1051 : vector<2x1xf32> to vector<2x16xf32>
    %1056 = arith.mulf %1055, %132 : vector<2x16xf32>
    %1057 = arith.addf %1050, %1056 : vector<2x16xf32>
    %cst_343 = arith.constant dense<0.000000e+00> : vector<2x16xf32>
    %1058 = tpu.matmul %955, %481, %cst_343 {dimension_numbers = #tpu.dot_dimension_numbers<[1], [0], [0], [1], [0, 0, 1, 1], [], []>} : vector<2x128xf32>, vector<128x16xf32>, vector<2x16xf32> -> vector<2x16xf32>
    %cst_344 = arith.constant dense<0.000000e+00> : vector<2x16xf32>
    %1059 = tpu.matmul %1054, %487, %cst_344 {dimension_numbers = #tpu.dot_dimension_numbers<[1], [0], [0], [1], [0, 0, 1, 1], [], []>} : vector<2x16xf32>, vector<16x16xf32>, vector<2x16xf32> -> vector<2x16xf32>
    %1060 = arith.addf %1058, %1059 : vector<2x16xf32>
    %cst_345 = arith.constant dense<0.000000e+00> : vector<2x16xf32>
    %1061 = tpu.matmul %1057, %493, %cst_345 {dimension_numbers = #tpu.dot_dimension_numbers<[1], [0], [0], [1], [0, 0, 1, 1], [], []>} : vector<2x16xf32>, vector<16x16xf32>, vector<2x16xf32> -> vector<2x16xf32>
    %1062 = arith.addf %1060, %1061 : vector<2x16xf32>
    %1063 = vector.broadcast %505 : vector<1x16xf32> to vector<2x16xf32>
    %1064 = arith.addf %1062, %1063 : vector<2x16xf32>
    %cst_346 = arith.constant dense<0.000000e+00> : vector<2x16xf32>
    %1065 = tpu.matmul %901, %499, %cst_346 {dimension_numbers = #tpu.dot_dimension_numbers<[1], [0], [0], [1], [0, 0, 1, 1], [], []>} : vector<2x16xf32>, vector<16x16xf32>, vector<2x16xf32> -> vector<2x16xf32>
    %1066 = vector.broadcast %511 : vector<1x16xf32> to vector<2x16xf32>
    %1067 = arith.addf %1065, %1066 : vector<2x16xf32>
    %1068 = arith.addf %1064, %1067 : vector<2x16xf32>
    %1069 = arith.negf %1068 : vector<2x16xf32>
    %1070 = math.exp %1069 : vector<2x16xf32>
    %cst_347 = arith.constant 1.000000e+00 : f32
    %1071 = vector.broadcast %cst_347 : f32 to vector<2x16xf32>
    %1072 = arith.addf %1071, %1070 : vector<2x16xf32>
    %1073 = arith.divf %1071, %1072 : vector<2x16xf32>
    %cst_348 = arith.constant dense<0.000000e+00> : vector<2x16xf32>
    %1074 = tpu.matmul %955, %483, %cst_348 {dimension_numbers = #tpu.dot_dimension_numbers<[1], [0], [0], [1], [0, 0, 1, 1], [], []>} : vector<2x128xf32>, vector<128x16xf32>, vector<2x16xf32> -> vector<2x16xf32>
    %cst_349 = arith.constant dense<0.000000e+00> : vector<2x16xf32>
    %1075 = tpu.matmul %1054, %489, %cst_349 {dimension_numbers = #tpu.dot_dimension_numbers<[1], [0], [0], [1], [0, 0, 1, 1], [], []>} : vector<2x16xf32>, vector<16x16xf32>, vector<2x16xf32> -> vector<2x16xf32>
    %1076 = arith.addf %1074, %1075 : vector<2x16xf32>
    %cst_350 = arith.constant dense<0.000000e+00> : vector<2x16xf32>
    %1077 = tpu.matmul %1057, %495, %cst_350 {dimension_numbers = #tpu.dot_dimension_numbers<[1], [0], [0], [1], [0, 0, 1, 1], [], []>} : vector<2x16xf32>, vector<16x16xf32>, vector<2x16xf32> -> vector<2x16xf32>
    %1078 = arith.addf %1076, %1077 : vector<2x16xf32>
    %1079 = vector.broadcast %507 : vector<1x16xf32> to vector<2x16xf32>
    %1080 = arith.addf %1078, %1079 : vector<2x16xf32>
    %cst_351 = arith.constant dense<0.000000e+00> : vector<2x16xf32>
    %1081 = tpu.matmul %901, %501, %cst_351 {dimension_numbers = #tpu.dot_dimension_numbers<[1], [0], [0], [1], [0, 0, 1, 1], [], []>} : vector<2x16xf32>, vector<16x16xf32>, vector<2x16xf32> -> vector<2x16xf32>
    %1082 = vector.broadcast %513 : vector<1x16xf32> to vector<2x16xf32>
    %1083 = arith.addf %1081, %1082 : vector<2x16xf32>
    %1084 = arith.addf %1080, %1083 : vector<2x16xf32>
    %1085 = arith.negf %1084 : vector<2x16xf32>
    %1086 = math.exp %1085 : vector<2x16xf32>
    %cst_352 = arith.constant 1.000000e+00 : f32
    %1087 = vector.broadcast %cst_352 : f32 to vector<2x16xf32>
    %1088 = arith.addf %1087, %1086 : vector<2x16xf32>
    %1089 = arith.divf %1087, %1088 : vector<2x16xf32>
    %cst_353 = arith.constant dense<0.000000e+00> : vector<2x16xf32>
    %1090 = tpu.matmul %955, %485, %cst_353 {dimension_numbers = #tpu.dot_dimension_numbers<[1], [0], [0], [1], [0, 0, 1, 1], [], []>} : vector<2x128xf32>, vector<128x16xf32>, vector<2x16xf32> -> vector<2x16xf32>
    %cst_354 = arith.constant dense<0.000000e+00> : vector<2x16xf32>
    %1091 = tpu.matmul %1054, %491, %cst_354 {dimension_numbers = #tpu.dot_dimension_numbers<[1], [0], [0], [1], [0, 0, 1, 1], [], []>} : vector<2x16xf32>, vector<16x16xf32>, vector<2x16xf32> -> vector<2x16xf32>
    %1092 = arith.addf %1090, %1091 : vector<2x16xf32>
    %cst_355 = arith.constant dense<0.000000e+00> : vector<2x16xf32>
    %1093 = tpu.matmul %1057, %497, %cst_355 {dimension_numbers = #tpu.dot_dimension_numbers<[1], [0], [0], [1], [0, 0, 1, 1], [], []>} : vector<2x16xf32>, vector<16x16xf32>, vector<2x16xf32> -> vector<2x16xf32>
    %1094 = arith.addf %1092, %1093 : vector<2x16xf32>
    %1095 = vector.broadcast %509 : vector<1x16xf32> to vector<2x16xf32>
    %1096 = arith.addf %1094, %1095 : vector<2x16xf32>
    %cst_356 = arith.constant dense<0.000000e+00> : vector<2x16xf32>
    %1097 = tpu.matmul %901, %503, %cst_356 {dimension_numbers = #tpu.dot_dimension_numbers<[1], [0], [0], [1], [0, 0, 1, 1], [], []>} : vector<2x16xf32>, vector<16x16xf32>, vector<2x16xf32> -> vector<2x16xf32>
    %1098 = vector.broadcast %515 : vector<1x16xf32> to vector<2x16xf32>
    %1099 = arith.addf %1097, %1098 : vector<2x16xf32>
    %1100 = arith.mulf %1073, %1099 : vector<2x16xf32>
    %1101 = arith.addf %1096, %1100 : vector<2x16xf32>
    %1102 = math.tanh %1101 : vector<2x16xf32>
    %cst_357 = arith.constant 1.000000e+00 : f32
    %1103 = vector.broadcast %cst_357 : f32 to vector<2x16xf32>
    %1104 = arith.subf %1103, %1089 : vector<2x16xf32>
    %1105 = arith.mulf %1104, %1102 : vector<2x16xf32>
    %1106 = arith.mulf %1089, %901 : vector<2x16xf32>
    %1107 = arith.addf %1105, %1106 : vector<2x16xf32>
    %cst_358 = arith.constant dense<0.000000e+00> : vector<2x128xf32>
    %1108 = tpu.matmul %1107, %516, %cst_358 {dimension_numbers = #tpu.dot_dimension_numbers<[1], [0], [0], [1], [0, 0, 1, 1], [], []>} : vector<2x16xf32>, vector<16x128xf32>, vector<2x128xf32> -> vector<2x128xf32>
    %cst_359 = arith.constant dense<0.000000e+00> : vector<2x128xf32>
    %1109 = tpu.matmul %1054, %517, %cst_359 {dimension_numbers = #tpu.dot_dimension_numbers<[1], [0], [0], [1], [0, 0, 1, 1], [], []>} : vector<2x16xf32>, vector<16x128xf32>, vector<2x128xf32> -> vector<2x128xf32>
    %1110 = arith.addf %1108, %1109 : vector<2x128xf32>
    %cst_360 = arith.constant dense<0.000000e+00> : vector<2x128xf32>
    %1111 = tpu.matmul %1057, %518, %cst_360 {dimension_numbers = #tpu.dot_dimension_numbers<[1], [0], [0], [1], [0, 0, 1, 1], [], []>} : vector<2x16xf32>, vector<16x128xf32>, vector<2x128xf32> -> vector<2x128xf32>
    %1112 = arith.addf %1110, %1111 : vector<2x128xf32>
    %cst_361 = arith.constant dense<0.000000e+00> : vector<2x128xf32>
    %1113 = tpu.matmul %955, %519, %cst_361 {dimension_numbers = #tpu.dot_dimension_numbers<[1], [0], [0], [1], [0, 0, 1, 1], [], []>} : vector<2x128xf32>, vector<128x128xf32>, vector<2x128xf32> -> vector<2x128xf32>
    %1114 = arith.addf %1112, %1113 : vector<2x128xf32>
    %1115 = vector.broadcast %520 : vector<1x128xf32> to vector<2x128xf32>
    %1116 = arith.addf %1114, %1115 : vector<2x128xf32>
    %c3 = arith.constant 3 : index
    %c0_362 = arith.constant 0 : index
    %c0_363 = arith.constant 0 : index
    %1117 = vector.load %arg30[%c3, %c0_362, %c0_363] : memref<5x2x128xf32, #tpu.memory_space<vmem>>, vector<1x2x128xf32>
    %1118 = vector.shape_cast %1117 : vector<1x2x128xf32> to vector<2x128xf32>
    %1119 = vector.shape_cast %1116 : vector<2x128xf32> to vector<1x2x128xf32>
    tpu.vector_store %arg30[%c3, %c0_362, %c0_363], %1119 {strides = array<i32>} : memref<5x2x128xf32, #tpu.memory_space<vmem>>, vector<1x2x128xf32>,
    %c18_i32_364 = arith.constant 18 : i32
    %1120 = vector.broadcast %c18_i32_364 : i32 to vector<2x128xi32>
    %1121 = arith.cmpi slt, %521, %1120 : vector<2x128xi32>
    %cst_365 = arith.constant -1.000000e+30 : f32
    %1122 = vector.broadcast %cst_365 : f32 to vector<2x128xf32>
    %1123 = arith.select %1121, %1116, %1122 : vector<2x128xi1>, vector<2x128xf32>
    %cst_366 = arith.constant dense<0xFF800000> : vector<2xf32>
    %1124 = vector.multi_reduction <maximumf>, %1123, %cst_366 [1] : vector<2x128xf32> to vector<2xf32>
    %1125 = vector.shape_cast %1124 : vector<2xf32> to vector<2x1xf32>
    %1126 = vector.broadcast %1125 : vector<2x1xf32> to vector<2x128xf32>
    %1127 = arith.cmpf oeq, %1123, %1126 : vector<2x128xf32>
    %1128 = arith.andi %1127, %1121 : vector<2x128xi1>
    %c128_i32_367 = arith.constant 128 : i32
    %1129 = vector.broadcast %c128_i32_367 : i32 to vector<2x128xi32>
    %1130 = arith.select %1128, %521, %1129 : vector<2x128xi1>, vector<2x128xi32>
    %cst_368 = arith.constant dense<2147483647> : vector<2xi32>
    %1131 = vector.multi_reduction <minsi>, %1130, %cst_368 [1] : vector<2x128xi32> to vector<2xi32>
    %1132 = vector.shape_cast %1131 : vector<2xi32> to vector<2x1xi32>
    %1133 = vector.broadcast %1132 : vector<2x1xi32> to vector<2x128xi32>
    %1134 = arith.cmpi eq, %521, %1133 : vector<2x128xi32>
    %1135 = arith.extui %1134 : vector<2x128xi1> to vector<2x128xi32>
    %1136 = arith.sitofp %1135 : vector<2x128xi32> to vector<2x128xf32>
    %c3_369 = arith.constant 3 : index
    %1137 = memref.load %arg0[%c3_369] : memref<5xi32, #tpu.memory_space<smem>>
    %1138 = arith.sitofp %1137 : i32 to f32
    %cst_370 = arith.constant 0.000000e+00 : f32
    %1139 = vector.broadcast %cst_370 : f32 to vector<2x128xf32>
    %c0_i32_371 = arith.constant 0 : i32
    %1140 = vector.broadcast %c0_i32_371 : i32 to vector<2x128xi32>
    %1141 = arith.cmpi eq, %522, %1140 : vector<2x128xi32>
    %c3_372 = arith.constant 3 : index
    %c0_373 = arith.constant 0 : index
    %1142 = memref.load %arg1[%c3_372, %c0_373] : memref<5x2xi32, #tpu.memory_space<smem>>
    %1143 = vector.broadcast %1142 : i32 to vector<2x128xi32>
    %1144 = arith.cmpi eq, %521, %1143 : vector<2x128xi32>
    %1145 = arith.andi %1141, %1144 : vector<2x128xi1>
    %cst_374 = arith.constant 1.000000e+00 : f32
    %1146 = vector.broadcast %cst_374 : f32 to vector<2x128xf32>
    %1147 = arith.select %1145, %1146, %1139 : vector<2x128xi1>, vector<2x128xf32>
    %c1_i32_375 = arith.constant 1 : i32
    %1148 = vector.broadcast %c1_i32_375 : i32 to vector<2x128xi32>
    %1149 = arith.cmpi eq, %522, %1148 : vector<2x128xi32>
    %c3_376 = arith.constant 3 : index
    %c1_377 = arith.constant 1 : index
    %1150 = memref.load %arg1[%c3_376, %c1_377] : memref<5x2xi32, #tpu.memory_space<smem>>
    %1151 = vector.broadcast %1150 : i32 to vector<2x128xi32>
    %1152 = arith.cmpi eq, %521, %1151 : vector<2x128xi32>
    %1153 = arith.andi %1149, %1152 : vector<2x128xi1>
    %cst_378 = arith.constant 1.000000e+00 : f32
    %1154 = vector.broadcast %cst_378 : f32 to vector<2x128xf32>
    %1155 = arith.select %1153, %1154, %1147 : vector<2x128xi1>, vector<2x128xf32>
    %1156 = vector.broadcast %1138 : f32 to vector<2x128xf32>
    %1157 = arith.mulf %1156, %1155 : vector<2x128xf32>
    %cst_379 = arith.constant 1.000000e+00 : f32
    %1158 = arith.subf %cst_379, %1138 : f32
    %1159 = vector.broadcast %1158 : f32 to vector<2x128xf32>
    %1160 = arith.mulf %1159, %1136 : vector<2x128xf32>
    %1161 = arith.addf %1157, %1160 : vector<2x128xf32>
    %cst_380 = arith.constant dense<0.000000e+00> : vector<2x16xf32>
    %1162 = tpu.matmul %1107, %478, %cst_380 {dimension_numbers = #tpu.dot_dimension_numbers<[1], [0], [0], [1], [0, 0, 1, 1], [], []>} : vector<2x16xf32>, vector<16x16xf32>, vector<2x16xf32> -> vector<2x16xf32>
    %1163 = arith.addf %472, %1162 : vector<2x16xf32>
    %1164 = math.tanh %1163 : vector<2x16xf32>
    %1165 = vector.broadcast %479 : vector<1x16xf32> to vector<2x16xf32>
    %1166 = arith.mulf %1164, %1165 : vector<2x16xf32>
    %cst_381 = arith.constant dense<0.000000e+00> : vector<2xf32>
    %1167 = vector.multi_reduction <add>, %1166, %cst_381 [1] : vector<2x16xf32> to vector<2xf32>
    %1168 = vector.shape_cast %1167 : vector<2xf32> to vector<2x1xf32>
    %1169 = arith.addf %473, %1162 : vector<2x16xf32>
    %1170 = math.tanh %1169 : vector<2x16xf32>
    %1171 = vector.broadcast %479 : vector<1x16xf32> to vector<2x16xf32>
    %1172 = arith.mulf %1170, %1171 : vector<2x16xf32>
    %cst_382 = arith.constant dense<0.000000e+00> : vector<2xf32>
    %1173 = vector.multi_reduction <add>, %1172, %cst_382 [1] : vector<2x16xf32> to vector<2xf32>
    %1174 = vector.shape_cast %1173 : vector<2xf32> to vector<2x1xf32>
    %1175 = arith.addf %474, %1162 : vector<2x16xf32>
    %1176 = math.tanh %1175 : vector<2x16xf32>
    %1177 = vector.broadcast %479 : vector<1x16xf32> to vector<2x16xf32>
    %1178 = arith.mulf %1176, %1177 : vector<2x16xf32>
    %cst_383 = arith.constant dense<0.000000e+00> : vector<2xf32>
    %1179 = vector.multi_reduction <add>, %1178, %cst_383 [1] : vector<2x16xf32> to vector<2xf32>
    %1180 = vector.shape_cast %1179 : vector<2xf32> to vector<2x1xf32>
    %1181 = arith.addf %475, %1162 : vector<2x16xf32>
    %1182 = math.tanh %1181 : vector<2x16xf32>
    %1183 = vector.broadcast %479 : vector<1x16xf32> to vector<2x16xf32>
    %1184 = arith.mulf %1182, %1183 : vector<2x16xf32>
    %cst_384 = arith.constant dense<0.000000e+00> : vector<2xf32>
    %1185 = vector.multi_reduction <add>, %1184, %cst_384 [1] : vector<2x16xf32> to vector<2xf32>
    %1186 = vector.shape_cast %1185 : vector<2xf32> to vector<2x1xf32>
    %1187 = arith.addf %476, %1162 : vector<2x16xf32>
    %1188 = math.tanh %1187 : vector<2x16xf32>
    %1189 = vector.broadcast %479 : vector<1x16xf32> to vector<2x16xf32>
    %1190 = arith.mulf %1188, %1189 : vector<2x16xf32>
    %cst_385 = arith.constant dense<0.000000e+00> : vector<2xf32>
    %1191 = vector.multi_reduction <add>, %1190, %cst_385 [1] : vector<2x16xf32> to vector<2xf32>
    %1192 = vector.shape_cast %1191 : vector<2xf32> to vector<2x1xf32>
    %1193 = arith.addf %477, %1162 : vector<2x16xf32>
    %1194 = math.tanh %1193 : vector<2x16xf32>
    %1195 = vector.broadcast %479 : vector<1x16xf32> to vector<2x16xf32>
    %1196 = arith.mulf %1194, %1195 : vector<2x16xf32>
    %cst_386 = arith.constant dense<0.000000e+00> : vector<2xf32>
    %1197 = vector.multi_reduction <add>, %1196, %cst_386 [1] : vector<2x16xf32> to vector<2xf32>
    %1198 = vector.shape_cast %1197 : vector<2xf32> to vector<2x1xf32>
    %1199 = arith.maximumf %1168, %1174 : vector<2x1xf32>
    %1200 = arith.maximumf %1199, %1180 : vector<2x1xf32>
    %1201 = arith.maximumf %1200, %1186 : vector<2x1xf32>
    %1202 = arith.maximumf %1201, %1192 : vector<2x1xf32>
    %1203 = arith.maximumf %1202, %1198 : vector<2x1xf32>
    %1204 = arith.subf %1168, %1203 : vector<2x1xf32>
    %1205 = math.exp %1204 : vector<2x1xf32>
    %1206 = arith.subf %1174, %1203 : vector<2x1xf32>
    %1207 = math.exp %1206 : vector<2x1xf32>
    %1208 = arith.subf %1180, %1203 : vector<2x1xf32>
    %1209 = math.exp %1208 : vector<2x1xf32>
    %1210 = arith.subf %1186, %1203 : vector<2x1xf32>
    %1211 = math.exp %1210 : vector<2x1xf32>
    %1212 = arith.subf %1192, %1203 : vector<2x1xf32>
    %1213 = math.exp %1212 : vector<2x1xf32>
    %1214 = arith.subf %1198, %1203 : vector<2x1xf32>
    %1215 = math.exp %1214 : vector<2x1xf32>
    %1216 = arith.addf %1205, %1207 : vector<2x1xf32>
    %1217 = arith.addf %1216, %1209 : vector<2x1xf32>
    %1218 = arith.addf %1217, %1211 : vector<2x1xf32>
    %1219 = arith.addf %1218, %1213 : vector<2x1xf32>
    %1220 = arith.addf %1219, %1215 : vector<2x1xf32>
    %cst_387 = arith.constant 1.000000e+00 : f32
    %1221 = vector.broadcast %cst_387 : f32 to vector<2x1xf32>
    %1222 = arith.divf %1221, %1220 : vector<2x1xf32>
    %1223 = arith.mulf %1205, %1222 : vector<2x1xf32>
    %1224 = vector.broadcast %1223 : vector<2x1xf32> to vector<2x16xf32>
    %1225 = arith.mulf %1224, %103 : vector<2x16xf32>
    %1226 = arith.mulf %1205, %1222 : vector<2x1xf32>
    %1227 = vector.broadcast %1226 : vector<2x1xf32> to vector<2x16xf32>
    %1228 = arith.mulf %1227, %452 : vector<2x16xf32>
    %1229 = arith.mulf %1207, %1222 : vector<2x1xf32>
    %1230 = vector.broadcast %1229 : vector<2x1xf32> to vector<2x16xf32>
    %1231 = arith.mulf %1230, %167 : vector<2x16xf32>
    %1232 = arith.addf %1225, %1231 : vector<2x16xf32>
    %1233 = vector.broadcast %1229 : vector<2x1xf32> to vector<2x16xf32>
    %1234 = arith.mulf %1233, %388 : vector<2x16xf32>
    %1235 = arith.addf %1228, %1234 : vector<2x16xf32>
    %1236 = arith.mulf %1209, %1222 : vector<2x1xf32>
    %1237 = vector.broadcast %1236 : vector<2x1xf32> to vector<2x16xf32>
    %1238 = arith.mulf %1237, %231 : vector<2x16xf32>
    %1239 = arith.addf %1232, %1238 : vector<2x16xf32>
    %1240 = vector.broadcast %1236 : vector<2x1xf32> to vector<2x16xf32>
    %1241 = arith.mulf %1240, %324 : vector<2x16xf32>
    %1242 = arith.addf %1235, %1241 : vector<2x16xf32>
    %1243 = arith.mulf %1211, %1222 : vector<2x1xf32>
    %1244 = vector.broadcast %1243 : vector<2x1xf32> to vector<2x16xf32>
    %1245 = arith.mulf %1244, %295 : vector<2x16xf32>
    %1246 = arith.addf %1239, %1245 : vector<2x16xf32>
    %1247 = vector.broadcast %1243 : vector<2x1xf32> to vector<2x16xf32>
    %1248 = arith.mulf %1247, %260 : vector<2x16xf32>
    %1249 = arith.addf %1242, %1248 : vector<2x16xf32>
    %1250 = arith.mulf %1213, %1222 : vector<2x1xf32>
    %1251 = vector.broadcast %1250 : vector<2x1xf32> to vector<2x16xf32>
    %1252 = arith.mulf %1251, %359 : vector<2x16xf32>
    %1253 = arith.addf %1246, %1252 : vector<2x16xf32>
    %1254 = vector.broadcast %1250 : vector<2x1xf32> to vector<2x16xf32>
    %1255 = arith.mulf %1254, %196 : vector<2x16xf32>
    %1256 = arith.addf %1249, %1255 : vector<2x16xf32>
    %1257 = arith.mulf %1215, %1222 : vector<2x1xf32>
    %1258 = vector.broadcast %1257 : vector<2x1xf32> to vector<2x16xf32>
    %1259 = arith.mulf %1258, %423 : vector<2x16xf32>
    %1260 = arith.addf %1253, %1259 : vector<2x16xf32>
    %1261 = vector.broadcast %1257 : vector<2x1xf32> to vector<2x16xf32>
    %1262 = arith.mulf %1261, %132 : vector<2x16xf32>
    %1263 = arith.addf %1256, %1262 : vector<2x16xf32>
    %cst_388 = arith.constant dense<0.000000e+00> : vector<2x16xf32>
    %1264 = tpu.matmul %1161, %481, %cst_388 {dimension_numbers = #tpu.dot_dimension_numbers<[1], [0], [0], [1], [0, 0, 1, 1], [], []>} : vector<2x128xf32>, vector<128x16xf32>, vector<2x16xf32> -> vector<2x16xf32>
    %cst_389 = arith.constant dense<0.000000e+00> : vector<2x16xf32>
    %1265 = tpu.matmul %1260, %487, %cst_389 {dimension_numbers = #tpu.dot_dimension_numbers<[1], [0], [0], [1], [0, 0, 1, 1], [], []>} : vector<2x16xf32>, vector<16x16xf32>, vector<2x16xf32> -> vector<2x16xf32>
    %1266 = arith.addf %1264, %1265 : vector<2x16xf32>
    %cst_390 = arith.constant dense<0.000000e+00> : vector<2x16xf32>
    %1267 = tpu.matmul %1263, %493, %cst_390 {dimension_numbers = #tpu.dot_dimension_numbers<[1], [0], [0], [1], [0, 0, 1, 1], [], []>} : vector<2x16xf32>, vector<16x16xf32>, vector<2x16xf32> -> vector<2x16xf32>
    %1268 = arith.addf %1266, %1267 : vector<2x16xf32>
    %1269 = vector.broadcast %505 : vector<1x16xf32> to vector<2x16xf32>
    %1270 = arith.addf %1268, %1269 : vector<2x16xf32>
    %cst_391 = arith.constant dense<0.000000e+00> : vector<2x16xf32>
    %1271 = tpu.matmul %1107, %499, %cst_391 {dimension_numbers = #tpu.dot_dimension_numbers<[1], [0], [0], [1], [0, 0, 1, 1], [], []>} : vector<2x16xf32>, vector<16x16xf32>, vector<2x16xf32> -> vector<2x16xf32>
    %1272 = vector.broadcast %511 : vector<1x16xf32> to vector<2x16xf32>
    %1273 = arith.addf %1271, %1272 : vector<2x16xf32>
    %1274 = arith.addf %1270, %1273 : vector<2x16xf32>
    %1275 = arith.negf %1274 : vector<2x16xf32>
    %1276 = math.exp %1275 : vector<2x16xf32>
    %cst_392 = arith.constant 1.000000e+00 : f32
    %1277 = vector.broadcast %cst_392 : f32 to vector<2x16xf32>
    %1278 = arith.addf %1277, %1276 : vector<2x16xf32>
    %1279 = arith.divf %1277, %1278 : vector<2x16xf32>
    %cst_393 = arith.constant dense<0.000000e+00> : vector<2x16xf32>
    %1280 = tpu.matmul %1161, %483, %cst_393 {dimension_numbers = #tpu.dot_dimension_numbers<[1], [0], [0], [1], [0, 0, 1, 1], [], []>} : vector<2x128xf32>, vector<128x16xf32>, vector<2x16xf32> -> vector<2x16xf32>
    %cst_394 = arith.constant dense<0.000000e+00> : vector<2x16xf32>
    %1281 = tpu.matmul %1260, %489, %cst_394 {dimension_numbers = #tpu.dot_dimension_numbers<[1], [0], [0], [1], [0, 0, 1, 1], [], []>} : vector<2x16xf32>, vector<16x16xf32>, vector<2x16xf32> -> vector<2x16xf32>
    %1282 = arith.addf %1280, %1281 : vector<2x16xf32>
    %cst_395 = arith.constant dense<0.000000e+00> : vector<2x16xf32>
    %1283 = tpu.matmul %1263, %495, %cst_395 {dimension_numbers = #tpu.dot_dimension_numbers<[1], [0], [0], [1], [0, 0, 1, 1], [], []>} : vector<2x16xf32>, vector<16x16xf32>, vector<2x16xf32> -> vector<2x16xf32>
    %1284 = arith.addf %1282, %1283 : vector<2x16xf32>
    %1285 = vector.broadcast %507 : vector<1x16xf32> to vector<2x16xf32>
    %1286 = arith.addf %1284, %1285 : vector<2x16xf32>
    %cst_396 = arith.constant dense<0.000000e+00> : vector<2x16xf32>
    %1287 = tpu.matmul %1107, %501, %cst_396 {dimension_numbers = #tpu.dot_dimension_numbers<[1], [0], [0], [1], [0, 0, 1, 1], [], []>} : vector<2x16xf32>, vector<16x16xf32>, vector<2x16xf32> -> vector<2x16xf32>
    %1288 = vector.broadcast %513 : vector<1x16xf32> to vector<2x16xf32>
    %1289 = arith.addf %1287, %1288 : vector<2x16xf32>
    %1290 = arith.addf %1286, %1289 : vector<2x16xf32>
    %1291 = arith.negf %1290 : vector<2x16xf32>
    %1292 = math.exp %1291 : vector<2x16xf32>
    %cst_397 = arith.constant 1.000000e+00 : f32
    %1293 = vector.broadcast %cst_397 : f32 to vector<2x16xf32>
    %1294 = arith.addf %1293, %1292 : vector<2x16xf32>
    %1295 = arith.divf %1293, %1294 : vector<2x16xf32>
    %cst_398 = arith.constant dense<0.000000e+00> : vector<2x16xf32>
    %1296 = tpu.matmul %1161, %485, %cst_398 {dimension_numbers = #tpu.dot_dimension_numbers<[1], [0], [0], [1], [0, 0, 1, 1], [], []>} : vector<2x128xf32>, vector<128x16xf32>, vector<2x16xf32> -> vector<2x16xf32>
    %cst_399 = arith.constant dense<0.000000e+00> : vector<2x16xf32>
    %1297 = tpu.matmul %1260, %491, %cst_399 {dimension_numbers = #tpu.dot_dimension_numbers<[1], [0], [0], [1], [0, 0, 1, 1], [], []>} : vector<2x16xf32>, vector<16x16xf32>, vector<2x16xf32> -> vector<2x16xf32>
    %1298 = arith.addf %1296, %1297 : vector<2x16xf32>
    %cst_400 = arith.constant dense<0.000000e+00> : vector<2x16xf32>
    %1299 = tpu.matmul %1263, %497, %cst_400 {dimension_numbers = #tpu.dot_dimension_numbers<[1], [0], [0], [1], [0, 0, 1, 1], [], []>} : vector<2x16xf32>, vector<16x16xf32>, vector<2x16xf32> -> vector<2x16xf32>
    %1300 = arith.addf %1298, %1299 : vector<2x16xf32>
    %1301 = vector.broadcast %509 : vector<1x16xf32> to vector<2x16xf32>
    %1302 = arith.addf %1300, %1301 : vector<2x16xf32>
    %cst_401 = arith.constant dense<0.000000e+00> : vector<2x16xf32>
    %1303 = tpu.matmul %1107, %503, %cst_401 {dimension_numbers = #tpu.dot_dimension_numbers<[1], [0], [0], [1], [0, 0, 1, 1], [], []>} : vector<2x16xf32>, vector<16x16xf32>, vector<2x16xf32> -> vector<2x16xf32>
    %1304 = vector.broadcast %515 : vector<1x16xf32> to vector<2x16xf32>
    %1305 = arith.addf %1303, %1304 : vector<2x16xf32>
    %1306 = arith.mulf %1279, %1305 : vector<2x16xf32>
    %1307 = arith.addf %1302, %1306 : vector<2x16xf32>
    %1308 = math.tanh %1307 : vector<2x16xf32>
    %cst_402 = arith.constant 1.000000e+00 : f32
    %1309 = vector.broadcast %cst_402 : f32 to vector<2x16xf32>
    %1310 = arith.subf %1309, %1295 : vector<2x16xf32>
    %1311 = arith.mulf %1310, %1308 : vector<2x16xf32>
    %1312 = arith.mulf %1295, %1107 : vector<2x16xf32>
    %1313 = arith.addf %1311, %1312 : vector<2x16xf32>
    %cst_403 = arith.constant dense<0.000000e+00> : vector<2x128xf32>
    %1314 = tpu.matmul %1313, %516, %cst_403 {dimension_numbers = #tpu.dot_dimension_numbers<[1], [0], [0], [1], [0, 0, 1, 1], [], []>} : vector<2x16xf32>, vector<16x128xf32>, vector<2x128xf32> -> vector<2x128xf32>
    %cst_404 = arith.constant dense<0.000000e+00> : vector<2x128xf32>
    %1315 = tpu.matmul %1260, %517, %cst_404 {dimension_numbers = #tpu.dot_dimension_numbers<[1], [0], [0], [1], [0, 0, 1, 1], [], []>} : vector<2x16xf32>, vector<16x128xf32>, vector<2x128xf32> -> vector<2x128xf32>
    %1316 = arith.addf %1314, %1315 : vector<2x128xf32>
    %cst_405 = arith.constant dense<0.000000e+00> : vector<2x128xf32>
    %1317 = tpu.matmul %1263, %518, %cst_405 {dimension_numbers = #tpu.dot_dimension_numbers<[1], [0], [0], [1], [0, 0, 1, 1], [], []>} : vector<2x16xf32>, vector<16x128xf32>, vector<2x128xf32> -> vector<2x128xf32>
    %1318 = arith.addf %1316, %1317 : vector<2x128xf32>
    %cst_406 = arith.constant dense<0.000000e+00> : vector<2x128xf32>
    %1319 = tpu.matmul %1161, %519, %cst_406 {dimension_numbers = #tpu.dot_dimension_numbers<[1], [0], [0], [1], [0, 0, 1, 1], [], []>} : vector<2x128xf32>, vector<128x128xf32>, vector<2x128xf32> -> vector<2x128xf32>
    %1320 = arith.addf %1318, %1319 : vector<2x128xf32>
    %1321 = vector.broadcast %520 : vector<1x128xf32> to vector<2x128xf32>
    %1322 = arith.addf %1320, %1321 : vector<2x128xf32>
    %c4 = arith.constant 4 : index
    %c0_407 = arith.constant 0 : index
    %c0_408 = arith.constant 0 : index
    %1323 = vector.load %arg30[%c4, %c0_407, %c0_408] : memref<5x2x128xf32, #tpu.memory_space<vmem>>, vector<1x2x128xf32>
    %1324 = vector.shape_cast %1323 : vector<1x2x128xf32> to vector<2x128xf32>
    %1325 = vector.shape_cast %1322 : vector<2x128xf32> to vector<1x2x128xf32>
    tpu.vector_store %arg30[%c4, %c0_407, %c0_408], %1325 {strides = array<i32>} : memref<5x2x128xf32, #tpu.memory_space<vmem>>, vector<1x2x128xf32>,
    return
  }
}

</mosaic_0001>

<bundles_post_ra>
// kernel: seq2seq_forward.1
= control target key start
LH: loop header
LB: loop body
LE: loop exit
PB: predicated region body
PF: predicated region fallthrough
CT: control target
= control target key end

     0   :  { %s13161_s6 = smov 1   ;;  %s13162_s10 = smov 2   ;;  %s14990_s0 = inlined_call_operand.smem [shape: u32[31], index: -1, kind: input, shape index: {}] }
   0x1   :  { %s13208_s5 = sld [smem:[%s14990_s0]]   ;;  %s13163_s14 = smov 3  }
   0x2   :  { %s13213_s9 = sld [smem:[%s14990_s0 + %s13161_s6]]   ;;  %s13164_s18 = smov 4  }
   0x3   :  { %s13218_s13 = sld [smem:[%s14990_s0 + %s13162_s10]]   ;;  %s13165_s22 = smov 5  }
   0x4   :  { %s13223_s17 = sld [smem:[%s14990_s0 + %s13163_s14]]   ;;  %s13166_s26 = smov 6  }
   0x5   :  { %s13228_s21 = sld [smem:[%s14990_s0 + %s13164_s18]]   ;;  %s13167_s30 = smov 7  }
   0x6   :  { %s13233_s25 = sld [smem:[%s14990_s0 + %s13165_s22]]   ;;  %s13168_s4 = smov 8  }
   0x7   :  { %s13238_s29 = sld [smem:[%s14990_s0 + %s13166_s26]]   ;;  %s13169_s10 = smov 9  }
   0x8   :  { %s13243_s3 = sld [smem:[%s14990_s0 + %s13167_s30]]   ;;  %s13170_s15 = smov 10  }
   0x9   :  { %s13248_s8 = sld [smem:[%s14990_s0 + %s13168_s4]]   ;;  %s13171_s20 = smov 11  }
   0xa   :  { %s13253_s14 = sld [smem:[%s14990_s0 + %s13169_s10]]   ;;  %s13172_s26 = smov 12  }
   0xb   :  { %s13258_s19 = sld [smem:[%s14990_s0 + %s13170_s15]]   ;;  %s13173_s1 = smov 13  }
   0xc   :  { %s13263_s24 = sld [smem:[%s14990_s0 + %s13171_s20]]   ;;  %s13174_s7 = smov 14  }
   0xd   :  { %s13268_s30 = sld [smem:[%s14990_s0 + %s13172_s26]]   ;;  %s13175_s15 = smov 15  }
   0xe   :  { %s13273_s6 = sld [smem:[%s14990_s0 + %s13173_s1]]   ;;  %s13176_s22 = smov 16  }
   0xf   :  { %s13278_s12 = sld [smem:[%s14990_s0 + %s13174_s7]]   ;;  %s13177_s28 = smov 17  }
  0x10   :  { %s13283_s20 = sld [smem:[%s14990_s0 + %s13175_s15]]   ;;  %s13178_s7 = smov 18  }
  0x11   :  { %s13288_s27 = sld [smem:[%s14990_s0 + %s13176_s22]]   ;;  %s13179_s15 = smov 19  }
  0x12   :  { %s13293_s4 = sld [smem:[%s14990_s0 + %s13177_s28]]   ;;  %s13180_s22 = smov 20  }
  0x13   :  { %s13181_s28 = smov 21  }
  0x14   :  { %15076 = sst [smem:[#allocation11_spill]] %s13273_s6 }
  0x15   :  { %15077 = sst [smem:[#allocation12_spill]] %s13278_s12 }
  0x16   :  { %15078 = sst [smem:[#allocation13_spill]] %s13283_s20 }
  0x17   :  { %s13298_s6 = sld [smem:[%s14990_s0 + %s13178_s7]]   ;;  %s13182_s7 = smov 22  }
  0x18   :  { %15079 = sst [smem:[#allocation14_spill]] %s13293_s4 }
  0x19   :  { %s13303_s12 = sld [smem:[%s14990_s0 + %s13179_s15]]   ;;  %s13183_s15 = smov 23  }
  0x1a   :  { %s13308_s20 = sld [smem:[%s14990_s0 + %s13180_s22]]   ;;  %s13184_s22 = smov 24  }
  0x1b   :  { %s13313_s4 = sld [smem:[%s14990_s0 + %s13181_s28]]   ;;  %s13185_s28 = smov 25  }
  0x1d   :  { %15080 = sst [smem:[#allocation15_spill]] %s13298_s6 }
  0x1e   :  { %s13318_s6 = sld [smem:[%s14990_s0 + %s13182_s7]]   ;;  %s13186_s7 = smov 26  }
  0x1f   :  { %15081 = sst [smem:[#allocation16_spill]] %s13303_s12 }
  0x20   :  { %15082 = sst [smem:[#allocation17_spill]] %s13308_s20 }
  0x21   :  { %15083 = sst [smem:[#allocation18_spill]] %s13313_s4 }
  0x22   :  { %s13323_s12 = sld [smem:[%s14990_s0 + %s13183_s15]]   ;;  %s13187_s15 = smov 27  }
  0x23   :  { %s13328_s20 = sld [smem:[%s14990_s0 + %s13184_s22]]   ;;  %s13188_s22 = smov 28  }
  0x24   :  { %15084 = sst [smem:[#allocation19_spill]] %s13318_s6 }
  0x25   :  { %s13333_s4 = sld [smem:[%s14990_s0 + %s13185_s28]]   ;;  %s13189_s28 = smov 29  }
  0x26   :  { %s13338_s6 = sld [smem:[%s14990_s0 + %s13186_s7]]   ;;  %s13190_s7 = smov 30  }
  0x28   :  { %15085 = sst [smem:[#allocation20_spill]] %s13323_s12 }
  0x29   :  { %15086 = sst [smem:[#allocation21_spill]] %s13328_s20 }
  0x2a   :  { %s13343_s12 = sld [smem:[%s14990_s0 + %s13187_s15]]  }
  0x2b   :  { %15087 = sst [smem:[#allocation22_spill]] %s13333_s4 }
  0x2c   :  { %15088 = sst [smem:[#allocation23_spill]] %s13338_s6 }
  0x2d   :  { %s13348_s20 = sld [smem:[%s14990_s0 + %s13188_s22]]  }
  0x2e   :  { %s13353_s4 = sld [smem:[%s14990_s0 + %s13189_s28]]  }
  0x2f   :  { %s13358_s6 = sld [smem:[%s14990_s0 + %s13190_s7]]  }
  0x30   :  { %66 = vsyncpa [#allocation4], 0 }
  0x31   :  { %67 = vsyncpa [#allocation6], 0 }
  0x32   :  { %68 = vsyncpa [#allocation3], 0  ;;  %s75_s15 = sshll.u32 %s13208_s5, 4  ;;  %s85_s16 = sshll.u32 %s13213_s9, 4  ;;  %s76_s15 = int_to_ptr.vmem [resolvable:$true] %s75_s15  ;;  %s86_s16 = int_to_ptr.vmem [resolvable:$true] %s85_s16 }
  0x33   :  { %s13109_s18 = scalar_lea.vmem %s76_s15, 16  ;;  %p13114_p1 = scmp.lt.s32.totalorder %s76_s15, %s76_s15 }
  0x34   :  { %p13110_p0 = scmp.ne.s32.totalorder %s76_s15, %s13109_s18  ;;  %p13115_p2 = scmp.lt.s32.totalorder %s13109_s18, %s13109_s18 }
  0x36   :  { %p13116_p3 = por %p13115_p2, %p13114_p1 }
  0x38   :  { %p13117_p4 = pnand %p13116_p3, %p13110_p0 }
  0x3a   :  { %13120 = shalt.err (!%p13117_p4)
}
  0x3b   :  { %s13191_s22 = smov [#allocation2]   ;;  %s13121_s0 = scalar_lea.vmem %s86_s16, 128 }
  0x3c   :  { %78 = dma.vmem_to_smem %s76_s15, 16, %s13191_s22, [#allocation4]  }
  0x3d   :  { %p13122_p5 = scmp.ne.s32.totalorder %s86_s16, %s13121_s0  ;;  %p13126_p6 = scmp.lt.s32.totalorder %s86_s16, %s86_s16 }
  0x3e   :  { %p13127_p7 = scmp.lt.s32.totalorder %s13121_s0, %s13121_s0 }
  0x40   :  { %p13128_p8 = por %p13127_p7, %p13126_p6 }
  0x42   :  { %p13129_p9 = pnand %p13128_p8, %p13122_p5 }
  0x44   :  { %13132 = shalt.err (!%p13129_p9)
}
  0x45   :  { %s13192_s5 = smov [#allocation5]  }
  0x46   :  { %88 = dma.vmem_to_smem %s86_s16, 128, %s13192_s5, [#allocation6]  }
  0x47   :  { %13155 = dma.done.wait [#allocation4], 16  }
  0x48   :  { %13156 = vsyncadd [#allocation4], 4294967280 }
  0x49   :  { %13157 = dma.done.wait [#allocation6], 128  }
  0x4a   :  { %13158 = vsyncadd [#allocation6], 4294967168 }
  0x4b   :  { %151 = sfence }
  0x4c   :  { %v154_v0 = vld [vmem:[%s13223_s17] sm:$0xff]  ;;  %vm162_vm0 = vcmask 64512   ;;  %v153_v2 = vld [vmem:[%s13218_s13 + $0x8] sm:$0xf]  ;;  %v10041_v4 = vld [vmem:[%s13223_s17 + $0x10] sm:$0xff]  ;;  %v15004_v5 = vmov 0.0  }
  0x4d   :  { %v152_v1 = vld [vmem:[%s13218_s13] sm:$0xff]  ;;  %10836 = vmatprep.subr.mxu1 %v154_v0  ;;  %v10036_v3 = vld [vmem:[%s13223_s17 + $0x8] sm:$0xff]  ;;  %4091 = vst [vmem:[#allocation7] sm:$0x3] %v15004_v5  ;;  %v10065_v7 = vld [vmem:[%s13248_s8 + $0x10] sm:$0xff]  ;;  %v15018_v14 = vmov 0.0|0.0  }
  0x4e   :  { %10838 = vmatprep.mubr.msk.f32.mxu1 %vm162_vm0, %v152_v1  ;;  %10837 = vmatpush3.msra.mxu1 %v154_v0  ;;  %v10049_v6 = vld [vmem:[%s13243_s3 + $0x8] sm:$0xff]  ;;  %v10066_v8 = vld [vmem:[%s13248_s8 + $0x18] sm:$0xff]  ;;  %v414_v9 = vld [vmem:[%s13243_s3] sm:$0xff]  ;;  %vm13195_vm1 = vmmov 0   ;;  %vm699_vm2 = vcmask 130048   ;;  %s15089_s9 = sld [smem:[#allocation13_spill]] }
  0x4f   :  { %10858 = vmatprep.mubr.msk.f32.mxu0 %vm162_vm0, %v152_v1  ;;  %10839 = vmatmul.mubr.msk.f32.vlgmr.msra.gmra.mrb[0].mxu1 %vm162_vm0, %v153_v2  ;;  %v13377_v10 = vpack.c.bf16 %v10066_v8, %v10065_v7  ;;  %v10054_v11 = vld [vmem:[%s13243_s3 + $0x10] sm:$0xff]  ;;  %v667_v12 = vld [vmem:[%s13228_s21] sm:$0xff]  ;;  %v668_v13 = vld [vmem:[%s13228_s21 + $0x8] sm:$0xff]  ;;  %vm3791_vm3 = vcmask 1041408   ;;  %vm3793_vm4 = vcmask 1043456   ;;  %vm3795_vm5 = vcmask 1045504  }
  0x50   :  { %10841 = vmatprep.subr.mxu1 %v10036_v3  ;;  %10843 = vmatprep.mubr.msk.f32.mxu1 %vm162_vm0, %v152_v1  ;;  %v13390_v15 = vpack.c.bf16 %v668_v13, %v667_v12  ;;  %v10059_v16 = vld [vmem:[%s13228_s21 + $0x10] sm:$0xff]  ;;  %v10060_v17 = vld [vmem:[%s13228_s21 + $0x18] sm:$0xff]  ;;  %v10061_v19 = vld [vmem:[%s13228_s21 + $0x20] sm:$0xff]  ;;  %s15090_s13 = sld [smem:[#allocation12_spill]]  ;;  %s15091_s17 = sld [smem:[#allocation11_spill]]  ;;  %vm4196_vm6 = vcmask 125954  }
  0x51   :  { %10842 = vmatpush3.msra.mxu1 %v10036_v3  ;;  %10856 = vmatprep.subr.mxu0 %v10049_v6  ;;  %v13407_v18 = vpack.c.bf16 %v10060_v17, %v10059_v16  ;;  %v10062_v20 = vld [vmem:[%s13228_s21 + $0x28] sm:$0xff]  ;;  %v680_v22 = vld [vmem:[%s13248_s8] sm:$0xff]  ;;  %s15093_s21 = sld [smem:[#allocation14_spill]]  ;;  %vm4205_vm7 = vcmask 128004   ;;  %vm4186_vm8 = vcmask 123904   ;;  %vm4214_vm9 = vcmask 130054  }
  0x52   :  { %10846 = vmatprep.subr.mxu1 %v10041_v4  ;;  %10857 = vmatpush3.msra.mxu0 %v10049_v6  ;;  %v13416_v21 = vpack.c.bf16 %v10062_v20, %v10061_v19  ;;  %v681_v23 = vld [vmem:[%s13248_s8 + $0x8] sm:$0xff]  ;;  %v10067_v25 = vld [vmem:[%s13248_s8 + $0x20] sm:$0xff]  ;;  %s15100_s3 = sld [smem:[#allocation16_spill]]  ;;  %s15118_s23 = sld [smem:[#allocation20_spill]] }
  0x53   :  { %10844 = vmatmul.mubr.msk.f32.vlgmr.msra.gmra.mrb[2].mxu1 %vm162_vm0, %v153_v2  ;;  %10859 = vmatmul.mubr.msk.f32.vlgmr.msra.gmra.mrb[0].mxu0 %vm162_vm0, %v153_v2  ;;  %v13425_v24 = vpack.c.bf16 %v681_v23, %v680_v22  ;;  %v10068_v26 = vld [vmem:[%s13248_s8 + $0x28] sm:$0xff]  ;;  %v10033_v28 = vld [vmem:[%s13233_s25] ss:$0 sm:$0xff]  ;;  %v10038_v32 = vld [vmem:[%s13233_s25 + $0x1] ss:$0 sm:$0xff]  ;;  %s13955_s8 = sld [smem:[#allocation5]] }
  0x54   :  { %10847 = vmatpush3.msra.mxu1 %v10041_v4  ;;  %10848 = vmatprep.mubr.msk.f32.mxu1 %vm162_vm0, %v152_v1  ;;  %v13434_v27 = vpack.c.bf16 %v10068_v26, %v10067_v25  ;;  %v10051_v36 = vld [vmem:[%s13253_s14 + $0x1] ss:$0 sm:$0xff]  ;;  %v10043_v37 = vld [vmem:[%s13233_s25 + $0x2] ss:$0 sm:$0xff]  ;;  %v10046_v44 = vld [vmem:[%s13253_s14] ss:$0 sm:$0xff] }
  0x55   :  { %10851 = vmatprep.subr.mxu1 %v414_v9  ;;  %12082 = vmatprep.subr.bf16.mxu0 %v15018_v14  ;;  %v13463_v50 = vld [vmem:[%s13253_s14 + $0x2] ss:$0 sm:$0xff]  ;;  %v13471_v54 = vld [vmem:[%s13238_s29] ss:$0 sm:$0xff]  ;;  %v13477_v59 = vld [vmem:[%s13238_s29 + $0x1] ss:$0 sm:$0xff] }
  0x56   :  { %10898 = vmatprep.mubr.msk.f32.mxu0 %vm13195_vm1, %v15004_v5  ;;  %12084 = vmatpush3.bf16.msra.mxu0 %v13377_v10  ;;  %v13485_v6 = vld [vmem:[%s13258_s19 + $0x1] ss:$0 sm:$0xff]  ;;  %v13488_v8 = vld [vmem:[%s13258_s19] ss:$0 sm:$0xff]  ;;  %s15095_s25 = sld [smem:[#allocation15_spill]]  ;;  %s13962_s14 = sld [smem:[#allocation5 + $0x1]] }
  0x57   :  { %10849 = vmatmul.mubr.msk.f32.vlgmr.msra.gmra.mrb[4].mxu1 %vm162_vm0, %v153_v2  ;;  %12088 = vmatprep.subr.bf16.mxu0 %v15018_v14  ;;  %s15119_s26 = sld [smem:[#allocation21_spill]]  ;;  %s10212_s28 = sld [smem:[#allocation2 + $0x1]] }
  0x58   :  { %10852 = vmatpush3.msra.mxu1 %v414_v9  ;;  %10853 = vmatprep.mubr.msk.f32.mxu1 %vm162_vm0, %v152_v1  ;;  %s10232_s7 = sld [smem:[#allocation5 + $0x100]]  ;;  %s10233_s10 = sld [smem:[#allocation5 + $0x101]] }
  0x59   :  { %10861 = vmatprep.subr.mxu1 %v10054_v11  ;;  %10899 = vmatmul.mubr.f32.vlgmr.msra.gmra.mrb[2].mxu0 %v15004_v5  ;;  %s10231_s11 = sld [smem:[#allocation2 + $0x2]]  ;;  %s10252_s18 = sld [smem:[#allocation5 + $0x181]] }
  0x5a   :  { %12090 = vmatpush3.bf16.msra.mxu0 %v13390_v15  ;;  %10912 = vmatprep.mubr.msk.f32.mxu0 %vm13195_vm1, %v15004_v5  ;;  %s10250_s22 = sld [smem:[#allocation2 + $0x3]] }
  0x5b   :  { %10854 = vmatmul.mubr.msk.f32.vlgmr.msra.gmra.mrb[6].mxu1 %vm162_vm0, %v153_v2  ;;  %12094 = vmatprep.subr.bf16.mxu0 %v15018_v14 }
  0x5c   :  { %10862 = vmatpush3.msra.mxu1 %v10054_v11  ;;  %10863 = vmatprep.mubr.msk.f32.mxu1 %vm162_vm0, %v152_v1 }
  0x5d   :  { %12070 = vmatprep.subr.bf16.mxu1 %v15018_v14  ;;  %s5610_s1 = scvt.s32.f32 %s10212_s28 }
  0x5f   :  { %10864 = vmatmul.mubr.msk.f32.vlgmr.msra.gmra.mrb[8].mxu1 %vm162_vm0, %v153_v2  ;;  %s5623_s2 = ssub.f32 1.0, %s5610_s1  ;;  %s7077_s15 = scvt.s32.f32 %s10231_s11 }
  0x60   :  { %12072 = vmatpush3.bf16.msra.mxu1 %v13390_v15  ;;  %10870 = vmatprep.mubr.msk.f32.mxu1 %vm13195_vm1, %v15004_v5  ;;  %s8544_s0 = scvt.s32.f32 %s10250_s22 }
  0x61   :  { %12073 = vmatprep.subr.bf16.mxu1 %v15018_v14  ;;  %s7090_s16 = ssub.f32 1.0, %s7077_s15 }
  0x62   :  { %s8557_s5 = ssub.f32 1.0, %s8544_s0 }
  0x63   :  { %10871 = vmatmul.mubr.f32.vlgmr.msra.gmra.mrb[10].mxu1 %v15004_v5 }
  0x64   :  { %12075 = vmatpush3.bf16.msra.mxu1 %v13407_v18  ;;  %10877 = vmatprep.mubr.msk.f32.mxu1 %vm13195_vm1, %v15004_v5 }
  0x65   :  { %12076 = vmatprep.subr.bf16.mxu1 %v15018_v14 }
  0x67   :  { %10878 = vmatmul.mubr.f32.vlgmr.msra.gmra.mrb[12].mxu1 %v15004_v5 }
  0x68   :  { %12078 = vmatpush3.bf16.msra.mxu1 %v13416_v21  ;;  %10884 = vmatprep.mubr.msk.f32.mxu1 %vm13195_vm1, %v15004_v5 }
  0x69   :  { %12079 = vmatprep.subr.bf16.mxu1 %v15018_v14 }
  0x6b   :  { %10885 = vmatmul.mubr.f32.vlgmr.msra.gmra.mrb[14].mxu1 %v15004_v5 }
  0x6c   :  { %12081 = vmatpush3.bf16.msra.mxu1 %v13425_v24  ;;  %10891 = vmatprep.mubr.msk.f32.mxu1 %vm13195_vm1, %v15004_v5 }
  0x6d   :  { %12085 = vmatprep.subr.bf16.mxu1 %v15018_v14 }
  0x6f   :  { %10892 = vmatmul.mubr.f32.vlgmr.msra.gmra.mrb[16].mxu1 %v15004_v5 }
  0x70   :  { %12087 = vmatpush3.bf16.msra.mxu1 %v13434_v27  ;;  %10905 = vmatprep.mubr.msk.f32.mxu1 %vm13195_vm1, %v15004_v5 }
  0x71   :  { %12091 = vmatprep.subr.bf16.mxu1 %v15018_v14 }
  0x73   :  { %10906 = vmatmul.mubr.f32.vlgmr.msra.gmra.mrb[18].mxu1 %v15004_v5 }
  0x74   :  { %12093 = vmatpush3.bf16.msra.mxu1 %v13407_v18  ;;  %10919 = vmatprep.mubr.msk.f32.mxu1 %vm13195_vm1, %v15004_v5 }
  0x75   :  { %12097 = vmatprep.subr.bf16.mxu1 %v15018_v14 }
 0x122   :  { %v10840_v29 = vpop.f32.mrb[0].mxu1 }
 0x123   :  { %v13448_v30 = vadd.f32 %v10840_v29, %v10033_v28  ;;  %v235_v31 = vpop.f32.mrb[1].mxu1 }
 0x124   :  { %v13473_v56 = vadd.f32 %v10033_v28, %v235_v31 }
 0x126   :  { %v10845_v33 = vpop.f32.mrb[2].mxu1  ;;  %v10860_v38 = vpop.f32.mrb[0].mxu0 }
 0x127   :  { %v13451_v34 = vadd.f32 %v10845_v33, %v10038_v32  ;;  %v320_v35 = vpop.f32.mrb[3].mxu1  ;;  %v573_v39 = vpop.f32.mrb[1].mxu0  ;;  %v13494_v19 = vadd.f32 %v10860_v38, %v10051_v36 }
 0x128   :  { %v13455_v41 = vadd.f32 %v10051_v36, %v573_v39  ;;  %v13480_v62 = vadd.f32 %v10038_v32, %v320_v35  ;;  %v13499_v35 = vld [vmem:[%s13238_s29 + $0x2] ss:$0 sm:$0xff]  ;;  %s15097_s29 = sld [smem:[#allocation17_spill]] }
 0x12a   :  { %v10850_v40 = vpop.f32.mrb[4].mxu1 }
 0x12b   :  { %v13457_v42 = vadd.f32 %v10850_v40, %v10043_v37  ;;  %v405_v43 = vpop.f32.mrb[5].mxu1 }
 0x12c   :  { %v1094_v45 = vpop.f32.mrb[2].mxu0 }
 0x12d   :  { %v10900_v47 = vpop.f32.mrb[3].mxu0  ;;  %v1095_v11 = vadd.f32 %v13485_v6, %v1094_v45 }
 0x12e   :  { %v10855_v46 = vpop.f32.mrb[6].mxu1 }
 0x12f   :  { %v488_v48 = vpop.f32.mrb[7].mxu1  ;;  %v13492_v16 = vadd.f32 %v10855_v46, %v10046_v44  ;;  %v1185_v20 = vrot.slane %v1095_v11, 6 }
 0x130   :  { %v13460_v49 = vadd.f32 %v10046_v44, %v488_v48  ;;  %v13502_v44 = vadd.f32 %v10043_v37, %v405_v43  ;;  %v13506_v48 = vld [vmem:[%s13258_s19 + $0x2] ss:$0 sm:$0xff]  ;;  %s15103_s19 = sld [smem:[#allocation18_spill]] }
 0x131   :  { %v1187_v31 = vadd.f32 %v1185_v20, %v13494_v19 }
 0x132   :  { %v13465_v51 = vpop.f32.mrb[8].mxu1 }
 0x133   :  { %v658_v52 = vpop.f32.mrb[9].mxu1  ;;  %v10080_v33 = vmul.f32 -1.442695, %v1187_v31  ;;  %v13511_v37 = vadd.f32 %v13465_v51, %v13463_v50 }
 0x134   :  { %v13468_v53 = vadd.f32 %v13463_v50, %v658_v52 }
 0x136   :  { %v769_v55 = vpop.f32.mrb[10].mxu1 }
 0x137   :  { %v770_v57 = vadd.f32 %v13471_v54, %v769_v55  ;;  %v10872_v58 = vpop.f32.mrb[11].mxu1 }
 0x139   :  { %v925_v60 = vadd.f32 %v770_v57, %v13473_v56 }
 0x13a   :  { %v845_v61 = vpop.f32.mrb[12].mxu1 }
 0x13b   :  { %v10074_v63 = vmul.f32 -1.442695, %v925_v60  ;;  %v846_v0 = vadd.f32 %v13477_v59, %v845_v61  ;;  %v10879_v1 = vpop.f32.mrb[13].mxu1 }
 0x13d   :  { %12839 = vpow2.f32 %v10074_v63  ;;  %v932_v2 = vadd.f32 %v846_v0, %v13480_v62 }
 0x13e   :  { %v921_v3 = vpop.f32.mrb[14].mxu1 }
 0x13f   :  { %v10886_v4 = vpop.f32.mrb[15].mxu1  ;;  %v10075_v7 = vmul.f32 -1.442695, %v932_v2  ;;  %v922_v36 = vadd.f32 %v13499_v35, %v921_v3 }
 0x141   :  { %12841 = vpow2.f32 %v10075_v7 }
 0x142   :  { %v1018_v9 = vpop.f32.mrb[16].mxu1 }
 0x143   :  { %v1019_v12 = vadd.f32 %v13488_v8, %v1018_v9  ;;  %v10893_v13 = vpop.f32.mrb[17].mxu1 }
 0x145   :  { %v1175_v17 = vrot.slane %v1019_v12, 6 }
 0x146   :  { %v1170_v22 = vpop.f32.mrb[18].mxu1 }
 0x147   :  { %v12840_v23 = vpop.eup %12839  ;;  %v1177_v25 = vadd.f32 %v1175_v17, %v13492_v16  ;;  %v10907_v26 = vpop.f32.mrb[19].mxu1  ;;  %v1171_v52 = vadd.f32 %v13506_v48, %v1170_v22 }
 0x148   :  { %v929_v28 = vadd.f32 1.0, %v12840_v23 }
 0x149   :  { %v10079_v29 = vmul.f32 -1.442695, %v1177_v25  ;;  %v1195_v60 = vrot.slane %v1171_v52, 6 }
 0x14a   :  { %12843 = vrcp.f32 %v929_v28 }
 0x14b   :  { %12845 = vpow2.f32 %v10079_v29  ;;  %v12842_v32 = vpop.eup %12841 }
 0x14c   :  { %v936_v39 = vadd.f32 1.0, %v12842_v32  ;;  %12847 = vpow2.f32 %v10080_v33 }
 0x14e   :  { %12849 = vrcp.f32 %v936_v39 }
 0x154   :  { %v12844_v38 = vpop.eup %12843 }
 0x155   :  { %v12846_v40 = vpop.eup %12845  ;;  %v939_v45 = vmul.f32 %v12844_v38, %v922_v36 }
 0x156   :  { %v1181_v46 = vadd.f32 1.0, %v12846_v40  ;;  %v12848_v55 = vpop.eup %12847 }
 0x157   :  { %v940_v47 = vadd.f32 %v939_v45, %v13502_v44  ;;  %v1191_v58 = vadd.f32 1.0, %v12848_v55 }
 0x158   :  { %12851 = vrcp.f32 %v1181_v46  ;;  %v12850_v57 = vpop.eup %12849 }
 0x159   :  { %12853 = vtanh.f32 %v940_v47  ;;  %v942_v63 = vsub.f32 1.0, %v12850_v57  ;;  %v944_v1 = vmul.f32 0.0, %v12850_v57 }
 0x15a   :  { %12855 = vrcp.f32 %v1191_v58 }
 0x162   :  { %v12852_v61 = vpop.eup %12851 }
 0x163   :  { %v12854_v0 = vpop.eup %12853  ;;  %v1197_v43 = vmul.f32 %v12852_v61, %v1195_v60 }
 0x164   :  { %v943_v2 = vmul.f32 %v12854_v0, %v942_v63  ;;  %v12856_v50 = vpop.eup %12855 }
 0x165   :  { %v1198_v3 = vadd.f32 %v1197_v43, %v13511_v37  ;;  %v1200_v51 = vsub.f32 1.0, %v12856_v50  ;;  %v1202_v9 = vmul.f32 0.0, %v12856_v50 }
 0x166   :  { %v13514_v4 = vadd.f32 %v944_v1, %v943_v2 }
 0x167   :  { %12857 = vtanh.f32 %v1198_v3 }
 0x168   :  { %10913 = vmatmul.mubr.msk.f32.vlgmr.msra.gmra.mrb[4].mxu0 %vm699_vm2, %v13514_v4  ;;  %10920 = vmatmul.mubr.msk.f32.vlgmr.msra.gmra.mrb[20].mxu1 %vm699_vm2, %v13514_v4 }
 0x169   :  { %12096 = vmatpush3.bf16.msra.mxu0 %v13416_v21  ;;  %10926 = vmatprep.mubr.msk.f32.mxu0 %vm13195_vm1, %v15004_v5 }
 0x16a   :  { %12100 = vmatprep.subr.bf16.mxu0 %v15018_v14  ;;  %12099 = vmatpush3.bf16.msra.mxu1 %v13425_v24 }
 0x16b   :  { %10933 = vmatprep.mubr.msk.f32.mxu1 %vm13195_vm1, %v15004_v5  ;;  %12103 = vmatprep.subr.bf16.mxu1 %v15018_v14 }
 0x16c   :  { %10927 = vmatmul.mubr.msk.f32.vlgmr.msra.gmra.mrb[6].mxu0 %vm699_vm2, %v13514_v4 }
 0x16d   :  { %12102 = vmatpush3.bf16.msra.mxu0 %v13377_v10  ;;  %10940 = vmatprep.mubr.msk.f32.mxu0 %vm13195_vm1, %v15004_v5 }
 0x16e   :  { %12106 = vmatprep.subr.bf16.mxu0 %v15018_v14 }
 0x171   :  { %v12858_v7 = vpop.eup %12857 }
 0x172   :  { %v1201_v11 = vmul.f32 %v12858_v7, %v1200_v51 }
 0x174   :  { %v13534_v12 = vadd.f32 %v1202_v9, %v1201_v11 }
 0x176   :  { %v13537_v13 = vrot.slane %v13534_v12, 2 }
 0x178   :  { %10934 = vmatmul.mubr.msk.f32.vlgmr.msra.gmra.mrb[22].mxu1 %vm699_vm2, %v13537_v13  ;;  %10941 = vmatmul.mubr.msk.f32.vlgmr.msra.gmra.mrb[8].mxu0 %vm699_vm2, %v13537_v13 }
 0x179   :  { %12105 = vmatpush3.bf16.msra.mxu1 %v13434_v27  ;;  %10947 = vmatprep.mubr.msk.f32.mxu1 %vm13195_vm1, %v15004_v5 }
 0x17a   :  { %12109 = vmatprep.subr.bf16.mxu1 %v15018_v14  ;;  %12108 = vmatpush3.bf16.msra.mxu0 %v13390_v15 }
 0x17b   :  { %10954 = vmatprep.mubr.msk.f32.mxu0 %vm13195_vm1, %v15004_v5  ;;  %12112 = vmatprep.subr.bf16.mxu0 %v15018_v14 }
 0x17c   :  { %10948 = vmatmul.mubr.msk.f32.vlgmr.msra.gmra.mrb[24].mxu1 %vm699_vm2, %v13537_v13 }
 0x17d   :  { %12111 = vmatpush3.bf16.msra.mxu1 %v13407_v18  ;;  %10961 = vmatprep.mubr.msk.f32.mxu1 %vm13195_vm1, %v15004_v5 }
 0x17e   :  { %12115 = vmatprep.subr.bf16.mxu1 %v15018_v14 }
 0x23b   :  { %v1273_v17 = vpop.f32.mrb[4].mxu0  ;;  %v1343_v20 = vpop.f32.mrb[20].mxu1 }
 0x23c   :  { %v1274_v22 = vadd.f32 %v13471_v54, %v1273_v17  ;;  %v1344_v23 = vadd.f32 %v13477_v59, %v1343_v20  ;;  %v10914_v25 = vpop.f32.mrb[5].mxu0  ;;  %v10921_v26 = vpop.f32.mrb[21].mxu1 }
 0x23d   :  { %v1445_v25 = vrot.slane %v13514_v4, 6 }
 0x23e   :  { %v1418_v28 = vrot.slane %v1274_v22, 6  ;;  %v1428_v29 = vrot.slane %v1344_v23, 6 }
 0x23f   :  { %v1413_v31 = vpop.f32.mrb[6].mxu0 }
 0x240   :  { %v1420_v32 = vadd.f32 %v1418_v28, %v13473_v56  ;;  %v10928_v33 = vpop.f32.mrb[7].mxu0  ;;  %v1430_v36 = vadd.f32 %v1428_v29, %v13480_v62  ;;  %v1414_v2 = vadd.f32 %v13499_v35, %v1413_v31 }
 0x242   :  { %v10084_v39 = vmul.f32 -1.442695, %v1420_v32  ;;  %v10085_v38 = vmul.f32 -1.442695, %v1430_v36  ;;  %v1438_v51 = vrot.slane %v1414_v2, 6 }
 0x244   :  { %12859 = vpow2.f32 %v10084_v39 }
 0x245   :  { %12861 = vpow2.f32 %v10085_v38 }
 0x24b   :  { %v1519_v40 = vpop.f32.mrb[22].mxu1  ;;  %v1589_v45 = vpop.f32.mrb[8].mxu0 }
 0x24c   :  { %v1520_v46 = vadd.f32 %v13488_v8, %v1519_v40  ;;  %v10935_v47 = vpop.f32.mrb[23].mxu1  ;;  %v10942_v52 = vpop.f32.mrb[9].mxu0  ;;  %v1590_v60 = vadd.f32 %v13485_v6, %v1589_v45 }
 0x24e   :  { %v12860_v55 = vpop.eup %12859  ;;  %v1663_v57 = vadd.f32 %v1520_v46, %v13492_v16  ;;  %v1670_v43 = vadd.f32 %v1590_v60, %v13494_v19 }
 0x24f   :  { %v1424_v58 = vadd.f32 1.0, %v12860_v55  ;;  %v1659_v61 = vpop.f32.mrb[24].mxu1  ;;  %v12862_v1 = vpop.eup %12861 }
 0x250   :  { %v10089_v63 = vmul.f32 -1.442695, %v1663_v57  ;;  %v10949_v0 = vpop.f32.mrb[25].mxu1  ;;  %v10090_v3 = vmul.f32 -1.442695, %v1670_v43  ;;  %v1434_v50 = vadd.f32 1.0, %v12862_v1  ;;  %v1660_v28 = vadd.f32 %v13506_v48, %v1659_v61 }
 0x251   :  { %12863 = vrcp.f32 %v1424_v58 }
 0x252   :  { %12865 = vpow2.f32 %v10089_v63 }
 0x253   :  { %12867 = vpow2.f32 %v10090_v3 }
 0x254   :  { %12869 = vrcp.f32 %v1434_v50 }
 0x25b   :  { %v12864_v7 = vpop.eup %12863 }
 0x25c   :  { %v1440_v16 = vmul.f32 %v12864_v7, %v1438_v51  ;;  %v12866_v9 = vpop.eup %12865 }
 0x25d   :  { %v1667_v17 = vadd.f32 1.0, %v12866_v9  ;;  %v12868_v20 = vpop.eup %12867 }
 0x25e   :  { %v1441_v11 = vadd.f32 %v1440_v16, %v13502_v44  ;;  %v12870_v22 = vpop.eup %12869  ;;  %v1674_v23 = vadd.f32 1.0, %v12868_v20 }
 0x25f   :  { %v1443_v19 = vsub.f32 1.0, %v12870_v22  ;;  %v1447_v31 = vmul.f32 %v12870_v22, %v1445_v25 }
 0x260   :  { %12871 = vtanh.f32 %v1441_v11 }
 0x261   :  { %12873 = vrcp.f32 %v1667_v17 }
 0x262   :  { %12875 = vrcp.f32 %v1674_v23 }
 0x26a   :  { %v12872_v26 = vpop.eup %12871 }
 0x26b   :  { %v12874_v29 = vpop.eup %12873  ;;  %v1444_v32 = vmul.f32 %v12872_v26, %v1443_v19 }
 0x26c   :  { %v1677_v33 = vmul.f32 %v12874_v29, %v1660_v28 }
 0x26d   :  { %v13569_v39 = vadd.f32 %v1447_v31, %v1444_v32 }
 0x26e   :  { %v1678_v36 = vadd.f32 %v1677_v33, %v13511_v37  ;;  %v12876_v37 = vpop.eup %12875 }
 0x26f   :  { %v1686_v38 = vrot.slane %v13569_v39, 2  ;;  %v1680_v40 = vsub.f32 1.0, %v12876_v37  ;;  %v1683_v46 = vmul.f32 %v12876_v37, %v13537_v13 }
 0x270   :  { %12877 = vtanh.f32 %v1678_v36 }
 0x271   :  { %10955 = vmatmul.mubr.msk.f32.vlgmr.msra.gmra.mrb[10].mxu0 %vm699_vm2, %v1686_v38  ;;  %10962 = vmatmul.mubr.msk.f32.vlgmr.msra.gmra.mrb[26].mxu1 %vm699_vm2, %v1686_v38 }
 0x272   :  { %12114 = vmatpush3.bf16.msra.mxu0 %v13416_v21  ;;  %10968 = vmatprep.mubr.msk.f32.mxu0 %vm13195_vm1, %v15004_v5 }
 0x273   :  { %12118 = vmatprep.subr.bf16.mxu0 %v15018_v14  ;;  %12117 = vmatpush3.bf16.msra.mxu1 %v13425_v24 }
 0x274   :  { %10975 = vmatprep.mubr.msk.f32.mxu1 %vm13195_vm1, %v15004_v5  ;;  %12121 = vmatprep.subr.bf16.mxu1 %v15018_v14 }
 0x275   :  { %10969 = vmatmul.mubr.msk.f32.vlgmr.msra.gmra.mrb[12].mxu0 %vm699_vm2, %v1686_v38 }
 0x276   :  { %12120 = vmatpush3.bf16.msra.mxu0 %v13377_v10  ;;  %10982 = vmatprep.mubr.msk.f32.mxu0 %vm13195_vm1, %v15004_v5 }
 0x277   :  { %12124 = vmatprep.subr.bf16.mxu0 %v15018_v14 }
 0x27a   :  { %v12878_v45 = vpop.eup %12877 }
 0x27b   :  { %v1681_v47 = vmul.f32 %v12878_v45, %v1680_v40 }
 0x27d   :  { %v13589_v52 = vadd.f32 %v1683_v46, %v1681_v47 }
 0x27f   :  { %10976 = vmatmul.mubr.msk.f32.vlgmr.msra.gmra.mrb[28].mxu1 %vm699_vm2, %v13589_v52  ;;  %10983 = vmatmul.mubr.msk.f32.vlgmr.msra.gmra.mrb[14].mxu0 %vm699_vm2, %v13589_v52 }
 0x280   :  { %12123 = vmatpush3.bf16.msra.mxu1 %v13434_v27  ;;  %10989 = vmatprep.mubr.msk.f32.mxu1 %vm13195_vm1, %v15004_v5 }
 0x281   :  { %12127 = vmatprep.subr.bf16.mxu1 %v15018_v14  ;;  %12126 = vmatpush3.bf16.msra.mxu0 %v13390_v15 }
 0x282   :  { %10996 = vmatprep.mubr.msk.f32.mxu0 %vm13195_vm1, %v15004_v5  ;;  %12130 = vmatprep.subr.bf16.mxu0 %v15018_v14 }
 0x283   :  { %10990 = vmatmul.mubr.msk.f32.vlgmr.msra.gmra.mrb[30].mxu1 %vm699_vm2, %v13589_v52 }
 0x284   :  { %12129 = vmatpush3.bf16.msra.mxu1 %v13407_v18  ;;  %11003 = vmatprep.mubr.msk.f32.mxu1 %vm13195_vm1, %v15004_v5 }
 0x285   :  { %12133 = vmatprep.subr.bf16.mxu1 %v15018_v14 }
 0x344   :  { %v1755_v13 = vpop.f32.mrb[10].mxu0  ;;  %v1825_v55 = vpop.f32.mrb[26].mxu1 }
 0x345   :  { %v1756_v57 = vadd.f32 %v13471_v54, %v1755_v13  ;;  %v1826_v58 = vadd.f32 %v13477_v59, %v1825_v55  ;;  %v10956_v60 = vpop.f32.mrb[11].mxu0  ;;  %v10963_v61 = vpop.f32.mrb[27].mxu1 }
 0x347   :  { %v1900_v63 = vrot.slane %v1756_v57, 4  ;;  %v1910_v0 = vrot.slane %v1826_v58, 4 }
 0x348   :  { %v1895_v43 = vpop.f32.mrb[12].mxu0 }
 0x349   :  { %v1902_v1 = vadd.f32 %v1900_v63, %v13473_v56  ;;  %v10970_v2 = vpop.f32.mrb[13].mxu0  ;;  %v1912_v50 = vadd.f32 %v1910_v0, %v13480_v62  ;;  %v1896_v36 = vadd.f32 %v13499_v35, %v1895_v43  ;;  %v1927_v0 = vrot.slane %v13569_v39, 6 }
 0x34b   :  { %v10094_v3 = vmul.f32 -1.442695, %v1902_v1  ;;  %v10095_v51 = vmul.f32 -1.442695, %v1912_v50  ;;  %v1920_v40 = vrot.slane %v1896_v36, 4 }
 0x34d   :  { %12879 = vpow2.f32 %v10094_v3 }
 0x34e   :  { %12881 = vpow2.f32 %v10095_v51 }
 0x352   :  { %v2000_v7 = vpop.f32.mrb[28].mxu1  ;;  %v2070_v16 = vpop.f32.mrb[14].mxu0 }
 0x353   :  { %v2001_v9 = vadd.f32 %v13488_v8, %v2000_v7  ;;  %v10977_v11 = vpop.f32.mrb[29].mxu1  ;;  %v10984_v17 = vpop.f32.mrb[15].mxu0  ;;  %v2071_v20 = vadd.f32 %v13485_v6, %v2070_v16 }
 0x355   :  { %v2145_v22 = vrot.slane %v2001_v9, 2  ;;  %v2155_v29 = vrot.slane %v2071_v20, 2  ;;  %v2172_v20 = vrot.slane %v13589_v52, 2 }
 0x356   :  { %v2140_v23 = vpop.f32.mrb[30].mxu1 }
 0x357   :  { %v12880_v19 = vpop.eup %12879  ;;  %v2147_v25 = vadd.f32 %v2145_v22, %v13460_v49  ;;  %v10991_v26 = vpop.f32.mrb[31].mxu1  ;;  %v2157_v32 = vadd.f32 %v2155_v29, %v13455_v41  ;;  %v2141_v60 = vadd.f32 %v13506_v48, %v2140_v23 }
 0x358   :  { %v1906_v28 = vadd.f32 1.0, %v12880_v19  ;;  %v12882_v33 = vpop.eup %12881 }
 0x359   :  { %v10099_v31 = vmul.f32 -1.442695, %v2147_v25  ;;  %v10100_v38 = vmul.f32 -1.442695, %v2157_v32  ;;  %v1916_v37 = vadd.f32 1.0, %v12882_v33  ;;  %v2165_v1 = vrot.slane %v2141_v60, 2 }
 0x35a   :  { %12883 = vrcp.f32 %v1906_v28 }
 0x35b   :  { %12885 = vpow2.f32 %v10099_v31 }
 0x35c   :  { %12887 = vpow2.f32 %v10100_v38 }
 0x35d   :  { %12889 = vrcp.f32 %v1916_v37 }
 0x364   :  { %v12884_v45 = vpop.eup %12883 }
 0x365   :  { %v1922_v46 = vmul.f32 %v12884_v45, %v1920_v40  ;;  %v12886_v47 = vpop.eup %12885 }
 0x366   :  { %v2151_v55 = vadd.f32 1.0, %v12886_v47  ;;  %v12888_v57 = vpop.eup %12887 }
 0x367   :  { %v1923_v13 = vadd.f32 %v1922_v46, %v13502_v44  ;;  %v12890_v58 = vpop.eup %12889  ;;  %v2161_v61 = vadd.f32 1.0, %v12888_v57 }
 0x368   :  { %v1925_v63 = vsub.f32 1.0, %v12890_v58  ;;  %v1929_v3 = vmul.f32 %v12890_v58, %v1927_v0 }
 0x369   :  { %12891 = vtanh.f32 %v1923_v13 }
 0x36a   :  { %12893 = vrcp.f32 %v2151_v55 }
 0x36b   :  { %12895 = vrcp.f32 %v2161_v61 }
 0x373   :  { %v12892_v43 = vpop.eup %12891 }
 0x374   :  { %v12894_v2 = vpop.eup %12893  ;;  %v1926_v50 = vmul.f32 %v12892_v43, %v1925_v63 }
 0x375   :  { %v2167_v51 = vmul.f32 %v12894_v2, %v2165_v1  ;;  %v12896_v11 = vpop.eup %12895 }
 0x376   :  { %v13621_v7 = vadd.f32 %v1929_v3, %v1926_v50  ;;  %v2170_v17 = vsub.f32 1.0, %v12896_v11  ;;  %v2174_v23 = vmul.f32 %v12896_v11, %v2172_v20 }
 0x377   :  { %v2168_v16 = vadd.f32 %v2167_v51, %v13468_v53 }
 0x378   :  { %v2177_v9 = vrot.slane %v13621_v7, 4 }
 0x379   :  { %12897 = vtanh.f32 %v2168_v16 }
 0x37a   :  { %10997 = vmatmul.mubr.msk.f32.vlgmr.msra.gmra.mrb[16].mxu0 %vm699_vm2, %v2177_v9  ;;  %11004 = vmatmul.mubr.msk.f32.vlgmr.msra.gmra.mrb[32].mxu1 %vm699_vm2, %v2177_v9 }
 0x37b   :  { %12132 = vmatpush3.bf16.msra.mxu0 %v13416_v21  ;;  %11010 = vmatprep.mubr.msk.f32.mxu0 %vm13195_vm1, %v15004_v5 }
 0x37c   :  { %12136 = vmatprep.subr.bf16.mxu0 %v15018_v14  ;;  %12135 = vmatpush3.bf16.msra.mxu1 %v13425_v24 }
 0x37d   :  { %11017 = vmatprep.mubr.msk.f32.mxu1 %vm13195_vm1, %v15004_v5  ;;  %12139 = vmatprep.subr.bf16.mxu1 %v15018_v14 }
 0x37e   :  { %11011 = vmatmul.mubr.msk.f32.vlgmr.msra.gmra.mrb[18].mxu0 %vm699_vm2, %v2177_v9 }
 0x37f   :  { %12138 = vmatpush3.bf16.msra.mxu0 %v13377_v10  ;;  %11024 = vmatprep.mubr.msk.f32.mxu0 %vm13195_vm1, %v15004_v5 }
 0x380   :  { %12142 = vmatprep.subr.bf16.mxu0 %v15018_v14 }
 0x383   :  { %v12898_v22 = vpop.eup %12897 }
 0x384   :  { %v2171_v19 = vmul.f32 %v12898_v22, %v2170_v17 }
 0x386   :  { %v13641_v25 = vadd.f32 %v2174_v23, %v2171_v19 }
 0x388   :  { %v2423_v26 = vrot.slane %v13641_v25, 6 }
 0x38a   :  { %11018 = vmatmul.mubr.msk.f32.vlgmr.msra.gmra.mrb[34].mxu1 %vm699_vm2, %v2423_v26  ;;  %11025 = vmatmul.mubr.msk.f32.vlgmr.msra.gmra.mrb[20].mxu0 %vm699_vm2, %v2423_v26 }
 0x38b   :  { %12141 = vmatpush3.bf16.msra.mxu1 %v13434_v27  ;;  %11031 = vmatprep.mubr.msk.f32.mxu1 %vm13195_vm1, %v15004_v5 }
 0x38c   :  { %12145 = vmatprep.subr.bf16.mxu1 %v15018_v14  ;;  %12144 = vmatpush3.bf16.msra.mxu0 %v13390_v15 }
 0x38d   :  { %11038 = vmatprep.mubr.msk.f32.mxu0 %vm13195_vm1, %v15004_v5  ;;  %12148 = vmatprep.subr.bf16.mxu0 %v15018_v14 }
 0x38e   :  { %11032 = vmatmul.mubr.msk.f32.vlgmr.msra.gmra.mrb[36].mxu1 %vm699_vm2, %v2423_v26 }
 0x38f   :  { %12147 = vmatpush3.bf16.msra.mxu1 %v13407_v18  ;;  %11045 = vmatprep.mubr.msk.f32.mxu1 %vm13195_vm1, %v15004_v5 }
 0x390   :  { %12151 = vmatprep.subr.bf16.mxu1 %v15018_v14 }
 0x44d   :  { %v2246_v28 = vpop.f32.mrb[16].mxu0  ;;  %v2316_v29 = vpop.f32.mrb[32].mxu1 }
 0x44e   :  { %v2247_v31 = vadd.f32 %v13471_v54, %v2246_v28  ;;  %v2317_v32 = vadd.f32 %v13477_v59, %v2316_v29  ;;  %v10998_v33 = vpop.f32.mrb[17].mxu0  ;;  %v11005_v36 = vpop.f32.mrb[33].mxu1 }
 0x450   :  { %v2391_v38 = vrot.slane %v2247_v31, 2  ;;  %v2401_v37 = vrot.slane %v2317_v32, 2 }
 0x451   :  { %v2386_v40 = vpop.f32.mrb[18].mxu0 }
 0x452   :  { %v2393_v45 = vadd.f32 %v2391_v38, %v13473_v56  ;;  %v11012_v46 = vpop.f32.mrb[19].mxu0  ;;  %v2403_v13 = vadd.f32 %v2401_v37, %v13480_v62  ;;  %v2387_v11 = vadd.f32 %v13499_v35, %v2386_v40  ;;  %v2418_v37 = vrot.slane %v13621_v7, 6 }
 0x454   :  { %v10104_v47 = vmul.f32 -1.442695, %v2393_v45  ;;  %v10105_v55 = vmul.f32 -1.442695, %v2403_v13  ;;  %v2411_v22 = vrot.slane %v2387_v11, 2 }
 0x456   :  { %12899 = vpow2.f32 %v10104_v47 }
 0x457   :  { %12901 = vpow2.f32 %v10105_v55 }
 0x45d   :  { %v2492_v57 = vpop.f32.mrb[34].mxu1  ;;  %v2562_v58 = vpop.f32.mrb[20].mxu0 }
 0x45e   :  { %v2493_v60 = vadd.f32 %v13488_v8, %v2492_v57  ;;  %v2563_v61 = vadd.f32 %v13485_v6, %v2562_v58  ;;  %v11019_v63 = vpop.f32.mrb[35].mxu1  ;;  %v11026_v0 = vpop.f32.mrb[21].mxu0 }
 0x45f   :  { %v2664_v63 = vrot.slane %v13641_v25, 2 }
 0x460   :  { %v12900_v43 = vpop.eup %12899  ;;  %v2637_v1 = vrot.slane %v2493_v60, 4  ;;  %v2647_v3 = vrot.slane %v2563_v61, 4 }
 0x461   :  { %v2397_v2 = vadd.f32 1.0, %v12900_v43  ;;  %v2632_v56 = vpop.f32.mrb[36].mxu1  ;;  %v12902_v9 = vpop.eup %12901 }
 0x462   :  { %v2639_v50 = vadd.f32 %v2637_v1, %v13460_v49  ;;  %v11033_v51 = vpop.f32.mrb[37].mxu1  ;;  %v2649_v16 = vadd.f32 %v2647_v3, %v13455_v41  ;;  %v2407_v20 = vadd.f32 1.0, %v12902_v9  ;;  %v2633_v33 = vadd.f32 %v13506_v48, %v2632_v56 }
 0x463   :  { %12903 = vrcp.f32 %v2397_v2 }
 0x464   :  { %v10109_v62 = vmul.f32 -1.442695, %v2639_v50  ;;  %v10110_v17 = vmul.f32 -1.442695, %v2649_v16  ;;  %v2657_v45 = vrot.slane %v2633_v33, 4 }
 0x466   :  { %12905 = vpow2.f32 %v10109_v62 }
 0x467   :  { %12907 = vpow2.f32 %v10110_v17 }
 0x468   :  { %12909 = vrcp.f32 %v2407_v20 }
 0x46d   :  { %v12904_v23 = vpop.eup %12903 }
 0x46e   :  { %v2413_v19 = vmul.f32 %v12904_v23, %v2411_v22 }
 0x470   :  { %v12906_v26 = vpop.eup %12905  ;;  %v2414_v28 = vadd.f32 %v2413_v19, %v13502_v44 }
 0x471   :  { %v2643_v29 = vadd.f32 1.0, %v12906_v26  ;;  %v12908_v31 = vpop.eup %12907 }
 0x472   :  { %12911 = vtanh.f32 %v2414_v28  ;;  %v12910_v32 = vpop.eup %12909  ;;  %v2653_v36 = vadd.f32 1.0, %v12908_v31 }
 0x473   :  { %12913 = vrcp.f32 %v2643_v29  ;;  %v2416_v38 = vsub.f32 1.0, %v12910_v32  ;;  %v2420_v47 = vmul.f32 %v12910_v32, %v2418_v37 }
 0x474   :  { %12915 = vrcp.f32 %v2653_v36 }
 0x47c   :  { %v12912_v40 = vpop.eup %12911 }
 0x47d   :  { %v12914_v46 = vpop.eup %12913  ;;  %v2417_v13 = vmul.f32 %v12912_v40, %v2416_v38 }
 0x47e   :  { %v2659_v55 = vmul.f32 %v12914_v46, %v2657_v45  ;;  %v12916_v60 = vpop.eup %12915 }
 0x47f   :  { %v13671_v57 = vadd.f32 %v2420_v47, %v2417_v13  ;;  %v2662_v61 = vsub.f32 1.0, %v12916_v60  ;;  %v2666_v43 = vmul.f32 %v12916_v60, %v2664_v63 }
 0x480   :  { %v2660_v44 = vadd.f32 %v2659_v55, %v13468_v53 }
 0x481   :  { %v13675_v58 = vrot.slane %v13671_v57, 6 }
 0x482   :  { %12917 = vtanh.f32 %v2660_v44 }
 0x483   :  { %11039 = vmatmul.mubr.msk.f32.vlgmr.msra.gmra.mrb[22].mxu0 %vm699_vm2, %v13675_v58  ;;  %11046 = vmatmul.mubr.msk.f32.vlgmr.msra.gmra.mrb[38].mxu1 %vm699_vm2, %v13675_v58 }
 0x484   :  { %12150 = vmatpush3.bf16.msra.mxu0 %v13416_v21  ;;  %11052 = vmatprep.mubr.msk.f32.mxu0 %vm13195_vm1, %v15004_v5 }
 0x485   :  { %12154 = vmatprep.subr.bf16.mxu0 %v15018_v14  ;;  %12153 = vmatpush3.bf16.msra.mxu1 %v13425_v24 }
 0x486   :  { %11059 = vmatprep.mubr.msk.f32.mxu1 %vm13195_vm1, %v15004_v5  ;;  %12157 = vmatprep.subr.bf16.mxu1 %v15018_v14 }
 0x487   :  { %11053 = vmatmul.mubr.msk.f32.vlgmr.msra.gmra.mrb[24].mxu0 %vm699_vm2, %v13675_v58 }
 0x488   :  { %12156 = vmatpush3.bf16.msra.mxu0 %v13377_v10  ;;  %11066 = vmatprep.mubr.msk.f32.mxu0 %vm13195_vm1, %v15004_v5 }
 0x489   :  { %12160 = vmatprep.subr.bf16.mxu0 %v15018_v14 }
 0x48c   :  { %v12918_v0 = vpop.eup %12917 }
 0x48d   :  { %v2663_v1 = vmul.f32 %v12918_v0, %v2662_v61 }
 0x48f   :  { %v13696_v2 = vadd.f32 %v2666_v43, %v2663_v1 }
 0x491   :  { %v2905_v3 = vrot.slane %v13696_v2, 4 }
 0x493   :  { %11060 = vmatmul.mubr.msk.f32.vlgmr.msra.gmra.mrb[40].mxu1 %vm699_vm2, %v2905_v3  ;;  %11067 = vmatmul.mubr.msk.f32.vlgmr.msra.gmra.mrb[26].mxu0 %vm699_vm2, %v2905_v3 }
 0x494   :  { %12159 = vmatpush3.bf16.msra.mxu1 %v13434_v27  ;;  %11073 = vmatprep.mubr.msk.f32.mxu1 %vm13195_vm1, %v15004_v5 }
 0x495   :  { %12163 = vmatprep.subr.bf16.mxu1 %v15018_v14  ;;  %12162 = vmatpush3.bf16.msra.mxu0 %v13390_v15 }
 0x496   :  { %11080 = vmatprep.mubr.msk.f32.mxu0 %vm13195_vm1, %v15004_v5  ;;  %12166 = vmatprep.subr.bf16.mxu0 %v15018_v14 }
 0x497   :  { %11074 = vmatmul.mubr.msk.f32.vlgmr.msra.gmra.mrb[42].mxu1 %vm699_vm2, %v2905_v3 }
 0x498   :  { %12165 = vmatpush3.bf16.msra.mxu1 %v13407_v18  ;;  %11087 = vmatprep.mubr.msk.f32.mxu1 %vm13195_vm1, %v15004_v5 }
 0x499   :  { %12169 = vmatprep.subr.bf16.mxu1 %v15018_v14 }
 0x556   :  { %v2738_v56 = vpop.f32.mrb[22].mxu0  ;;  %v2808_v50 = vpop.f32.mrb[38].mxu1 }
 0x557   :  { %v2739_v51 = vadd.f32 %v13471_v54, %v2738_v56  ;;  %v11040_v62 = vpop.f32.mrb[23].mxu0  ;;  %v11047_v15 = vpop.f32.mrb[39].mxu1  ;;  %v2809_v16 = vadd.f32 %v13477_v59, %v2808_v50 }
 0x559   :  { %v2882_v9 = vadd.f32 %v2739_v51, %v13448_v30  ;;  %v2889_v18 = vadd.f32 %v2809_v16, %v13451_v34 }
 0x55a   :  { %v2878_v11 = vpop.f32.mrb[24].mxu0 }
 0x55b   :  { %v10114_v17 = vmul.f32 -1.442695, %v2882_v9  ;;  %v11054_v20 = vpop.f32.mrb[25].mxu0  ;;  %v10115_v22 = vmul.f32 -1.442695, %v2889_v18  ;;  %v2879_v60 = vadd.f32 %v13499_v35, %v2878_v11 }
 0x55d   :  { %12919 = vpow2.f32 %v10114_v17 }
 0x55e   :  { %12921 = vpow2.f32 %v10115_v22 }
 0x566   :  { %v2974_v23 = vpop.f32.mrb[40].mxu1  ;;  %v3044_v19 = vpop.f32.mrb[26].mxu0 }
 0x567   :  { %v12920_v26 = vpop.eup %12919  ;;  %v2975_v28 = vadd.f32 %v13488_v8, %v2974_v23  ;;  %v3045_v29 = vadd.f32 %v13485_v6, %v3044_v19  ;;  %v11061_v31 = vpop.f32.mrb[41].mxu1 }
 0x568   :  { %v11068_v32 = vpop.f32.mrb[27].mxu0  ;;  %v2886_v33 = vadd.f32 1.0, %v12920_v26  ;;  %v12922_v47 = vpop.eup %12921  ;;  %v3632_v31 = vld [vmem:[%s13263_s24 + $0x8] sm:$0xff] }
 0x569   :  { %v3119_v36 = vrot.slane %v2975_v28, 6  ;;  %v3129_v38 = vrot.slane %v3045_v29, 6  ;;  %v2893_v55 = vadd.f32 1.0, %v12922_v47  ;;  %v3631_v29 = vld [vmem:[%s13263_s24] sm:$0xff]  ;;  %s15104_s24 = sld [smem:[#allocation19_spill]] }
 0x56a   :  { %12923 = vrcp.f32 %v2886_v33  ;;  %v3114_v37 = vpop.f32.mrb[42].mxu1  ;;  %v12182_v32 = vpack.c.bf16 %v3632_v31, %v3631_v29  ;;  %v3634_v33 = vld [vmem:[%s13268_s30 + $0x8] sm:$0xff] }
 0x56b   :  { %v3121_v40 = vadd.f32 %v3119_v36, %v13460_v49  ;;  %v11075_v45 = vpop.f32.mrb[43].mxu1  ;;  %v3131_v13 = vadd.f32 %v3129_v38, %v13455_v41  ;;  %v3115_v50 = vadd.f32 %v13506_v48, %v3114_v37  ;;  %v3804_v38 = vld [vmem:[%s13288_s27] sm:$0xff]  ;;  %v3805_v37 = vld [vmem:[%s13288_s27 + $0x8] sm:$0xff]  ;;  %s15116_s27 = sld [smem:[#allocation22_spill]] }
 0x56d   :  { %v10119_v46 = vmul.f32 -1.442695, %v3121_v40  ;;  %v10120_v44 = vmul.f32 -1.442695, %v3131_v13  ;;  %v3139_v11 = vrot.slane %v3115_v50, 6  ;;  %v13774_v40 = vpack.c.bf16 %v3805_v37, %v3804_v38 }
 0x56f   :  { %12925 = vpow2.f32 %v10119_v46 }
 0x570   :  { %12927 = vrcp.f32 %v2893_v55 }
 0x571   :  { %12929 = vpow2.f32 %v10120_v44 }
 0x574   :  { %v12924_v61 = vpop.eup %12923 }
 0x575   :  { %v2896_v63 = vmul.f32 %v12924_v61, %v2879_v60 }
 0x577   :  { %v2897_v0 = vadd.f32 %v2896_v63, %v13457_v42 }
 0x579   :  { %v12926_v43 = vpop.eup %12925  ;;  %12931 = vtanh.f32 %v2897_v0 }
 0x57a   :  { %v3125_v1 = vadd.f32 1.0, %v12926_v43  ;;  %v12928_v3 = vpop.eup %12927 }
 0x57b   :  { %v12930_v56 = vpop.eup %12929  ;;  %v2899_v51 = vsub.f32 1.0, %v12928_v3  ;;  %v2902_v16 = vmul.f32 %v12928_v3, %v13675_v58 }
 0x57c   :  { %12933 = vrcp.f32 %v3125_v1  ;;  %v3135_v15 = vadd.f32 1.0, %v12930_v56 }
 0x57e   :  { %12935 = vrcp.f32 %v3135_v15 }
 0x583   :  { %v12932_v62 = vpop.eup %12931 }
 0x584   :  { %v2900_v9 = vmul.f32 %v12932_v62, %v2899_v51 }
 0x586   :  { %v12934_v17 = vpop.eup %12933  ;;  %v13726_v20 = vadd.f32 %v2902_v16, %v2900_v9 }
 0x587   :  { %v3141_v18 = vmul.f32 %v12934_v17, %v3139_v11 }
 0x588   :  { %11081 = vmatmul.mubr.msk.f32.vlgmr.msra.gmra.mrb[28].mxu0 %vm699_vm2, %v13726_v20  ;;  %11088 = vmatmul.mubr.msk.f32.vlgmr.msra.gmra.mrb[44].mxu1 %vm699_vm2, %v13726_v20 }
 0x589   :  { %v3142_v22 = vadd.f32 %v3141_v18, %v13468_v53  ;;  %12168 = vmatpush3.bf16.msra.mxu0 %v13416_v21  ;;  %11094 = vmatprep.mubr.msk.f32.mxu0 %vm13195_vm1, %v15004_v5  ;;  %v12936_v21 = vpop.eup %12935 }
 0x58a   :  { %12172 = vmatprep.subr.bf16.mxu0 %v15018_v14  ;;  %12171 = vmatpush3.bf16.msra.mxu1 %v13425_v24  ;;  %v3144_v58 = vsub.f32 1.0, %v12936_v21  ;;  %v3146_v24 = vrot.slane %v13696_v2, 2 }
 0x58b   :  { %12937 = vtanh.f32 %v3142_v22  ;;  %11101 = vmatprep.mubr.msk.f32.mxu1 %vm13195_vm1, %v15004_v5  ;;  %12175 = vmatprep.subr.bf16.mxu1 %v15018_v14 }
 0x58c   :  { %11095 = vmatmul.mubr.msk.f32.vlgmr.msra.gmra.mrb[30].mxu0 %vm699_vm2, %v13726_v20  ;;  %v3148_v19 = vmul.f32 %v12936_v21, %v3146_v24 }
 0x58d   :  { %12174 = vmatpush3.bf16.msra.mxu0 %v13377_v10  ;;  %11108 = vmatprep.mubr.msk.f32.mxu0 %vm13195_vm1, %v15004_v5 }
 0x58e   :  { %12178 = vmatprep.subr.bf16.mxu0 %v15018_v14 }
 0x595   :  { %v12938_v23 = vpop.eup %12937 }
 0x596   :  { %v3145_v26 = vmul.f32 %v12938_v23, %v3144_v58 }
 0x598   :  { %v13748_v28 = vadd.f32 %v3148_v19, %v3145_v26 }
 0x59a   :  { %v13751_v10 = vrot.slane %v13748_v28, 2 }
 0x59c   :  { %11102 = vmatmul.mubr.msk.f32.vlgmr.msra.gmra.mrb[46].mxu1 %vm699_vm2, %v13751_v10  ;;  %11109 = vmatmul.mubr.msk.f32.vlgmr.msra.gmra.mrb[32].mxu0 %vm699_vm2, %v13751_v10 }
 0x59d   :  { %12177 = vmatpush3.bf16.msra.mxu1 %v13434_v27  ;;  %11115 = vmatprep.mubr.msk.f32.mxu1 %vm13195_vm1, %v15004_v5  ;;  %v3633_v27 = vld [vmem:[%s13268_s30] sm:$0xff]  ;;  %s15109_s30 = sld [smem:[#allocation23_spill]] }
 0x59e   :  { %12181 = vmatprep.subr.bf16.mxu1 %v15018_v14  ;;  %11122 = vmatprep.mubr.msk.f32.mxu0 %vm13195_vm1, %v15004_v5  ;;  %v12179_v36 = vpack.c.bf16 %v3634_v33, %v3633_v27 }
 0x5a0   :  { %11116 = vmatmul.mubr.msk.f32.vlgmr.msra.gmra.mrb[48].mxu1 %vm699_vm2, %v13751_v10  ;;  %12180 = vmatpush3.bf16.msra.mxu0 %v12179_v36 }
 0x5a1   :  { %11129 = vmatprep.mubr.msk.f32.mxu1 %vm13195_vm1, %v15004_v5  ;;  %12183 = vmatpush3.bf16.msra.mxu1 %v12182_v32 }
 0x5a2   :  { %12192 = vmatprep.subr.bf16.mxu1 %v15018_v14  ;;  %12185 = vmatprep.subr.bf16.mxu0 %v13774_v40 }
 0x65b   :  { %v3219_v45 = vpop.f32.mrb[28].mxu0  ;;  %v3289_v46 = vpop.f32.mrb[44].mxu1 }
 0x65c   :  { %v3220_v47 = vadd.f32 %v13471_v54, %v3219_v45  ;;  %v3290_v13 = vadd.f32 %v13477_v59, %v3289_v46  ;;  %v11082_v55 = vpop.f32.mrb[29].mxu0  ;;  %v11089_v44 = vpop.f32.mrb[45].mxu1 }
 0x65e   :  { %v3364_v60 = vrot.slane %v3220_v47, 6  ;;  %v3374_v61 = vrot.slane %v3290_v13, 6 }
 0x65f   :  { %v3359_v63 = vpop.f32.mrb[30].mxu0 }
 0x660   :  { %v3366_v0 = vadd.f32 %v3364_v60, %v13448_v30  ;;  %v11096_v43 = vpop.f32.mrb[31].mxu0  ;;  %v3376_v3 = vadd.f32 %v3374_v61, %v13451_v34  ;;  %v3360_v21 = vadd.f32 %v13499_v35, %v3359_v63  ;;  %v3802_v60 = vld [vmem:[%s15089_s9] sm:$0xff] }
 0x662   :  { %v10124_v1 = vmul.f32 -1.442695, %v3366_v0  ;;  %v10125_v56 = vmul.f32 -1.442695, %v3376_v3  ;;  %v3384_v23 = vrot.slane %v3360_v21, 6  ;;  %v3792_v3 = vsel %vm3791_vm3, %v13514_v4, %v13569_v39 }
 0x664   :  { %12939 = vpow2.f32 %v10124_v1 }
 0x665   :  { %12941 = vpow2.f32 %v10125_v56  ;;  %v3801_v56 = vsel %vm3791_vm3, %v13589_v52, %v13534_v12 }
 0x66e   :  { %v12940_v50 = vpop.eup %12939 }
 0x66f   :  { %v3370_v51 = vadd.f32 1.0, %v12940_v50  ;;  %v3465_v62 = vpop.f32.mrb[46].mxu1  ;;  %v3535_v54 = vpop.f32.mrb[32].mxu0 }
 0x670   :  { %v3466_v59 = vadd.f32 %v13488_v8, %v3465_v62  ;;  %v11103_v15 = vpop.f32.mrb[47].mxu1  ;;  %v11110_v16 = vpop.f32.mrb[33].mxu0  ;;  %v3536_v9 = vadd.f32 %v13485_v6, %v3535_v54  ;;  %v3977_v62 = vld [vmem:[%s15090_s13] sm:$0xff]  ;;  %v3978_v54 = vld [vmem:[%s15090_s13 + $0x8] sm:$0xff] }
 0x671   :  { %12943 = vrcp.f32 %v3370_v51  ;;  %v12942_v34 = vpop.eup %12941 }
 0x672   :  { %v3609_v30 = vadd.f32 %v3466_v59, %v13460_v49  ;;  %v3616_v22 = vadd.f32 %v3536_v9, %v13455_v41  ;;  %v3380_v58 = vadd.f32 1.0, %v12942_v34  ;;  %v3391_v41 = vrot.slane %v13726_v20, 6 }
 0x673   :  { %v3605_v11 = vpop.f32.mrb[48].mxu1  ;;  %v13829_v59 = vpack.c.bf16 %v3978_v54, %v3977_v62 }
 0x674   :  { %v10129_v17 = vmul.f32 -1.442695, %v3609_v30  ;;  %v11117_v18 = vpop.f32.mrb[49].mxu1  ;;  %v10130_v24 = vmul.f32 -1.442695, %v3616_v22  ;;  %v3606_v38 = vadd.f32 %v13506_v48, %v3605_v11  ;;  %v3803_v48 = vld [vmem:[%s15089_s9 + $0x8] sm:$0xff] }
 0x675   :  { %v12188_v43 = vpack.c.bf16 %v3803_v48, %v3802_v60  ;;  %15092 = vst [vmem:[#allocation24_spill] sm:$0xff] %v13829_v59  ;;  %v10133_v30 = vld [vmem:[%s15091_s17] ss:$0 sm:$0xff]  ;;  %s13197_s9 = smov [#allocation7]  }
 0x676   :  { %12945 = vpow2.f32 %v10129_v17  ;;  %s9990_s13 = sshll.u32 %s13197_s9, 4  ;;  %s9991_s13 = int_to_ptr.vmem [resolvable:$true] %s9990_s13 }
 0x677   :  { %12947 = vrcp.f32 %v3380_v58  ;;  %v10138_v58 = vld [vmem:[%s15093_s21] ss:$0 sm:$0xff]  ;;  %s13133_s17 = scalar_lea.vmem %s9991_s13, 160  ;;  %p13138_p11 = scmp.lt.s32.totalorder %s9991_s13, %s9991_s13 }
 0x678   :  { %12949 = vpow2.f32 %v10130_v24  ;;  %p13134_p10 = scmp.ne.s32.totalorder %s9991_s13, %s13133_s17  ;;  %p13139_p12 = scmp.lt.s32.totalorder %s13133_s17, %s13133_s17 }
 0x67a   :  { %p13140_p13 = por %p13139_p12, %p13138_p11 }
 0x67b   :  { %v12944_v8 = vpop.eup %12943 }
 0x67c   :  { %v3386_v19 = vmul.f32 %v12944_v8, %v3384_v23  ;;  %p13141_p0 = pnand %p13140_p13, %p13134_p10 }
 0x67e   :  { %v3387_v6 = vadd.f32 %v3386_v19, %v13457_v42 }
 0x680   :  { %v12946_v26 = vpop.eup %12945  ;;  %12951 = vtanh.f32 %v3387_v6 }
 0x681   :  { %v3613_v49 = vadd.f32 1.0, %v12946_v26  ;;  %v12948_v29 = vpop.eup %12947 }
 0x682   :  { %v12950_v31 = vpop.eup %12949  ;;  %v3389_v32 = vsub.f32 1.0, %v12948_v29  ;;  %v3393_v33 = vmul.f32 %v12948_v29, %v3391_v41 }
 0x683   :  { %12953 = vrcp.f32 %v3613_v49  ;;  %v3620_v27 = vadd.f32 1.0, %v12950_v31 }
 0x685   :  { %12955 = vrcp.f32 %v3620_v27 }
 0x68a   :  { %v12952_v35 = vpop.eup %12951 }
 0x68b   :  { %v3390_v36 = vmul.f32 %v12952_v35, %v3389_v32 }
 0x68d   :  { %v12954_v37 = vpop.eup %12953  ;;  %v13789_v45 = vadd.f32 %v3393_v33, %v3390_v36 }
 0x68e   :  { %v3623_v42 = vmul.f32 %v12954_v37, %v3606_v38  ;;  %v13852_v38 = vld [vmem:[%s15095_s25] ss:$0 sm:$0xff] }
 0x68f   :  { %v3709_v46 = vrot.slane %v13789_v45, 2  ;;  %v12956_v13 = vpop.eup %12955  ;;  %v3797_v51 = vsel %vm3791_vm3, %v13726_v20, %v13789_v45 }
 0x690   :  { %v3624_v47 = vadd.f32 %v3623_v42, %v13468_v53  ;;  %v3626_v55 = vsub.f32 1.0, %v12956_v13  ;;  %v3629_v61 = vmul.f32 %v12956_v13, %v13751_v10 }
 0x691   :  { %11130 = vmatmul.mubr.msk.f32.vlgmr.msra.gmra.mrb[50].mxu1 %vm699_vm2, %v3709_v46 }
 0x692   :  { %12957 = vtanh.f32 %v3624_v47  ;;  %11150 = vmatprep.mubr.msk.f32.mxu1 %vm13195_vm1, %v15004_v5  ;;  %12194 = vmatpush3.bf16.msra.mxu1 %v13829_v59 }
 0x693   :  { %12195 = vmatprep.subr.bf16.mxu1 %v15018_v14 }
 0x69c   :  { %v12958_v44 = vpop.eup %12957 }
 0x69d   :  { %v3627_v63 = vmul.f32 %v12958_v44, %v3626_v55 }
 0x69f   :  { %v13799_v0 = vadd.f32 %v3629_v61, %v3627_v63 }
 0x6a1   :  { %11123 = vmatmul.mubr.msk.f32.vlgmr.msra.gmra.mrb[34].mxu0 %vm699_vm2, %v13799_v0  ;;  %v3798_v53 = vsel %vm3791_vm3, %v13799_v0, %v13748_v28 }
 0x6a2   :  { %12187 = vmatpush3.bf16.msra.mxu0 %v13774_v40  ;;  %v3799_v1 = vsel %vm3793_vm4, %v3798_v53, %v13696_v2  ;;  %v3794_v40 = vsel %vm3793_vm4, %v3792_v3, %v13621_v7 }
 0x6a3   :  { %v3800_v10 = vsel %vm3795_vm5, %v3799_v1, %v13641_v25  ;;  %12189 = vmatprep.subr.bf16.mxu0 %v12188_v43  ;;  %v3796_v50 = vsel %vm3795_vm5, %v3794_v40, %v13671_v57 }
 0x6a4   :  { %11136 = vmatprep.mubr.msk.f32.mxu0 %vm699_vm2, %v3800_v10 }
 0x6a5   :  { %11137 = vmatmul.mubr.msk.f32.vlgmr.msra.gmra.mrb[36].mxu0 %vm699_vm2, %v3801_v56  ;;  %v13196_v56 = vmov 0  }
 0x6a6   :  { %11143 = vmatprep.mubr.msk.f32.mxu0 %vm699_vm2, %v3796_v50  ;;  %12191 = vmatpush3.bf16.msra.mxu0 %v12188_v43 }
 0x6a7   :  { %12228 = vmatprep.subr.bf16.mxu0 %v15018_v14  ;;  %12838 = vset.pattern.permute.xlu1 %v13196_v56 }
 0x6a8   :  { %12837 = vset.pattern.permute.xlu0 %v13196_v56 }
 0x6ad   :  { %11144 = vmatmul.mubr.msk.f32.vlgmr.msra.gmra.mrb[36].mxu0 %vm699_vm2, %v3797_v51 }
 0x6ae   :  { %11213 = vmatprep.mubr.msk.f32.mxu0 %vm13195_vm1, %v15004_v5 }
 0x764   :  { %v3778_v15 = vpop.f32.mrb[50].mxu1 }
 0x765   :  { %v11131_v16 = vpop.f32.mrb[51].mxu1 }
 0x774   :  { %v3704_v9 = vpop.f32.mrb[34].mxu0 }
 0x775   :  { %v3779_v11 = vadd.f32 %v3778_v15, %v3704_v9  ;;  %v11124_v17 = vpop.f32.mrb[35].mxu0 }
 0x777   :  { %v3789_v18 = vadd.f32 %v10133_v30, %v3779_v11 }
 0x779   :  { %12959 = vtanh.f32 %v3789_v18 }
 0x780   :  { %v11145_v34 = vpop.f32.mrb[36].mxu0 }
 0x781   :  { %v3959_v22 = vpop.f32.mrb[37].mxu0  ;;  %v13844_v29 = vadd.f32 %v11145_v34, %v10138_v58 }
 0x782   :  { %v13841_v24 = vadd.f32 %v10138_v58, %v3959_v22 }
 0x783   :  { %v13834_v21 = vpop.eup %12959  ;;  %15096 = vst [vmem:[#allocation26_spill] sm:$0xff] %v13844_v29 }
 0x784   :  { %11151 = vmatmul.mubr.msk.f32.vlgmr.msra.gmra.mrb[52].mxu1 %vm699_vm2, %v13834_v21  ;;  %15094 = vst [vmem:[#allocation25_spill] sm:$0xff] %v13841_v24 }
 0x785   :  { %11157 = vmatprep.mubr.msk.f32.mxu1 %vm13195_vm1, %v15004_v5 }
 0x857   :  { %v4173_v23 = vpop.f32.mrb[52].mxu1 }
 0x858   :  { %v4177_v8 = vadd.f32 %v4173_v23, %v13841_v24  ;;  %v4191_v19 = vrot.slane %v4173_v23, 6  ;;  %v4200_v6 = vrot.slane %v4173_v23, 4  ;;  %v4209_v26 = vrot.slane %v4173_v23, 2  ;;  %v11152_v49 = vpop.f32.mrb[53].mxu1 }
 0x859   :  { %v4218_v35 = vadd.f32 %v4173_v23, %v13844_v29 }
 0x85a   :  { %v4193_v31 = vadd.f32 %v4191_v19, %v13841_v24  ;;  %v4202_v32 = vadd.f32 %v4200_v6, %v13841_v24  ;;  %v4211_v41 = vadd.f32 %v4209_v26, %v13841_v24  ;;  %12961 = vtanh.f32 %v4177_v8 }
 0x85b   :  { %v4224_v27 = vadd.f32 %v4191_v19, %v13844_v29 }
 0x85c   :  { %12963 = vtanh.f32 %v4193_v31 }
 0x85d   :  { %12965 = vtanh.f32 %v4202_v32 }
 0x85e   :  { %12967 = vtanh.f32 %v4211_v41 }
 0x85f   :  { %12969 = vtanh.f32 %v4218_v35 }
 0x860   :  { %12971 = vtanh.f32 %v4224_v27 }
 0x864   :  { %v12962_v33 = vpop.eup %12961 }
 0x865   :  { %v4185_v55 = vmul.f32 %v12962_v33, %v13852_v38 }
 0x866   :  { %v12964_v36 = vpop.eup %12963 }
 0x867   :  { %v12966_v37 = vpop.eup %12965  ;;  %v4195_v42 = vmul.f32 %v12964_v36, %v13852_v38  ;;  %v4187_v63 = vsel %vm4186_vm8, %v4185_v55, 0.0 }
 0x868   :  { %v12968_v46 = vpop.eup %12967  ;;  %v4204_v47 = vmul.f32 %v12966_v37, %v13852_v38 }
 0x869   :  { %v4197_v13 = vsel %vm4196_vm6, %v4195_v42, 0.0  ;;  %v12970_v44 = vpop.eup %12969  ;;  %v4213_v48 = vmul.f32 %v12968_v46, %v13852_v38 }
 0x86a   :  { %v4206_v60 = vsel %vm4205_vm7, %v4204_v47, 0.0  ;;  %4198 = vadd.xlane.f32.xlu0 %v4197_v13  ;;  %v12972_v61 = vpop.eup %12971  ;;  %v4220_v43 = vmul.f32 %v12970_v44, %v13852_v38 }
 0x86b   :  { %4207 = vadd.xlane.f32.xlu1 %v4206_v60  ;;  %v4215_v53 = vsel %vm4214_vm9, %v4213_v48, 0.0  ;;  %v4226_v1 = vmul.f32 %v12972_v61, %v13852_v38 }
 0x86c   :  { %v4221_v10 = vsel %vm4186_vm8, %v4220_v43, 0.0 }
 0x86d   :  { %v4227_v3 = vsel %vm4196_vm6, %v4226_v1, 0.0 }
 0x86e   :  { %4188 = vadd.xlane.f32.xlu0 %v4187_v63 }
 0x86f   :  { %4216 = vadd.xlane.f32.xlu1 %v4215_v53 }
 0x872   :  { %4222 = vadd.xlane.f32.xlu0 %v4221_v10 }
 0x873   :  { %4228 = vadd.xlane.f32.xlu1 %v4227_v3 }
 0x8f7   :  { %v4199_v40 = vpop.xlane.xlu0 %4198 }
 0x8f8   :  { %v4208_v50 = vpop.xlane.xlu1 %4207  ;;  %v4231_v51 = vrot.slane %v4199_v40, 2 }
 0x8f9   :  { %v4235_v54 = vrot.slane %v4208_v50, 4 }
 0x8fb   :  { %v4189_v62 = vpop.xlane.xlu0 %4188 }
 0x8fc   :  { %v4217_v15 = vpop.xlane.xlu1 %4216  ;;  %v4233_v16 = vmax.f32 %v4189_v62, %v4231_v51 }
 0x8fd   :  { %v4239_v9 = vrot.slane %v4217_v15, 6 }
 0x8fe   :  { %v4237_v30 = vmax.f32 %v4233_v16, %v4235_v54 }
 0x8ff   :  { %v4223_v18 = vpop.xlane.xlu0 %4222 }
 0x900   :  { %v4229_v11 = vpop.xlane.xlu1 %4228  ;;  %v4241_v17 = vmax.f32 %v4237_v30, %v4239_v9 }
 0x901   :  { %v4244_v34 = vrot.slane %v4229_v11, 2 }
 0x902   :  { %v4242_v22 = vmax.f32 %v4241_v17, %v4223_v18  ;;  %v4030_v17 = vld [vmem:[%s15097_s29] sm:$0xff] }
 0x904   :  { %v4246_v58 = vmax.f32 %v4242_v22, %v4244_v34  ;;  %v10171_v34 = vld [vmem:[%s15097_s29 + $0x10] sm:$0xff] }
 0x906   :  { %v4247_v23 = vsub.f32 %v4189_v62, %v4246_v58  ;;  %v4251_v8 = vrot.slane %v4246_v58, 6  ;;  %v4256_v19 = vrot.slane %v4246_v58, 4  ;;  %v4261_v6 = vrot.slane %v4246_v58, 2 }
 0x907   :  { %v4266_v36 = vsub.f32 %v4223_v18, %v4246_v58  ;;  %v4031_v18 = vld [vmem:[%s15097_s29 + $0x8] sm:$0xff]  ;;  %v10172_v58 = vld [vmem:[%s15097_s29 + $0x18] sm:$0xff] }
 0x908   :  { %v4248_v26 = vmul.f32 1.442695, %v4247_v23  ;;  %v4253_v49 = vsub.f32 %v4199_v40, %v4251_v8  ;;  %v4258_v31 = vsub.f32 %v4208_v50, %v4256_v19  ;;  %v4263_v32 = vsub.f32 %v4217_v15, %v4261_v6 }
 0x909   :  { %v4269_v33 = vsub.f32 %v4229_v11, %v4251_v8  ;;  %v4267_v42 = vmul.f32 1.442695, %v4266_v36  ;;  %v13869_v22 = vpack.c.bf16 %v4031_v18, %v4030_v17  ;;  %v13872_v23 = vpack.c.bf16 %v10172_v58, %v10171_v34  ;;  %v3986_v17 = vld [vmem:[%s15100_s3 + $0x30] sm:$0xff]  ;;  %v3987_v18 = vld [vmem:[%s15100_s3 + $0x38] sm:$0xff] }
 0x90a   :  { %v4254_v41 = vmul.f32 1.442695, %v4253_v49  ;;  %v4259_v35 = vmul.f32 1.442695, %v4258_v31  ;;  %v4264_v27 = vmul.f32 1.442695, %v4263_v32  ;;  %12973 = vpow2.f32 %v4248_v26 }
 0x90b   :  { %v4270_v37 = vmul.f32 1.442695, %v4269_v33  ;;  %15098 = vst [vmem:[#allocation27_spill] sm:$0xff] %v13869_v22  ;;  %15099 = vst [vmem:[#allocation28_spill] sm:$0xff] %v13872_v23  ;;  %12197 = vmatpush3.bf16.msra.mxu1 %v13869_v22  ;;  %12230 = vmatpush3.bf16.msra.mxu0 %v13872_v23  ;;  %v10145_v34 = vld [vmem:[%s15100_s3 + $0xb0] sm:$0xff]  ;;  %v10146_v58 = vld [vmem:[%s15100_s3 + $0xb8] sm:$0xff] }
 0x90c   :  { %12975 = vpow2.f32 %v4254_v41  ;;  %12198 = vmatprep.subr.bf16.mxu1 %v15018_v14  ;;  %12231 = vmatprep.subr.bf16.mxu0 %v15018_v14 }
 0x90d   :  { %12977 = vpow2.f32 %v4259_v35 }
 0x90e   :  { %12979 = vpow2.f32 %v4264_v27 }
 0x90f   :  { %12981 = vpow2.f32 %v4270_v37 }
 0x910   :  { %12983 = vpow2.f32 %v4267_v42 }
 0x914   :  { %v12974_v46 = vpop.eup %12973 }
 0x916   :  { %v12976_v47 = vpop.eup %12975 }
 0x917   :  { %v12978_v13 = vpop.eup %12977  ;;  %v4273_v55 = vrot.slane %v12976_v47, 2 }
 0x918   :  { %v12980_v44 = vpop.eup %12979  ;;  %v4277_v48 = vrot.slane %v12978_v13, 4 }
 0x919   :  { %v4275_v60 = vadd.f32 %v12974_v46, %v4273_v55  ;;  %v4281_v63 = vrot.slane %v12980_v44, 6  ;;  %v12982_v43 = vpop.eup %12981 }
 0x91a   :  { %v12984_v1 = vpop.eup %12983  ;;  %v4286_v3 = vrot.slane %v12982_v43, 2 }
 0x91b   :  { %v4279_v61 = vadd.f32 %v4277_v48, %v4275_v60  ;;  %v3981_v60 = vld [vmem:[%s15100_s3 + $0x8] sm:$0xff]  ;;  %v10139_v48 = vld [vmem:[%s15100_s3 + $0x80] sm:$0xff] }
 0x91d   :  { %v4283_v53 = vadd.f32 %v4281_v63, %v4279_v61  ;;  %v10140_v61 = vld [vmem:[%s15100_s3 + $0x88] sm:$0xff] }
 0x91f   :  { %v4284_v10 = vadd.f32 %v12984_v1, %v4283_v53 }
 0x921   :  { %v4288_v56 = vadd.f32 %v4286_v3, %v4284_v10  ;;  %v3982_v10 = vld [vmem:[%s15100_s3 + $0x10] sm:$0xff] }
 0x923   :  { %12985 = vrcp.f32 %v4288_v56  ;;  %v3983_v56 = vld [vmem:[%s15100_s3 + $0x18] sm:$0xff] }
 0x92d   :  { %v12986_v40 = vpop.eup %12985 }
 0x92e   :  { %v4291_v50 = vmul.f32 %v12986_v40, %v12974_v46  ;;  %v4300_v51 = vrot.slane %v12986_v40, 6  ;;  %v4354_v54 = vmul.f32 %v12986_v40, %v12984_v1  ;;  %v4318_v15 = vrot.slane %v12986_v40, 4 }
 0x92f   :  { %v4336_v9 = vrot.slane %v12986_v40, 2  ;;  %v13908_v1 = vpack.c.bf16 %v10140_v61, %v10139_v48  ;;  %v10141_v40 = vld [vmem:[%s15100_s3 + $0x90] sm:$0xff] }
 0x930   :  { %4294 = vperm.xlu1 %12838, %v4291_v50   ;;  %v4302_v62 = vmul.f32 %v12976_v47, %v4300_v51  ;;  %v4320_v16 = vmul.f32 %v12978_v13, %v4318_v15  ;;  %v4364_v11 = vmul.f32 %v12982_v43, %v4300_v51  ;;  %v3980_v47 = vld [vmem:[%s15100_s3] sm:$0xff]  ;;  %v10142_v50 = vld [vmem:[%s15100_s3 + $0x98] sm:$0xff]  ;;  %v13922_v51 = vpack.c.bf16 %v3983_v56, %v3982_v10  ;;  %v3985_v15 = vld [vmem:[%s15100_s3 + $0x28] sm:$0xff] }
 0x931   :  { %v4338_v30 = vmul.f32 %v12980_v44, %v4336_v9  ;;  %v13906_v53 = vpack.c.bf16 %v3981_v60, %v3980_v47  ;;  %v10144_v9 = vld [vmem:[%s15100_s3 + $0xa8] sm:$0xff]  ;;  %v3990_v47 = vld [vmem:[%s15100_s3 + $0x50] sm:$0xff]  ;;  %v4094_v10 = vstv %s13955_s8 }
 0x932   :  { %4305 = vperm.xlu0 %12837, %v4302_v62   ;;  %v13924_v62 = vpack.c.bf16 %v10142_v50, %v10141_v40  ;;  %v3993_v40 = vld [vmem:[%s15100_s3 + $0x68] sm:$0xff]  ;;  %v10151_v50 = vld [vmem:[%s15100_s3 + $0xe0] sm:$0xff] }
 0x934   :  { %4357 = vperm.xlu1 %12838, %v4354_v54   ;;  %v3984_v54 = vld [vmem:[%s15100_s3 + $0x20] sm:$0xff] }
 0x938   :  { %4323 = vperm.xlu1 %12838, %v4320_v16   ;;  %v10143_v16 = vld [vmem:[%s15100_s3 + $0xa0] sm:$0xff] }
 0x93c   :  { %4341 = vperm.xlu1 %12838, %v4338_v30   ;;  %v13938_v30 = vpack.c.bf16 %v3985_v15, %v3984_v54  ;;  %v10152_v54 = vld [vmem:[%s15100_s3 + $0xe8] sm:$0xff]  ;;  %v4100_v15 = vstv %s13962_s14 }
 0x940   :  { %4367 = vperm.xlu1 %12838, %v4364_v11   ;;  %v13940_v11 = vpack.c.bf16 %v10144_v9, %v10143_v16 }
 0x9af   :  { %v13878_v8 = vpop.permute.xlu1 %4294 }
 0x9b0   :  { %v4297_v41 = vmul.f32 %v13878_v8, %v13514_v4 }
 0x9b1   :  { %v13880_v19 = vpop.permute.xlu0 %4305 }
 0x9b2   :  { %v4308_v26 = vmul.f32 %v13880_v19, %v13569_v39  ;;  %v4313_v56 = vmul.f32 %v13880_v19, %v13748_v28 }
 0x9b3   :  { %v13882_v6 = vpop.permute.xlu1 %4357 }
 0x9b4   :  { %v4310_v31 = vrot.slane %v4308_v26, 2  ;;  %v4360_v13 = vmul.f32 %v13882_v6, %v13726_v20  ;;  %v13950_v26 = vpack.c.bf16 %v3987_v18, %v3986_v17  ;;  %v14008_v17 = vpack.c.bf16 %v10152_v54, %v10151_v50  ;;  %v3994_v18 = vld [vmem:[%s15100_s3 + $0x70] sm:$0xff] }
 0x9b5   :  { %v4362_v9 = vmul.f32 %v13882_v6, %v13589_v52  ;;  %v10180_v6 = vld [vmem:[%s15104_s24 + $0x18] sm:$0xff] }
 0x9b6   :  { %v4312_v33 = vadd.f32 %v4310_v31, %v4297_v41  ;;  %v13952_v31 = vpack.c.bf16 %v10146_v58, %v10145_v34  ;;  %v3989_v41 = vld [vmem:[%s15100_s3 + $0x48] sm:$0xff]  ;;  %v4315_v34 = vrot.slane %v4313_v56, 2  ;;  %v3995_v58 = vld [vmem:[%s15100_s3 + $0x78] sm:$0xff] }
 0x9b7   :  { %v13886_v49 = vpop.permute.xlu1 %4323 }
 0x9b8   :  { %v4326_v32 = vmul.f32 %v13886_v49, %v13621_v7  ;;  %v4331_v16 = vmul.f32 %v13886_v49, %v13696_v2 }
 0x9ba   :  { %v4328_v35 = vrot.slane %v4326_v32, 4  ;;  %v3988_v32 = vld [vmem:[%s15100_s3 + $0x40] sm:$0xff] }
 0x9bb   :  { %v13892_v27 = vpop.permute.xlu1 %4341 }
 0x9bc   :  { %v4344_v36 = vmul.f32 %v13892_v27, %v13671_v57  ;;  %v4330_v37 = vadd.f32 %v4328_v35, %v4312_v33  ;;  %v10147_v35 = vld [vmem:[%s15100_s3 + $0xc0] sm:$0xff]  ;;  %v10148_v33 = vld [vmem:[%s15100_s3 + $0xc8] sm:$0xff]  ;;  %v4349_v49 = vmul.f32 %v13892_v27, %v13641_v25  ;;  %v4298_v27 = vmul.f32 %v13878_v8, %v13799_v0 }
 0x9be   :  { %v4346_v42 = vrot.slane %v4344_v36, 6  ;;  %v4087_v36 = vlaneseq }
 0x9bf   :  { %v13896_v46 = vpop.permute.xlu1 %4367 }
 0x9c0   :  { %v4348_v55 = vadd.f32 %v4346_v42, %v4330_v37  ;;  %v4370_v44 = vmul.f32 %v13896_v46, %v13789_v45  ;;  %v13966_v37 = vpack.c.bf16 %v3989_v41, %v3988_v32  ;;  %v13968_v42 = vpack.c.bf16 %v10148_v33, %v10147_v35  ;;  %v10153_v32 = vld [vmem:[%s15100_s3 + $0xf0] sm:$0xff]  ;;  %v10154_v41 = vld [vmem:[%s15100_s3 + $0xf8] sm:$0xff] }
 0x9c1   :  { %v13976_v60 = vand.u32 127, %v4087_v36  ;;  %v13978_v48 = vshrl.u32 %v4087_v36, 7  ;;  %v4333_v35 = vrot.slane %v4331_v16, 4  ;;  %v14028_v33 = vpack.c.bf16 %v3995_v58, %v3994_v18  ;;  %v10179_v18 = vld [vmem:[%s15104_s24 + $0x10] sm:$0xff]  ;;  %v4047_v58 = vld [vmem:[%s15104_s24 + $0x8] sm:$0xff] }
 0x9c2   :  { %v4361_v63 = vadd.f32 %v4360_v13, %v4348_v55  ;;  %v4372_v43 = vrot.slane %v4370_v44, 2  ;;  %v3991_v13 = vld [vmem:[%s15100_s3 + $0x58] sm:$0xff]  ;;  %v10149_v55 = vld [vmem:[%s15100_s3 + $0xd0] sm:$0xff]  ;;  %v14030_v36 = vpack.c.bf16 %v10154_v41, %v10153_v32  ;;  %v4375_v16 = vmul.f32 %v13896_v46, %v13534_v12  ;;  %v4046_v46 = vld [vmem:[%s15104_s24] sm:$0xff] }
 0x9c3   :  { %v10150_v44 = vld [vmem:[%s15100_s3 + $0xd8] sm:$0xff]  ;;  %v13982_v61 = vpack.c.bf16 %v3991_v13, %v3990_v47  ;;  %vm4092_vm10 = vcmp.eq.s32.totalorder %v13978_v48, 0  ;;  %vm14000_vm11 = vcmp.eq.s32.totalorder %v13976_v60, %v4094_v10  ;;  %vm4098_vm12 = vcmp.eq.s32.totalorder %v13978_v48, 1  ;;  %v10175_v47 = vld [vmem:[%s15103_s19 + $0x10] sm:$0xff]  ;;  %v4039_v10 = vld [vmem:[%s15103_s19 + $0x8] sm:$0xff] }
 0x9c4   :  { %v13911_v3 = vadd.f32 %v4372_v43, %v4361_v63  ;;  %v13984_v63 = vpack.c.bf16 %v10150_v44, %v10149_v55  ;;  %v3992_v43 = vld [vmem:[%s15100_s3 + $0x60] sm:$0xff]  ;;  %vm4101_vm13 = vcmp.eq.s32.totalorder %v13976_v60, %v4100_v15  ;;  %vm4096_vm14 = vmand %vm4092_vm10, %vm14000_vm11  ;;  %v4317_v13 = vadd.f32 %v4315_v34, %v4298_v27  ;;  %v10176_v44 = vld [vmem:[%s15103_s19 + $0x18] sm:$0xff] }
 0x9c5   :  { %v14006_v19 = vpack.c.bf16 %v3993_v40, %v3992_v43  ;;  %vm4102_vm15 = vmand %vm4098_vm12, %vm4101_vm13  ;;  %v4351_v55 = vrot.slane %v4349_v49, 6  ;;  %v4097_v8 = vsel %vm4096_vm14, 1.0, %v15004_v5  ;;  %v4038_v43 = vld [vmem:[%s15103_s19] sm:$0xff]  ;;  %v14045_v50 = vpack.c.bf16 %v10176_v44, %v10175_v47  ;;  %v10156_v47 = vld [vmem:[%s15100_s3 + $0x108] sm:$0xff] }
 0x9c6   :  { %11158 = vmatmul.mubr.msk.f32.vlgmr.msra.gmra.mrb[54].mxu1 %vm699_vm2, %v13911_v3  ;;  %11214 = vmatmul.mubr.msk.f32.vlgmr.msra.gmra.mrb[38].mxu0 %vm699_vm2, %v13911_v3  ;;  %v4335_v56 = vadd.f32 %v4333_v35, %v4317_v13  ;;  %v14043_v40 = vsel %vm4102_vm15, 1.0, %v4097_v8  ;;  %v14047_v54 = vpack.c.bf16 %v4039_v10, %v4038_v43  ;;  %v4377_v49 = vrot.slane %v4375_v16, 2  ;;  %v10155_v35 = vld [vmem:[%s15100_s3 + $0x100] sm:$0xff]  ;;  %v10157_v43 = vld [vmem:[%s15100_s3 + $0x110] sm:$0xff]  ;;  %v10158_v10 = vld [vmem:[%s15100_s3 + $0x118] sm:$0xff] }
 0x9c7   :  { %12200 = vmatpush3.bf16.msra.mxu1 %v13906_v53  ;;  %12233 = vmatpush3.bf16.msra.mxu0 %v13908_v1  ;;  %v14069_v32 = vpack.c.bf16 %v10180_v6, %v10179_v18  ;;  %v14071_v41 = vpack.c.bf16 %v4047_v58, %v4046_v46  ;;  %v10173_v13 = vld [vmem:[%s15097_s29 + $0x20] sm:$0xff]  ;;  %v14091_v8 = vpack.c.bf16 %v10156_v47, %v10155_v35  ;;  %v10182_v6 = vld [vmem:[%s15104_s24 + $0x28] sm:$0xff]  ;;  %v10161_v35 = vld [vmem:[%s15100_s3 + $0x130] sm:$0xff]  ;;  %vm5583_vm0 = vcmp.lt.s32.totalorder %v13976_v60, 18 }
 0x9c8   :  { %12201 = vmatprep.subr.bf16.mxu1 %v15018_v14  ;;  %12234 = vmatprep.subr.bf16.mxu0 %v15018_v14  ;;  %v4353_v15 = vadd.f32 %v4351_v55, %v4335_v56  ;;  %v10174_v55 = vld [vmem:[%s15097_s29 + $0x28] sm:$0xff]  ;;  %v10177_v56 = vld [vmem:[%s15103_s19 + $0x20] sm:$0xff]  ;;  %v14105_v16 = vpack.c.bf16 %v10158_v10, %v10157_v43  ;;  %v10162_v47 = vld [vmem:[%s15100_s3 + $0x138] sm:$0xff] }
 0x9c9   :  { %11192 = vmatprep.mubr.msk.f32.mxu1 %vm13195_vm1, %v15004_v5  ;;  %11248 = vmatprep.mubr.msk.f32.mxu0 %vm13195_vm1, %v15004_v5  ;;  %15105 = vst [vmem:[#allocation29_spill] sm:$0xff] %v14091_v8  ;;  %v14093_v44 = vpack.c.bf16 %v10174_v55, %v10173_v13  ;;  %v10159_v18 = vld [vmem:[%s15100_s3 + $0x120] sm:$0xff]  ;;  %v4067_v55 = vld [vmem:[%s15109_s30 + $0x8] sm:$0xff]  ;;  %v14139_v43 = vpack.c.bf16 %v10162_v47, %v10161_v35 }
 0x9ca   :  { %v4363_v34 = vadd.f32 %v4362_v9, %v4353_v15  ;;  %v10178_v15 = vld [vmem:[%s15103_s19 + $0x28] sm:$0xff]  ;;  %15107 = vst [vmem:[#allocation31_spill] sm:$0xff] %v14105_v16  ;;  %v4066_v13 = vld [vmem:[%s15109_s30] sm:$0xff] }
 0x9cb   :  { %12203 = vmatpush3.bf16.msra.mxu1 %v13922_v51  ;;  %12236 = vmatpush3.bf16.msra.mxu0 %v13924_v62  ;;  %15106 = vst [vmem:[#allocation30_spill] sm:$0xff] %v14093_v44  ;;  %v14107_v9 = vpack.c.bf16 %v10178_v15, %v10177_v56  ;;  %15112 = vst [vmem:[#allocation35_spill] sm:$0xff] %v14139_v43  ;;  %v14141_v10 = vpack.c.bf16 %v4067_v55, %v4066_v13  ;;  %v10163_v56 = vld [vmem:[%s15100_s3 + $0x140] sm:$0xff]  ;;  %v10164_v15 = vld [vmem:[%s15100_s3 + $0x148] sm:$0xff] }
 0x9cc   :  { %12204 = vmatprep.subr.bf16.mxu1 %v15018_v14  ;;  %12237 = vmatprep.subr.bf16.mxu0 %v15018_v14  ;;  %v14073_v27 = vadd.f32 %v4377_v49, %v4363_v34  ;;  %v10160_v34 = vld [vmem:[%s15100_s3 + $0x128] sm:$0xff]  ;;  %v10181_v49 = vld [vmem:[%s15104_s24 + $0x20] sm:$0xff]  ;;  %v10170_v55 = vld [vmem:[%s15100_s3 + $0x178] sm:$0xff] }
 0x9cd   :  { %15108 = vst [vmem:[#allocation32_spill] sm:$0xff] %v14107_v9  ;;  %v14123_v46 = vpack.c.bf16 %v10160_v34, %v10159_v18  ;;  %v14125_v58 = vpack.c.bf16 %v10182_v6, %v10181_v49  ;;  %15113 = vst [vmem:[#allocation36_spill] sm:$0xff] %v14141_v10  ;;  %v14153_v18 = vpack.c.bf16 %v10164_v15, %v10163_v56  ;;  %v10165_v34 = vld [vmem:[%s15100_s3 + $0x150] sm:$0xff]  ;;  %v10166_v49 = vld [vmem:[%s15100_s3 + $0x158] sm:$0xff] }
 0x9ce   :  { %v14164_v6 = vpack.c.bf16 %v10166_v49, %v10165_v34  ;;  %v10167_v35 = vld [vmem:[%s15100_s3 + $0x160] sm:$0xff]  ;;  %v10168_v47 = vld [vmem:[%s15100_s3 + $0x168] sm:$0xff] }
 0x9cf   :  { %12206 = vmatpush3.bf16.msra.mxu1 %v13938_v30  ;;  %12239 = vmatpush3.bf16.msra.mxu0 %v13940_v11  ;;  %15110 = vst [vmem:[#allocation33_spill] sm:$0xff] %v14123_v46  ;;  %15111 = vst [vmem:[#allocation34_spill] sm:$0xff] %v14125_v58  ;;  %v14172_v13 = vpack.c.bf16 %v10168_v47, %v10167_v35  ;;  %v4064_v15 = vld [vmem:[%s15116_s27] sm:$0xff]  ;;  %v4065_v34 = vld [vmem:[%s15116_s27 + $0x8] sm:$0xff] }
 0x9d0   :  { %12207 = vmatprep.subr.bf16.mxu1 %v15018_v14  ;;  %12240 = vmatprep.subr.bf16.mxu0 %v15018_v14  ;;  %15114 = vst [vmem:[#allocation37_spill] sm:$0xff] %v14153_v18  ;;  %15115 = vst [vmem:[#allocation38_spill] sm:$0xff] %v14164_v6  ;;  %v14190_v49 = vpack.c.bf16 %v4065_v34, %v4064_v15  ;;  %v10192_v35 = vld [vmem:[%s15118_s23] ss:$0 sm:$0xff]  ;;  %v10199_v15 = vld [vmem:[%s15119_s26 + $0x1] ss:$0 sm:$0xff] }
 0x9d1   :  { %15117 = vst [vmem:[#allocation39_spill] sm:$0xff] %v14172_v13  ;;  %v10193_v47 = vld [vmem:[%s15119_s26] ss:$0 sm:$0xff]  ;;  %v15206_v48 = vld [vmem:[#allocation29_spill] sm:$0xff] }
 0x9d2   :  { %15121 = vst [vmem:[#allocation41_spill] sm:$0xff] %v14190_v49 }
 0x9d3   :  { %12209 = vmatpush3.bf16.msra.mxu1 %v13950_v26  ;;  %12242 = vmatpush3.bf16.msra.mxu0 %v13952_v31 }
 0x9d4   :  { %12210 = vmatprep.subr.bf16.mxu1 %v15018_v14  ;;  %12243 = vmatprep.subr.bf16.mxu0 %v15018_v14 }
 0x9d7   :  { %12212 = vmatpush3.bf16.msra.mxu1 %v13966_v37  ;;  %12245 = vmatpush3.bf16.msra.mxu0 %v13968_v42 }
 0x9d8   :  { %12213 = vmatprep.subr.bf16.mxu1 %v15018_v14  ;;  %12246 = vmatprep.subr.bf16.mxu0 %v15018_v14 }
 0x9db   :  { %12215 = vmatpush3.bf16.msra.mxu1 %v13982_v61  ;;  %12248 = vmatpush3.bf16.msra.mxu0 %v13984_v63 }
 0x9dc   :  { %12216 = vmatprep.subr.bf16.mxu1 %v15018_v14  ;;  %12249 = vmatprep.subr.bf16.mxu0 %v15018_v14 }
 0x9df   :  { %12218 = vmatpush3.bf16.msra.mxu1 %v14006_v19  ;;  %12251 = vmatpush3.bf16.msra.mxu0 %v14008_v17 }
 0x9e0   :  { %12219 = vmatprep.subr.bf16.mxu1 %v15018_v14  ;;  %12252 = vmatprep.subr.bf16.mxu0 %v15018_v14 }
 0x9e3   :  { %12221 = vmatpush3.bf16.msra.mxu1 %v14028_v33  ;;  %12254 = vmatpush3.bf16.msra.mxu0 %v14030_v36 }
 0x9e4   :  { %12255 = vmatprep.subr.bf16.mxu0 %v15018_v14  ;;  %12222 = vmatprep.subr.bf16.mxu1 %v15018_v14 }
 0x9e6   :  { %11193 = vmatmul.mubr.f32.vlgmr.msra.gmra.mrb[54].mxu1 %v14043_v40  ;;  %11249 = vmatmul.mubr.f32.vlgmr.msra.gmra.mrb[38].mxu0 %v14043_v40 }
 0x9e7   :  { %12257 = vmatpush3.bf16.msra.mxu0 %v14045_v50  ;;  %12224 = vmatpush3.bf16.msra.mxu1 %v14047_v54 }
 0x9e8   :  { %11199 = vmatprep.mubr.msk.f32.mxu1 %vm13195_vm1, %v15004_v5  ;;  %11255 = vmatprep.mubr.msk.f32.mxu0 %vm13195_vm1, %v15004_v5 }
 0x9e9   :  { %12258 = vmatprep.subr.bf16.mxu0 %v15018_v14  ;;  %12225 = vmatprep.subr.bf16.mxu1 %v15018_v14 }
 0x9ee   :  { %11200 = vmatmul.mubr.msk.f32.vlgmr.msra.gmra.mrb[54].mxu1 %vm699_vm2, %v14073_v27  ;;  %11256 = vmatmul.mubr.msk.f32.vlgmr.msra.gmra.mrb[38].mxu0 %vm699_vm2, %v14073_v27 }
 0x9ef   :  { %12260 = vmatpush3.bf16.msra.mxu0 %v14069_v32  ;;  %12227 = vmatpush3.bf16.msra.mxu1 %v14071_v41 }
 0x9f0   :  { %11206 = vmatprep.mubr.msk.f32.mxu1 %vm13195_vm1, %v15004_v5  ;;  %11262 = vmatprep.mubr.msk.f32.mxu0 %vm13195_vm1, %v15004_v5 }
 0x9f1   :  { %12264 = vmatprep.subr.bf16.mxu0 %v15018_v14  ;;  %12261 = vmatprep.subr.bf16.mxu1 %v15018_v14 }
 0x9f6   :  { %11207 = vmatmul.mubr.msk.f32.vlgmr.msra.gmra.mrb[54].mxu1 %vm699_vm2, %v13834_v21  ;;  %11263 = vmatmul.mubr.msk.f32.vlgmr.msra.gmra.mrb[38].mxu0 %vm699_vm2, %v13834_v21 }
 0x9f7   :  { %12266 = vmatpush3.bf16.msra.mxu0 %v14091_v8  ;;  %12263 = vmatpush3.bf16.msra.mxu1 %v14093_v44 }
 0x9f8   :  { %11269 = vmatprep.mubr.msk.f32.mxu1 %vm13195_vm1, %v15004_v5  ;;  %12267 = vmatprep.subr.bf16.mxu0 %v15018_v14 }
 0x9f9   :  { %12288 = vmatprep.subr.bf16.mxu1 %v15018_v14  ;;  %11304 = vmatprep.mubr.msk.f32.mxu0 %vm13195_vm1, %v15004_v5 }
 0x9fa   :  { %11270 = vmatmul.mubr.msk.f32.vlgmr.msra.gmra.mrb[56].mxu1 %vm699_vm2, %v13911_v3 }
 0x9fb   :  { %12269 = vmatpush3.bf16.msra.mxu0 %v14105_v16  ;;  %12290 = vmatpush3.bf16.msra.mxu1 %v14107_v9 }
 0x9fc   :  { %12270 = vmatprep.subr.bf16.mxu0 %v15018_v14  ;;  %11311 = vmatprep.mubr.msk.f32.mxu1 %vm13195_vm1, %v15004_v5 }
 0x9fd   :  { %12291 = vmatprep.subr.bf16.mxu1 %v15018_v14 }
 0x9fe   :  { %11312 = vmatmul.mubr.msk.f32.vlgmr.msra.gmra.mrb[58].mxu1 %vm699_vm2, %v14073_v27 }
 0x9ff   :  { %12272 = vmatpush3.bf16.msra.mxu0 %v14123_v46  ;;  %12293 = vmatpush3.bf16.msra.mxu1 %v14125_v58 }
 0xa00   :  { %12273 = vmatprep.subr.bf16.mxu0 %v15018_v14  ;;  %11318 = vmatprep.mubr.msk.f32.mxu1 %vm13195_vm1, %v15004_v5 }
 0xa01   :  { %12294 = vmatprep.subr.bf16.mxu1 %v15018_v14 }
 0xa02   :  { %11319 = vmatmul.mubr.msk.f32.vlgmr.msra.gmra.mrb[60].mxu1 %vm699_vm2, %v13834_v21 }
 0xa03   :  { %12275 = vmatpush3.bf16.msra.mxu0 %v14139_v43  ;;  %12296 = vmatpush3.bf16.msra.mxu1 %v14141_v10  ;;  %v10198_v43 = vld [vmem:[%s15118_s23 + $0x1] ss:$0 sm:$0xff] }
 0xa04   :  { %12276 = vmatprep.subr.bf16.mxu0 %v15018_v14  ;;  %11325 = vmatprep.mubr.msk.f32.mxu1 %vm13195_vm1, %v15004_v5 }
 0xa05   :  { %12297 = vmatprep.subr.bf16.mxu1 %v15018_v14 }
 0xa06   :  { %11326 = vmatmul.mubr.msk.f32.vlgmr.msra.gmra.mrb[62].mxu1 %vm699_vm2, %v13911_v3  ;;  %v10169_v3 = vld [vmem:[%s15100_s3 + $0x170] sm:$0xff] }
 0xa07   :  { %12278 = vmatpush3.bf16.msra.mxu0 %v14153_v18  ;;  %11332 = vmatprep.mubr.msk.f32.mxu1 %vm13195_vm1, %v15004_v5  ;;  %v14178_v56 = vpack.c.bf16 %v10170_v55, %v10169_v3  ;;  %v14196_v3 = vadd.f32 %v10193_v47, %v10192_v35 }
 0xa08   :  { %12279 = vmatprep.subr.bf16.mxu0 %v15018_v14  ;;  %12299 = vmatpush3.bf16.msra.mxu1 %v14190_v49  ;;  %v14201_v49 = vadd.f32 %v10199_v15, %v10198_v43 }
 0xa09   :  { %15120 = vst [vmem:[#allocation40_spill] sm:$0xff] %v14178_v56  ;;  %12300 = vmatprep.subr.bf16.mxu1 %v15018_v14  ;;  %15122 = vst [vmem:[#allocation42_spill] sm:$0xff] %v14196_v3 }
 0xa0a   :  { %15123 = vst [vmem:[#allocation43_spill] sm:$0xff] %v14201_v49 }
 0xa0b   :  { %12281 = vmatpush3.bf16.msra.mxu0 %v14164_v6 }
 0xa0c   :  { %12282 = vmatprep.subr.bf16.mxu0 %v15018_v14 }
 0xa0f   :  { %12284 = vmatpush3.bf16.msra.mxu0 %v14172_v13 }
 0xa10   :  { %12285 = vmatprep.subr.bf16.mxu0 %v15018_v14 }
 0xa13   :  { %12287 = vmatpush3.bf16.msra.mxu0 %v14178_v56 }
 0xa14   :  { %12327 = vmatprep.subr.bf16.mxu0 %v15018_v14 }
 0xa16   :  { %11305 = vmatmul.mubr.f32.vlgmr.msra.gmra.mrb[40].mxu0 %v14043_v40 }
 0xa17   :  { %12329 = vmatpush3.bf16.msra.mxu0 %v13829_v59  ;;  %11381 = vmatprep.mubr.msk.f32.mxu0 %vm13195_vm1, %v15004_v5 }
 0xa18   :  { %12330 = vmatprep.subr.bf16.mxu0 %v15018_v14 }
 0xac9   :  { %v4676_v55 = vpop.f32.mrb[54].mxu1  ;;  %v4977_v59 = vpop.f32.mrb[38].mxu0 }
 0xaca   :  { %v12733_v5 = vadd.f32 %v14196_v3, %v4676_v55  ;;  %v11208_v56 = vpop.f32.mrb[55].mxu1  ;;  %v11264_v13 = vpop.f32.mrb[39].mxu0  ;;  %v12735_v35 = vadd.f32 %v14201_v49, %v4977_v59 }
 0xacc   :  { %v10195_v6 = vmul.f32 -1.442695, %v12733_v5  ;;  %v10201_v56 = vmul.f32 -1.442695, %v12735_v35 }
 0xacd   :  { %v5054_v18 = vpop.f32.mrb[56].mxu1 }
 0xace   :  { %12987 = vpow2.f32 %v10195_v6  ;;  %v11271_v34 = vpop.f32.mrb[57].mxu1  ;;  %v14207_v6 = vld [vmem:[%s15119_s26 + $0x2] ss:$0 sm:$0xff] }
 0xacf   :  { %15124 = vst [vmem:[#allocation44_spill] sm:$0xff] %v14207_v6 }
 0xad1   :  { %v5194_v14 = vpop.f32.mrb[58].mxu1 }
 0xad2   :  { %v11313_v46 = vpop.f32.mrb[59].mxu1 }
 0xad5   :  { %v5278_v47 = vpop.f32.mrb[60].mxu1 }
 0xad6   :  { %v11320_v10 = vpop.f32.mrb[61].mxu1  ;;  %v5279_v43 = vadd.f32 %v14207_v6, %v5278_v47  ;;  %v4068_v6 = vld [vmem:[%s13343_s12] sm:$0xff] }
 0xad8   :  { %v12988_v16 = vpop.eup %12987 }
 0xad9   :  { %v4684_v55 = vadd.f32 1.0, %v12988_v16  ;;  %v14204_v13 = vpop.f32.mrb[62].mxu1  ;;  %v14211_v16 = vld [vmem:[%s15118_s23 + $0x2] ss:$0 sm:$0xff] }
 0xada   :  { %v11327_v5 = vpop.f32.mrb[63].mxu1  ;;  %15125 = vst [vmem:[#allocation45_spill] sm:$0xff] %v14211_v16 }
 0xadb   :  { %12989 = vrcp.f32 %v4684_v55 }
 0xadc   :  { %12991 = vpow2.f32 %v10201_v56 }
 0xae5   :  { %v12990_v15 = vpop.eup %12989 }
 0xae6   :  { %v5282_v46 = vmul.f32 %v12990_v15, %v5279_v43  ;;  %v12992_v59 = vpop.eup %12991  ;;  %v4069_v43 = vld [vmem:[%s13343_s12 + $0x8] sm:$0xff]  ;;  %s10213_s12 = sld [smem:[#allocation5 + $0x80]] }
 0xae7   :  { %v4985_v10 = vadd.f32 1.0, %v12992_v59  ;;  %v14217_v59 = vpack.c.bf16 %v4069_v43, %v4068_v6  ;;  %v15129_v6 = vmov 0.0|0.0   ;;  %v4077_v43 = vld [vmem:[%s13348_s20 + $0x38] sm:$0xff] }
 0xae9   :  { %v5124_v34 = vpop.f32.mrb[40].mxu0  ;;  %12993 = vrcp.f32 %v4985_v10  ;;  %15126 = vst [vmem:[#allocation46_spill] sm:$0xff] %v14217_v59  ;;  %v4072_v10 = vld [vmem:[%s13348_s20 + $0x10] sm:$0xff] }
 0xaea   :  { %v5125_v49 = vadd.f32 %v5124_v34, %v5054_v18  ;;  %v11306_v3 = vpop.f32.mrb[41].mxu0 }
 0xaec   :  { %v5198_v35 = vadd.f32 %v5194_v14, %v5125_v49  ;;  %v4070_v14 = vld [vmem:[%s13348_s20] sm:$0xff]  ;;  %v4071_v49 = vld [vmem:[%s13348_s20 + $0x8] sm:$0xff] }
 0xaee   :  { %v5205_v55 = vadd.f32 %v14211_v16, %v5198_v35  ;;  %v4073_v35 = vld [vmem:[%s13348_s20 + $0x18] sm:$0xff] }
 0xaf0   :  { %v5283_v56 = vadd.f32 %v5282_v46, %v5205_v55  ;;  %v15127_v46 = vmov 0.0   ;;  %v14242_v55 = vpack.c.bf16 %v4073_v35, %v4072_v10  ;;  %v4081_v10 = vld [vmem:[%s13348_s20 + $0x58] sm:$0xff] }
 0xaf2   :  { %12995 = vtanh.f32 %v5283_v56  ;;  %15130 = vst [vmem:[#allocation48_spill] sm:$0xff] %v14242_v55  ;;  %v4074_v56 = vld [vmem:[%s13348_s20 + $0x20] sm:$0xff] }
 0xaf3   :  { %v12994_v47 = vpop.eup %12993 }
 0xaf4   :  { %v5285_v5 = vsub.f32 1.0, %v12994_v47  ;;  %v5287_v18 = vmul.f32 %v12994_v47, %v13834_v21  ;;  %v14230_v21 = vpack.c.bf16 %v4071_v49, %v4070_v14  ;;  %v4075_v47 = vld [vmem:[%s13348_s20 + $0x28] sm:$0xff]  ;;  %v4080_v49 = vld [vmem:[%s13348_s20 + $0x50] sm:$0xff] }
 0xaf5   :  { %v14268_v35 = vpack.c.bf16 %v4081_v10, %v4080_v49 }
 0xaf6   :  { %15128 = vst [vmem:[#allocation47_spill] sm:$0xff] %v14230_v21 }
 0xaf7   :  { %15134 = vst [vmem:[#allocation52_spill] sm:$0xff] %v14268_v35 }
 0xafc   :  { %v12996_v15 = vpop.eup %12995 }
 0xafd   :  { %v5286_v3 = vmul.f32 %v12996_v15, %v5285_v5  ;;  %v14250_v5 = vpack.c.bf16 %v4075_v47, %v4074_v56  ;;  %v4082_v56 = vld [vmem:[%s13348_s20 + $0x60] sm:$0xff]  ;;  %v4083_v47 = vld [vmem:[%s13348_s20 + $0x68] sm:$0xff] }
 0xaff   :  { %v14219_v34 = vadd.f32 %v5287_v18, %v5286_v3  ;;  %15131 = vst [vmem:[#allocation49_spill] sm:$0xff] %v14250_v5  ;;  %v4078_v18 = vld [vmem:[%s13348_s20 + $0x40] sm:$0xff]  ;;  %v4079_v3 = vld [vmem:[%s13348_s20 + $0x48] sm:$0xff] }
 0xb00   :  { %v14262_v14 = vpack.c.bf16 %v4079_v3, %v4078_v18  ;;  %v4085_v18 = vld [vmem:[%s13348_s20 + $0x78] sm:$0xff] }
 0xb01   :  { %11333 = vmatmul.mubr.msk.f32.vlgmr.msra.gmra.mrb[64].mxu1 %vm699_vm2, %v14219_v34  ;;  %11382 = vmatmul.mubr.msk.f32.vlgmr.msra.gmra.mrb[42].mxu0 %vm699_vm2, %v14219_v34 }
 0xb02   :  { %12302 = vmatpush3.bf16.msra.mxu1 %v14217_v59  ;;  %11339 = vmatprep.mubr.msk.f32.mxu1 %vm13195_vm1, %v15127_v46  ;;  %15133 = vst [vmem:[#allocation51_spill] sm:$0xff] %v14262_v14 }
 0xb03   :  { %12303 = vmatprep.subr.bf16.mxu1 %v15129_v6  ;;  %12332 = vmatpush3.bf16.msra.mxu0 %v13869_v22 }
 0xb04   :  { %11388 = vmatprep.mubr.msk.f32.mxu0 %vm13195_vm1, %v15127_v46  ;;  %12333 = vmatprep.subr.bf16.mxu0 %v15129_v6 }
 0xb05   :  { %11340 = vmatmul.mubr.msk.f32.vlgmr.msra.gmra.mrb[66].mxu1 %vm699_vm2, %v14073_v27  ;;  %v4076_v27 = vld [vmem:[%s13348_s20 + $0x30] sm:$0xff] }
 0xb06   :  { %12305 = vmatpush3.bf16.msra.mxu1 %v14230_v21  ;;  %11374 = vmatprep.mubr.msk.f32.mxu1 %vm13195_vm1, %v15127_v46  ;;  %v14256_v15 = vpack.c.bf16 %v4077_v43, %v4076_v27  ;;  %v14274_v27 = vpack.c.bf16 %v4083_v47, %v4082_v56  ;;  %v4084_v43 = vld [vmem:[%s13348_s20 + $0x70] sm:$0xff]  ;;  %s10214_s20 = sld [smem:[#allocation5 + $0x81]] }
 0xb07   :  { %12306 = vmatprep.subr.bf16.mxu1 %v15129_v6  ;;  %v14280_v3 = vpack.c.bf16 %v4085_v18, %v4084_v43 }
 0xb08   :  { %15132 = vst [vmem:[#allocation50_spill] sm:$0xff] %v14256_v15  ;;  %15135 = vst [vmem:[#allocation53_spill] sm:$0xff] %v14274_v27 }
 0xb09   :  { %15136 = vst [vmem:[#allocation54_spill] sm:$0xff] %v14280_v3 }
 0xb0a   :  { %12308 = vmatpush3.bf16.msra.mxu1 %v14242_v55 }
 0xb0b   :  { %12309 = vmatprep.subr.bf16.mxu1 %v15129_v6 }
 0xb0e   :  { %12311 = vmatpush3.bf16.msra.mxu1 %v14250_v5 }
 0xb0f   :  { %12312 = vmatprep.subr.bf16.mxu1 %v15129_v6 }
 0xb12   :  { %12314 = vmatpush3.bf16.msra.mxu1 %v14256_v15 }
 0xb13   :  { %12315 = vmatprep.subr.bf16.mxu1 %v15129_v6 }
 0xb16   :  { %12317 = vmatpush3.bf16.msra.mxu1 %v14262_v14 }
 0xb17   :  { %12318 = vmatprep.subr.bf16.mxu1 %v15129_v6 }
 0xb1a   :  { %12320 = vmatpush3.bf16.msra.mxu1 %v14268_v35 }
 0xb1b   :  { %12321 = vmatprep.subr.bf16.mxu1 %v15129_v6 }
 0xb1e   :  { %12323 = vmatpush3.bf16.msra.mxu1 %v14274_v27 }
 0xb1f   :  { %12324 = vmatprep.subr.bf16.mxu1 %v15129_v6 }
 0xb22   :  { %12326 = vmatpush3.bf16.msra.mxu1 %v14280_v3 }
 0xb23   :  { %12363 = vmatprep.subr.bf16.mxu1 %v15129_v6 }
 0xb25   :  { %11375 = vmatmul.mubr.f32.vlgmr.msra.gmra.mrb[68].mxu1 %v14043_v40 }
 0xb26   :  { %12365 = vmatpush3.bf16.msra.mxu1 %v13872_v23  ;;  %11444 = vmatprep.mubr.msk.f32.mxu1 %vm13195_vm1, %v15127_v46 }
 0xb27   :  { %12366 = vmatprep.subr.bf16.mxu1 %v15129_v6 }
 0xbd4   :  { %v5428_v49 = vpop.f32.mrb[64].mxu1  ;;  %v5693_v10 = vpop.f32.mrb[42].mxu0 }
 0xbd5   :  { %v5429_v56 = vadd.f32 %v5428_v49, %v14204_v13  ;;  %v5697_v47 = vadd.f32 %v5693_v10, %v13841_v24  ;;  %v5704_v43 = vrot.slane %v5693_v10, 6  ;;  %v5712_v18 = vrot.slane %v5693_v10, 4  ;;  %v11334_v22 = vpop.f32.mrb[65].mxu1  ;;  %v11383_v59 = vpop.f32.mrb[43].mxu0 }
 0xbd6   :  { %v5728_v35 = vadd.f32 %v5693_v10, %v13844_v29 }
 0xbd7   :  { %12997 = vtanh.f32 %v5697_v47  ;;  %v5706_v40 = vadd.f32 %v5704_v43, %v13841_v24  ;;  %v5714_v16 = vadd.f32 %v5712_v18, %v13841_v24 }
 0xbd8   :  { %v5498_v23 = vpop.f32.mrb[66].mxu1 }
 0xbd9   :  { %12999 = vtanh.f32 %v5706_v40  ;;  %v5502_v3 = vadd.f32 %v5498_v23, %v5429_v56  ;;  %v11341_v27 = vpop.f32.mrb[67].mxu1 }
 0xbda   :  { %13001 = vtanh.f32 %v5714_v16  ;;  %v5720_v16 = vrot.slane %v5693_v10, 2 }
 0xbdb   :  { %13003 = vtanh.f32 %v5728_v35 }
 0xbdc   :  { %v5722_v40 = vadd.f32 %v5720_v16, %v13841_v24 }
 0xbde   :  { %13005 = vtanh.f32 %v5722_v40 }
 0xbe1   :  { %v12998_v13 = vpop.eup %12997 }
 0xbe2   :  { %v5699_v49 = vmul.f32 %v12998_v13, %v13852_v38 }
 0xbe3   :  { %v13000_v14 = vpop.eup %12999 }
 0xbe4   :  { %v5700_v22 = vsel %vm4186_vm8, %v5699_v49, 0.0  ;;  %v5708_v59 = vmul.f32 %v13000_v14, %v13852_v38  ;;  %v13002_v47 = vpop.eup %13001  ;;  %v5734_v14 = vadd.f32 %v5704_v43, %v13844_v29  ;;  %v14306_v49 = vld [vmem:[%s13353_s4] ss:$0 sm:$0xff] }
 0xbe5   :  { %5701 = vadd.xlane.f32.xlu1 %v5700_v22  ;;  %v5716_v23 = vmul.f32 %v13002_v47, %v13852_v38  ;;  %v13004_v27 = vpop.eup %13003  ;;  %15137 = vst [vmem:[#allocation55_spill] sm:$0xff] %v14306_v49 }
 0xbe6   :  { %v5709_v18 = vsel %vm4196_vm6, %v5708_v59, 0.0  ;;  %v5730_v56 = vmul.f32 %v13004_v27, %v13852_v38  ;;  %13007 = vtanh.f32 %v5734_v14 }
 0xbe7   :  { %v5717_v35 = vsel %vm4205_vm7, %v5716_v23, 0.0 }
 0xbe8   :  { %v5731_v13 = vsel %vm4186_vm8, %v5730_v56, 0.0  ;;  %v13006_v47 = vpop.eup %13005 }
 0xbe9   :  { %5710 = vadd.xlane.f32.xlu1 %v5709_v18  ;;  %v5724_v43 = vmul.f32 %v13006_v47, %v13852_v38 }
 0xbed   :  { %5718 = vadd.xlane.f32.xlu1 %v5717_v35  ;;  %v5725_v35 = vsel %vm4214_vm9, %v5724_v43, 0.0 }
 0xbf0   :  { %v13008_v16 = vpop.eup %13007 }
 0xbf1   :  { %5732 = vadd.xlane.f32.xlu1 %v5731_v13 }
 0xbf8   :  { %v5569_v22 = vpop.f32.mrb[68].mxu1 }
 0xbf9   :  { %v5573_v59 = vadd.f32 %v5569_v22, %v5502_v3  ;;  %v11376_v10 = vpop.f32.mrb[69].mxu1  ;;  %v5736_v3 = vmul.f32 %v13008_v16, %v13852_v38 }
 0xbfb   :  { %v5580_v18 = vadd.f32 %v14306_v49, %v5573_v59  ;;  %v5737_v56 = vsel %vm4196_vm6, %v5736_v3, 0.0 }
 0xbfd   :  { %5582 = vst [vmem:[#allocation7 + $0x2] sm:$0x3] %v5580_v18  ;;  %v5584_v23 = vsel %vm5583_vm0, %v5580_v18, -1e+30 }
 0xbfe   :  { %v5585_v27 = vsel %vm3791_vm3, %v5584_v23, -inf }
 0xbff   :  { %5586 = vmax.xlane.f32.xlu0 %v5585_v27 }
 0xc03   :  { %5726 = vadd.xlane.f32.xlu0 %v5725_v35 }
 0xc07   :  { %5738 = vadd.xlane.f32.xlu0 %v5737_v56 }
 0xc72   :  { %v5702_v40 = vpop.xlane.xlu1 %5701 }
 0xc76   :  { %v5711_v13 = vpop.xlane.xlu1 %5710 }
 0xc77   :  { %v5741_v22 = vrot.slane %v5711_v13, 2 }
 0xc79   :  { %v5743_v47 = vmax.f32 %v5702_v40, %v5741_v22 }
 0xc7a   :  { %v5719_v14 = vpop.xlane.xlu1 %5718 }
 0xc7b   :  { %v5745_v10 = vrot.slane %v5719_v14, 4 }
 0xc7d   :  { %v5747_v43 = vmax.f32 %v5743_v47, %v5745_v10 }
 0xc7e   :  { %v5733_v29 = vpop.xlane.xlu1 %5732 }
 0xc8c   :  { %v5587_v59 = vpop.xlane.xlu0 %5586 }
 0xc8d   :  { %vm5588_vm4 = vcmp.eq.f32.partialorder %v5584_v23, %v5587_v59 }
 0xc8e   :  { %vm5589_vm5 = vmand %vm5588_vm4, %vm5583_vm0 }
 0xc8f   :  { %v5590_v18 = vsel %vm5589_vm5, %v13976_v60, 128 }
 0xc90   :  { %v5727_v27 = vpop.xlane.xlu0 %5726  ;;  %v14321_v38 = vsel %vm3791_vm3, %v5590_v18, 2147483647 }
 0xc91   :  { %v5749_v16 = vrot.slane %v5727_v27, 6  ;;  %v5593_v35 = vshra.s32 %v14321_v38, 16 }
 0xc93   :  { %v5751_v3 = vmax.f32 %v5747_v43, %v5749_v16  ;;  %v14324_v56 = vcvt.s32.f32 %v5593_v35 }
 0xc94   :  { %v5739_v49 = vpop.xlane.xlu0 %5738 }
 0xc95   :  { %v5752_v23 = vmax.f32 %v5751_v3, %v5733_v29  ;;  %v5754_v59 = vrot.slane %v5739_v49, 2  ;;  %5596 = vmin.xlane.f32.xlu1 %v14324_v56 }
 0xc97   :  { %v5756_v22 = vmax.f32 %v5752_v23, %v5754_v59 }
 0xc99   :  { %v5761_v24 = vrot.slane %v5756_v22, 6  ;;  %v5766_v15 = vrot.slane %v5756_v22, 4  ;;  %v5771_v5 = vrot.slane %v5756_v22, 2  ;;  %v5757_v55 = vsub.f32 %v5702_v40, %v5756_v22 }
 0xc9a   :  { %v5776_v35 = vsub.f32 %v5733_v29, %v5756_v22 }
 0xc9b   :  { %v5763_v18 = vsub.f32 %v5711_v13, %v5761_v24  ;;  %v5768_v21 = vsub.f32 %v5719_v14, %v5766_v15  ;;  %v5773_v10 = vsub.f32 %v5727_v27, %v5771_v5  ;;  %v5758_v47 = vmul.f32 1.442695, %v5757_v55 }
 0xc9c   :  { %v5779_v16 = vsub.f32 %v5739_v49, %v5761_v24  ;;  %v5777_v9 = vmul.f32 1.442695, %v5776_v35 }
 0xc9d   :  { %v5764_v58 = vmul.f32 1.442695, %v5763_v18  ;;  %v5769_v8 = vmul.f32 1.442695, %v5768_v21  ;;  %v5774_v43 = vmul.f32 1.442695, %v5773_v10  ;;  %13009 = vpow2.f32 %v5758_v47 }
 0xc9e   :  { %v5780_v3 = vmul.f32 1.442695, %v5779_v16 }
 0xc9f   :  { %13011 = vpow2.f32 %v5764_v58 }
 0xca0   :  { %13013 = vpow2.f32 %v5769_v8 }
 0xca1   :  { %13015 = vpow2.f32 %v5774_v43 }
 0xca2   :  { %13017 = vpow2.f32 %v5780_v3 }
 0xca3   :  { %13019 = vpow2.f32 %v5777_v9 }
 0xca7   :  { %v13010_v23 = vpop.eup %13009 }
 0xca9   :  { %v13012_v59 = vpop.eup %13011 }
 0xcaa   :  { %v13014_v40 = vpop.eup %13013  ;;  %v5783_v13 = vrot.slane %v13012_v59, 2 }
 0xcab   :  { %v13016_v15 = vpop.eup %13015  ;;  %v5787_v55 = vrot.slane %v13014_v40, 4 }
 0xcac   :  { %v5785_v5 = vadd.f32 %v13010_v23, %v5783_v13  ;;  %v5791_v14 = vrot.slane %v13016_v15, 6  ;;  %v13018_v27 = vpop.eup %13017 }
 0xcad   :  { %v13020_v49 = vpop.eup %13019  ;;  %v5796_v58 = vrot.slane %v13018_v27, 2 }
 0xcae   :  { %v5789_v21 = vadd.f32 %v5787_v55, %v5785_v5  ;;  %v5592_v5 = vand.u32 65535, %v14321_v38 }
 0xcb0   :  { %v5793_v24 = vadd.f32 %v5791_v14, %v5789_v21  ;;  %v5594_v14 = vcvt.s32.f32 %v5592_v5 }
 0xcb2   :  { %v5794_v29 = vadd.f32 %v13020_v49, %v5793_v24 }
 0xcb4   :  { %v5798_v8 = vadd.f32 %v5796_v58, %v5794_v29 }
 0xcb6   :  { %13021 = vrcp.f32 %v5798_v8 }
 0xcc0   :  { %v13022_v22 = vpop.eup %13021 }
 0xcc1   :  { %v5801_v18 = vmul.f32 %v13022_v22, %v13010_v23  ;;  %v5810_v10 = vrot.slane %v13022_v22, 6  ;;  %v5828_v9 = vrot.slane %v13022_v22, 4  ;;  %v5846_v43 = vrot.slane %v13022_v22, 2 }
 0xcc2   :  { %v5864_v3 = vmul.f32 %v13022_v22, %v13020_v49 }
 0xcc3   :  { %5804 = vperm.xlu1 %12838, %v5801_v18   ;;  %v5812_v47 = vmul.f32 %v13012_v59, %v5810_v10  ;;  %v5830_v16 = vmul.f32 %v13014_v40, %v5828_v9  ;;  %v5848_v35 = vmul.f32 %v13016_v15, %v5846_v43  ;;  %v5874_v13 = vmul.f32 %v13018_v27, %v5810_v10 }
 0xcc5   :  { %5815 = vperm.xlu0 %12837, %v5812_v47  }
 0xcc7   :  { %5833 = vperm.xlu1 %12838, %v5830_v16  }
 0xcc9   :  { %5851 = vperm.xlu0 %12837, %v5848_v35  }
 0xccb   :  { %5867 = vperm.xlu1 %12838, %v5864_v3  }
 0xccd   :  { %5877 = vperm.xlu0 %12837, %v5874_v13  }
 0xd22   :  { %v14328_v55 = vpop.xlane.xlu1 %5596 }
 0xd23   :  { %vm5598_vm11 = vcmp.eq.f32.partialorder %v14324_v56, %v14328_v55 }
 0xd24   :  { %v5599_v23 = vsel %vm5598_vm11, %v5594_v14, inf }
 0xd25   :  { %5600 = vmin.xlane.f32.xlu1 %v5599_v23 }
 0xd42   :  { %v5805_v59 = vpop.permute.xlu1 %5804 }
 0xd43   :  { %v5807_v24 = vmul.f32 %v5805_v59, %v13514_v4  ;;  %v5808_v27 = vmul.f32 %v5805_v59, %v13799_v0 }
 0xd44   :  { %v5816_v21 = vpop.permute.xlu0 %5815 }
 0xd45   :  { %v5818_v40 = vmul.f32 %v5816_v21, %v13569_v39  ;;  %v5823_v15 = vmul.f32 %v5816_v21, %v13748_v28 }
 0xd46   :  { %v5834_v49 = vpop.permute.xlu1 %5833 }
 0xd47   :  { %v5820_v38 = vrot.slane %v5818_v40, 2  ;;  %v5825_v58 = vrot.slane %v5823_v15, 2  ;;  %v5836_v29 = vmul.f32 %v5834_v49, %v13621_v7  ;;  %v5841_v8 = vmul.f32 %v5834_v49, %v13696_v2 }
 0xd48   :  { %v5852_v56 = vpop.permute.xlu0 %5851  ;;  %v5612_v49 = vstv %s10213_s12 }
 0xd49   :  { %v5822_v22 = vadd.f32 %v5820_v38, %v5807_v24  ;;  %v5827_v18 = vadd.f32 %v5825_v58, %v5808_v27  ;;  %v5838_v10 = vrot.slane %v5836_v29, 4  ;;  %v5843_v9 = vrot.slane %v5841_v8, 4 }
 0xd4a   :  { %v5854_v47 = vmul.f32 %v5852_v56, %v13671_v57  ;;  %v5859_v43 = vmul.f32 %v5852_v56, %v13641_v25  ;;  %v14340_v3 = vpop.permute.xlu1 %5867  ;;  %vm5613_vm13 = vcmp.eq.s32.totalorder %v13976_v60, %v5612_v49  ;;  %v5617_v38 = vstv %s10214_s20  ;;  %v15143_v49 = vld [vmem:[#allocation33_spill] sm:$0xff] }
 0xd4b   :  { %v5840_v16 = vadd.f32 %v5838_v10, %v5822_v22  ;;  %v5845_v35 = vadd.f32 %v5843_v9, %v5827_v18  ;;  %v5870_v40 = vmul.f32 %v14340_v3, %v13726_v20  ;;  %vm5614_vm14 = vmand %vm4092_vm10, %vm5613_vm13  ;;  %vm5618_vm15 = vcmp.eq.s32.totalorder %v13976_v60, %v5617_v38  ;;  %v15144_v38 = vld [vmem:[#allocation41_spill] sm:$0xff] }
 0xd4c   :  { %v5856_v13 = vrot.slane %v5854_v47, 6  ;;  %v5861_v5 = vrot.slane %v5859_v43, 6  ;;  %v14342_v14 = vpop.permute.xlu0 %5877  ;;  %v5603_v58 = vcvt.f32.s32 %v14328_v55  ;;  %v5615_v29 = vsel %vm5614_vm14, 1.0, %v15127_v46  ;;  %vm5619_vm4 = vmand %vm4098_vm12, %vm5618_vm15 }
 0xd4d   :  { %v5880_v23 = vmul.f32 %v14342_v14, %v13789_v45  ;;  %v5620_v18 = vsel %vm5619_vm4, 1.0, %v5615_v29  ;;  %v5621_v10 = vstv %s5610_s1  ;;  %v5624_v47 = vstv %s5623_s2  ;;  %v15146_v29 = vld [vmem:[#allocation37_spill] sm:$0xff] }
 0xd4e   :  { %v5858_v59 = vadd.f32 %v5856_v13, %v5840_v16  ;;  %v14346_v21 = vadd.f32 %v5861_v5, %v5845_v35  ;;  %v5604_v56 = vshll.u32 %v5603_v58, 16  ;;  %v5622_v43 = vmul.f32 %v5621_v10, %v5620_v18  ;;  %v15145_v58 = vld [vmem:[#allocation35_spill] sm:$0xff]  ;;  %v15151_v18 = vld [vmem:[#allocation48_spill] sm:$0xff]  ;;  %v15152_v10 = vld [vmem:[#allocation49_spill] sm:$0xff] }
 0xd4f   :  { %v5882_v15 = vrot.slane %v5880_v23, 2  ;;  %v5885_v55 = vmul.f32 %v14342_v14, %v13534_v12  ;;  %v5872_v5 = vmul.f32 %v14340_v3, %v13589_v52  ;;  %v15138_v14 = vld [vmem:[#allocation32_spill] sm:$0xff] }
 0xd50   :  { %v5871_v24 = vadd.f32 %v5870_v40, %v5858_v59  ;;  %v15140_v40 = vld [vmem:[#allocation34_spill] sm:$0xff] }
 0xd51   :  { %v5873_v23 = vadd.f32 %v5872_v5, %v14346_v21  ;;  %v5887_v59 = vrot.slane %v5885_v55, 2  ;;  %v15139_v21 = vld [vmem:[#allocation29_spill] sm:$0xff]  ;;  %v15158_v55 = vld [vmem:[#allocation28_spill] sm:$0xff] }
 0xd52   :  { %v14350_v27 = vadd.f32 %v5882_v15, %v5871_v24  ;;  %v15141_v15 = vld [vmem:[#allocation31_spill] sm:$0xff]  ;;  %v15142_v24 = vld [vmem:[#allocation36_spill] sm:$0xff] }
 0xd53   :  { %v14419_v3 = vadd.f32 %v5887_v59, %v5873_v23  ;;  %v15159_v59 = vld [vmem:[#allocation42_spill] sm:$0xff] }
 0xd54   :  { %11389 = vmatmul.mubr.msk.f32.vlgmr.msra.gmra.mrb[44].mxu0 %vm699_vm2, %v14350_v27  ;;  %11445 = vmatmul.mubr.msk.f32.vlgmr.msra.gmra.mrb[70].mxu1 %vm699_vm2, %v14350_v27 }
 0xd55   :  { %12335 = vmatpush3.bf16.msra.mxu0 %v13906_v53  ;;  %12368 = vmatpush3.bf16.msra.mxu1 %v13908_v1 }
 0xd56   :  { %12336 = vmatprep.subr.bf16.mxu0 %v15129_v6  ;;  %12369 = vmatprep.subr.bf16.mxu1 %v15129_v6 }
 0xd57   :  { %11423 = vmatprep.mubr.msk.f32.mxu0 %vm13195_vm1, %v15127_v46  ;;  %11479 = vmatprep.mubr.msk.f32.mxu1 %vm13195_vm1, %v15127_v46 }
 0xd59   :  { %12338 = vmatpush3.bf16.msra.mxu0 %v13922_v51  ;;  %12371 = vmatpush3.bf16.msra.mxu1 %v13924_v62 }
 0xd5a   :  { %12339 = vmatprep.subr.bf16.mxu0 %v15129_v6  ;;  %12372 = vmatprep.subr.bf16.mxu1 %v15129_v6 }
 0xd5d   :  { %12341 = vmatpush3.bf16.msra.mxu0 %v13938_v30  ;;  %12374 = vmatpush3.bf16.msra.mxu1 %v13940_v11 }
 0xd5e   :  { %12342 = vmatprep.subr.bf16.mxu0 %v15129_v6  ;;  %12375 = vmatprep.subr.bf16.mxu1 %v15129_v6 }
 0xd61   :  { %12344 = vmatpush3.bf16.msra.mxu0 %v13950_v26  ;;  %12377 = vmatpush3.bf16.msra.mxu1 %v13952_v31 }
 0xd62   :  { %12345 = vmatprep.subr.bf16.mxu0 %v15129_v6  ;;  %12378 = vmatprep.subr.bf16.mxu1 %v15129_v6 }
 0xd65   :  { %12347 = vmatpush3.bf16.msra.mxu0 %v13966_v37  ;;  %12380 = vmatpush3.bf16.msra.mxu1 %v13968_v42 }
 0xd66   :  { %12348 = vmatprep.subr.bf16.mxu0 %v15129_v6  ;;  %12381 = vmatprep.subr.bf16.mxu1 %v15129_v6 }
 0xd69   :  { %12350 = vmatpush3.bf16.msra.mxu0 %v13982_v61  ;;  %12383 = vmatpush3.bf16.msra.mxu1 %v13984_v63 }
 0xd6a   :  { %12351 = vmatprep.subr.bf16.mxu0 %v15129_v6  ;;  %12384 = vmatprep.subr.bf16.mxu1 %v15129_v6 }
 0xd6d   :  { %12353 = vmatpush3.bf16.msra.mxu0 %v14006_v19  ;;  %12386 = vmatpush3.bf16.msra.mxu1 %v14008_v17 }
 0xd6e   :  { %12354 = vmatprep.subr.bf16.mxu0 %v15129_v6  ;;  %12387 = vmatprep.subr.bf16.mxu1 %v15129_v6 }
 0xd71   :  { %12356 = vmatpush3.bf16.msra.mxu0 %v14028_v33  ;;  %12389 = vmatpush3.bf16.msra.mxu1 %v14030_v36 }
 0xd72   :  { %12357 = vmatprep.subr.bf16.mxu0 %v15129_v6  ;;  %12390 = vmatprep.subr.bf16.mxu1 %v15129_v6 }
 0xdb2   :  { %v5601_v8 = vpop.xlane.xlu1 %5600 }
 0xdb3   :  { %v5602_v22 = vcvt.f32.s32 %v5601_v8  ;;  %v15148_v8 = vld [vmem:[#allocation39_spill] sm:$0xff] }
 0xdb5   :  { %v5605_v9 = vadd.s32 %v5604_v56, %v5602_v22  ;;  %v15149_v56 = vld [vmem:[#allocation40_spill] sm:$0xff]  ;;  %v15150_v22 = vld [vmem:[#allocation47_spill] sm:$0xff] }
 0xdb7   :  { %vm5606_vm5 = vcmp.eq.s32.totalorder %v13976_v60, %v5605_v9  ;;  %v15153_v9 = vld [vmem:[#allocation50_spill] sm:$0xff] }
 0xdb8   :  { %v10211_v16 = vsel %vm5606_vm5, 1.0, %v15127_v46 }
 0xdb9   :  { %v5625_v35 = vmul.f32 %v10211_v16, %v5624_v47  ;;  %v15154_v47 = vld [vmem:[#allocation51_spill] sm:$0xff]  ;;  %v15156_v16 = vld [vmem:[#allocation53_spill] sm:$0xff] }
 0xdbb   :  { %v14404_v13 = vadd.f32 %v5625_v35, %v5622_v43  ;;  %v15155_v43 = vld [vmem:[#allocation52_spill] sm:$0xff]  ;;  %v15157_v35 = vld [vmem:[#allocation54_spill] sm:$0xff] }
 0xdbd   :  { %11424 = vmatmul.mubr.f32.vlgmr.msra.gmra.mrb[44].mxu0 %v14404_v13  ;;  %11480 = vmatmul.mubr.f32.vlgmr.msra.gmra.mrb[70].mxu1 %v14404_v13 }
 0xdbe   :  { %12359 = vmatpush3.bf16.msra.mxu0 %v14047_v54  ;;  %12392 = vmatpush3.bf16.msra.mxu1 %v14045_v50 }
 0xdbf   :  { %11430 = vmatprep.mubr.msk.f32.mxu0 %vm13195_vm1, %v15127_v46  ;;  %11486 = vmatprep.mubr.msk.f32.mxu1 %vm13195_vm1, %v15127_v46 }
 0xdc0   :  { %12360 = vmatprep.subr.bf16.mxu0 %v15129_v6  ;;  %12393 = vmatprep.subr.bf16.mxu1 %v15129_v6 }
 0xdc5   :  { %11431 = vmatmul.mubr.msk.f32.vlgmr.msra.gmra.mrb[44].mxu0 %vm699_vm2, %v14419_v3  ;;  %11487 = vmatmul.mubr.msk.f32.vlgmr.msra.gmra.mrb[70].mxu1 %vm699_vm2, %v14419_v3 }
 0xdc6   :  { %12362 = vmatpush3.bf16.msra.mxu0 %v14071_v41  ;;  %12395 = vmatpush3.bf16.msra.mxu1 %v14069_v32 }
 0xdc7   :  { %11437 = vmatprep.mubr.msk.f32.mxu0 %vm13195_vm1, %v15127_v46  ;;  %11493 = vmatprep.mubr.msk.f32.mxu1 %vm13195_vm1, %v15127_v46 }
 0xdc8   :  { %12396 = vmatprep.subr.bf16.mxu0 %v15129_v6  ;;  %12423 = vmatprep.subr.bf16.mxu1 %v15129_v6 }
 0xdcd   :  { %11438 = vmatmul.mubr.msk.f32.vlgmr.msra.gmra.mrb[44].mxu0 %vm699_vm2, %v14219_v34  ;;  %11494 = vmatmul.mubr.msk.f32.vlgmr.msra.gmra.mrb[70].mxu1 %vm699_vm2, %v14219_v34 }
 0xdce   :  { %12398 = vmatpush3.bf16.msra.mxu0 %v14093_v44  ;;  %12425 = vmatpush3.bf16.msra.mxu1 %v15138_v14 }
 0xdcf   :  { %11500 = vmatprep.mubr.msk.f32.mxu0 %vm13195_vm1, %v15127_v46  ;;  %12399 = vmatprep.subr.bf16.mxu0 %v15129_v6 }
 0xdd0   :  { %11542 = vmatprep.mubr.msk.f32.mxu1 %vm13195_vm1, %v15127_v46  ;;  %12426 = vmatprep.subr.bf16.mxu1 %v15129_v6 }
 0xdd1   :  { %11501 = vmatmul.mubr.msk.f32.vlgmr.msra.gmra.mrb[46].mxu0 %vm699_vm2, %v14350_v27  ;;  %11543 = vmatmul.mubr.msk.f32.vlgmr.msra.gmra.mrb[72].mxu1 %vm699_vm2, %v14419_v3 }
 0xdd2   :  { %12401 = vmatpush3.bf16.msra.mxu0 %v15139_v21  ;;  %12428 = vmatpush3.bf16.msra.mxu1 %v15140_v40 }
 0xdd3   :  { %12402 = vmatprep.subr.bf16.mxu0 %v15129_v6  ;;  %11549 = vmatprep.mubr.msk.f32.mxu1 %vm13195_vm1, %v15127_v46 }
 0xdd4   :  { %12429 = vmatprep.subr.bf16.mxu1 %v15129_v6  ;;  %11535 = vmatprep.mubr.msk.f32.mxu0 %vm13195_vm1, %v15127_v46 }
 0xdd5   :  { %11550 = vmatmul.mubr.msk.f32.vlgmr.msra.gmra.mrb[74].mxu1 %vm699_vm2, %v14219_v34 }
 0xdd6   :  { %12404 = vmatpush3.bf16.msra.mxu0 %v15141_v15  ;;  %12431 = vmatpush3.bf16.msra.mxu1 %v15142_v24 }
 0xdd7   :  { %12405 = vmatprep.subr.bf16.mxu0 %v15129_v6  ;;  %11556 = vmatprep.mubr.msk.f32.mxu1 %vm13195_vm1, %v15127_v46 }
 0xdd8   :  { %12432 = vmatprep.subr.bf16.mxu1 %v15129_v6 }
 0xdd9   :  { %11557 = vmatmul.mubr.msk.f32.vlgmr.msra.gmra.mrb[76].mxu1 %vm699_vm2, %v14350_v27  ;;  %v15147_v27 = vld [vmem:[#allocation38_spill] sm:$0xff] }
 0xdda   :  { %12407 = vmatpush3.bf16.msra.mxu0 %v15143_v49  ;;  %12434 = vmatpush3.bf16.msra.mxu1 %v15144_v38 }
 0xddb   :  { %12408 = vmatprep.subr.bf16.mxu0 %v15129_v6  ;;  %11563 = vmatprep.mubr.msk.f32.mxu1 %vm13195_vm1, %v15127_v46 }
 0xddc   :  { %12435 = vmatprep.subr.bf16.mxu1 %v15129_v6 }
 0xdde   :  { %12410 = vmatpush3.bf16.msra.mxu0 %v15145_v58 }
 0xddf   :  { %12411 = vmatprep.subr.bf16.mxu0 %v15129_v6 }
 0xde2   :  { %12413 = vmatpush3.bf16.msra.mxu0 %v15146_v29  ;;  %v15160_v29 = vld [vmem:[#allocation43_spill] sm:$0xff] }
 0xde3   :  { %12414 = vmatprep.subr.bf16.mxu0 %v15129_v6 }
 0xde6   :  { %12416 = vmatpush3.bf16.msra.mxu0 %v15147_v27 }
 0xde7   :  { %12417 = vmatprep.subr.bf16.mxu0 %v15129_v6 }
 0xdea   :  { %12419 = vmatpush3.bf16.msra.mxu0 %v15148_v8 }
 0xdeb   :  { %12420 = vmatprep.subr.bf16.mxu0 %v15129_v6 }
 0xdee   :  { %12422 = vmatpush3.bf16.msra.mxu0 %v15149_v56 }
 0xdef   :  { %12438 = vmatprep.subr.bf16.mxu0 %v15129_v6 }
 0xdf1   :  { %11536 = vmatmul.mubr.f32.vlgmr.msra.gmra.mrb[48].mxu0 %v14404_v13 }
 0xdf2   :  { %12440 = vmatpush3.bf16.msra.mxu0 %v15150_v22  ;;  %11605 = vmatprep.mubr.msk.f32.mxu0 %vm13195_vm1, %v15127_v46 }
 0xdf3   :  { %12441 = vmatprep.subr.bf16.mxu0 %v15129_v6 }
 0xdf6   :  { %12443 = vmatpush3.bf16.msra.mxu0 %v15151_v18 }
 0xdf7   :  { %12444 = vmatprep.subr.bf16.mxu0 %v15129_v6 }
 0xdfa   :  { %12446 = vmatpush3.bf16.msra.mxu0 %v15152_v10 }
 0xdfb   :  { %12447 = vmatprep.subr.bf16.mxu0 %v15129_v6 }
 0xdfe   :  { %12449 = vmatpush3.bf16.msra.mxu0 %v15153_v9 }
 0xdff   :  { %12450 = vmatprep.subr.bf16.mxu0 %v15129_v6 }
 0xe02   :  { %12452 = vmatpush3.bf16.msra.mxu0 %v15154_v47 }
 0xe03   :  { %12453 = vmatprep.subr.bf16.mxu0 %v15129_v6 }
 0xe06   :  { %12455 = vmatpush3.bf16.msra.mxu0 %v15155_v43 }
 0xe07   :  { %12456 = vmatprep.subr.bf16.mxu0 %v15129_v6 }
 0xe0a   :  { %12458 = vmatpush3.bf16.msra.mxu0 %v15156_v16 }
 0xe0b   :  { %12459 = vmatprep.subr.bf16.mxu0 %v15129_v6 }
 0xe0e   :  { %12461 = vmatpush3.bf16.msra.mxu0 %v15157_v35 }
 0xe0f   :  { %12498 = vmatprep.subr.bf16.mxu0 %v15129_v6 }
 0xe11   :  { %11606 = vmatmul.mubr.f32.vlgmr.msra.gmra.mrb[50].mxu0 %v14404_v13 }
 0xe12   :  { %12500 = vmatpush3.bf16.msra.mxu0 %v15158_v55  ;;  %11675 = vmatprep.mubr.msk.f32.mxu0 %vm13195_vm1, %v15127_v46 }
 0xe13   :  { %12501 = vmatprep.subr.bf16.mxu0 %v15129_v6 }
 0xea0   :  { %v6174_v5 = vpop.f32.mrb[44].mxu0  ;;  %v6463_v23 = vpop.f32.mrb[70].mxu1 }
 0xea1   :  { %v12737_v43 = vadd.f32 %v15159_v59, %v6174_v5  ;;  %v11439_v16 = vpop.f32.mrb[45].mxu0  ;;  %v11495_v47 = vpop.f32.mrb[71].mxu1  ;;  %v12739_v58 = vadd.f32 %v15160_v29, %v6463_v23  ;;  %v15161_v5 = vld [vmem:[#allocation44_spill] sm:$0xff] }
 0xea3   :  { %v10219_v9 = vmul.f32 -1.442695, %v12737_v43  ;;  %v10223_v49 = vmul.f32 -1.442695, %v12739_v58 }
 0xea4   :  { %v6540_v10 = vpop.f32.mrb[46].mxu0  ;;  %v6680_v35 = vpop.f32.mrb[72].mxu1 }
 0xea5   :  { %13023 = vpow2.f32 %v10219_v9  ;;  %v11502_v18 = vpop.f32.mrb[47].mxu0  ;;  %v11544_v22 = vpop.f32.mrb[73].mxu1 }
 0xea8   :  { %v6752_v13 = vpop.f32.mrb[74].mxu1 }
 0xea9   :  { %v11551_v38 = vpop.f32.mrb[75].mxu1  ;;  %v6753_v16 = vadd.f32 %v15161_v5, %v6752_v13 }
 0xeaa   :  { %v15162_v38 = vld [vmem:[#allocation45_spill] sm:$0xff] }
 0xeac   :  { %v6829_v55 = vpop.f32.mrb[76].mxu1 }
 0xead   :  { %v11558_v56 = vpop.f32.mrb[77].mxu1 }
 0xeaf   :  { %v13024_v8 = vpop.eup %13023 }
 0xeb0   :  { %v6182_v27 = vadd.f32 1.0, %v13024_v8 }
 0xeb2   :  { %13025 = vrcp.f32 %v6182_v27 }
 0xeb3   :  { %13027 = vpow2.f32 %v10223_v49 }
 0xebc   :  { %v13026_v47 = vpop.eup %13025 }
 0xebd   :  { %v6756_v43 = vmul.f32 %v13026_v47, %v6753_v16  ;;  %v13028_v59 = vpop.eup %13027 }
 0xebe   :  { %v6471_v9 = vadd.f32 1.0, %v13028_v59  ;;  %v15164_v59 = vld [vmem:[#allocation46_spill] sm:$0xff] }
 0xec0   :  { %13029 = vrcp.f32 %v6471_v9 }
 0xec4   :  { %v6610_v24 = vpop.f32.mrb[48].mxu0 }
 0xec5   :  { %v6611_v18 = vadd.f32 %v6610_v24, %v6540_v10  ;;  %v11537_v22 = vpop.f32.mrb[49].mxu0  ;;  %v15166_v24 = vld [vmem:[#allocation27_spill] sm:$0xff] }
 0xec7   :  { %v6684_v15 = vadd.f32 %v6680_v35, %v6611_v18  ;;  %v15167_v18 = vld [vmem:[#allocation25_spill] sm:$0xff] }
 0xec9   :  { %v6685_v56 = vadd.f32 %v15162_v38, %v6684_v15 }
 0xeca   :  { %v13030_v8 = vpop.eup %13029 }
 0xecb   :  { %v6757_v40 = vadd.f32 %v6756_v43, %v6685_v56  ;;  %v6759_v23 = vsub.f32 1.0, %v13030_v8  ;;  %v6761_v49 = vmul.f32 %v13030_v8, %v14219_v34 }
 0xecd   :  { %13031 = vtanh.f32 %v6757_v40  ;;  %v15165_v40 = vld [vmem:[#allocation24_spill] sm:$0xff] }
 0xed7   :  { %v13032_v27 = vpop.eup %13031 }
 0xed8   :  { %v6760_v58 = vmul.f32 %v13032_v27, %v6759_v23  ;;  %v15168_v27 = vld [vmem:[#allocation55_spill] sm:$0xff] }
 0xeda   :  { %v14512_v13 = vadd.f32 %v6761_v49, %v6760_v58 }
 0xedc   :  { %15163 = vst [vmem:[#allocation44_spill] sm:$0xff] %v14512_v13  ;;  %11564 = vmatmul.mubr.msk.f32.vlgmr.msra.gmra.mrb[78].mxu1 %vm699_vm2, %v14512_v13 }
 0xedd   :  { %12437 = vmatpush3.bf16.msra.mxu1 %v15164_v59  ;;  %11570 = vmatprep.mubr.msk.f32.mxu1 %vm13195_vm1, %v15127_v46 }
 0xede   :  { %12462 = vmatprep.subr.bf16.mxu1 %v15129_v6 }
 0xee0   :  { %11571 = vmatmul.mubr.msk.f32.vlgmr.msra.gmra.mrb[80].mxu1 %vm699_vm2, %v14419_v3 }
 0xee1   :  { %12464 = vmatpush3.bf16.msra.mxu1 %v15165_v40  ;;  %11612 = vmatprep.mubr.msk.f32.mxu1 %vm13195_vm1, %v15127_v46 }
 0xee2   :  { %12465 = vmatprep.subr.bf16.mxu1 %v15129_v6 }
 0xee4   :  { %v7043_v34 = vpop.f32.mrb[50].mxu0  ;;  %11613 = vmatmul.mubr.msk.f32.vlgmr.msra.gmra.mrb[82].mxu1 %vm699_vm2, %v14512_v13 }
 0xee5   :  { %v11607_v15 = vpop.f32.mrb[51].mxu0  ;;  %12467 = vmatpush3.bf16.msra.mxu1 %v15166_v24  ;;  %11619 = vmatprep.mubr.msk.f32.mxu1 %vm13195_vm1, %v15127_v46 }
 0xee6   :  { %12468 = vmatprep.subr.bf16.mxu1 %v15129_v6 }
 0xfaf   :  { %v6902_v3 = vpop.f32.mrb[78].mxu1 }
 0xfb0   :  { %v6903_v10 = vadd.f32 %v6902_v3, %v6829_v55  ;;  %v11565_v35 = vpop.f32.mrb[79].mxu1  ;;  %v15169_v3 = vld [vmem:[#allocation26_spill] sm:$0xff] }
 0xfb3   :  { %v6972_v5 = vpop.f32.mrb[80].mxu1 }
 0xfb4   :  { %v6976_v16 = vadd.f32 %v6972_v5, %v6903_v10  ;;  %v11572_v47 = vpop.f32.mrb[81].mxu1 }
 0xfb5   :  { %v14543_v47 = vld [vmem:[%s15095_s25] ss:$0 sm:$0xff] }
 0xfb6   :  { %v7047_v43 = vadd.f32 %v7043_v34, %v6976_v16  ;;  %15170 = vst [vmem:[#allocation45_spill] sm:$0xff] %v14543_v47 }
 0xfb7   :  { %v7160_v9 = vpop.f32.mrb[82].mxu1 }
 0xfb8   :  { %v7164_v22 = vadd.f32 %v7160_v9, %v15167_v18  ;;  %v7171_v38 = vrot.slane %v7160_v9, 6  ;;  %v7179_v56 = vrot.slane %v7160_v9, 4  ;;  %v7187_v8 = vrot.slane %v7160_v9, 2  ;;  %v11614_v23 = vpop.f32.mrb[83].mxu1 }
 0xfb9   :  { %v7048_v49 = vadd.f32 %v15168_v27, %v7047_v43  ;;  %v7195_v35 = vadd.f32 %v7160_v9, %v15169_v3 }
 0xfba   :  { %13033 = vtanh.f32 %v7164_v22  ;;  %v7173_v58 = vadd.f32 %v7171_v38, %v15167_v18  ;;  %v7181_v55 = vadd.f32 %v7179_v56, %v15167_v18  ;;  %v7189_v15 = vadd.f32 %v7187_v8, %v15167_v18 }
 0xfbb   :  { %v7201_v10 = vadd.f32 %v7171_v38, %v15169_v3  ;;  %v7051_v34 = vsel %vm5583_vm0, %v7048_v49, -1e+30  ;;  %7050 = vst [vmem:[#allocation7 + $0x4] sm:$0x3] %v7048_v49 }
 0xfbc   :  { %13035 = vtanh.f32 %v7173_v58  ;;  %v7052_v5 = vsel %vm3791_vm3, %v7051_v34, -inf }
 0xfbd   :  { %13037 = vtanh.f32 %v7181_v55  ;;  %7053 = vmax.xlane.f32.xlu0 %v7052_v5 }
 0xfbe   :  { %13039 = vtanh.f32 %v7189_v15 }
 0xfbf   :  { %13041 = vtanh.f32 %v7201_v10 }
 0xfc0   :  { %13043 = vtanh.f32 %v7195_v35 }
 0xfc4   :  { %v13034_v16 = vpop.eup %13033 }
 0xfc5   :  { %v7166_v43 = vmul.f32 %v14543_v47, %v13034_v16 }
 0xfc6   :  { %v13036_v22 = vpop.eup %13035 }
 0xfc7   :  { %v13038_v38 = vpop.eup %13037  ;;  %v7167_v56 = vsel %vm4186_vm8, %v7166_v43, 0.0  ;;  %v7175_v8 = vmul.f32 %v14543_v47, %v13036_v22 }
 0xfc8   :  { %v13040_v23 = vpop.eup %13039  ;;  %7168 = vadd.xlane.f32.xlu1 %v7167_v56  ;;  %v7183_v58 = vmul.f32 %v14543_v47, %v13038_v38 }
 0xfc9   :  { %v13042_v9 = vpop.eup %13041  ;;  %v7176_v27 = vsel %vm4196_vm6, %v7175_v8, 0.0  ;;  %v7191_v49 = vmul.f32 %v14543_v47, %v13040_v23 }
 0xfca   :  { %v13044_v55 = vpop.eup %13043  ;;  %7177 = vadd.xlane.f32.xlu0 %v7176_v27  ;;  %v7203_v10 = vmul.f32 %v14543_v47, %v13042_v9  ;;  %v7184_v35 = vsel %vm4205_vm7, %v7183_v58, 0.0 }
 0xfcb   :  { %v7192_v15 = vsel %vm4214_vm9, %v7191_v49, 0.0  ;;  %v7197_v5 = vmul.f32 %v14543_v47, %v13044_v55 }
 0xfcc   :  { %7193 = vadd.xlane.f32.xlu1 %v7192_v15  ;;  %v7204_v16 = vsel %vm4196_vm6, %v7203_v10, 0.0 }
 0xfcd   :  { %v7198_v43 = vsel %vm4186_vm8, %v7197_v5, 0.0 }
 0xfce   :  { %7185 = vadd.xlane.f32.xlu0 %v7184_v35 }
 0xfd0   :  { %7205 = vadd.xlane.f32.xlu1 %v7204_v16 }
 0xfd2   :  { %7199 = vadd.xlane.f32.xlu0 %v7198_v43 }
0x104a   :  { %v7054_v22 = vpop.xlane.xlu0 %7053 }
0x104b   :  { %vm7055_vm11 = vcmp.eq.f32.partialorder %v7051_v34, %v7054_v22 }
0x104c   :  { %vm7056_vm13 = vmand %vm7055_vm11, %vm5583_vm0 }
0x104d   :  { %v7057_v38 = vsel %vm7056_vm13, %v13976_v60, 128 }
0x104e   :  { %v14561_v56 = vsel %vm3791_vm3, %v7057_v38, 2147483647 }
0x104f   :  { %v7060_v8 = vshra.s32 %v14561_v56, 16 }
0x1051   :  { %v14564_v23 = vcvt.s32.f32 %v7060_v8 }
0x1053   :  { %7063 = vmin.xlane.f32.xlu0 %v14564_v23 }
0x1055   :  { %v7169_v9 = vpop.xlane.xlu1 %7168 }
0x1057   :  { %v7178_v27 = vpop.xlane.xlu0 %7177 }
0x1058   :  { %v7208_v49 = vrot.slane %v7178_v27, 2 }
0x1059   :  { %v7194_v58 = vpop.xlane.xlu1 %7193 }
0x105a   :  { %v7210_v34 = vmax.f32 %v7169_v9, %v7208_v49  ;;  %v7216_v10 = vrot.slane %v7194_v58, 6 }
0x105b   :  { %v7186_v55 = vpop.xlane.xlu0 %7185 }
0x105c   :  { %v7212_v15 = vrot.slane %v7186_v55, 4 }
0x105d   :  { %v7206_v5 = vpop.xlane.xlu1 %7205 }
0x105e   :  { %v7214_v35 = vmax.f32 %v7210_v34, %v7212_v15  ;;  %v7221_v22 = vrot.slane %v7206_v5, 2 }
0x105f   :  { %v7200_v43 = vpop.xlane.xlu0 %7199 }
0x1060   :  { %v7218_v16 = vmax.f32 %v7214_v35, %v7216_v10 }
0x1062   :  { %v7219_v38 = vmax.f32 %v7218_v16, %v7200_v43 }
0x1064   :  { %v7223_v47 = vmax.f32 %v7219_v38, %v7221_v22 }
0x1066   :  { %v7224_v3 = vsub.f32 %v7169_v9, %v7223_v47  ;;  %v7228_v8 = vrot.slane %v7223_v47, 6  ;;  %v7233_v18 = vrot.slane %v7223_v47, 4  ;;  %v7238_v24 = vrot.slane %v7223_v47, 2 }
0x1067   :  { %v7243_v34 = vsub.f32 %v7200_v43, %v7223_v47 }
0x1068   :  { %v7225_v29 = vmul.f32 1.442695, %v7224_v3  ;;  %v7230_v40 = vsub.f32 %v7178_v27, %v7228_v8  ;;  %v7235_v59 = vsub.f32 %v7186_v55, %v7233_v18  ;;  %v7240_v21 = vsub.f32 %v7194_v58, %v7238_v24 }
0x1069   :  { %v7246_v13 = vsub.f32 %v7206_v5, %v7228_v8  ;;  %v7244_v10 = vmul.f32 1.442695, %v7243_v34 }
0x106a   :  { %v7231_v14 = vmul.f32 1.442695, %v7230_v40  ;;  %v7236_v44 = vmul.f32 1.442695, %v7235_v59  ;;  %v7241_v49 = vmul.f32 1.442695, %v7240_v21  ;;  %13045 = vpow2.f32 %v7225_v29 }
0x106b   :  { %v7247_v15 = vmul.f32 1.442695, %v7246_v13 }
0x106c   :  { %13047 = vpow2.f32 %v7231_v14 }
0x106d   :  { %13049 = vpow2.f32 %v7236_v44 }
0x106e   :  { %13051 = vpow2.f32 %v7241_v49 }
0x106f   :  { %13053 = vpow2.f32 %v7247_v15 }
0x1070   :  { %13055 = vpow2.f32 %v7244_v10  ;;  %v7059_v10 = vand.u32 65535, %v14561_v56 }
0x1074   :  { %v13046_v9 = vpop.eup %13045 }
0x1076   :  { %v13048_v35 = vpop.eup %13047 }
0x1077   :  { %v13050_v16 = vpop.eup %13049  ;;  %v7250_v3 = vrot.slane %v13048_v35, 2 }
0x1078   :  { %v13052_v27 = vpop.eup %13051  ;;  %v7254_v24 = vrot.slane %v13050_v16, 4 }
0x1079   :  { %v7252_v18 = vadd.f32 %v13046_v9, %v7250_v3  ;;  %v7258_v59 = vrot.slane %v13052_v27, 6  ;;  %v13054_v21 = vpop.eup %13053 }
0x107a   :  { %v13056_v29 = vpop.eup %13055  ;;  %v7263_v47 = vrot.slane %v13054_v21, 2 }
0x107b   :  { %v7256_v40 = vadd.f32 %v7254_v24, %v7252_v18  ;;  %v7061_v18 = vcvt.s32.f32 %v7059_v10 }
0x107d   :  { %v7260_v58 = vadd.f32 %v7258_v59, %v7256_v40 }
0x107f   :  { %v7261_v14 = vadd.f32 %v13056_v29, %v7260_v58 }
0x1081   :  { %v7265_v44 = vadd.f32 %v7263_v47, %v7261_v14 }
0x1083   :  { %13057 = vrcp.f32 %v7265_v44 }
0x108d   :  { %v13058_v13 = vpop.eup %13057 }
0x108e   :  { %v7268_v55 = vmul.f32 %v13058_v13, %v13046_v9  ;;  %v7277_v5 = vrot.slane %v13058_v13, 6  ;;  %v7295_v22 = vrot.slane %v13058_v13, 4  ;;  %v7331_v38 = vmul.f32 %v13058_v13, %v13056_v29 }
0x108f   :  { %v7313_v49 = vrot.slane %v13058_v13, 2 }
0x1090   :  { %7271 = vperm.xlu0 %12837, %v7268_v55   ;;  %v7279_v43 = vmul.f32 %v13048_v35, %v7277_v5  ;;  %v7297_v8 = vmul.f32 %v13050_v16, %v7295_v22  ;;  %v7341_v15 = vmul.f32 %v13054_v21, %v7277_v5 }
0x1091   :  { %v7315_v34 = vmul.f32 %v13052_v27, %v7313_v49 }
0x1092   :  { %7282 = vperm.xlu1 %12838, %v7279_v43  }
0x1094   :  { %7334 = vperm.xlu0 %12837, %v7331_v38  }
0x1096   :  { %7300 = vperm.xlu1 %12838, %v7297_v8  }
0x109a   :  { %7318 = vperm.xlu1 %12838, %v7315_v34  }
0x109e   :  { %7344 = vperm.xlu1 %12838, %v7341_v15  }
0x10e0   :  { %v14568_v3 = vpop.xlane.xlu0 %7063 }
0x10e1   :  { %vm7065_vm14 = vcmp.eq.f32.partialorder %v14564_v23, %v14568_v3 }
0x10e2   :  { %v7066_v9 = vsel %vm7065_vm14, %v7061_v18, inf }
0x10e3   :  { %7067 = vmin.xlane.f32.xlu0 %v7066_v9 }
0x110f   :  { %v7272_v35 = vpop.permute.xlu0 %7271 }
0x1110   :  { %v7275_v27 = vmul.f32 %v7272_v35, %v13799_v0  ;;  %v7274_v23 = vmul.f32 %v7272_v35, %v13514_v4 }
0x1111   :  { %v7283_v24 = vpop.permute.xlu1 %7282 }
0x1112   :  { %v7285_v16 = vmul.f32 %v7283_v24, %v13569_v39  ;;  %v7290_v40 = vmul.f32 %v7283_v24, %v13748_v28 }
0x1113   :  { %v14580_v38 = vpop.permute.xlu0 %7334 }
0x1114   :  { %v7292_v59 = vrot.slane %v7290_v40, 2  ;;  %v7287_v58 = vrot.slane %v7285_v16, 2  ;;  %v7337_v10 = vmul.f32 %v14580_v38, %v13726_v20 }
0x1115   :  { %v7301_v21 = vpop.permute.xlu1 %7300 }
0x1116   :  { %v7294_v56 = vadd.f32 %v7292_v59, %v7275_v27  ;;  %v7303_v29 = vmul.f32 %v7301_v21, %v13621_v7  ;;  %v7308_v14 = vmul.f32 %v7301_v21, %v13696_v2  ;;  %v7289_v55 = vadd.f32 %v7287_v58, %v7274_v23 }
0x1117   :  { %v7079_v27 = vstv %s10232_s7  ;;  %v7084_v59 = vstv %s10233_s10  ;;  %v7070_v21 = vcvt.f32.s32 %v14568_v3 }
0x1118   :  { %v7305_v47 = vrot.slane %v7303_v29, 4  ;;  %v7310_v44 = vrot.slane %v7308_v14, 4  ;;  %vm7080_vm15 = vcmp.eq.s32.totalorder %v13976_v60, %v7079_v27  ;;  %vm7085_vm5 = vcmp.eq.s32.totalorder %v13976_v60, %v7084_v59  ;;  %v15178_v27 = vld [vmem:[#allocation33_spill] sm:$0xff]  ;;  %v15179_v59 = vld [vmem:[#allocation46_spill] sm:$0xff] }
0x1119   :  { %v7319_v13 = vpop.permute.xlu1 %7318  ;;  %vm7081_vm4 = vmand %vm4092_vm10, %vm7080_vm15  ;;  %v7071_v29 = vshll.u32 %v7070_v21, 16  ;;  %v15180_v21 = vld [vmem:[#allocation35_spill] sm:$0xff] }
0x111a   :  { %v7312_v5 = vadd.f32 %v7310_v44, %v7294_v56  ;;  %v7321_v43 = vmul.f32 %v7319_v13, %v13671_v57  ;;  %v7326_v22 = vmul.f32 %v7319_v13, %v13641_v25  ;;  %v7307_v8 = vadd.f32 %v7305_v47, %v7289_v55  ;;  %vm7086_vm11 = vmand %vm4098_vm12, %vm7085_vm5 }
0x111b   :  { %v7082_v58 = vsel %vm7081_vm4, 1.0, %v15127_v46  ;;  %v7088_v47 = vstv %s7077_s15  ;;  %v7091_v13 = vstv %s7090_s16 }
0x111c   :  { %v7323_v49 = vrot.slane %v7321_v43, 6  ;;  %v7328_v34 = vrot.slane %v7326_v22, 6  ;;  %v7087_v23 = vsel %vm7086_vm11, 1.0, %v7082_v58  ;;  %v15181_v58 = vld [vmem:[#allocation24_spill] sm:$0xff] }
0x111d   :  { %v14582_v15 = vpop.permute.xlu1 %7344  ;;  %v7089_v55 = vmul.f32 %v7088_v47, %v7087_v23  ;;  %v15186_v23 = vld [vmem:[#allocation41_spill] sm:$0xff] }
0x111e   :  { %v7325_v18 = vadd.f32 %v7323_v49, %v7307_v8  ;;  %v14586_v9 = vadd.f32 %v7328_v34, %v7312_v5  ;;  %v7347_v35 = vmul.f32 %v14582_v15, %v13789_v45  ;;  %v7352_v3 = vmul.f32 %v14582_v15, %v13534_v12  ;;  %v15171_v15 = vld [vmem:[#allocation44_spill] sm:$0xff] }
0x111f   :  { %v7339_v8 = vmul.f32 %v14580_v38, %v13589_v52 }
0x1120   :  { %v7338_v24 = vadd.f32 %v7337_v10, %v7325_v18  ;;  %v7349_v16 = vrot.slane %v7347_v35, 2  ;;  %v7354_v34 = vrot.slane %v7352_v3, 2  ;;  %v15172_v10 = vld [vmem:[#allocation30_spill] sm:$0xff]  ;;  %v15173_v18 = vld [vmem:[#allocation32_spill] sm:$0xff] }
0x1121   :  { %v7340_v49 = vadd.f32 %v7339_v8, %v14586_v9  ;;  %v15174_v9 = vld [vmem:[#allocation29_spill] sm:$0xff]  ;;  %v15175_v35 = vld [vmem:[#allocation34_spill] sm:$0xff] }
0x1122   :  { %v14590_v40 = vadd.f32 %v7349_v16, %v7338_v24  ;;  %v15176_v24 = vld [vmem:[#allocation31_spill] sm:$0xff]  ;;  %v15177_v16 = vld [vmem:[#allocation36_spill] sm:$0xff] }
0x1123   :  { %v7356_v38 = vadd.f32 %v7354_v34, %v7340_v49 }
0x1124   :  { %11620 = vmatmul.mubr.msk.f32.vlgmr.msra.gmra.mrb[84].mxu1 %vm699_vm2, %v14590_v40  ;;  %11676 = vmatmul.mubr.msk.f32.vlgmr.msra.gmra.mrb[52].mxu0 %vm699_vm2, %v14590_v40 }
0x1125   :  { %12470 = vmatpush3.bf16.msra.mxu1 %v13906_v53  ;;  %12503 = vmatpush3.bf16.msra.mxu0 %v13908_v1 }
0x1126   :  { %12471 = vmatprep.subr.bf16.mxu1 %v15129_v6  ;;  %12504 = vmatprep.subr.bf16.mxu0 %v15129_v6 }
0x1127   :  { %11654 = vmatprep.mubr.msk.f32.mxu1 %vm13195_vm1, %v15127_v46  ;;  %11710 = vmatprep.mubr.msk.f32.mxu0 %vm13195_vm1, %v15127_v46 }
0x1129   :  { %12473 = vmatpush3.bf16.msra.mxu1 %v13922_v51  ;;  %12506 = vmatpush3.bf16.msra.mxu0 %v13924_v62 }
0x112a   :  { %12474 = vmatprep.subr.bf16.mxu1 %v15129_v6  ;;  %12507 = vmatprep.subr.bf16.mxu0 %v15129_v6 }
0x112d   :  { %12476 = vmatpush3.bf16.msra.mxu1 %v13938_v30  ;;  %12509 = vmatpush3.bf16.msra.mxu0 %v13940_v11 }
0x112e   :  { %12477 = vmatprep.subr.bf16.mxu1 %v15129_v6  ;;  %12510 = vmatprep.subr.bf16.mxu0 %v15129_v6 }
0x1131   :  { %12479 = vmatpush3.bf16.msra.mxu1 %v13950_v26  ;;  %12512 = vmatpush3.bf16.msra.mxu0 %v13952_v31 }
0x1132   :  { %12480 = vmatprep.subr.bf16.mxu1 %v15129_v6  ;;  %12513 = vmatprep.subr.bf16.mxu0 %v15129_v6 }
0x1135   :  { %12482 = vmatpush3.bf16.msra.mxu1 %v13966_v37  ;;  %12515 = vmatpush3.bf16.msra.mxu0 %v13968_v42 }
0x1136   :  { %12483 = vmatprep.subr.bf16.mxu1 %v15129_v6  ;;  %12516 = vmatprep.subr.bf16.mxu0 %v15129_v6 }
0x1139   :  { %12485 = vmatpush3.bf16.msra.mxu1 %v13982_v61  ;;  %12518 = vmatpush3.bf16.msra.mxu0 %v13984_v63 }
0x113a   :  { %12486 = vmatprep.subr.bf16.mxu1 %v15129_v6  ;;  %12519 = vmatprep.subr.bf16.mxu0 %v15129_v6 }
0x113d   :  { %12488 = vmatpush3.bf16.msra.mxu1 %v14006_v19  ;;  %12521 = vmatpush3.bf16.msra.mxu0 %v14008_v17 }
0x113e   :  { %12489 = vmatprep.subr.bf16.mxu1 %v15129_v6  ;;  %12522 = vmatprep.subr.bf16.mxu0 %v15129_v6 }
0x1141   :  { %12491 = vmatpush3.bf16.msra.mxu1 %v14028_v33  ;;  %12524 = vmatpush3.bf16.msra.mxu0 %v14030_v36 }
0x1142   :  { %12492 = vmatprep.subr.bf16.mxu1 %v15129_v6  ;;  %12525 = vmatprep.subr.bf16.mxu0 %v15129_v6 }
0x1170   :  { %v7068_v56 = vpop.xlane.xlu0 %7067 }
0x1171   :  { %v7069_v14 = vcvt.f32.s32 %v7068_v56  ;;  %v15183_v56 = vld [vmem:[#allocation38_spill] sm:$0xff] }
0x1173   :  { %v7072_v44 = vadd.s32 %v7071_v29, %v7069_v14  ;;  %v15184_v29 = vld [vmem:[#allocation39_spill] sm:$0xff]  ;;  %v15185_v14 = vld [vmem:[#allocation40_spill] sm:$0xff] }
0x1175   :  { %vm7073_vm13 = vcmp.eq.s32.totalorder %v13976_v60, %v7072_v44 }
0x1176   :  { %v10230_v5 = vsel %vm7073_vm13, 1.0, %v15127_v46 }
0x1177   :  { %v7092_v43 = vmul.f32 %v10230_v5, %v7091_v13  ;;  %v15187_v13 = vld [vmem:[#allocation42_spill] sm:$0xff] }
0x1179   :  { %v14644_v22 = vadd.f32 %v7092_v43, %v7089_v55 }
0x117b   :  { %11655 = vmatmul.mubr.f32.vlgmr.msra.gmra.mrb[84].mxu1 %v14644_v22  ;;  %11711 = vmatmul.mubr.f32.vlgmr.msra.gmra.mrb[52].mxu0 %v14644_v22 }
0x117c   :  { %12494 = vmatpush3.bf16.msra.mxu1 %v14047_v54  ;;  %12527 = vmatpush3.bf16.msra.mxu0 %v14045_v50 }
0x117d   :  { %11661 = vmatprep.mubr.msk.f32.mxu1 %vm13195_vm1, %v15127_v46  ;;  %11717 = vmatprep.mubr.msk.f32.mxu0 %vm13195_vm1, %v15127_v46 }
0x117e   :  { %12495 = vmatprep.subr.bf16.mxu1 %v15129_v6  ;;  %12528 = vmatprep.subr.bf16.mxu0 %v15129_v6 }
0x1183   :  { %11662 = vmatmul.mubr.msk.f32.vlgmr.msra.gmra.mrb[84].mxu1 %vm699_vm2, %v7356_v38  ;;  %11718 = vmatmul.mubr.msk.f32.vlgmr.msra.gmra.mrb[52].mxu0 %vm699_vm2, %v7356_v38 }
0x1184   :  { %12497 = vmatpush3.bf16.msra.mxu1 %v14071_v41  ;;  %12530 = vmatpush3.bf16.msra.mxu0 %v14069_v32 }
0x1185   :  { %11668 = vmatprep.mubr.msk.f32.mxu1 %vm13195_vm1, %v15127_v46  ;;  %11724 = vmatprep.mubr.msk.f32.mxu0 %vm13195_vm1, %v15127_v46 }
0x1186   :  { %12531 = vmatprep.subr.bf16.mxu1 %v15129_v6  ;;  %12558 = vmatprep.subr.bf16.mxu0 %v15129_v6 }
0x118b   :  { %11669 = vmatmul.mubr.msk.f32.vlgmr.msra.gmra.mrb[84].mxu1 %vm699_vm2, %v15171_v15  ;;  %11725 = vmatmul.mubr.msk.f32.vlgmr.msra.gmra.mrb[52].mxu0 %vm699_vm2, %v15171_v15 }
0x118c   :  { %12533 = vmatpush3.bf16.msra.mxu1 %v15172_v10  ;;  %12560 = vmatpush3.bf16.msra.mxu0 %v15173_v18 }
0x118d   :  { %11731 = vmatprep.mubr.msk.f32.mxu1 %vm13195_vm1, %v15127_v46  ;;  %12534 = vmatprep.subr.bf16.mxu1 %v15129_v6 }
0x118e   :  { %11773 = vmatprep.mubr.msk.f32.mxu0 %vm13195_vm1, %v15127_v46  ;;  %12561 = vmatprep.subr.bf16.mxu0 %v15129_v6 }
0x118f   :  { %11732 = vmatmul.mubr.msk.f32.vlgmr.msra.gmra.mrb[86].mxu1 %vm699_vm2, %v14590_v40  ;;  %11774 = vmatmul.mubr.msk.f32.vlgmr.msra.gmra.mrb[54].mxu0 %vm699_vm2, %v7356_v38 }
0x1190   :  { %12536 = vmatpush3.bf16.msra.mxu1 %v15174_v9  ;;  %12563 = vmatpush3.bf16.msra.mxu0 %v15175_v35 }
0x1191   :  { %12537 = vmatprep.subr.bf16.mxu1 %v15129_v6  ;;  %11780 = vmatprep.mubr.msk.f32.mxu0 %vm13195_vm1, %v15127_v46 }
0x1192   :  { %12564 = vmatprep.subr.bf16.mxu0 %v15129_v6  ;;  %11766 = vmatprep.mubr.msk.f32.mxu1 %vm13195_vm1, %v15127_v46 }
0x1193   :  { %11781 = vmatmul.mubr.msk.f32.vlgmr.msra.gmra.mrb[56].mxu0 %vm699_vm2, %v15171_v15 }
0x1194   :  { %12539 = vmatpush3.bf16.msra.mxu1 %v15176_v24  ;;  %12566 = vmatpush3.bf16.msra.mxu0 %v15177_v16 }
0x1195   :  { %12540 = vmatprep.subr.bf16.mxu1 %v15129_v6  ;;  %11787 = vmatprep.mubr.msk.f32.mxu0 %vm13195_vm1, %v15127_v46 }
0x1196   :  { %12570 = vmatprep.subr.bf16.mxu0 %v15129_v6 }
0x1197   :  { %11788 = vmatmul.mubr.msk.f32.vlgmr.msra.gmra.mrb[58].mxu0 %vm699_vm2, %v14590_v40  ;;  %v15182_v40 = vld [vmem:[#allocation37_spill] sm:$0xff] }
0x1198   :  { %12542 = vmatpush3.bf16.msra.mxu1 %v15178_v27  ;;  %12572 = vmatpush3.bf16.msra.mxu0 %v15179_v59 }
0x1199   :  { %12543 = vmatprep.subr.bf16.mxu1 %v15129_v6  ;;  %11801 = vmatprep.mubr.msk.f32.mxu0 %vm13195_vm1, %v15127_v46 }
0x119a   :  { %12597 = vmatprep.subr.bf16.mxu0 %v15129_v6 }
0x119b   :  { %11802 = vmatmul.mubr.msk.f32.vlgmr.msra.gmra.mrb[60].mxu0 %vm699_vm2, %v7356_v38 }
0x119c   :  { %12545 = vmatpush3.bf16.msra.mxu1 %v15180_v21  ;;  %12599 = vmatpush3.bf16.msra.mxu0 %v15181_v58  ;;  %v15188_v21 = vld [vmem:[#allocation43_spill] sm:$0xff] }
0x119d   :  { %12546 = vmatprep.subr.bf16.mxu1 %v15129_v6  ;;  %11843 = vmatprep.mubr.msk.f32.mxu0 %vm13195_vm1, %v15127_v46 }
0x119e   :  { %12600 = vmatprep.subr.bf16.mxu0 %v15129_v6 }
0x11a0   :  { %12548 = vmatpush3.bf16.msra.mxu1 %v15182_v40 }
0x11a1   :  { %12549 = vmatprep.subr.bf16.mxu1 %v15129_v6 }
0x11a4   :  { %12551 = vmatpush3.bf16.msra.mxu1 %v15183_v56 }
0x11a5   :  { %12552 = vmatprep.subr.bf16.mxu1 %v15129_v6 }
0x11a8   :  { %12554 = vmatpush3.bf16.msra.mxu1 %v15184_v29 }
0x11a9   :  { %12555 = vmatprep.subr.bf16.mxu1 %v15129_v6 }
0x11ac   :  { %12557 = vmatpush3.bf16.msra.mxu1 %v15185_v14 }
0x11ad   :  { %12567 = vmatprep.subr.bf16.mxu1 %v15129_v6 }
0x11af   :  { %11767 = vmatmul.mubr.f32.vlgmr.msra.gmra.mrb[88].mxu1 %v14644_v22 }
0x11b0   :  { %12569 = vmatpush3.bf16.msra.mxu1 %v15186_v23  ;;  %11794 = vmatprep.mubr.msk.f32.mxu1 %vm13195_vm1, %v15127_v46 }
0x11b1   :  { %12573 = vmatprep.subr.bf16.mxu1 %v15129_v6 }
0x125e   :  { %v7641_v47 = vpop.f32.mrb[84].mxu1  ;;  %v7930_v44 = vpop.f32.mrb[52].mxu0 }
0x125f   :  { %v12741_v55 = vadd.f32 %v15187_v13, %v7641_v47  ;;  %v11670_v5 = vpop.f32.mrb[85].mxu1  ;;  %v11726_v43 = vpop.f32.mrb[53].mxu0  ;;  %v12743_v59 = vadd.f32 %v15188_v21, %v7930_v44  ;;  %v14737_v44 = vld [vmem:[%s15118_s23 + $0x2] ss:$0 sm:$0xff] }
0x1260   :  { %v14733_v5 = vld [vmem:[%s15119_s26 + $0x2] ss:$0 sm:$0xff]  ;;  %15190 = vst [vmem:[#allocation44_spill] sm:$0xff] %v14737_v44 }
0x1261   :  { %v10238_v3 = vmul.f32 -1.442695, %v12741_v55  ;;  %v10242_v55 = vmul.f32 -1.442695, %v12743_v59  ;;  %15189 = vst [vmem:[#allocation55_spill] sm:$0xff] %v14733_v5 }
0x1262   :  { %v8007_v8 = vpop.f32.mrb[86].mxu1  ;;  %v8147_v49 = vpop.f32.mrb[54].mxu0 }
0x1263   :  { %13059 = vpow2.f32 %v10238_v3  ;;  %v11733_v34 = vpop.f32.mrb[87].mxu1  ;;  %v11775_v38 = vpop.f32.mrb[55].mxu0 }
0x1266   :  { %v8219_v58 = vpop.f32.mrb[56].mxu0 }
0x1267   :  { %v11782_v23 = vpop.f32.mrb[57].mxu0  ;;  %v8220_v43 = vadd.f32 %v14733_v5, %v8219_v58 }
0x126a   :  { %v8296_v14 = vpop.f32.mrb[58].mxu0 }
0x126b   :  { %v11789_v29 = vpop.f32.mrb[59].mxu0 }
0x126d   :  { %v13060_v56 = vpop.eup %13059 }
0x126e   :  { %v7649_v40 = vadd.f32 1.0, %v13060_v56  ;;  %v14730_v27 = vpop.f32.mrb[60].mxu0 }
0x126f   :  { %v11803_v47 = vpop.f32.mrb[61].mxu0 }
0x1270   :  { %13061 = vrcp.f32 %v7649_v40 }
0x1271   :  { %13063 = vpow2.f32 %v10242_v55 }
0x127a   :  { %v13062_v3 = vpop.eup %13061 }
0x127b   :  { %v8223_v34 = vmul.f32 %v13062_v3, %v8220_v43  ;;  %v13064_v23 = vpop.eup %13063  ;;  %v15198_v3 = vld [vmem:[#allocation53_spill] sm:$0xff] }
0x127c   :  { %v7938_v29 = vadd.f32 1.0, %v13064_v23  ;;  %v15200_v23 = vld [vmem:[#allocation28_spill] sm:$0xff] }
0x127e   :  { %13065 = vrcp.f32 %v7938_v29 }
0x1282   :  { %v8077_v38 = vpop.f32.mrb[88].mxu1 }
0x1283   :  { %v8078_v13 = vadd.f32 %v8077_v38, %v8007_v8  ;;  %v11768_v56 = vpop.f32.mrb[89].mxu1  ;;  %v15195_v8 = vld [vmem:[#allocation50_spill] sm:$0xff] }
0x1285   :  { %v8151_v16 = vadd.f32 %v8147_v49, %v8078_v13  ;;  %v15191_v13 = vld [vmem:[#allocation47_spill] sm:$0xff] }
0x1286   :  { %v15196_v49 = vld [vmem:[#allocation51_spill] sm:$0xff] }
0x1287   :  { %v8152_v47 = vadd.f32 %v14737_v44, %v8151_v16  ;;  %v15192_v16 = vld [vmem:[#allocation27_spill] sm:$0xff] }
0x1288   :  { %v13066_v59 = vpop.eup %13065 }
0x1289   :  { %v8224_v40 = vadd.f32 %v8223_v34, %v8152_v47  ;;  %v8226_v55 = vsub.f32 1.0, %v13066_v59  ;;  %v8228_v58 = vmul.f32 %v13066_v59, %v15171_v15  ;;  %v15193_v15 = vld [vmem:[#allocation48_spill] sm:$0xff]  ;;  %v15199_v34 = vld [vmem:[#allocation54_spill] sm:$0xff]  ;;  %v15201_v47 = vld [vmem:[#allocation25_spill] sm:$0xff] }
0x128b   :  { %13067 = vtanh.f32 %v8224_v40 }
0x1295   :  { %v13068_v21 = vpop.eup %13067 }
0x1296   :  { %v8227_v5 = vmul.f32 %v13068_v21, %v8226_v55  ;;  %v15194_v21 = vld [vmem:[#allocation49_spill] sm:$0xff] }
0x1298   :  { %v14741_v43 = vadd.f32 %v8228_v58, %v8227_v5  ;;  %v15197_v5 = vld [vmem:[#allocation52_spill] sm:$0xff] }
0x129a   :  { %11795 = vmatmul.mubr.msk.f32.vlgmr.msra.gmra.mrb[90].mxu1 %vm699_vm2, %v14741_v43  ;;  %11844 = vmatmul.mubr.msk.f32.vlgmr.msra.gmra.mrb[62].mxu0 %vm699_vm2, %v14741_v43 }
0x129b   :  { %12575 = vmatpush3.bf16.msra.mxu1 %v15191_v13  ;;  %11836 = vmatprep.mubr.msk.f32.mxu1 %vm13195_vm1, %v15127_v46 }
0x129c   :  { %12576 = vmatprep.subr.bf16.mxu1 %v15129_v6  ;;  %12602 = vmatpush3.bf16.msra.mxu0 %v15192_v16 }
0x129d   :  { %11850 = vmatprep.mubr.msk.f32.mxu0 %vm13195_vm1, %v15127_v46  ;;  %12603 = vmatprep.subr.bf16.mxu0 %v15129_v6 }
0x129f   :  { %12578 = vmatpush3.bf16.msra.mxu1 %v15193_v15 }
0x12a0   :  { %12579 = vmatprep.subr.bf16.mxu1 %v15129_v6 }
0x12a3   :  { %12581 = vmatpush3.bf16.msra.mxu1 %v15194_v21 }
0x12a4   :  { %12582 = vmatprep.subr.bf16.mxu1 %v15129_v6 }
0x12a7   :  { %12584 = vmatpush3.bf16.msra.mxu1 %v15195_v8 }
0x12a8   :  { %12585 = vmatprep.subr.bf16.mxu1 %v15129_v6 }
0x12ab   :  { %12587 = vmatpush3.bf16.msra.mxu1 %v15196_v49 }
0x12ac   :  { %12588 = vmatprep.subr.bf16.mxu1 %v15129_v6 }
0x12af   :  { %12590 = vmatpush3.bf16.msra.mxu1 %v15197_v5 }
0x12b0   :  { %12591 = vmatprep.subr.bf16.mxu1 %v15129_v6 }
0x12b3   :  { %12593 = vmatpush3.bf16.msra.mxu1 %v15198_v3  ;;  %v15202_v3 = vld [vmem:[#allocation26_spill] sm:$0xff] }
0x12b4   :  { %12594 = vmatprep.subr.bf16.mxu1 %v15129_v6 }
0x12b7   :  { %12596 = vmatpush3.bf16.msra.mxu1 %v15199_v34 }
0x12b8   :  { %12633 = vmatprep.subr.bf16.mxu1 %v15129_v6 }
0x12ba   :  { %11837 = vmatmul.mubr.f32.vlgmr.msra.gmra.mrb[92].mxu1 %v14644_v22 }
0x12bb   :  { %12635 = vmatpush3.bf16.msra.mxu1 %v15200_v23  ;;  %11906 = vmatprep.mubr.msk.f32.mxu1 %vm13195_vm1, %v15127_v46 }
0x12bc   :  { %12636 = vmatprep.subr.bf16.mxu1 %v15129_v6 }
0x136d   :  { %v8369_v38 = vpop.f32.mrb[90].mxu1  ;;  %v8627_v29 = vpop.f32.mrb[62].mxu0 }
0x136e   :  { %v8370_v56 = vadd.f32 %v8369_v38, %v8296_v14  ;;  %v8631_v40 = vadd.f32 %v8627_v29, %v15201_v47  ;;  %v8638_v59 = vrot.slane %v8627_v29, 6  ;;  %v8646_v55 = vrot.slane %v8627_v29, 4  ;;  %v11796_v58 = vpop.f32.mrb[91].mxu1  ;;  %v11845_v16 = vpop.f32.mrb[63].mxu0  ;;  %v15203_v14 = vld [vmem:[#allocation45_spill] sm:$0xff] }
0x136f   :  { %v8662_v5 = vadd.f32 %v8627_v29, %v15202_v3  ;;  %v8654_v16 = vrot.slane %v8627_v29, 2 }
0x1370   :  { %13069 = vtanh.f32 %v8631_v40  ;;  %v8640_v34 = vadd.f32 %v8638_v59, %v15201_v47  ;;  %v8648_v22 = vadd.f32 %v8646_v55, %v15201_v47  ;;  %v8443_v23 = vadd.f32 %v14730_v27, %v8370_v56 }
0x1372   :  { %13071 = vtanh.f32 %v8640_v34 }
0x1373   :  { %13073 = vtanh.f32 %v8648_v22  ;;  %v8668_v22 = vadd.f32 %v8638_v59, %v15202_v3 }
0x1374   :  { %13075 = vtanh.f32 %v8662_v5  ;;  %v8656_v5 = vadd.f32 %v8654_v16, %v15201_v47 }
0x1376   :  { %13077 = vtanh.f32 %v8656_v5 }
0x1377   :  { %13079 = vtanh.f32 %v8668_v22 }
0x137a   :  { %v13070_v49 = vpop.eup %13069 }
0x137b   :  { %v8633_v38 = vmul.f32 %v15203_v14, %v13070_v49 }
0x137c   :  { %v13072_v8 = vpop.eup %13071 }
0x137d   :  { %v13074_v21 = vpop.eup %13073  ;;  %v8634_v58 = vsel %vm4186_vm8, %v8633_v38, 0.0  ;;  %v8642_v40 = vmul.f32 %v15203_v14, %v13072_v8 }
0x137e   :  { %8635 = vadd.xlane.f32.xlu0 %v8634_v58  ;;  %v8650_v27 = vmul.f32 %v15203_v14, %v13074_v21  ;;  %v13076_v34 = vpop.eup %13075 }
0x137f   :  { %v8643_v55 = vsel %vm4196_vm6, %v8642_v40, 0.0  ;;  %v8664_v49 = vmul.f32 %v15203_v14, %v13076_v34  ;;  %v14790_v40 = vld [vmem:[%s13353_s4] ss:$0 sm:$0xff]  ;;  %s10251_s4 = sld [smem:[#allocation5 + $0x180]] }
0x1380   :  { %8644 = vadd.xlane.f32.xlu1 %v8643_v55  ;;  %v8651_v56 = vsel %vm4205_vm7, %v8650_v27, 0.0  ;;  %v13078_v58 = vpop.eup %13077  ;;  %15204 = vst [vmem:[#allocation30_spill] sm:$0xff] %v14790_v40 }
0x1381   :  { %v8665_v8 = vsel %vm4186_vm8, %v8664_v49, 0.0  ;;  %v8658_v3 = vmul.f32 %v15203_v14, %v13078_v58  ;;  %v13080_v59 = vpop.eup %13079 }
0x1383   :  { %v8659_v27 = vsel %vm4214_vm9, %v8658_v3, 0.0 }
0x1384   :  { %8652 = vadd.xlane.f32.xlu1 %v8651_v56 }
0x1388   :  { %8666 = vadd.xlane.f32.xlu1 %v8665_v8 }
0x138d   :  { %v8510_v29 = vpop.f32.mrb[92].mxu1 }
0x138e   :  { %v8514_v38 = vadd.f32 %v8510_v29, %v8443_v23  ;;  %v11838_v21 = vpop.f32.mrb[93].mxu1  ;;  %v8670_v23 = vmul.f32 %v15203_v14, %v13080_v59 }
0x1390   :  { %v8515_v47 = vadd.f32 %v14790_v40, %v8514_v38  ;;  %v8671_v34 = vsel %vm4196_vm6, %v8670_v23, 0.0 }
0x1392   :  { %8517 = vst [vmem:[#allocation7 + $0x6] sm:$0x3] %v8515_v47  ;;  %v8518_v16 = vsel %vm5583_vm0, %v8515_v47, -1e+30 }
0x1393   :  { %v8519_v55 = vsel %vm3791_vm3, %v8518_v16, -inf }
0x1394   :  { %8520 = vmax.xlane.f32.xlu0 %v8519_v55 }
0x1398   :  { %8660 = vadd.xlane.f32.xlu0 %v8659_v27 }
0x139c   :  { %8672 = vadd.xlane.f32.xlu0 %v8671_v34 }
0x140b   :  { %v8636_v56 = vpop.xlane.xlu0 %8635 }
0x140d   :  { %v8645_v5 = vpop.xlane.xlu1 %8644 }
0x140e   :  { %v8675_v22 = vrot.slane %v8645_v5, 2 }
0x1410   :  { %v8677_v38 = vmax.f32 %v8636_v56, %v8675_v22 }
0x1411   :  { %v8653_v49 = vpop.xlane.xlu1 %8652 }
0x1412   :  { %v8679_v29 = vrot.slane %v8653_v49, 4 }
0x1414   :  { %v8681_v47 = vmax.f32 %v8677_v38, %v8679_v29 }
0x1415   :  { %v8667_v23 = vpop.xlane.xlu1 %8666 }
0x1421   :  { %v8521_v8 = vpop.xlane.xlu0 %8520 }
0x1422   :  { %vm8522_vm7 = vcmp.eq.f32.partialorder %v8518_v16, %v8521_v8 }
0x1423   :  { %vm8523_vm8 = vmand %vm8522_vm7, %vm5583_vm0 }
0x1424   :  { %v8524_v21 = vsel %vm8523_vm8, %v13976_v60, 128 }
0x1425   :  { %v8661_v58 = vpop.xlane.xlu0 %8660  ;;  %v14804_v14 = vsel %vm3791_vm3, %v8524_v21, 2147483647 }
0x1426   :  { %v8683_v55 = vrot.slane %v8661_v58, 6  ;;  %v8527_v3 = vshra.s32 %v14804_v14, 16 }
0x1428   :  { %v8685_v59 = vmax.f32 %v8681_v47, %v8683_v55  ;;  %v14807_v27 = vcvt.s32.f32 %v8527_v3 }
0x1429   :  { %v8673_v34 = vpop.xlane.xlu0 %8672 }
0x142a   :  { %v8686_v16 = vmax.f32 %v8685_v59, %v8667_v23  ;;  %v8688_v8 = vrot.slane %v8673_v34, 2  ;;  %8530 = vmin.xlane.f32.xlu1 %v14807_v27 }
0x142c   :  { %v8690_v22 = vmax.f32 %v8686_v16, %v8688_v8 }
0x142e   :  { %v8695_v40 = vrot.slane %v8690_v22, 6  ;;  %v8700_v15 = vrot.slane %v8690_v22, 4  ;;  %v8705_v13 = vrot.slane %v8690_v22, 2  ;;  %v8691_v44 = vsub.f32 %v8636_v56, %v8690_v22 }
0x142f   :  { %v8710_v3 = vsub.f32 %v8667_v23, %v8690_v22 }
0x1430   :  { %v8697_v21 = vsub.f32 %v8645_v5, %v8695_v40  ;;  %v8702_v24 = vsub.f32 %v8653_v49, %v8700_v15  ;;  %v8707_v29 = vsub.f32 %v8661_v58, %v8705_v13  ;;  %v8692_v38 = vmul.f32 1.442695, %v8691_v44 }
0x1431   :  { %v8713_v55 = vsub.f32 %v8673_v34, %v8695_v40  ;;  %v8711_v18 = vmul.f32 1.442695, %v8710_v3 }
0x1432   :  { %v8698_v35 = vmul.f32 1.442695, %v8697_v21  ;;  %v8703_v9 = vmul.f32 1.442695, %v8702_v24  ;;  %v8708_v47 = vmul.f32 1.442695, %v8707_v29  ;;  %13081 = vpow2.f32 %v8692_v38 }
0x1433   :  { %v8714_v59 = vmul.f32 1.442695, %v8713_v55 }
0x1434   :  { %13083 = vpow2.f32 %v8698_v35 }
0x1435   :  { %13085 = vpow2.f32 %v8703_v9 }
0x1436   :  { %13087 = vpow2.f32 %v8708_v47 }
0x1437   :  { %13089 = vpow2.f32 %v8714_v59 }
0x1438   :  { %13091 = vpow2.f32 %v8711_v18 }
0x143c   :  { %v13082_v16 = vpop.eup %13081 }
0x143e   :  { %v13084_v8 = vpop.eup %13083 }
0x143f   :  { %v13086_v56 = vpop.eup %13085  ;;  %v8717_v5 = vrot.slane %v13084_v8, 2 }
0x1440   :  { %v13088_v15 = vpop.eup %13087  ;;  %v8721_v44 = vrot.slane %v13086_v56, 4 }
0x1441   :  { %v8719_v13 = vadd.f32 %v13082_v16, %v8717_v5  ;;  %v8725_v49 = vrot.slane %v13088_v15, 6  ;;  %v13090_v58 = vpop.eup %13089 }
0x1442   :  { %v13092_v34 = vpop.eup %13091  ;;  %v8730_v35 = vrot.slane %v13090_v58, 2 }
0x1443   :  { %v8723_v24 = vadd.f32 %v8721_v44, %v8719_v13  ;;  %v8526_v13 = vand.u32 65535, %v14804_v14 }
0x1445   :  { %v8727_v40 = vadd.f32 %v8725_v49, %v8723_v24  ;;  %v8528_v49 = vcvt.s32.f32 %v8526_v13 }
0x1447   :  { %v8728_v23 = vadd.f32 %v13092_v34, %v8727_v40 }
0x1449   :  { %v8732_v9 = vadd.f32 %v8730_v35, %v8728_v23 }
0x144b   :  { %13093 = vrcp.f32 %v8732_v9 }
0x1455   :  { %v13094_v22 = vpop.eup %13093 }
0x1456   :  { %v8735_v21 = vmul.f32 %v13094_v22, %v13082_v16  ;;  %v8744_v29 = vrot.slane %v13094_v22, 6  ;;  %v8762_v18 = vrot.slane %v13094_v22, 4  ;;  %v8780_v47 = vrot.slane %v13094_v22, 2 }
0x1457   :  { %v8798_v59 = vmul.f32 %v13094_v22, %v13092_v34 }
0x1458   :  { %8738 = vperm.xlu1 %12838, %v8735_v21   ;;  %v8746_v38 = vmul.f32 %v13084_v8, %v8744_v29  ;;  %v8764_v55 = vmul.f32 %v13086_v56, %v8762_v18  ;;  %v8782_v3 = vmul.f32 %v13088_v15, %v8780_v47  ;;  %v8808_v5 = vmul.f32 %v13090_v58, %v8744_v29 }
0x145a   :  { %8749 = vperm.xlu0 %12837, %v8746_v38  }
0x145c   :  { %8767 = vperm.xlu1 %12838, %v8764_v55  }
0x145e   :  { %8785 = vperm.xlu0 %12837, %v8782_v3  }
0x1460   :  { %8801 = vperm.xlu1 %12838, %v8798_v59  }
0x1462   :  { %8811 = vperm.xlu0 %12837, %v8808_v5  }
0x14b7   :  { %v14811_v44 = vpop.xlane.xlu1 %8530 }
0x14b8   :  { %vm8532_vm3 = vcmp.eq.f32.partialorder %v14807_v27, %v14811_v44 }
0x14b9   :  { %v8533_v16 = vsel %vm8532_vm3, %v8528_v49, inf }
0x14ba   :  { %8534 = vmin.xlane.f32.xlu1 %v8533_v16 }
0x14d7   :  { %v8739_v8 = vpop.permute.xlu1 %8738 }
0x14d8   :  { %v8741_v40 = vmul.f32 %v8739_v8, %v13514_v4  ;;  %v8742_v58 = vmul.f32 %v8739_v8, %v13799_v0 }
0x14d9   :  { %v8750_v24 = vpop.permute.xlu0 %8749 }
0x14da   :  { %v8752_v56 = vmul.f32 %v8750_v24, %v13569_v39  ;;  %v8757_v15 = vmul.f32 %v8750_v24, %v13748_v28 }
0x14db   :  { %v8768_v34 = vpop.permute.xlu1 %8767 }
0x14dc   :  { %v8754_v14 = vrot.slane %v8752_v56, 2  ;;  %v8759_v35 = vrot.slane %v8757_v15, 2  ;;  %v8770_v23 = vmul.f32 %v8768_v34, %v13621_v7  ;;  %v8775_v9 = vmul.f32 %v8768_v34, %v13696_v2 }
0x14dd   :  { %v8786_v27 = vpop.permute.xlu0 %8785 }
0x14de   :  { %v8756_v22 = vadd.f32 %v8754_v14, %v8741_v40  ;;  %v8761_v21 = vadd.f32 %v8759_v35, %v8742_v58  ;;  %v8772_v29 = vrot.slane %v8770_v23, 4  ;;  %v8777_v18 = vrot.slane %v8775_v9, 4  ;;  %v15218_v58 = vld [vmem:[#allocation42_spill] sm:$0xff] }
0x14df   :  { %v8788_v39 = vmul.f32 %v8786_v27, %v13671_v57  ;;  %v8793_v28 = vmul.f32 %v8786_v27, %v13641_v25  ;;  %v8802_v47 = vpop.permute.xlu1 %8801 }
0x14e0   :  { %v8774_v38 = vadd.f32 %v8772_v29, %v8756_v22  ;;  %v8779_v4 = vadd.f32 %v8777_v18, %v8761_v21  ;;  %v8804_v13 = vmul.f32 %v8802_v47, %v13726_v20  ;;  %v8806_v49 = vmul.f32 %v8802_v47, %v13589_v52  ;;  %v15219_v47 = vld [vmem:[#allocation43_spill] sm:$0xff] }
0x14e1   :  { %v8790_v0 = vrot.slane %v8788_v39, 6  ;;  %v8795_v55 = vrot.slane %v8793_v28, 6  ;;  %v8812_v3 = vpop.permute.xlu0 %8811  ;;  %v8551_v52 = vstv %s10252_s18  ;;  %v8537_v20 = vcvt.f32.s32 %v14811_v44  ;;  %v15217_v44 = vld [vmem:[#allocation41_spill] sm:$0xff] }
0x14e2   :  { %v8814_v59 = vmul.f32 %v8812_v3, %v13789_v45  ;;  %v8819_v7 = vmul.f32 %v8812_v3, %v13534_v12  ;;  %v8546_v12 = vstv %s10251_s4  ;;  %vm8552_vm0 = vcmp.eq.s32.totalorder %v13976_v60, %v8551_v52 }
0x14e3   :  { %v8792_v2 = vadd.f32 %v8790_v0, %v8774_v38  ;;  %v8797_v5 = vadd.f32 %v8795_v55, %v8779_v4  ;;  %vm8547_vm6 = vcmp.eq.s32.totalorder %v13976_v60, %v8546_v12  ;;  %vm8553_vm14 = vmand %vm4098_vm12, %vm8552_vm0 }
0x14e4   :  { %v8816_v16 = vrot.slane %v8814_v59, 2  ;;  %v8821_v57 = vrot.slane %v8819_v7, 2  ;;  %vm8548_vm9 = vmand %vm4092_vm10, %vm8547_vm6  ;;  %v15220_v7 = vld [vmem:[#allocation55_spill] sm:$0xff] }
0x14e5   :  { %v8805_v8 = vadd.f32 %v8804_v13, %v8792_v2  ;;  %v8807_v25 = vadd.f32 %v8806_v49, %v8797_v5  ;;  %v8549_v45 = vsel %vm8548_vm9, 1.0, %v15127_v46 }
0x14e7   :  { %v14827_v24 = vadd.f32 %v8816_v16, %v8805_v8  ;;  %v14829_v56 = vadd.f32 %v8821_v57, %v8807_v25 }
0x14e9   :  { %11851 = vmatmul.mubr.msk.f32.vlgmr.msra.gmra.mrb[64].mxu0 %vm699_vm2, %v14827_v24  ;;  %11907 = vmatmul.mubr.msk.f32.vlgmr.msra.gmra.mrb[94].mxu1 %vm699_vm2, %v14827_v24 }
0x14ea   :  { %12605 = vmatpush3.bf16.msra.mxu0 %v13906_v53  ;;  %12638 = vmatpush3.bf16.msra.mxu1 %v13908_v1  ;;  %v8538_v1 = vshll.u32 %v8537_v20, 16 }
0x14eb   :  { %12606 = vmatprep.subr.bf16.mxu0 %v15129_v6  ;;  %12639 = vmatprep.subr.bf16.mxu1 %v15129_v6 }
0x14ec   :  { %11885 = vmatprep.mubr.msk.f32.mxu0 %vm13195_vm1, %v15127_v46  ;;  %11941 = vmatprep.mubr.msk.f32.mxu1 %vm13195_vm1, %v15127_v46 }
0x14ee   :  { %12608 = vmatpush3.bf16.msra.mxu0 %v13922_v51  ;;  %12641 = vmatpush3.bf16.msra.mxu1 %v13924_v62  ;;  %v8554_v62 = vsel %vm8553_vm14, 1.0, %v8549_v45 }
0x14ef   :  { %12609 = vmatprep.subr.bf16.mxu0 %v15129_v6  ;;  %12642 = vmatprep.subr.bf16.mxu1 %v15129_v6 }
0x14f2   :  { %12611 = vmatpush3.bf16.msra.mxu0 %v13938_v30  ;;  %12644 = vmatpush3.bf16.msra.mxu1 %v13940_v11  ;;  %v8555_v30 = vstv %s8544_s0 }
0x14f3   :  { %12612 = vmatprep.subr.bf16.mxu0 %v15129_v6  ;;  %12645 = vmatprep.subr.bf16.mxu1 %v15129_v6 }
0x14f6   :  { %12614 = vmatpush3.bf16.msra.mxu0 %v13950_v26  ;;  %12647 = vmatpush3.bf16.msra.mxu1 %v13952_v31  ;;  %v8558_v26 = vstv %s8557_s5  ;;  %v8556_v31 = vmul.f32 %v8555_v30, %v8554_v62  ;;  %v15222_v30 = vld [vmem:[#allocation47_spill] sm:$0xff] }
0x14f7   :  { %12615 = vmatprep.subr.bf16.mxu0 %v15129_v6  ;;  %12648 = vmatprep.subr.bf16.mxu1 %v15129_v6 }
0x14fa   :  { %12617 = vmatpush3.bf16.msra.mxu0 %v13966_v37  ;;  %12650 = vmatpush3.bf16.msra.mxu1 %v13968_v42 }
0x14fb   :  { %12618 = vmatprep.subr.bf16.mxu0 %v15129_v6  ;;  %12651 = vmatprep.subr.bf16.mxu1 %v15129_v6 }
0x14fe   :  { %12620 = vmatpush3.bf16.msra.mxu0 %v13982_v61  ;;  %12653 = vmatpush3.bf16.msra.mxu1 %v13984_v63  ;;  %v15207_v63 = vld [vmem:[#allocation34_spill] sm:$0xff] }
0x14ff   :  { %12621 = vmatprep.subr.bf16.mxu0 %v15129_v6  ;;  %12654 = vmatprep.subr.bf16.mxu1 %v15129_v6 }
0x1502   :  { %12623 = vmatpush3.bf16.msra.mxu0 %v14006_v19  ;;  %12656 = vmatpush3.bf16.msra.mxu1 %v14008_v17  ;;  %v15208_v19 = vld [vmem:[#allocation31_spill] sm:$0xff]  ;;  %v15209_v17 = vld [vmem:[#allocation36_spill] sm:$0xff] }
0x1503   :  { %12624 = vmatprep.subr.bf16.mxu0 %v15129_v6  ;;  %12657 = vmatprep.subr.bf16.mxu1 %v15129_v6 }
0x1506   :  { %12626 = vmatpush3.bf16.msra.mxu0 %v14028_v33  ;;  %12659 = vmatpush3.bf16.msra.mxu1 %v14030_v36  ;;  %v15210_v33 = vld [vmem:[#allocation33_spill] sm:$0xff]  ;;  %v15211_v36 = vld [vmem:[#allocation46_spill] sm:$0xff] }
0x1507   :  { %12627 = vmatprep.subr.bf16.mxu0 %v15129_v6  ;;  %12660 = vmatprep.subr.bf16.mxu1 %v15129_v6 }
0x1547   :  { %v8535_v53 = vpop.xlane.xlu1 %8534 }
0x1548   :  { %v8536_v51 = vcvt.f32.s32 %v8535_v53 }
0x154a   :  { %v8539_v11 = vadd.s32 %v8538_v1, %v8536_v51 }
0x154c   :  { %vm8540_vm15 = vcmp.eq.s32.totalorder %v13976_v60, %v8539_v11  ;;  %v15205_v60 = vld [vmem:[#allocation32_spill] sm:$0xff] }
0x154d   :  { %v10249_v37 = vsel %vm8540_vm15, 1.0, %v15127_v46  ;;  %v15223_v11 = vld [vmem:[#allocation48_spill] sm:$0xff] }
0x154e   :  { %v8559_v42 = vmul.f32 %v10249_v37, %v8558_v26  ;;  %v15224_v26 = vld [vmem:[#allocation49_spill] sm:$0xff]  ;;  %v15227_v37 = vld [vmem:[#allocation52_spill] sm:$0xff] }
0x1550   :  { %v14881_v61 = vadd.f32 %v8559_v42, %v8556_v31  ;;  %v15225_v31 = vld [vmem:[#allocation50_spill] sm:$0xff] }
0x1551   :  { %v15229_v42 = vld [vmem:[#allocation54_spill] sm:$0xff] }
0x1552   :  { %11886 = vmatmul.mubr.f32.vlgmr.msra.gmra.mrb[64].mxu0 %v14881_v61  ;;  %11942 = vmatmul.mubr.f32.vlgmr.msra.gmra.mrb[94].mxu1 %v14881_v61 }
0x1553   :  { %12629 = vmatpush3.bf16.msra.mxu0 %v14047_v54  ;;  %12662 = vmatpush3.bf16.msra.mxu1 %v14045_v50  ;;  %v15212_v50 = vld [vmem:[#allocation35_spill] sm:$0xff]  ;;  %v15213_v54 = vld [vmem:[#allocation37_spill] sm:$0xff] }
0x1554   :  { %11892 = vmatprep.mubr.msk.f32.mxu0 %vm13195_vm1, %v15127_v46  ;;  %11948 = vmatprep.mubr.msk.f32.mxu1 %vm13195_vm1, %v15127_v46 }
0x1555   :  { %12630 = vmatprep.subr.bf16.mxu0 %v15129_v6  ;;  %12663 = vmatprep.subr.bf16.mxu1 %v15129_v6 }
0x155a   :  { %11893 = vmatmul.mubr.msk.f32.vlgmr.msra.gmra.mrb[64].mxu0 %vm699_vm2, %v14829_v56  ;;  %11949 = vmatmul.mubr.msk.f32.vlgmr.msra.gmra.mrb[94].mxu1 %vm699_vm2, %v14829_v56 }
0x155b   :  { %12632 = vmatpush3.bf16.msra.mxu0 %v14071_v41  ;;  %12665 = vmatpush3.bf16.msra.mxu1 %v14069_v32  ;;  %v15214_v32 = vld [vmem:[#allocation38_spill] sm:$0xff]  ;;  %v15215_v41 = vld [vmem:[#allocation39_spill] sm:$0xff] }
0x155c   :  { %11899 = vmatprep.mubr.msk.f32.mxu0 %vm13195_vm1, %v15127_v46  ;;  %11955 = vmatprep.mubr.msk.f32.mxu1 %vm13195_vm1, %v15127_v46 }
0x155d   :  { %12666 = vmatprep.subr.bf16.mxu0 %v15129_v6  ;;  %12693 = vmatprep.subr.bf16.mxu1 %v15129_v6 }
0x1562   :  { %11900 = vmatmul.mubr.msk.f32.vlgmr.msra.gmra.mrb[64].mxu0 %vm699_vm2, %v14741_v43  ;;  %11956 = vmatmul.mubr.msk.f32.vlgmr.msra.gmra.mrb[94].mxu1 %vm699_vm2, %v14741_v43 }
0x1563   :  { %12668 = vmatpush3.bf16.msra.mxu0 %v15172_v10  ;;  %12695 = vmatpush3.bf16.msra.mxu1 %v15205_v60  ;;  %v15216_v10 = vld [vmem:[#allocation40_spill] sm:$0xff] }
0x1564   :  { %11962 = vmatprep.mubr.msk.f32.mxu0 %vm13195_vm1, %v15127_v46  ;;  %12669 = vmatprep.subr.bf16.mxu0 %v15129_v6 }
0x1565   :  { %12004 = vmatprep.mubr.msk.f32.mxu1 %vm13195_vm1, %v15127_v46  ;;  %12696 = vmatprep.subr.bf16.mxu1 %v15129_v6 }
0x1566   :  { %11963 = vmatmul.mubr.msk.f32.vlgmr.msra.gmra.mrb[66].mxu0 %vm699_vm2, %v14827_v24  ;;  %12005 = vmatmul.mubr.msk.f32.vlgmr.msra.gmra.mrb[96].mxu1 %vm699_vm2, %v14829_v56 }
0x1567   :  { %12671 = vmatpush3.bf16.msra.mxu0 %v15206_v48  ;;  %12698 = vmatpush3.bf16.msra.mxu1 %v15207_v63 }
0x1568   :  { %12672 = vmatprep.subr.bf16.mxu0 %v15129_v6  ;;  %12011 = vmatprep.mubr.msk.f32.mxu1 %vm13195_vm1, %v15127_v46 }
0x1569   :  { %12699 = vmatprep.subr.bf16.mxu1 %v15129_v6  ;;  %11997 = vmatprep.mubr.msk.f32.mxu0 %vm13195_vm1, %v15127_v46 }
0x156a   :  { %12012 = vmatmul.mubr.msk.f32.vlgmr.msra.gmra.mrb[98].mxu1 %vm699_vm2, %v14741_v43 }
0x156b   :  { %12674 = vmatpush3.bf16.msra.mxu0 %v15208_v19  ;;  %12701 = vmatpush3.bf16.msra.mxu1 %v15209_v17 }
0x156c   :  { %12675 = vmatprep.subr.bf16.mxu0 %v15129_v6  ;;  %12018 = vmatprep.mubr.msk.f32.mxu1 %vm13195_vm1, %v15127_v46 }
0x156d   :  { %12705 = vmatprep.subr.bf16.mxu1 %v15129_v6 }
0x156e   :  { %12019 = vmatmul.mubr.msk.f32.vlgmr.msra.gmra.mrb[100].mxu1 %vm699_vm2, %v14827_v24 }
0x156f   :  { %12677 = vmatpush3.bf16.msra.mxu0 %v15210_v33  ;;  %12707 = vmatpush3.bf16.msra.mxu1 %v15211_v36 }
0x1570   :  { %12678 = vmatprep.subr.bf16.mxu0 %v15129_v6  ;;  %12032 = vmatprep.mubr.msk.f32.mxu1 %vm13195_vm1, %v15127_v46 }
0x1572   :  { %12033 = vmatmul.mubr.msk.f32.vlgmr.msra.gmra.mrb[102].mxu1 %vm699_vm2, %v14829_v56  ;;  %v15221_v56 = vld [vmem:[#allocation44_spill] sm:$0xff] }
0x1573   :  { %12680 = vmatpush3.bf16.msra.mxu0 %v15212_v50  ;;  %v15230_v50 = vld [vmem:[#allocation30_spill] sm:$0xff] }
0x1574   :  { %12681 = vmatprep.subr.bf16.mxu0 %v15129_v6 }
0x1577   :  { %12683 = vmatpush3.bf16.msra.mxu0 %v15213_v54 }
0x1578   :  { %12684 = vmatprep.subr.bf16.mxu0 %v15129_v6 }
0x157b   :  { %12686 = vmatpush3.bf16.msra.mxu0 %v15214_v32 }
0x157c   :  { %12687 = vmatprep.subr.bf16.mxu0 %v15129_v6 }
0x157f   :  { %12689 = vmatpush3.bf16.msra.mxu0 %v15215_v41 }
0x1580   :  { %12690 = vmatprep.subr.bf16.mxu0 %v15129_v6 }
0x1583   :  { %12692 = vmatpush3.bf16.msra.mxu0 %v15216_v10 }
0x1584   :  { %12702 = vmatprep.subr.bf16.mxu0 %v15129_v6 }
0x1586   :  { %11998 = vmatmul.mubr.f32.vlgmr.msra.gmra.mrb[68].mxu0 %v14881_v61 }
0x1587   :  { %12704 = vmatpush3.bf16.msra.mxu0 %v15217_v44  ;;  %12025 = vmatprep.mubr.msk.f32.mxu0 %vm13195_vm1, %v15127_v46 }
0x1588   :  { %12708 = vmatprep.subr.bf16.mxu0 %v15129_v6 }
0x1635   :  { %v9108_v15 = vpop.f32.mrb[64].mxu0  ;;  %v9397_v40 = vpop.f32.mrb[94].mxu1 }
0x1636   :  { %v12745_v34 = vadd.f32 %v15218_v58, %v9108_v15  ;;  %v11901_v14 = vpop.f32.mrb[65].mxu0  ;;  %v11957_v35 = vpop.f32.mrb[95].mxu1  ;;  %v12747_v0 = vadd.f32 %v15219_v47, %v9397_v40 }
0x1638   :  { %v10257_v23 = vmul.f32 -1.442695, %v12745_v34  ;;  %v10261_v59 = vmul.f32 -1.442695, %v12747_v0 }
0x1639   :  { %v9474_v9 = vpop.f32.mrb[66].mxu0  ;;  %v9614_v27 = vpop.f32.mrb[96].mxu1 }
0x163a   :  { %13095 = vpow2.f32 %v10257_v23  ;;  %v11964_v22 = vpop.f32.mrb[67].mxu0  ;;  %v12006_v21 = vpop.f32.mrb[97].mxu1 }
0x163d   :  { %v9686_v29 = vpop.f32.mrb[98].mxu1 }
0x163e   :  { %v12013_v18 = vpop.f32.mrb[99].mxu1  ;;  %v9687_v2 = vadd.f32 %v15220_v7, %v9686_v29 }
0x1641   :  { %v9763_v39 = vpop.f32.mrb[100].mxu1 }
0x1642   :  { %v12020_v28 = vpop.f32.mrb[101].mxu1 }
0x1644   :  { %v13096_v38 = vpop.eup %13095 }
0x1645   :  { %v9116_v4 = vadd.f32 1.0, %v13096_v38  ;;  %v9906_v55 = vpop.f32.mrb[102].mxu1 }
0x1646   :  { %v12034_v3 = vpop.f32.mrb[103].mxu1 }
0x1647   :  { %13097 = vrcp.f32 %v9116_v4 }
0x1648   :  { %13099 = vpow2.f32 %v10261_v59 }
0x1651   :  { %v13098_v5 = vpop.eup %13097 }
0x1652   :  { %v9690_v13 = vmul.f32 %v13098_v5, %v9687_v2  ;;  %v13100_v49 = vpop.eup %13099 }
0x1653   :  { %v9405_v57 = vadd.f32 1.0, %v13100_v49 }
0x1655   :  { %13101 = vrcp.f32 %v9405_v57 }
0x1659   :  { %v9544_v16 = vpop.f32.mrb[68].mxu0 }
0x165a   :  { %v9545_v8 = vadd.f32 %v9544_v16, %v9474_v9  ;;  %v11999_v25 = vpop.f32.mrb[69].mxu0 }
0x165c   :  { %v9618_v24 = vadd.f32 %v9614_v27, %v9545_v8 }
0x165e   :  { %v9619_v12 = vadd.f32 %v15221_v56, %v9618_v24 }
0x165f   :  { %v13102_v20 = vpop.eup %13101 }
0x1660   :  { %v9691_v52 = vadd.f32 %v9690_v13, %v9619_v12  ;;  %v9693_v45 = vsub.f32 1.0, %v13102_v20  ;;  %v9695_v51 = vmul.f32 %v13102_v20, %v14741_v43  ;;  %v15226_v43 = vld [vmem:[#allocation51_spill] sm:$0xff] }
0x1662   :  { %13103 = vtanh.f32 %v9691_v52 }
0x166c   :  { %v13104_v53 = vpop.eup %13103 }
0x166d   :  { %v9694_v1 = vmul.f32 %v13104_v53, %v9693_v45 }
0x166f   :  { %v9696_v62 = vadd.f32 %v9695_v51, %v9694_v1 }
0x1671   :  { %12026 = vmatmul.mubr.msk.f32.vlgmr.msra.gmra.mrb[70].mxu0 %vm699_vm2, %v9696_v62 }
0x1672   :  { %12710 = vmatpush3.bf16.msra.mxu0 %v15222_v30  ;;  %12067 = vmatprep.mubr.msk.f32.mxu0 %vm13195_vm1, %v15127_v46  ;;  %v15228_v46 = vld [vmem:[#allocation53_spill] sm:$0xff] }
0x1673   :  { %12711 = vmatprep.subr.bf16.mxu0 %v15129_v6 }
0x1676   :  { %12713 = vmatpush3.bf16.msra.mxu0 %v15223_v11 }
0x1677   :  { %12714 = vmatprep.subr.bf16.mxu0 %v15129_v6 }
0x167a   :  { %12716 = vmatpush3.bf16.msra.mxu0 %v15224_v26 }
0x167b   :  { %12717 = vmatprep.subr.bf16.mxu0 %v15129_v6 }
0x167e   :  { %12719 = vmatpush3.bf16.msra.mxu0 %v15225_v31 }
0x167f   :  { %12720 = vmatprep.subr.bf16.mxu0 %v15129_v6 }
0x1682   :  { %12722 = vmatpush3.bf16.msra.mxu0 %v15226_v43 }
0x1683   :  { %12723 = vmatprep.subr.bf16.mxu0 %v15129_v6 }
0x1686   :  { %12725 = vmatpush3.bf16.msra.mxu0 %v15227_v37 }
0x1687   :  { %12726 = vmatprep.subr.bf16.mxu0 %v15129_v6 }
0x168a   :  { %12728 = vmatpush3.bf16.msra.mxu0 %v15228_v46 }
0x168b   :  { %12729 = vmatprep.subr.bf16.mxu0 %v15129_v6 }
0x168e   :  { %12731 = vmatpush3.bf16.msra.mxu0 %v15229_v42 }
0x1691   :  { %12068 = vmatmul.mubr.f32.vlgmr.msra.gmra.mrb[72].mxu0 %v14881_v61 }
0x1744   :  { %v9836_v60 = vpop.f32.mrb[70].mxu0 }
0x1745   :  { %v9837_v48 = vadd.f32 %v9836_v60, %v9763_v39  ;;  %v12027_v63 = vpop.f32.mrb[71].mxu0 }
0x1747   :  { %v9910_v19 = vadd.f32 %v9906_v55, %v9837_v48 }
0x1764   :  { %v9977_v17 = vpop.f32.mrb[72].mxu0 }
0x1765   :  { %v9981_v33 = vadd.f32 %v9977_v17, %v9910_v19  ;;  %v12069_v36 = vpop.f32.mrb[73].mxu0 }
0x1767   :  { %v9982_v54 = vadd.f32 %v15230_v50, %v9981_v33 }
0x1769   :  { %9984 = vst [vmem:[#allocation7 + $0x8] sm:$0x3] %v9982_v54 }
0x176a   :  { %13144 = shalt.err (!%p13141_p0)
}
0x176b   :  { %s13145_s21 = scalar_lea.hbm %s13358_s6, 160 }
0x176c   :  { %p13146_p1 = scmp.ne.s32.totalorder %s13358_s6, %s13145_s21  ;;  %p13149_p2 = scmp.lt.u32.totalorder %s13145_s21, %s13358_s6 }
0x176e   :  { %p13151_p3 = pnand %p13149_p2, %p13146_p1 }
0x1770   :  { %13154 = shalt.err (!%p13151_p3)
}
0x1771   :  { %s13198_s25 = smov 32   ;;  %s13199_s29 = smov 2  }
0x1772   :  { %9996 = dma.vmem_to_hbm [thread:$0]  %s9991_s13, 160, %s13358_s6, [#allocation3], %s13198_s25, %s13198_s25, %s13199_s29  }
0x1773   :  { %13159 = dma.done.wait [#allocation3], 160  }
0x1774   :  { %13160 = vsyncadd [#allocation3], 4294967136 }
0x1775   :  { %10000 = vsyncpa [#allocation3], 1 }
0x1776   :  { %10001 = vsyncpa [#allocation4], 1 }
0x1777   :  { %10002 = vsyncpa [#allocation6], 1 }

</bundles_post_ra>
